<compile_context>
chip_gen: v6e
topology: v6e:2x2x1
jax: 0.10.0
libtpu: 0.0.40
codegen_flags: <defaults>
</compile_context>

<pallas_src>
import functools

import jax
import jax.numpy as jnp
from jax.experimental import pallas as pl
from jax.experimental.pallas import tpu as pltpu

BN_EPS = 1e-5


def _inception_a_kernel(x_ref, whead_ref, b1_ref, b23_ref, wb23_ref,
                        bb2_ref, bb3a_ref, wb3b_ref, bb3b_ref, b4_ref,
                        inv_ref, o_ref, p23, p3b, p4, *, plane, wp, g):
    """One image of the full Inception-A unit.

    x_ref:     (1, plane, 384) bf16  flat zero-padded input (plane = padded (H+2)*(W+2))
    whead_ref: (384, 320) bf16 fused 1x1 weights [b1(96)|b2(64)|b3(64)|b4(96)]
    wb23_ref:  (3,3,128,192) bf16 block-diagonal fused branch2-3x3 / branch3-3x3a
    wb3b_ref:  (3,3,96,96)  bf16 branch3 second 3x3
    b*_ref:    (1, Cout) f32 folded BN biases
    inv_ref:   (plane, 1) f32  1/pool_count at interior pixels, 0 elsewhere
               (doubles as the interior mask: inv > 0  <=>  real HxW pixel)
    o_ref:     (1, plane, 384) bf16 flat padded output (border rows cropped by wrapper)
    p23/p3b/p4: (plane + 2*g, C) VMEM plane buffers with guard rows.
    """
    f32 = jnp.float32
    bf16 = jnp.bfloat16

    x = x_ref[0]                       # (plane, 384) bf16
    inv = inv_ref[...]                 # (plane, 1)  f32
    keep = inv > 0.0                   # interior mask (pad border & dead rows are 0)

    # Zero the guard rows so flat-shift taps landing outside the real plane are
    # deterministic zeros (those output rows are discarded anyway).
    for p in (p23, p3b, p4):
        zg = jnp.zeros((g, p.shape[1]), p.dtype)
        p[0:g, :] = zg
        p[g + plane:g + plane + g, :] = zg

    # ---------------- fused 1x1 heads: ONE (plane,384)x(384,320) dot ----------
    v = jnp.dot(x, whead_ref[...], preferred_element_type=f32)     # (plane, 320)

    # branch1 head -> final output channels [0:96]
    y1 = jnp.maximum(v[:, 0:96] + b1_ref[...], 0.0).astype(bf16)

    # branch2 + branch3 heads (64|64) -> shared 128-lane zero-padded bf16 plane
    t23 = jnp.where(keep, jnp.maximum(v[:, 96:224] + b23_ref[...], 0.0), 0.0)
    p23[g:g + plane, :] = t23.astype(bf16)

    # branch4 head (pre-pool, scale folded, bias/ReLU applied AFTER the pool).
    # Padded-border rows of x are exactly zero -> plane border already zero.
    p4[g:g + plane, :] = v[:, 224:320]

    # Flat-shift 3x3 conv: every tap is a contiguous sublane slice of the plane;
    # the first tap initializes the accumulator (no zero-broadcast).
    def conv3x3(src, w_ref):
        acc = None
        for di in range(3):
            for dj in range(3):
                off = g + (di - 1) * wp + (dj - 1)
                tap = jnp.dot(src[off:off + plane, :], w_ref[di, dj],
                              preferred_element_type=f32)
                acc = tap if acc is None else acc + tap
        return acc

    # ------ branch2 3x3 + branch3 first 3x3 as ONE block-diagonal conv -------
    a23 = conv3x3(p23, wb23_ref)                                    # (plane, 192) f32
    y2 = jnp.maximum(a23[:, 0:96] + bb2_ref[...], 0.0).astype(bf16)
    t3b = jnp.where(keep, jnp.maximum(a23[:, 96:192] + bb3a_ref[...], 0.0), 0.0)
    p3b[g:g + plane, :] = t3b.astype(bf16)

    # ---------------- branch3 second 3x3 (96 -> 96) ---------------------------
    a3b = conv3x3(p3b, wb3b_ref)
    y3 = jnp.maximum(a3b + bb3b_ref[...], 0.0).astype(bf16)

    # ------ branch4: 3x3 avg-pool (count_include_pad=False) of folded 1x1 ----
    psum = None
    for di in range(3):
        for dj in range(3):
            off = g + (di - 1) * wp + (dj - 1)
            tap = p4[off:off + plane, :]
            psum = tap if psum is None else psum + tap
    y4 = jnp.maximum(psum * inv + b4_ref[...], 0.0).astype(bf16)

    # Single lane-dense, full-width 384-channel store (no masked slice stores).
    o_ref[0, :, :] = jnp.concatenate([y1, y2, y3, y4], axis=-1)


def _fold_conv(p, eps):
    """Fold BN (inference) into conv: bf16 weights + (1, Cout) f32 bias."""
    w_, gamma, beta, mean, var = p
    scale = gamma / jnp.sqrt(var + eps)
    wf = (w_ * scale).astype(jnp.bfloat16)                  # scale folds into Cout
    bias = (beta - mean * scale).reshape(1, -1).astype(jnp.float32)
    return wf, bias


def inception_a_unit(x_nchw, params, eps):
    """InceptionAUnit forward.  Input NCHW (N, 384, H, W) -> output NCHW (N, 384, H, W)."""
    x = jnp.transpose(x_nchw, (0, 2, 3, 1))                 # NCHW -> NHWC
    n, h, w, cin = x.shape
    hp, wp = h + 2, w + 2
    plane = hp * wp
    plane_pad = ((plane + 7) // 8) * 8                      # sublane-aligned row count
    g = ((wp + 1 + 7) // 8) * 8                             # guard rows (>= wp+1, aligned)

    # Flat zero-padded input plane, bf16 MXU operand (dead tail rows are zero).
    x_flat = jnp.pad(x, ((0, 0), (1, 1), (1, 1), (0, 0))).reshape(n, plane, cin)
    x_flat = jnp.pad(x_flat, ((0, 0), (0, plane_pad - plane), (0, 0))).astype(jnp.bfloat16)

    w1, b1 = _fold_conv(params['b1'], eps)
    w2, b2 = _fold_conv(params['b2_1'], eps)
    wb2, bb2 = _fold_conv(params['b2_2'], eps)
    w3, b3 = _fold_conv(params['b3_1'], eps)
    wb3a, bb3a = _fold_conv(params['b3_2'], eps)
    wb3b, bb3b = _fold_conv(params['b3_3'], eps)
    w4, b4 = _fold_conv(params['b4'], eps)

    # Fused 1x1 head RHS: [branch1 | branch2 | branch3 | branch4] -> (384, 320).
    w_head = jnp.concatenate(
        [w1.reshape(cin, 96), w2.reshape(cin, 64),
         w3.reshape(cin, 64), w4.reshape(cin, 96)], axis=1)
    b23 = jnp.concatenate([b2, b3], axis=1)                 # (1, 128)

    # Block-diagonal weight fusing branch2's 3x3 with branch3's first 3x3.
    wb23 = jnp.zeros((3, 3, 128, 192), jnp.bfloat16)
    wb23 = wb23.at[:, :, 0:64, 0:96].set(wb2)
    wb23 = wb23.at[:, :, 64:128, 96:192].set(wb3a)

    # Reciprocal pool-count map (count_include_pad=False); 0 outside the real
    # HxW interior -> also serves as the interior mask inside the kernel.
    yy = jnp.arange(hp, dtype=jnp.float32).reshape(hp, 1)
    xx = jnp.arange(wp, dtype=jnp.float32).reshape(1, wp)
    interior = ((yy >= 1) & (yy <= h) & (xx >= 1) & (xx <= w)).astype(jnp.float32)
    rcnt = 3.0 - (yy == 1).astype(jnp.float32) - (yy == h).astype(jnp.float32)
    ccnt = 3.0 - (xx == 1).astype(jnp.float32) - (xx == w).astype(jnp.float32)
    inv_cnt = (interior / (rcnt * ccnt)).reshape(plane, 1)
    inv_cnt = jnp.pad(inv_cnt, ((0, plane_pad - plane), (0, 0)))

    kernel = functools.partial(_inception_a_kernel, plane=plane_pad, wp=wp, g=g)
    rep2 = lambda b: (0, 0)
    rep4 = lambda b: (0, 0, 0, 0)

    out_flat = pl.pallas_call(
        kernel,
        out_shape=jax.ShapeDtypeStruct((n, plane_pad, 384), jnp.bfloat16),
        grid=(n,),
        in_specs=[
            pl.BlockSpec((1, plane_pad, cin), lambda b: (b, 0, 0)),   # x
            pl.BlockSpec((cin, 320), rep2),                           # fused 1x1 heads
            pl.BlockSpec((1, 96), rep2),                              # branch1 bias
            pl.BlockSpec((1, 128), rep2),                             # branch2|3 head bias
            pl.BlockSpec((3, 3, 128, 192), rep4),                     # block-diag 3x3
            pl.BlockSpec((1, 96), rep2),                              # branch2 3x3 bias
            pl.BlockSpec((1, 96), rep2),                              # branch3 3x3a bias
            pl.BlockSpec((3, 3, 96, 96), rep4),                       # branch3 3x3b weight
            pl.BlockSpec((1, 96), rep2),                              # branch3 3x3b bias
            pl.BlockSpec((1, 96), rep2),                              # branch4 bias
            pl.BlockSpec((plane_pad, 1), rep2),                       # 1/pool-count map
        ],
        out_specs=pl.BlockSpec((1, plane_pad, 384), lambda b: (b, 0, 0)),
        scratch_shapes=[
            pltpu.VMEM((plane_pad + 2 * g, 128), jnp.bfloat16),  # branch2|3 head plane
            pltpu.VMEM((plane_pad + 2 * g, 96), jnp.bfloat16),   # branch3 mid plane
            pltpu.VMEM((plane_pad + 2 * g, 96), jnp.float32),    # branch4 pre-pool plane
        ],
        compiler_params=pltpu.CompilerParams(
            dimension_semantics=("parallel",),
            vmem_limit_bytes=64 * 1024 * 1024),
    )(x_flat, w_head, b1, b23, wb23, bb2, bb3a, wb3b, bb3b, b4, inv_cnt)

    out = out_flat[:, :plane, :].reshape(n, hp, wp, 384)[:, 1:h + 1, 1:w + 1, :]
    # Downstream Inception layers could consume bf16 directly; cast back to f32
    # here to preserve the PyTorch module's output dtype.
    return jnp.transpose(out, (0, 3, 1, 2)).astype(jnp.float32)


# ---------------- pure-JAX f32 reference (for correctness check) ----------------
def _ref_conv_bn_relu(x, p, eps, pad):
    w_, gamma, beta, mean, var = p
    y = jax.lax.conv_general_dilated(
        x, w_, window_strides=(1, 1), padding=[(pad, pad), (pad, pad)],
        dimension_numbers=('NHWC', 'HWIO', 'NHWC'))
    scale = gamma / jnp.sqrt(var + eps)
    return jnp.maximum(y * scale + (beta - mean * scale), 0.0)


def _ref_avgpool3x3(x):
    n, h, w, c = x.shape
    xp = jnp.pad(x, ((0, 0), (1, 1), (1, 1), (0, 0)))
    op = jnp.pad(jnp.ones((n, h, w, 1), x.dtype), ((0, 0), (1, 1), (1, 1), (0, 0)))
    s = jnp.zeros((n, h, w, c), x.dtype)
    cnt = jnp.zeros((n, h, w, 1), x.dtype)
    for i in range(3):
        for j in range(3):
            s = s + xp[:, i:i + h, j:j + w, :]
            cnt = cnt + op[:, i:i + h, j:j + w, :]
    return s / cnt


def _reference(x_nchw, params, eps):
    x = jnp.transpose(x_nchw, (0, 2, 3, 1))
    b1 = _ref_conv_bn_relu(x, params['b1'], eps, 0)
    b2 = _ref_conv_bn_relu(x, params['b2_1'], eps, 0)
    b2 = _ref_conv_bn_relu(b2, params['b2_2'], eps, 1)
    b3 = _ref_conv_bn_relu(x, params['b3_1'], eps, 0)
    b3 = _ref_conv_bn_relu(b3, params['b3_2'], eps, 1)
    b3 = _ref_conv_bn_relu(b3, params['b3_3'], eps, 1)
    b4 = _ref_conv_bn_relu(_ref_avgpool3x3(x), params['b4'], eps, 0)
    out = jnp.concatenate([b1, b2, b3, b4], axis=-1)
    return jnp.transpose(out, (0, 3, 1, 2))


# ---------------------------- deterministic params ---------------------------
def make_conv_params(key, kh, kw, cin, cout):
    kw_, kg, kb, km, kv = jax.random.split(key, 5)
    w = jax.random.normal(kw_, (kh, kw, cin, cout), jnp.float32) * 0.04
    gamma = 1.0 + 0.1 * jax.random.normal(kg, (cout,), jnp.float32)
    beta = 0.1 * jax.random.normal(kb, (cout,), jnp.float32)
    mean = 0.1 * jax.random.normal(km, (cout,), jnp.float32)
    var = jnp.abs(jax.random.normal(kv, (cout,), jnp.float32)) + 0.5
    return (w, gamma, beta, mean, var)


if __name__ == "__main__":
    key = jax.random.PRNGKey(0)
    keys = jax.random.split(key, 8)

    # in_channels=384 is fixed by the module; keep batch/spatial small.
    x_nchw = jax.random.normal(keys[0], (2, 384, 8, 8), jnp.float32)

    params = {
        'b1':   make_conv_params(keys[1], 1, 1, 384, 96),
        'b2_1': make_conv_params(keys[2], 1, 1, 384, 64),
        'b2_2': make_conv_params(keys[3], 3, 3, 64, 96),
        'b3_1': make_conv_params(keys[4], 1, 1, 384, 64),
        'b3_2': make_conv_params(keys[5], 3, 3, 64, 96),
        'b3_3': make_conv_params(keys[6], 3, 3, 96, 96),
        'b4':   make_conv_params(keys[7], 1, 1, 384, 96),
    }

    out = jax.jit(lambda xx: inception_a_unit(xx, params, BN_EPS))(x_nchw)
    out = jax.block_until_ready(out)
    assert out.shape == (2, 384, 8, 8), out.shape

    ref = _reference(x_nchw, params, BN_EPS)
    max_err = float(jnp.max(jnp.abs(out - ref)))
    # bf16 MXU operands + bf16 intermediate planes + bf16 output vs f32 reference.
    assert jnp.allclose(out, ref, atol=4e-2, rtol=4e-2), max_err

    print("KERNEL_OK")
</pallas_src>

<mosaic_0001>
module attributes {stable_mosaic.version = 11 : i64} {
  func.func @_inception_a_kernel(%arg0: i32, %arg1: memref<1x104x384xbf16, #tpu.memory_space<vmem>>, %arg2: memref<384x320xbf16, #tpu.memory_space<vmem>>, %arg3: memref<1x96xf32, #tpu.memory_space<vmem>>, %arg4: memref<1x128xf32, #tpu.memory_space<vmem>>, %arg5: memref<3x3x128x192xbf16, #tpu.memory_space<vmem>>, %arg6: memref<1x96xf32, #tpu.memory_space<vmem>>, %arg7: memref<1x96xf32, #tpu.memory_space<vmem>>, %arg8: memref<3x3x96x96xbf16, #tpu.memory_space<vmem>>, %arg9: memref<1x96xf32, #tpu.memory_space<vmem>>, %arg10: memref<1x96xf32, #tpu.memory_space<vmem>>, %arg11: memref<104x1xf32, #tpu.memory_space<vmem>>, %arg12: memref<1x104x384xbf16, #tpu.memory_space<vmem>>, %arg13: memref<136x128xbf16, #tpu.memory_space<vmem>>, %arg14: memref<136x96xbf16, #tpu.memory_space<vmem>>, %arg15: memref<136x96xf32, #tpu.memory_space<vmem>>) attributes {dimension_semantics = [#tpu.dimension_semantics<parallel>], iteration_bounds = array<i64: 2>, scalar_prefetch = 0 : i64, scratch_operands = 3 : i64, tpu.core_type = #tpu.core_type<tc>, window_params = [{transform_indices = @transform_0, window_bounds = array<i64: 1, 104, 384>}, {pipeline_mode = #tpu.pipeline_mode<synchronous>, transform_indices = @transform_1, window_bounds = array<i64: 384, 320>}, {pipeline_mode = #tpu.pipeline_mode<synchronous>, transform_indices = @transform_2, window_bounds = array<i64: 1, 96>}, {pipeline_mode = #tpu.pipeline_mode<synchronous>, transform_indices = @transform_3, window_bounds = array<i64: 1, 128>}, {pipeline_mode = #tpu.pipeline_mode<synchronous>, transform_indices = @transform_4, window_bounds = array<i64: 3, 3, 128, 192>}, {pipeline_mode = #tpu.pipeline_mode<synchronous>, transform_indices = @transform_5, window_bounds = array<i64: 1, 96>}, {pipeline_mode = #tpu.pipeline_mode<synchronous>, transform_indices = @transform_6, window_bounds = array<i64: 1, 96>}, {pipeline_mode = #tpu.pipeline_mode<synchronous>, transform_indices = @transform_7, window_bounds = array<i64: 3, 3, 96, 96>}, {pipeline_mode = #tpu.pipeline_mode<synchronous>, transform_indices = @transform_8, window_bounds = array<i64: 1, 96>}, {pipeline_mode = #tpu.pipeline_mode<synchronous>, transform_indices = @transform_9, window_bounds = array<i64: 1, 96>}, {pipeline_mode = #tpu.pipeline_mode<synchronous>, transform_indices = @transform_10, window_bounds = array<i64: 104, 1>}, {transform_indices = @transform_11, window_bounds = array<i64: 1, 104, 384>}]} {
    %c0 = arith.constant 0 : index
    %c0_0 = arith.constant 0 : index
    %c0_1 = arith.constant 0 : index
    %0 = vector.load %arg1[%c0, %c0_0, %c0_1] : memref<1x104x384xbf16, #tpu.memory_space<vmem>>, vector<1x104x384xbf16>
    %1 = vector.shape_cast %0 : vector<1x104x384xbf16> to vector<104x384xbf16>
    %c0_2 = arith.constant 0 : index
    %c0_3 = arith.constant 0 : index
    %2 = vector.load %arg11[%c0_2, %c0_3] : memref<104x1xf32, #tpu.memory_space<vmem>>, vector<104x1xf32>
    %cst = arith.constant 0.000000e+00 : f32
    %3 = vector.broadcast %cst : f32 to vector<104x1xf32>
    %4 = arith.cmpf ogt, %2, %3 : vector<104x1xf32>
    %cst_4 = arith.constant 0.000000e+00 : bf16
    %5 = vector.broadcast %cst_4 : bf16 to vector<16x128xbf16>
    %c0_5 = arith.constant 0 : index
    %c0_6 = arith.constant 0 : index
    %6 = vector.load %arg13[%c0_5, %c0_6] : memref<136x128xbf16, #tpu.memory_space<vmem>>, vector<16x128xbf16>
    tpu.vector_store %arg13[%c0_5, %c0_6], %5 {strides = array<i32>} : memref<136x128xbf16, #tpu.memory_space<vmem>>, vector<16x128xbf16>,
    %c120 = arith.constant 120 : index
    %c0_7 = arith.constant 0 : index
    %7 = vector.load %arg13[%c120, %c0_7] : memref<136x128xbf16, #tpu.memory_space<vmem>>, vector<16x128xbf16>
    tpu.vector_store %arg13[%c120, %c0_7], %5 {strides = array<i32>} : memref<136x128xbf16, #tpu.memory_space<vmem>>, vector<16x128xbf16>,
    %cst_8 = arith.constant 0.000000e+00 : bf16
    %8 = vector.broadcast %cst_8 : bf16 to vector<16x96xbf16>
    %c0_9 = arith.constant 0 : index
    %c0_10 = arith.constant 0 : index
    %9 = vector.load %arg14[%c0_9, %c0_10] : memref<136x96xbf16, #tpu.memory_space<vmem>>, vector<16x96xbf16>
    tpu.vector_store %arg14[%c0_9, %c0_10], %8 {strides = array<i32>} : memref<136x96xbf16, #tpu.memory_space<vmem>>, vector<16x96xbf16>,
    %c120_11 = arith.constant 120 : index
    %c0_12 = arith.constant 0 : index
    %10 = vector.load %arg14[%c120_11, %c0_12] : memref<136x96xbf16, #tpu.memory_space<vmem>>, vector<16x96xbf16>
    tpu.vector_store %arg14[%c120_11, %c0_12], %8 {strides = array<i32>} : memref<136x96xbf16, #tpu.memory_space<vmem>>, vector<16x96xbf16>,
    %cst_13 = arith.constant 0.000000e+00 : f32
    %11 = vector.broadcast %cst_13 : f32 to vector<16x96xf32>
    %c0_14 = arith.constant 0 : index
    %c0_15 = arith.constant 0 : index
    %12 = vector.load %arg15[%c0_14, %c0_15] : memref<136x96xf32, #tpu.memory_space<vmem>>, vector<16x96xf32>
    tpu.vector_store %arg15[%c0_14, %c0_15], %11 {strides = array<i32>} : memref<136x96xf32, #tpu.memory_space<vmem>>, vector<16x96xf32>,
    %c120_16 = arith.constant 120 : index
    %c0_17 = arith.constant 0 : index
    %13 = vector.load %arg15[%c120_16, %c0_17] : memref<136x96xf32, #tpu.memory_space<vmem>>, vector<16x96xf32>
    tpu.vector_store %arg15[%c120_16, %c0_17], %11 {strides = array<i32>} : memref<136x96xf32, #tpu.memory_space<vmem>>, vector<16x96xf32>,
    %c0_18 = arith.constant 0 : index
    %c0_19 = arith.constant 0 : index
    %14 = vector.load %arg2[%c0_18, %c0_19] : memref<384x320xbf16, #tpu.memory_space<vmem>>, vector<384x320xbf16>
    %cst_20 = arith.constant dense<0.000000e+00> : vector<104x320xf32>
    %15 = tpu.matmul %1, %14, %cst_20 {dimension_numbers = #tpu.dot_dimension_numbers<[1], [0], [0], [1], [0, 0, 1, 1], [], []>} : vector<104x384xbf16>, vector<384x320xbf16>, vector<104x320xf32> -> vector<104x320xf32>
    %16 = vector.extract_strided_slice %15 {offsets = [0, 0], sizes = [104, 96], strides = [1, 1]} : vector<104x320xf32> to vector<104x96xf32>
    %c0_21 = arith.constant 0 : index
    %c0_22 = arith.constant 0 : index
    %17 = vector.load %arg3[%c0_21, %c0_22] : memref<1x96xf32, #tpu.memory_space<vmem>>, vector<1x96xf32>
    %18 = vector.broadcast %17 : vector<1x96xf32> to vector<104x96xf32>
    %19 = arith.addf %16, %18 : vector<104x96xf32>
    %cst_23 = arith.constant 0.000000e+00 : f32
    %20 = vector.broadcast %cst_23 : f32 to vector<104x96xf32>
    %21 = arith.maximumf %19, %20 : vector<104x96xf32>
    %22 = arith.truncf %21 : vector<104x96xf32> to vector<104x96xbf16>
    %23 = vector.extract_strided_slice %15 {offsets = [0, 96], sizes = [104, 128], strides = [1, 1]} : vector<104x320xf32> to vector<104x128xf32>
    %c0_24 = arith.constant 0 : index
    %c0_25 = arith.constant 0 : index
    %24 = vector.load %arg4[%c0_24, %c0_25] : memref<1x128xf32, #tpu.memory_space<vmem>>, vector<1x128xf32>
    %25 = vector.broadcast %24 : vector<1x128xf32> to vector<104x128xf32>
    %26 = arith.addf %23, %25 : vector<104x128xf32>
    %cst_26 = arith.constant 0.000000e+00 : f32
    %27 = vector.broadcast %cst_26 : f32 to vector<104x128xf32>
    %28 = arith.maximumf %26, %27 : vector<104x128xf32>
    %cst_27 = arith.constant 0.000000e+00 : f32
    %29 = vector.shape_cast %4 : vector<104x1xi1> to vector<104x1xi1>
    %30 = vector.broadcast %29 : vector<104x1xi1> to vector<104x128xi1>
    %31 = vector.broadcast %cst_27 : f32 to vector<104x128xf32>
    %32 = arith.select %30, %28, %31 : vector<104x128xi1>, vector<104x128xf32>
    %33 = arith.truncf %32 : vector<104x128xf32> to vector<104x128xbf16>
    %c16 = arith.constant 16 : index
    %c0_28 = arith.constant 0 : index
    %34 = vector.load %arg13[%c16, %c0_28] : memref<136x128xbf16, #tpu.memory_space<vmem>>, vector<104x128xbf16>
    tpu.vector_store %arg13[%c16, %c0_28], %33 {strides = array<i32>} : memref<136x128xbf16, #tpu.memory_space<vmem>>, vector<104x128xbf16>,
    %35 = vector.extract_strided_slice %15 {offsets = [0, 224], sizes = [104, 96], strides = [1, 1]} : vector<104x320xf32> to vector<104x96xf32>
    %c16_29 = arith.constant 16 : index
    %c0_30 = arith.constant 0 : index
    %36 = vector.load %arg15[%c16_29, %c0_30] : memref<136x96xf32, #tpu.memory_space<vmem>>, vector<104x96xf32>
    tpu.vector_store %arg15[%c16_29, %c0_30], %35 {strides = array<i32>} : memref<136x96xf32, #tpu.memory_space<vmem>>, vector<104x96xf32>,
    %c5 = arith.constant 5 : index
    %c0_31 = arith.constant 0 : index
    %37 = vector.load %arg13[%c5, %c0_31] : memref<136x128xbf16, #tpu.memory_space<vmem>>, vector<104x128xbf16>
    %c0_32 = arith.constant 0 : index
    %c0_33 = arith.constant 0 : index
    %c0_34 = arith.constant 0 : index
    %c0_35 = arith.constant 0 : index
    %38 = vector.load %arg5[%c0_32, %c0_33, %c0_34, %c0_35] : memref<3x3x128x192xbf16, #tpu.memory_space<vmem>>, vector<1x1x128x192xbf16>
    %39 = vector.shape_cast %38 : vector<1x1x128x192xbf16> to vector<128x192xbf16>
    %cst_36 = arith.constant dense<0.000000e+00> : vector<104x192xf32>
    %40 = tpu.matmul %37, %39, %cst_36 {dimension_numbers = #tpu.dot_dimension_numbers<[1], [0], [0], [1], [0, 0, 1, 1], [], []>} : vector<104x128xbf16>, vector<128x192xbf16>, vector<104x192xf32> -> vector<104x192xf32>
    %c6 = arith.constant 6 : index
    %c0_37 = arith.constant 0 : index
    %41 = vector.load %arg13[%c6, %c0_37] : memref<136x128xbf16, #tpu.memory_space<vmem>>, vector<104x128xbf16>
    %c0_38 = arith.constant 0 : index
    %c1 = arith.constant 1 : index
    %c0_39 = arith.constant 0 : index
    %c0_40 = arith.constant 0 : index
    %42 = vector.load %arg5[%c0_38, %c1, %c0_39, %c0_40] : memref<3x3x128x192xbf16, #tpu.memory_space<vmem>>, vector<1x1x128x192xbf16>
    %43 = vector.shape_cast %42 : vector<1x1x128x192xbf16> to vector<128x192xbf16>
    %cst_41 = arith.constant dense<0.000000e+00> : vector<104x192xf32>
    %44 = tpu.matmul %41, %43, %cst_41 {dimension_numbers = #tpu.dot_dimension_numbers<[1], [0], [0], [1], [0, 0, 1, 1], [], []>} : vector<104x128xbf16>, vector<128x192xbf16>, vector<104x192xf32> -> vector<104x192xf32>
    %45 = arith.addf %40, %44 : vector<104x192xf32>
    %c7 = arith.constant 7 : index
    %c0_42 = arith.constant 0 : index
    %46 = vector.load %arg13[%c7, %c0_42] : memref<136x128xbf16, #tpu.memory_space<vmem>>, vector<104x128xbf16>
    %c0_43 = arith.constant 0 : index
    %c2 = arith.constant 2 : index
    %c0_44 = arith.constant 0 : index
    %c0_45 = arith.constant 0 : index
    %47 = vector.load %arg5[%c0_43, %c2, %c0_44, %c0_45] : memref<3x3x128x192xbf16, #tpu.memory_space<vmem>>, vector<1x1x128x192xbf16>
    %48 = vector.shape_cast %47 : vector<1x1x128x192xbf16> to vector<128x192xbf16>
    %cst_46 = arith.constant dense<0.000000e+00> : vector<104x192xf32>
    %49 = tpu.matmul %46, %48, %cst_46 {dimension_numbers = #tpu.dot_dimension_numbers<[1], [0], [0], [1], [0, 0, 1, 1], [], []>} : vector<104x128xbf16>, vector<128x192xbf16>, vector<104x192xf32> -> vector<104x192xf32>
    %50 = arith.addf %45, %49 : vector<104x192xf32>
    %c15 = arith.constant 15 : index
    %c0_47 = arith.constant 0 : index
    %51 = vector.load %arg13[%c15, %c0_47] : memref<136x128xbf16, #tpu.memory_space<vmem>>, vector<104x128xbf16>
    %c1_48 = arith.constant 1 : index
    %c0_49 = arith.constant 0 : index
    %c0_50 = arith.constant 0 : index
    %c0_51 = arith.constant 0 : index
    %52 = vector.load %arg5[%c1_48, %c0_49, %c0_50, %c0_51] : memref<3x3x128x192xbf16, #tpu.memory_space<vmem>>, vector<1x1x128x192xbf16>
    %53 = vector.shape_cast %52 : vector<1x1x128x192xbf16> to vector<128x192xbf16>
    %cst_52 = arith.constant dense<0.000000e+00> : vector<104x192xf32>
    %54 = tpu.matmul %51, %53, %cst_52 {dimension_numbers = #tpu.dot_dimension_numbers<[1], [0], [0], [1], [0, 0, 1, 1], [], []>} : vector<104x128xbf16>, vector<128x192xbf16>, vector<104x192xf32> -> vector<104x192xf32>
    %55 = arith.addf %50, %54 : vector<104x192xf32>
    %c16_53 = arith.constant 16 : index
    %c0_54 = arith.constant 0 : index
    %56 = vector.load %arg13[%c16_53, %c0_54] : memref<136x128xbf16, #tpu.memory_space<vmem>>, vector<104x128xbf16>
    %c1_55 = arith.constant 1 : index
    %c1_56 = arith.constant 1 : index
    %c0_57 = arith.constant 0 : index
    %c0_58 = arith.constant 0 : index
    %57 = vector.load %arg5[%c1_55, %c1_56, %c0_57, %c0_58] : memref<3x3x128x192xbf16, #tpu.memory_space<vmem>>, vector<1x1x128x192xbf16>
    %58 = vector.shape_cast %57 : vector<1x1x128x192xbf16> to vector<128x192xbf16>
    %cst_59 = arith.constant dense<0.000000e+00> : vector<104x192xf32>
    %59 = tpu.matmul %56, %58, %cst_59 {dimension_numbers = #tpu.dot_dimension_numbers<[1], [0], [0], [1], [0, 0, 1, 1], [], []>} : vector<104x128xbf16>, vector<128x192xbf16>, vector<104x192xf32> -> vector<104x192xf32>
    %60 = arith.addf %55, %59 : vector<104x192xf32>
    %c17 = arith.constant 17 : index
    %c0_60 = arith.constant 0 : index
    %61 = vector.load %arg13[%c17, %c0_60] : memref<136x128xbf16, #tpu.memory_space<vmem>>, vector<104x128xbf16>
    %c1_61 = arith.constant 1 : index
    %c2_62 = arith.constant 2 : index
    %c0_63 = arith.constant 0 : index
    %c0_64 = arith.constant 0 : index
    %62 = vector.load %arg5[%c1_61, %c2_62, %c0_63, %c0_64] : memref<3x3x128x192xbf16, #tpu.memory_space<vmem>>, vector<1x1x128x192xbf16>
    %63 = vector.shape_cast %62 : vector<1x1x128x192xbf16> to vector<128x192xbf16>
    %cst_65 = arith.constant dense<0.000000e+00> : vector<104x192xf32>
    %64 = tpu.matmul %61, %63, %cst_65 {dimension_numbers = #tpu.dot_dimension_numbers<[1], [0], [0], [1], [0, 0, 1, 1], [], []>} : vector<104x128xbf16>, vector<128x192xbf16>, vector<104x192xf32> -> vector<104x192xf32>
    %65 = arith.addf %60, %64 : vector<104x192xf32>
    %c25 = arith.constant 25 : index
    %c0_66 = arith.constant 0 : index
    %66 = vector.load %arg13[%c25, %c0_66] : memref<136x128xbf16, #tpu.memory_space<vmem>>, vector<104x128xbf16>
    %c2_67 = arith.constant 2 : index
    %c0_68 = arith.constant 0 : index
    %c0_69 = arith.constant 0 : index
    %c0_70 = arith.constant 0 : index
    %67 = vector.load %arg5[%c2_67, %c0_68, %c0_69, %c0_70] : memref<3x3x128x192xbf16, #tpu.memory_space<vmem>>, vector<1x1x128x192xbf16>
    %68 = vector.shape_cast %67 : vector<1x1x128x192xbf16> to vector<128x192xbf16>
    %cst_71 = arith.constant dense<0.000000e+00> : vector<104x192xf32>
    %69 = tpu.matmul %66, %68, %cst_71 {dimension_numbers = #tpu.dot_dimension_numbers<[1], [0], [0], [1], [0, 0, 1, 1], [], []>} : vector<104x128xbf16>, vector<128x192xbf16>, vector<104x192xf32> -> vector<104x192xf32>
    %70 = arith.addf %65, %69 : vector<104x192xf32>
    %c26 = arith.constant 26 : index
    %c0_72 = arith.constant 0 : index
    %71 = vector.load %arg13[%c26, %c0_72] : memref<136x128xbf16, #tpu.memory_space<vmem>>, vector<104x128xbf16>
    %c2_73 = arith.constant 2 : index
    %c1_74 = arith.constant 1 : index
    %c0_75 = arith.constant 0 : index
    %c0_76 = arith.constant 0 : index
    %72 = vector.load %arg5[%c2_73, %c1_74, %c0_75, %c0_76] : memref<3x3x128x192xbf16, #tpu.memory_space<vmem>>, vector<1x1x128x192xbf16>
    %73 = vector.shape_cast %72 : vector<1x1x128x192xbf16> to vector<128x192xbf16>
    %cst_77 = arith.constant dense<0.000000e+00> : vector<104x192xf32>
    %74 = tpu.matmul %71, %73, %cst_77 {dimension_numbers = #tpu.dot_dimension_numbers<[1], [0], [0], [1], [0, 0, 1, 1], [], []>} : vector<104x128xbf16>, vector<128x192xbf16>, vector<104x192xf32> -> vector<104x192xf32>
    %75 = arith.addf %70, %74 : vector<104x192xf32>
    %c27 = arith.constant 27 : index
    %c0_78 = arith.constant 0 : index
    %76 = vector.load %arg13[%c27, %c0_78] : memref<136x128xbf16, #tpu.memory_space<vmem>>, vector<104x128xbf16>
    %c2_79 = arith.constant 2 : index
    %c2_80 = arith.constant 2 : index
    %c0_81 = arith.constant 0 : index
    %c0_82 = arith.constant 0 : index
    %77 = vector.load %arg5[%c2_79, %c2_80, %c0_81, %c0_82] : memref<3x3x128x192xbf16, #tpu.memory_space<vmem>>, vector<1x1x128x192xbf16>
    %78 = vector.shape_cast %77 : vector<1x1x128x192xbf16> to vector<128x192xbf16>
    %cst_83 = arith.constant dense<0.000000e+00> : vector<104x192xf32>
    %79 = tpu.matmul %76, %78, %cst_83 {dimension_numbers = #tpu.dot_dimension_numbers<[1], [0], [0], [1], [0, 0, 1, 1], [], []>} : vector<104x128xbf16>, vector<128x192xbf16>, vector<104x192xf32> -> vector<104x192xf32>
    %80 = arith.addf %75, %79 : vector<104x192xf32>
    %81 = vector.extract_strided_slice %80 {offsets = [0, 0], sizes = [104, 96], strides = [1, 1]} : vector<104x192xf32> to vector<104x96xf32>
    %c0_84 = arith.constant 0 : index
    %c0_85 = arith.constant 0 : index
    %82 = vector.load %arg6[%c0_84, %c0_85] : memref<1x96xf32, #tpu.memory_space<vmem>>, vector<1x96xf32>
    %83 = vector.broadcast %82 : vector<1x96xf32> to vector<104x96xf32>
    %84 = arith.addf %81, %83 : vector<104x96xf32>
    %cst_86 = arith.constant 0.000000e+00 : f32
    %85 = vector.broadcast %cst_86 : f32 to vector<104x96xf32>
    %86 = arith.maximumf %84, %85 : vector<104x96xf32>
    %87 = arith.truncf %86 : vector<104x96xf32> to vector<104x96xbf16>
    %88 = vector.extract_strided_slice %80 {offsets = [0, 96], sizes = [104, 96], strides = [1, 1]} : vector<104x192xf32> to vector<104x96xf32>
    %c0_87 = arith.constant 0 : index
    %c0_88 = arith.constant 0 : index
    %89 = vector.load %arg7[%c0_87, %c0_88] : memref<1x96xf32, #tpu.memory_space<vmem>>, vector<1x96xf32>
    %90 = vector.broadcast %89 : vector<1x96xf32> to vector<104x96xf32>
    %91 = arith.addf %88, %90 : vector<104x96xf32>
    %cst_89 = arith.constant 0.000000e+00 : f32
    %92 = vector.broadcast %cst_89 : f32 to vector<104x96xf32>
    %93 = arith.maximumf %91, %92 : vector<104x96xf32>
    %cst_90 = arith.constant 0.000000e+00 : f32
    %94 = vector.shape_cast %4 : vector<104x1xi1> to vector<104x1xi1>
    %95 = vector.broadcast %94 : vector<104x1xi1> to vector<104x96xi1>
    %96 = vector.broadcast %cst_90 : f32 to vector<104x96xf32>
    %97 = arith.select %95, %93, %96 : vector<104x96xi1>, vector<104x96xf32>
    %98 = arith.truncf %97 : vector<104x96xf32> to vector<104x96xbf16>
    %c16_91 = arith.constant 16 : index
    %c0_92 = arith.constant 0 : index
    %99 = vector.load %arg14[%c16_91, %c0_92] : memref<136x96xbf16, #tpu.memory_space<vmem>>, vector<104x96xbf16>
    tpu.vector_store %arg14[%c16_91, %c0_92], %98 {strides = array<i32>} : memref<136x96xbf16, #tpu.memory_space<vmem>>, vector<104x96xbf16>,
    %c5_93 = arith.constant 5 : index
    %c0_94 = arith.constant 0 : index
    %100 = vector.load %arg14[%c5_93, %c0_94] : memref<136x96xbf16, #tpu.memory_space<vmem>>, vector<104x96xbf16>
    %c0_95 = arith.constant 0 : index
    %c0_96 = arith.constant 0 : index
    %c0_97 = arith.constant 0 : index
    %c0_98 = arith.constant 0 : index
    %101 = vector.load %arg8[%c0_95, %c0_96, %c0_97, %c0_98] : memref<3x3x96x96xbf16, #tpu.memory_space<vmem>>, vector<1x1x96x96xbf16>
    %102 = vector.shape_cast %101 : vector<1x1x96x96xbf16> to vector<96x96xbf16>
    %cst_99 = arith.constant dense<0.000000e+00> : vector<104x96xf32>
    %103 = tpu.matmul %100, %102, %cst_99 {dimension_numbers = #tpu.dot_dimension_numbers<[1], [0], [0], [1], [0, 0, 1, 1], [], []>} : vector<104x96xbf16>, vector<96x96xbf16>, vector<104x96xf32> -> vector<104x96xf32>
    %c6_100 = arith.constant 6 : index
    %c0_101 = arith.constant 0 : index
    %104 = vector.load %arg14[%c6_100, %c0_101] : memref<136x96xbf16, #tpu.memory_space<vmem>>, vector<104x96xbf16>
    %c0_102 = arith.constant 0 : index
    %c1_103 = arith.constant 1 : index
    %c0_104 = arith.constant 0 : index
    %c0_105 = arith.constant 0 : index
    %105 = vector.load %arg8[%c0_102, %c1_103, %c0_104, %c0_105] : memref<3x3x96x96xbf16, #tpu.memory_space<vmem>>, vector<1x1x96x96xbf16>
    %106 = vector.shape_cast %105 : vector<1x1x96x96xbf16> to vector<96x96xbf16>
    %cst_106 = arith.constant dense<0.000000e+00> : vector<104x96xf32>
    %107 = tpu.matmul %104, %106, %cst_106 {dimension_numbers = #tpu.dot_dimension_numbers<[1], [0], [0], [1], [0, 0, 1, 1], [], []>} : vector<104x96xbf16>, vector<96x96xbf16>, vector<104x96xf32> -> vector<104x96xf32>
    %108 = arith.addf %103, %107 : vector<104x96xf32>
    %c7_107 = arith.constant 7 : index
    %c0_108 = arith.constant 0 : index
    %109 = vector.load %arg14[%c7_107, %c0_108] : memref<136x96xbf16, #tpu.memory_space<vmem>>, vector<104x96xbf16>
    %c0_109 = arith.constant 0 : index
    %c2_110 = arith.constant 2 : index
    %c0_111 = arith.constant 0 : index
    %c0_112 = arith.constant 0 : index
    %110 = vector.load %arg8[%c0_109, %c2_110, %c0_111, %c0_112] : memref<3x3x96x96xbf16, #tpu.memory_space<vmem>>, vector<1x1x96x96xbf16>
    %111 = vector.shape_cast %110 : vector<1x1x96x96xbf16> to vector<96x96xbf16>
    %cst_113 = arith.constant dense<0.000000e+00> : vector<104x96xf32>
    %112 = tpu.matmul %109, %111, %cst_113 {dimension_numbers = #tpu.dot_dimension_numbers<[1], [0], [0], [1], [0, 0, 1, 1], [], []>} : vector<104x96xbf16>, vector<96x96xbf16>, vector<104x96xf32> -> vector<104x96xf32>
    %113 = arith.addf %108, %112 : vector<104x96xf32>
    %c15_114 = arith.constant 15 : index
    %c0_115 = arith.constant 0 : index
    %114 = vector.load %arg14[%c15_114, %c0_115] : memref<136x96xbf16, #tpu.memory_space<vmem>>, vector<104x96xbf16>
    %c1_116 = arith.constant 1 : index
    %c0_117 = arith.constant 0 : index
    %c0_118 = arith.constant 0 : index
    %c0_119 = arith.constant 0 : index
    %115 = vector.load %arg8[%c1_116, %c0_117, %c0_118, %c0_119] : memref<3x3x96x96xbf16, #tpu.memory_space<vmem>>, vector<1x1x96x96xbf16>
    %116 = vector.shape_cast %115 : vector<1x1x96x96xbf16> to vector<96x96xbf16>
    %cst_120 = arith.constant dense<0.000000e+00> : vector<104x96xf32>
    %117 = tpu.matmul %114, %116, %cst_120 {dimension_numbers = #tpu.dot_dimension_numbers<[1], [0], [0], [1], [0, 0, 1, 1], [], []>} : vector<104x96xbf16>, vector<96x96xbf16>, vector<104x96xf32> -> vector<104x96xf32>
    %118 = arith.addf %113, %117 : vector<104x96xf32>
    %c16_121 = arith.constant 16 : index
    %c0_122 = arith.constant 0 : index
    %119 = vector.load %arg14[%c16_121, %c0_122] : memref<136x96xbf16, #tpu.memory_space<vmem>>, vector<104x96xbf16>
    %c1_123 = arith.constant 1 : index
    %c1_124 = arith.constant 1 : index
    %c0_125 = arith.constant 0 : index
    %c0_126 = arith.constant 0 : index
    %120 = vector.load %arg8[%c1_123, %c1_124, %c0_125, %c0_126] : memref<3x3x96x96xbf16, #tpu.memory_space<vmem>>, vector<1x1x96x96xbf16>
    %121 = vector.shape_cast %120 : vector<1x1x96x96xbf16> to vector<96x96xbf16>
    %cst_127 = arith.constant dense<0.000000e+00> : vector<104x96xf32>
    %122 = tpu.matmul %119, %121, %cst_127 {dimension_numbers = #tpu.dot_dimension_numbers<[1], [0], [0], [1], [0, 0, 1, 1], [], []>} : vector<104x96xbf16>, vector<96x96xbf16>, vector<104x96xf32> -> vector<104x96xf32>
    %123 = arith.addf %118, %122 : vector<104x96xf32>
    %c17_128 = arith.constant 17 : index
    %c0_129 = arith.constant 0 : index
    %124 = vector.load %arg14[%c17_128, %c0_129] : memref<136x96xbf16, #tpu.memory_space<vmem>>, vector<104x96xbf16>
    %c1_130 = arith.constant 1 : index
    %c2_131 = arith.constant 2 : index
    %c0_132 = arith.constant 0 : index
    %c0_133 = arith.constant 0 : index
    %125 = vector.load %arg8[%c1_130, %c2_131, %c0_132, %c0_133] : memref<3x3x96x96xbf16, #tpu.memory_space<vmem>>, vector<1x1x96x96xbf16>
    %126 = vector.shape_cast %125 : vector<1x1x96x96xbf16> to vector<96x96xbf16>
    %cst_134 = arith.constant dense<0.000000e+00> : vector<104x96xf32>
    %127 = tpu.matmul %124, %126, %cst_134 {dimension_numbers = #tpu.dot_dimension_numbers<[1], [0], [0], [1], [0, 0, 1, 1], [], []>} : vector<104x96xbf16>, vector<96x96xbf16>, vector<104x96xf32> -> vector<104x96xf32>
    %128 = arith.addf %123, %127 : vector<104x96xf32>
    %c25_135 = arith.constant 25 : index
    %c0_136 = arith.constant 0 : index
    %129 = vector.load %arg14[%c25_135, %c0_136] : memref<136x96xbf16, #tpu.memory_space<vmem>>, vector<104x96xbf16>
    %c2_137 = arith.constant 2 : index
    %c0_138 = arith.constant 0 : index
    %c0_139 = arith.constant 0 : index
    %c0_140 = arith.constant 0 : index
    %130 = vector.load %arg8[%c2_137, %c0_138, %c0_139, %c0_140] : memref<3x3x96x96xbf16, #tpu.memory_space<vmem>>, vector<1x1x96x96xbf16>
    %131 = vector.shape_cast %130 : vector<1x1x96x96xbf16> to vector<96x96xbf16>
    %cst_141 = arith.constant dense<0.000000e+00> : vector<104x96xf32>
    %132 = tpu.matmul %129, %131, %cst_141 {dimension_numbers = #tpu.dot_dimension_numbers<[1], [0], [0], [1], [0, 0, 1, 1], [], []>} : vector<104x96xbf16>, vector<96x96xbf16>, vector<104x96xf32> -> vector<104x96xf32>
    %133 = arith.addf %128, %132 : vector<104x96xf32>
    %c26_142 = arith.constant 26 : index
    %c0_143 = arith.constant 0 : index
    %134 = vector.load %arg14[%c26_142, %c0_143] : memref<136x96xbf16, #tpu.memory_space<vmem>>, vector<104x96xbf16>
    %c2_144 = arith.constant 2 : index
    %c1_145 = arith.constant 1 : index
    %c0_146 = arith.constant 0 : index
    %c0_147 = arith.constant 0 : index
    %135 = vector.load %arg8[%c2_144, %c1_145, %c0_146, %c0_147] : memref<3x3x96x96xbf16, #tpu.memory_space<vmem>>, vector<1x1x96x96xbf16>
    %136 = vector.shape_cast %135 : vector<1x1x96x96xbf16> to vector<96x96xbf16>
    %cst_148 = arith.constant dense<0.000000e+00> : vector<104x96xf32>
    %137 = tpu.matmul %134, %136, %cst_148 {dimension_numbers = #tpu.dot_dimension_numbers<[1], [0], [0], [1], [0, 0, 1, 1], [], []>} : vector<104x96xbf16>, vector<96x96xbf16>, vector<104x96xf32> -> vector<104x96xf32>
    %138 = arith.addf %133, %137 : vector<104x96xf32>
    %c27_149 = arith.constant 27 : index
    %c0_150 = arith.constant 0 : index
    %139 = vector.load %arg14[%c27_149, %c0_150] : memref<136x96xbf16, #tpu.memory_space<vmem>>, vector<104x96xbf16>
    %c2_151 = arith.constant 2 : index
    %c2_152 = arith.constant 2 : index
    %c0_153 = arith.constant 0 : index
    %c0_154 = arith.constant 0 : index
    %140 = vector.load %arg8[%c2_151, %c2_152, %c0_153, %c0_154] : memref<3x3x96x96xbf16, #tpu.memory_space<vmem>>, vector<1x1x96x96xbf16>
    %141 = vector.shape_cast %140 : vector<1x1x96x96xbf16> to vector<96x96xbf16>
    %cst_155 = arith.constant dense<0.000000e+00> : vector<104x96xf32>
    %142 = tpu.matmul %139, %141, %cst_155 {dimension_numbers = #tpu.dot_dimension_numbers<[1], [0], [0], [1], [0, 0, 1, 1], [], []>} : vector<104x96xbf16>, vector<96x96xbf16>, vector<104x96xf32> -> vector<104x96xf32>
    %143 = arith.addf %138, %142 : vector<104x96xf32>
    %c0_156 = arith.constant 0 : index
    %c0_157 = arith.constant 0 : index
    %144 = vector.load %arg9[%c0_156, %c0_157] : memref<1x96xf32, #tpu.memory_space<vmem>>, vector<1x96xf32>
    %145 = vector.broadcast %144 : vector<1x96xf32> to vector<104x96xf32>
    %146 = arith.addf %143, %145 : vector<104x96xf32>
    %cst_158 = arith.constant 0.000000e+00 : f32
    %147 = vector.broadcast %cst_158 : f32 to vector<104x96xf32>
    %148 = arith.maximumf %146, %147 : vector<104x96xf32>
    %149 = arith.truncf %148 : vector<104x96xf32> to vector<104x96xbf16>
    %c5_159 = arith.constant 5 : index
    %c0_160 = arith.constant 0 : index
    %150 = vector.load %arg15[%c5_159, %c0_160] : memref<136x96xf32, #tpu.memory_space<vmem>>, vector<104x96xf32>
    %c6_161 = arith.constant 6 : index
    %c0_162 = arith.constant 0 : index
    %151 = vector.load %arg15[%c6_161, %c0_162] : memref<136x96xf32, #tpu.memory_space<vmem>>, vector<104x96xf32>
    %152 = arith.addf %150, %151 : vector<104x96xf32>
    %c7_163 = arith.constant 7 : index
    %c0_164 = arith.constant 0 : index
    %153 = vector.load %arg15[%c7_163, %c0_164] : memref<136x96xf32, #tpu.memory_space<vmem>>, vector<104x96xf32>
    %154 = arith.addf %152, %153 : vector<104x96xf32>
    %c15_165 = arith.constant 15 : index
    %c0_166 = arith.constant 0 : index
    %155 = vector.load %arg15[%c15_165, %c0_166] : memref<136x96xf32, #tpu.memory_space<vmem>>, vector<104x96xf32>
    %156 = arith.addf %154, %155 : vector<104x96xf32>
    %c16_167 = arith.constant 16 : index
    %c0_168 = arith.constant 0 : index
    %157 = vector.load %arg15[%c16_167, %c0_168] : memref<136x96xf32, #tpu.memory_space<vmem>>, vector<104x96xf32>
    %158 = arith.addf %156, %157 : vector<104x96xf32>
    %c17_169 = arith.constant 17 : index
    %c0_170 = arith.constant 0 : index
    %159 = vector.load %arg15[%c17_169, %c0_170] : memref<136x96xf32, #tpu.memory_space<vmem>>, vector<104x96xf32>
    %160 = arith.addf %158, %159 : vector<104x96xf32>
    %c25_171 = arith.constant 25 : index
    %c0_172 = arith.constant 0 : index
    %161 = vector.load %arg15[%c25_171, %c0_172] : memref<136x96xf32, #tpu.memory_space<vmem>>, vector<104x96xf32>
    %162 = arith.addf %160, %161 : vector<104x96xf32>
    %c26_173 = arith.constant 26 : index
    %c0_174 = arith.constant 0 : index
    %163 = vector.load %arg15[%c26_173, %c0_174] : memref<136x96xf32, #tpu.memory_space<vmem>>, vector<104x96xf32>
    %164 = arith.addf %162, %163 : vector<104x96xf32>
    %c27_175 = arith.constant 27 : index
    %c0_176 = arith.constant 0 : index
    %165 = vector.load %arg15[%c27_175, %c0_176] : memref<136x96xf32, #tpu.memory_space<vmem>>, vector<104x96xf32>
    %166 = arith.addf %164, %165 : vector<104x96xf32>
    %167 = vector.broadcast %2 : vector<104x1xf32> to vector<104x96xf32>
    %168 = arith.mulf %166, %167 : vector<104x96xf32>
    %c0_177 = arith.constant 0 : index
    %c0_178 = arith.constant 0 : index
    %169 = vector.load %arg10[%c0_177, %c0_178] : memref<1x96xf32, #tpu.memory_space<vmem>>, vector<1x96xf32>
    %170 = vector.broadcast %169 : vector<1x96xf32> to vector<104x96xf32>
    %171 = arith.addf %168, %170 : vector<104x96xf32>
    %cst_179 = arith.constant 0.000000e+00 : f32
    %172 = vector.broadcast %cst_179 : f32 to vector<104x96xf32>
    %173 = arith.maximumf %171, %172 : vector<104x96xf32>
    %174 = arith.truncf %173 : vector<104x96xf32> to vector<104x96xbf16>
    %175 = tpu.concatenate %22, %87, %149, %174 in 1 : vector<104x96xbf16>, vector<104x96xbf16>, vector<104x96xbf16>, vector<104x96xbf16> -> vector<104x384xbf16>
    %c0_180 = arith.constant 0 : index
    %c0_181 = arith.constant 0 : index
    %c0_182 = arith.constant 0 : index
    %176 = vector.load %arg12[%c0_180, %c0_181, %c0_182] : memref<1x104x384xbf16, #tpu.memory_space<vmem>>, vector<1x104x384xbf16>
    %177 = vector.shape_cast %176 : vector<1x104x384xbf16> to vector<104x384xbf16>
    %178 = vector.shape_cast %175 : vector<104x384xbf16> to vector<1x104x384xbf16>
    tpu.vector_store %arg12[%c0_180, %c0_181, %c0_182], %178 {strides = array<i32>} : memref<1x104x384xbf16, #tpu.memory_space<vmem>>, vector<1x104x384xbf16>,
    return
  }
  func.func @transform_0(%arg0: i32) -> (i32, i32, i32) {
    %c0_i32 = arith.constant 0 : i32
    %c0_i32_0 = arith.constant 0 : i32
    %c0_i32_1 = arith.constant 0 : i32
    return %arg0, %c0_i32, %c0_i32_0 : i32, i32, i32
  }
  func.func @transform_1(%arg0: i32) -> (i32, i32) {
    %c0_i32 = arith.constant 0 : i32
    %c0_i32_0 = arith.constant 0 : i32
    %c0_i32_1 = arith.constant 0 : i32
    return %c0_i32, %c0_i32_0 : i32, i32
  }
  func.func @transform_2(%arg0: i32) -> (i32, i32) {
    %c0_i32 = arith.constant 0 : i32
    %c0_i32_0 = arith.constant 0 : i32
    %c0_i32_1 = arith.constant 0 : i32
    return %c0_i32, %c0_i32_0 : i32, i32
  }
  func.func @transform_3(%arg0: i32) -> (i32, i32) {
    %c0_i32 = arith.constant 0 : i32
    %c0_i32_0 = arith.constant 0 : i32
    %c0_i32_1 = arith.constant 0 : i32
    return %c0_i32, %c0_i32_0 : i32, i32
  }
  func.func @transform_4(%arg0: i32) -> (i32, i32, i32, i32) {
    %c0_i32 = arith.constant 0 : i32
    %c0_i32_0 = arith.constant 0 : i32
    %c0_i32_1 = arith.constant 0 : i32
    %c0_i32_2 = arith.constant 0 : i32
    %c0_i32_3 = arith.constant 0 : i32
    return %c0_i32, %c0_i32_0, %c0_i32_1, %c0_i32_2 : i32, i32, i32, i32
  }
  func.func @transform_5(%arg0: i32) -> (i32, i32) {
    %c0_i32 = arith.constant 0 : i32
    %c0_i32_0 = arith.constant 0 : i32
    %c0_i32_1 = arith.constant 0 : i32
    return %c0_i32, %c0_i32_0 : i32, i32
  }
  func.func @transform_6(%arg0: i32) -> (i32, i32) {
    %c0_i32 = arith.constant 0 : i32
    %c0_i32_0 = arith.constant 0 : i32
    %c0_i32_1 = arith.constant 0 : i32
    return %c0_i32, %c0_i32_0 : i32, i32
  }
  func.func @transform_7(%arg0: i32) -> (i32, i32, i32, i32) {
    %c0_i32 = arith.constant 0 : i32
    %c0_i32_0 = arith.constant 0 : i32
    %c0_i32_1 = arith.constant 0 : i32
    %c0_i32_2 = arith.constant 0 : i32
    %c0_i32_3 = arith.constant 0 : i32
    return %c0_i32, %c0_i32_0, %c0_i32_1, %c0_i32_2 : i32, i32, i32, i32
  }
  func.func @transform_8(%arg0: i32) -> (i32, i32) {
    %c0_i32 = arith.constant 0 : i32
    %c0_i32_0 = arith.constant 0 : i32
    %c0_i32_1 = arith.constant 0 : i32
    return %c0_i32, %c0_i32_0 : i32, i32
  }
  func.func @transform_9(%arg0: i32) -> (i32, i32) {
    %c0_i32 = arith.constant 0 : i32
    %c0_i32_0 = arith.constant 0 : i32
    %c0_i32_1 = arith.constant 0 : i32
    return %c0_i32, %c0_i32_0 : i32, i32
  }
  func.func @transform_10(%arg0: i32) -> (i32, i32) {
    %c0_i32 = arith.constant 0 : i32
    %c0_i32_0 = arith.constant 0 : i32
    %c0_i32_1 = arith.constant 0 : i32
    return %c0_i32, %c0_i32_0 : i32, i32
  }
  func.func @transform_11(%arg0: i32) -> (i32, i32, i32) {
    %c0_i32 = arith.constant 0 : i32
    %c0_i32_0 = arith.constant 0 : i32
    %c0_i32_1 = arith.constant 0 : i32
    return %arg0, %c0_i32, %c0_i32_0 : i32, i32, i32
  }
}

</mosaic_0001>

<bundles_post_ra>
// kernel: _lambda_.1
= control target key start
LH: loop header
LB: loop body
LE: loop exit
PB: predicated region body
PF: predicated region fallthrough
CT: control target
= control target key end

     0   :  { %s9387_s17 = smov 0   ;;  %s12695_s0 = inlined_call_operand.vmem [shape: bf16[2,104,384], index: 0, kind: input, shape index: {}]   ;;  %s12696_s1 = inlined_call_operand.vmem [shape: bf16[384,320], index: 1, kind: input, shape index: {}]   ;;  %s12697_s2 = inlined_call_operand.vmem [shape: f32[1,96], index: 2, kind: input, shape index: {}]   ;;  %s12698_s3 = inlined_call_operand.vmem [shape: f32[1,128], index: 3, kind: input, shape index: {}]   ;;  %s12699_s4 = inlined_call_operand.vmem [shape: bf16[3,3,128,192], index: 4, kind: input, shape index: {}]   ;;  %s12700_s5 = inlined_call_operand.vmem [shape: f32[1,96], index: 5, kind: input, shape index: {}]   ;;  %s12701_s6 = inlined_call_operand.vmem [shape: f32[1,96], index: 6, kind: input, shape index: {}]   ;;  %s12702_s7 = inlined_call_operand.vmem [shape: bf16[3,3,96,96], index: 7, kind: input, shape index: {}]   ;;  %s12703_s8 = inlined_call_operand.vmem [shape: f32[1,96], index: 8, kind: input, shape index: {}]   ;;  %s12704_s9 = inlined_call_operand.vmem [shape: f32[1,96], index: 9, kind: input, shape index: {}]   ;;  %s12705_s10 = inlined_call_operand.vmem [shape: f32[104,1], index: 10, kind: input, shape index: {}]   ;;  %s12706_s11 = inlined_call_operand.vmem [shape: bf16[2,104,384], index: 11, kind: output, shape index: {}]  }
   0x1 LB: > { %s7458_s18 = sadd.s32 4294967295, %s9319_s17   ;;  %p7462_p0 = scmp.ge.s32.totalorder %s9319_s17, 1  ;;  %s9319_s17 = sphi %s9387_s17, %s21_s17  }
   0x2   : > { %p337_p1 = scmp.lt.s32.totalorder %s9319_s17, 3 }
   0x4   : > { %p338_p2 = pnand %p7462_p0, %p337_p1 }
   0x6   : > { %341 = sbr.rel (%p338_p2) target bundleno = 1586 (0x632), region = 64 }
   0xb   : > { %v8830_v0 = vld [vmem:[%s12696_s1 + $0xac] ss:$12 sps:$4 sm:$0xff]   ;;  %v8832_v1 = vld [vmem:[%s12696_s1 + $0xa8] ss:$12 sps:$4 sm:$0xff]   ;;  %v12715_v2 = vmov 0   ;;  %p377_p3 = scmp.lt.s32.totalorder %s7458_s18, 1 }
   0xc   : > { %1174 = vmatprep.mubr.bf16.mxu1 %v12715_v2  ;;  %440 = vst [vmem:[#allocation2] sm:$0xf] %v12715_v2  ;;  %441 = vst [vmem:[#allocation2 + $0x4] sm:$0xf] %v12715_v2  ;;  %8828 = vset.pattern.permute.xlu0 %v12715_v2  ;;  %v8833_v3 = vld [vmem:[%s12696_s1 + $0x94] ss:$12 sps:$4 sm:$0xff]  }
   0xd   : > { %442 = vst [vmem:[#allocation2 + $0x3c] sm:$0xf] %v12715_v2  ;;  %443 = vst [vmem:[#allocation2 + $0x40] sm:$0xf] %v12715_v2  ;;  %1041 = vmatprep.subr.bf16.mxu0 %v8830_v0  ;;  %8829 = vset.pattern.permute.xlu1 %v12715_v2  ;;  %v8835_v4 = vld [vmem:[%s12696_s1 + $0x90] ss:$12 sps:$4 sm:$0xff]  }
   0xe   : > { %1042 = vmatpush1.bf16.msra.mxu0 %v8832_v1  ;;  %v8836_v5 = vld [vmem:[%s12696_s1 + $0x7c] ss:$12 sps:$4 sm:$0xff]   ;;  %v8838_v6 = vld [vmem:[%s12696_s1 + $0x78] ss:$12 sps:$4 sm:$0xff]   ;;  %v8841_v10 = vld [vmem:[%s12696_s1 + $0x60] ss:$12 sps:$4 sm:$0xff]  }
   0xf   : > { %1043 = vmatprep.subr.bf16.mxu0 %v8833_v3  ;;  %v8839_v7 = vld [vmem:[%s12696_s1 + $0x64] ss:$12 sps:$4 sm:$0xff]   ;;  %v8851_v8 = vld [vmem:[%s12696_s1 + $0x22c] ss:$12 sps:$4 sm:$0xff]   ;;  %v8853_v9 = vld [vmem:[%s12696_s1 + $0x228] ss:$12 sps:$4 sm:$0xff]  }
  0x10   : > { %v8842_v11 = vld [vmem:[%s12696_s1 + $0x4c] ss:$12 sps:$4 sm:$0xff]   ;;  %1142 = vmatprep.subr.bf16.mxu1 %v8851_v8  ;;  %v8857_v12 = vld [vmem:[%s12696_s1 + $0x214] ss:$12 sps:$4 sm:$0xff]   ;;  %v8859_v13 = vld [vmem:[%s12696_s1 + $0x210] ss:$12 sps:$4 sm:$0xff]  }
  0x11   : > { %1143 = vmatpush1.bf16.msra.mxu1 %v8853_v9  ;;  %v8844_v14 = vld [vmem:[%s12696_s1 + $0x48] ss:$12 sps:$4 sm:$0xff]   ;;  %v8865_v17 = vld [vmem:[%s12696_s1 + $0x1f8] ss:$12 sps:$4 sm:$0xff]   ;;  %v8847_v19 = vld [vmem:[%s12696_s1 + $0x30] ss:$12 sps:$4 sm:$0xff]  }
  0x12   : > { %1044 = vmatpush1.bf16.msra.mxu0 %v8835_v4  ;;  %1144 = vmatprep.subr.bf16.mxu1 %v8857_v12  ;;  %v8863_v15 = vld [vmem:[%s12696_s1 + $0x1fc] ss:$12 sps:$4 sm:$0xff]   ;;  %v8845_v16 = vld [vmem:[%s12696_s1 + $0x34] ss:$12 sps:$4 sm:$0xff]   ;;  %v8869_v18 = vld [vmem:[%s12696_s1 + $0x1e4] ss:$12 sps:$4 sm:$0xff]  }
  0x13   : > { %1045 = vmatprep.subr.bf16.mxu0 %v8836_v5  ;;  %v8848_v20 = vld [vmem:[%s12696_s1 + $0x1c] ss:$12 sps:$4 sm:$0xff]   ;;  %v8871_v21 = vld [vmem:[%s12696_s1 + $0x1e0] ss:$12 sps:$4 sm:$0xff]   ;;  %s12996_s18 = smov (!%p377_p3, %s7458_s18), 1  ;;  %s9322_s15 = smov 96  }
  0x14   : > { %v8875_v22 = vld [vmem:[%s12696_s1 + $0x1cc] ss:$12 sps:$4 sm:$0xff]   ;;  %v8854_v24 = vld [vmem:[%s12696_s1 + $0x4] ss:$12 sps:$4 sm:$0xff]   ;;  %v8877_v25 = vld [vmem:[%s12696_s1 + $0x1c8] ss:$12 sps:$4 sm:$0xff]  }
  0x15   : > { %1145 = vmatpush1.bf16.msra.mxu1 %v8859_v13  ;;  %v8850_v23 = vld [vmem:[%s12696_s1 + $0x18] ss:$12 sps:$4 sm:$0xff]   ;;  %s8813_s16 = smul.u32 156, %s12996_s18  ;;  %v8881_v26 = vld [vmem:[%s12696_s1 + $0x1b4] ss:$12 sps:$4 sm:$0xff]   ;;  %v415_v48 = vld [vmem:[%s12705_s10 + $0x8] sm:$0xff] }
  0x16   : > { %1046 = vmatpush1.bf16.msra.mxu0 %v8838_v6  ;;  %1146 = vmatprep.subr.bf16.mxu1 %v8863_v15  ;;  %v8856_v27 = vld [vmem:[%s12696_s1] ss:$12 sps:$4 sm:$0xff]   ;;  %v8883_v29 = vld [vmem:[%s12696_s1 + $0x1b0] ss:$12 sps:$4 sm:$0xff]   ;;  %v8862_v31 = vld [vmem:[%s12696_s1 + $0x168] ss:$12 sps:$4 sm:$0xff]  }
  0x17   : > { %1047 = vmatprep.subr.bf16.mxu0 %v8839_v7  ;;  %v8860_v28 = vld [vmem:[%s12696_s1 + $0x16c] ss:$12 sps:$4 sm:$0xff]   ;;  %s9501_s29 = scalar_lea.vmem %s12695_s0, %s8813_s16  ;;  %v8887_v30 = vld [vmem:[%s12696_s1 + $0x19c] ss:$12 sps:$4 sm:$0xff]   ;;  %v8866_v32 = vld [vmem:[%s12696_s1 + $0x154] ss:$12 sps:$4 sm:$0xff]   ;;  %s12630_s21 = scalar_lea.vmem %s12706_s11, %s8813_s16 }
  0x18   : > { %v8889_v33 = vld [vmem:[%s12696_s1 + $0x198] ss:$12 sps:$4 sm:$0xff]   ;;  %v8868_v36 = vld [vmem:[%s12696_s1 + $0x150] ss:$12 sps:$4 sm:$0xff]   ;;  %v8895_v38 = vld [vmem:[%s12696_s1 + $0x180] ss:$12 sps:$4 sm:$0xff]  }
  0x19   : > { %1147 = vmatpush1.bf16.msra.mxu1 %v8865_v17  ;;  %v8893_v34 = vld [vmem:[%s12696_s1 + $0x184] ss:$12 sps:$4 sm:$0xff]   ;;  %v8872_v37 = vld [vmem:[%s12696_s1 + $0x13c] ss:$12 sps:$4 sm:$0xff]   ;;  %v8880_v42 = vld [vmem:[%s12696_s1 + $0x120] ss:$12 sps:$4 sm:$0xff]  }
  0x1a   : > { %1048 = vmatpush1.bf16.msra.mxu0 %v8841_v10  ;;  %1148 = vmatprep.subr.bf16.mxu1 %v8869_v18  ;;  %v9519_v35 = vld [vmem:[%s9501_s29 + $0x4] ss:$12 sps:$4 sm:$0xff]   ;;  %v9538_v41 = vld [vmem:[%s9501_s29 + $0x8] ss:$12 sps:$4 sm:$0xff]   ;;  %v8884_v43 = vld [vmem:[%s12696_s1 + $0x10c] ss:$12 sps:$4 sm:$0xff]  }
  0x1b   : > { %1049 = vmatprep.subr.bf16.mxu0 %v8842_v11  ;;  %1073 = vmatprep.mubr.bf16.mxu0 %v9519_v35  ;;  %v8874_v39 = vld [vmem:[%s12696_s1 + $0x138] ss:$12 sps:$4 sm:$0xff]   ;;  %v8886_v44 = vld [vmem:[%s12696_s1 + $0x108] ss:$12 sps:$4 sm:$0xff]   ;;  %v9555_v46 = vld [vmem:[%s9501_s29 + $0x20] ss:$12 sps:$4 sm:$0xff]  }
  0x1c   : > { %v8878_v40 = vld [vmem:[%s12696_s1 + $0x124] ss:$12 sps:$4 sm:$0xff]   ;;  %v8890_v45 = vld [vmem:[%s12696_s1 + $0xf4] ss:$12 sps:$4 sm:$0xff]   ;;  %vm428_vm1 = vcmp.gt.f32.partialorder %v415_v48, 0.0  ;;  %v417_v50 = vld [vmem:[%s12705_s10 + $0x18] sm:$0xff] }
  0x1d   : > { %1149 = vmatpush1.bf16.msra.mxu1 %v8871_v21  ;;  %v414_v47 = vld [vmem:[%s12705_s10] sm:$0xff]  ;;  %v416_v51 = vld [vmem:[%s12705_s10 + $0x10] sm:$0xff]  ;;  %v419_v52 = vld [vmem:[%s12705_s10 + $0x28] sm:$0xff]  ;;  %vm430_vm2 = vcmp.gt.f32.partialorder %v417_v50, 0.0  ;;  %v1521_v61 = vsel %vm428_vm1, 1, %v12715_v2  ;;  %vm9324_vm12 = vmmov 0  }
  0x1e   : > { %1050 = vmatpush1.bf16.msra.mxu0 %v8844_v14  ;;  %1150 = vmatprep.subr.bf16.mxu1 %v8875_v22  ;;  %v7559_v49 = vld [vmem:[%s12698_s3] ss:$0 sm:$0xff]  ;;  %vm427_vm0 = vcmp.gt.f32.partialorder %v414_v47, 0.0  ;;  %v8892_v53 = vld [vmem:[%s12696_s1 + $0xf0] ss:$12 sps:$4 sm:$0xff]   ;;  %vm429_vm3 = vcmp.gt.f32.partialorder %v416_v51, 0.0 }
  0x1f   : > { %1051 = vmatprep.subr.bf16.mxu0 %v8845_v16  ;;  %1465 = vrot.lane.b32.xlu1 %v7559_v49, %s9322_s15  ;;  %v1520_v54 = vsel %vm427_vm0, 1, %v12715_v2  ;;  %v418_v55 = vld [vmem:[%s12705_s10 + $0x20] sm:$0xff]  ;;  %v421_v56 = vld [vmem:[%s12705_s10 + $0x38] sm:$0xff]  ;;  %v1522_v58 = vsel %vm429_vm3, 1, %v12715_v2  ;;  %vm432_vm4 = vcmp.gt.f32.partialorder %v419_v52, 0.0  ;;  %v420_v59 = vld [vmem:[%s12705_s10 + $0x30] sm:$0xff] }
  0x20   : > { %v8896_v57 = vld [vmem:[%s12696_s1 + $0xdc] ss:$12 sps:$4 sm:$0xff]   ;;  %1534 = vperm.xlu0 %8828, %v1520_v54   ;;  %vm431_vm5 = vcmp.gt.f32.partialorder %v418_v55, 0.0  ;;  %v1523_v62 = vsel %vm430_vm2, 1, %v12715_v2  ;;  %vm434_vm6 = vcmp.gt.f32.partialorder %v421_v56, 0.0  ;;  %vm433_vm7 = vcmp.gt.f32.partialorder %v420_v59, 0.0 }
  0x21   : > { %1151 = vmatpush1.bf16.msra.mxu1 %v8877_v25  ;;  %v423_v60 = vld [vmem:[%s12705_s10 + $0x48] sm:$0xff]  ;;  %v422_v63 = vld [vmem:[%s12705_s10 + $0x40] sm:$0xff]  ;;  %v1525_v0 = vsel %vm432_vm4, 1, %v12715_v2  ;;  %v1524_v1 = vsel %vm431_vm5, 1, %v12715_v2  ;;  %v424_v3 = vld [vmem:[%s12705_s10 + $0x50] sm:$0xff]  ;;  %v1527_v5 = vsel %vm434_vm6, 1, %v12715_v2 }
  0x22   : > { %1052 = vmatpush1.bf16.msra.mxu0 %v8847_v19  ;;  %1152 = vmatprep.subr.bf16.mxu1 %v8881_v26  ;;  %vm436_vm8 = vcmp.gt.f32.partialorder %v423_v60, 0.0  ;;  %vm435_vm9 = vcmp.gt.f32.partialorder %v422_v63, 0.0  ;;  %v8898_v4 = vld [vmem:[%s12696_s1 + $0xd8] ss:$12 sps:$4 sm:$0xff]   ;;  %v1526_v6 = vsel %vm433_vm7, 1, %v12715_v2  ;;  %vm437_vm10 = vcmp.gt.f32.partialorder %v424_v3, 0.0 }
  0x23   : > { %1053 = vmatprep.subr.bf16.mxu0 %v8848_v20  ;;  %1540 = vperm.xlu1 %8829, %v1522_v58   ;;  %v1529_v7 = vsel %vm436_vm8, 1, %v12715_v2  ;;  %v8900_v8 = vld [vmem:[%s12696_s1 + $0xc4] ss:$12 sps:$4 sm:$0xff]   ;;  %v1528_v10 = vsel %vm435_vm9, 1, %v12715_v2  ;;  %v1530_v11 = vsel %vm437_vm10, 1, %v12715_v2  ;;  %v425_v12 = vld [vmem:[%s12705_s10 + $0x58] sm:$0xff] }
  0x24   : > { %v9619_v9 = vld [vmem:[%s9501_s29 + $0x38] ss:$12 sps:$4 sm:$0xff]   ;;  %1537 = vperm.xlu0 %8828, %v1521_v61   ;;  %v8902_v13 = vld [vmem:[%s12696_s1 + $0xc0] ss:$12 sps:$4 sm:$0xff]   ;;  %vm438_vm11 = vcmp.gt.f32.partialorder %v425_v12, 0.0  ;;  %s9325_s14 = smov 32  }
  0x25   : > { %1153 = vmatpush1.bf16.msra.mxu1 %v8883_v29  ;;  %v9630_v14 = vld [vmem:[%s9501_s29] ss:$12 sps:$4 sm:$0xff]   ;;  %v9634_v15 = vld [vmem:[%s9501_s29 + $0x1c] ss:$12 sps:$4 sm:$0xff]   ;;  %v9643_v17 = vld [vmem:[%s9501_s29 + $0x18] ss:$12 sps:$4 sm:$0xff]  }
  0x26   : > { %1054 = vmatpush1.bf16.msra.mxu0 %v8850_v23  ;;  %1154 = vmatprep.subr.bf16.mxu1 %v8887_v30  ;;  %v9638_v16 = vld [vmem:[%s9501_s29 + $0x50] ss:$12 sps:$4 sm:$0xff]   ;;  %v9647_v18 = vld [vmem:[%s9501_s29 + $0x34] ss:$12 sps:$4 sm:$0xff]   ;;  %v1531_v20 = vsel %vm438_vm11, 1, %v12715_v2  ;;  %vm12733_vm10 = vcmask 261120  }
  0x27   : > { %1055 = vmatprep.subr.bf16.mxu0 %v8854_v24  ;;  %1546 = vperm.xlu1 %8829, %v1524_v1   ;;  %v9651_v19 = vld [vmem:[%s9501_s29 + $0x68] ss:$12 sps:$4 sm:$0xff]   ;;  %v9658_v21 = vld [vmem:[%s9501_s29 + $0x30] ss:$12 sps:$4 sm:$0xff]   ;;  %v9662_v22 = vld [vmem:[%s9501_s29 + $0x4c] ss:$12 sps:$4 sm:$0xff]  }
  0x28   : > { %1543 = vperm.xlu0 %8828, %v1523_v62   ;;  %v9666_v23 = vld [vmem:[%s9501_s29 + $0x80] ss:$12 sps:$4 sm:$0xff]   ;;  %v9671_v24 = vld [vmem:[%s9501_s29 + $0x48] ss:$12 sps:$4 sm:$0xff]   ;;  %v9675_v25 = vld [vmem:[%s9501_s29 + $0x64] ss:$12 sps:$4 sm:$0xff]  }
  0x29   : > { %1155 = vmatpush1.bf16.msra.mxu1 %v8889_v33  ;;  %v9679_v26 = vld [vmem:[%s9501_s29 + $0x98] ss:$0 sps:$4 sm:$0xff]   ;;  %v412_v29 = vld [vmem:[%s9501_s29 + $0x90] sm:$0xff]  ;;  %v8947_v55 = vld [vmem:[%s12696_s1 + $0x20] ss:$12 sps:$4 sm:$0xff]   ;;  %vm12729_vm11 = vcmask 1044480  }
  0x2a   : > { %1056 = vmatpush1.bf16.msra.mxu0 %v8856_v27  ;;  %1156 = vmatprep.subr.bf16.mxu1 %v8893_v34  ;;  %v9684_v27 = vld [vmem:[%s9501_s29 + $0x60] ss:$12 sps:$4 sm:$0xff]   ;;  %v9695_v30 = vld [vmem:[%s9501_s29 + $0x78] ss:$12 sps:$4 sm:$0xff]   ;;  %v8929_v33 = vld [vmem:[%s12696_s1 + $0x170] ss:$12 sps:$4 sm:$0xff]  }
  0x2b   : > { %1057 = vmatprep.subr.bf16.mxu0 %v8860_v28  ;;  %1552 = vperm.xlu1 %8829, %v1526_v6   ;;  %v9688_v28 = vld [vmem:[%s9501_s29 + $0x7c] ss:$12 sps:$4 sm:$0xff]   ;;  %v8943_v50 = vld [vmem:[%s12696_s1 + $0xf8] ss:$12 sps:$4 sm:$0xff]   ;;  %s9326_s28 = smov 64  }
  0x2c   : > { %1549 = vperm.xlu0 %8828, %v1525_v0   ;;  %v8930_v34 = vld [vmem:[%s12696_s1 + $0xb0] ss:$12 sps:$4 sm:$0xff]   ;;  %v8942_v48 = vld [vmem:[%s12696_s1 + $0x1e8] ss:$12 sps:$4 sm:$0xff]   ;;  %v8944_v52 = vld [vmem:[%s12696_s1 + $0x38] ss:$12 sps:$4 sm:$0xff]  }
  0x2d   : > { %1157 = vmatpush1.bf16.msra.mxu1 %v8895_v38  ;;  %v8932_v38 = vld [vmem:[%s12696_s1 + $0x98] ss:$12 sps:$4 sm:$0xff]   ;;  %v8940_v47 = vld [vmem:[%s12696_s1 + $0x110] ss:$12 sps:$4 sm:$0xff]   ;;  %v8949_v56 = vld [vmem:[%s12696_s1 + $0xc8] ss:$12 sps:$4 sm:$0xff]  }
  0x2e   : > { %1058 = vmatpush2.bf16.msra.mxu0 %v8862_v31  ;;  %v9697_v31 = vcombine.high %v412_v29, %v412_v29  ;;  %8207 = vmatprep.subr.bf16.mxu1 %v8929_v33  ;;  %v8941_v49 = vld [vmem:[%s12696_s1 + $0x50] ss:$12 sps:$4 sm:$0xff]   ;;  %v8948_v54 = vld [vmem:[%s12696_s1 + $0x1b8] ss:$12 sps:$4 sm:$0xff]   ;;  %v8950_v58 = vld [vmem:[%s12696_s1 + $0x8] ss:$12 sps:$4 sm:$0xff]  }
  0x2f   : > { %1059 = vmatprep.subr.bf16.mxu0 %v8866_v32  ;;  %1558 = vperm.xlu1 %8829, %v1528_v10   ;;  %v9701_v32 = vcombine.low %v412_v29, %v412_v29  ;;  %v8945_v51 = vld [vmem:[%s12696_s1 + $0x1d0] ss:$12 sps:$4 sm:$0xff]   ;;  %v8952_v59 = vld [vmem:[%s12696_s1 + $0x188] ss:$12 sps:$4 sm:$0xff]   ;;  %v8958_v63 = vld [vmem:[%s12699_s4 + $0xe4] ss:$8 sps:$4 sm:$0xff]  }
  0x30   : > { %1175 = vmatmul.mubr.bf16.vlgmr.msra.gmra.mxu1 %v9538_v41  ;;  %1555 = vperm.xlu0 %8828, %v1527_v5   ;;  %v8955_v60 = vld [vmem:[%s12699_s4 + $0xf4] ss:$8 sps:$4 sm:$0xff]   ;;  %v8953_v62 = vld [vmem:[%s12699_s4 + $0xf0] ss:$8 sps:$4 sm:$0xff]   ;;  %v8967_v1 = vld [vmem:[%s12699_s4 + $0x64] ss:$8 sps:$4 sm:$0xff]  }
  0x31   : > { %1184 = vmatprep.mubr.bf16.mxu1 %v12715_v2  ;;  %8208 = vmatpush3.bf16.msra.mxu1 %v8930_v34  ;;  %v8961_v61 = vld [vmem:[%s12699_s4 + $0x74] ss:$8 sps:$4 sm:$0xff]   ;;  %v8959_v0 = vld [vmem:[%s12699_s4 + $0x70] ss:$8 sps:$4 sm:$0xff]   ;;  %v8956_v3 = vld [vmem:[%s12699_s4 + $0xe0] ss:$8 sps:$4 sm:$0xff]  }
  0x32   : > { %1060 = vmatpush2.bf16.msra.mxu0 %v8868_v36  ;;  %v12707_v36 = vmov 0.0   ;;  %v8962_v5 = vld [vmem:[%s12699_s4 + $0xd0] ss:$8 sps:$4 sm:$0xff]   ;;  %v8976_v29 = vld [vmem:[%s12699_s4 + $0xb4] ss:$8 sps:$4 sm:$0xff]  }
  0x33   : > { %1061 = vmatprep.subr.bf16.mxu0 %v8872_v37  ;;  %1564 = vperm.xlu1 %8829, %v1530_v11   ;;  %v8933_v37 = vld [vmem:[%s12696_s1 + $0x230] ss:$12 sps:$4 sm:$0xff]   ;;  %v8979_v33 = vld [vmem:[%s12699_s4 + $0x44] ss:$8 sps:$4 sm:$0xff]  }
  0x34   : > { %1561 = vperm.xlu0 %8828, %v1529_v7  }
  0x36   : > { %1062 = vmatpush2.bf16.msra.mxu0 %v8874_v39  ;;  %v8934_v39 = vld [vmem:[%s12696_s1 + $0x140] ss:$12 sps:$4 sm:$0xff]  }
  0x37   : > { %1063 = vmatprep.subr.bf16.mxu0 %v8878_v40  ;;  %v8936_v40 = vld [vmem:[%s12696_s1 + $0x218] ss:$12 sps:$4 sm:$0xff]  }
  0x38   : > { %1185 = vmatmul.mubr.bf16.gmra.mxu1 %v9555_v46  ;;  %1567 = vperm.xlu0 %8828, %v1531_v20   ;;  %v8971_v20 = vld [vmem:[%s12699_s4 + $0x50] ss:$8 sps:$4 sm:$0xff]  }
  0x39   : > { %1194 = vmatprep.mubr.bf16.mxu1 %v12715_v2 }
  0x3a   : > { %1064 = vmatpush2.bf16.msra.mxu0 %v8880_v42  ;;  %v8935_v42 = vld [vmem:[%s12696_s1 + $0x80] ss:$12 sps:$4 sm:$0xff]  }
  0x3b   : > { %1065 = vmatprep.subr.bf16.mxu0 %v8884_v43  ;;  %v8937_v43 = vld [vmem:[%s12696_s1 + $0x128] ss:$12 sps:$4 sm:$0xff]  }
  0x3e   : > { %1066 = vmatpush2.bf16.msra.mxu0 %v8886_v44  ;;  %v8939_v44 = vld [vmem:[%s12696_s1 + $0x200] ss:$12 sps:$4 sm:$0xff]  }
  0x3f   : > { %1067 = vmatprep.subr.bf16.mxu0 %v8890_v45  ;;  %v8938_v45 = vld [vmem:[%s12696_s1 + $0x68] ss:$12 sps:$4 sm:$0xff]  }
  0x40   : > { %1195 = vmatmul.mubr.bf16.gmra.mxu1 %v9619_v9 }
  0x41   : > { %1204 = vmatprep.mubr.bf16.mxu1 %v12715_v2 }
  0x42   : > { %1068 = vmatpush2.bf16.msra.mxu0 %v8892_v53  ;;  %v8946_v53 = vld [vmem:[%s12696_s1 + $0xe0] ss:$12 sps:$4 sm:$0xff]  }
  0x43   : > { %1069 = vmatprep.subr.bf16.mxu0 %v8896_v57  ;;  %v8951_v57 = vld [vmem:[%s12696_s1 + $0x1a0] ss:$12 sps:$4 sm:$0xff]  }
  0x46   : > { %1070 = vmatpush2.bf16.msra.mxu0 %v8898_v4  ;;  %v8964_v4 = vld [vmem:[%s12699_s4 + $0xd4] ss:$8 sps:$4 sm:$0xff]  }
  0x47   : > { %1071 = vmatprep.subr.bf16.mxu0 %v8900_v8 }
  0x48   : > { %1205 = vmatmul.mubr.bf16.gmra.mxu1 %v9638_v16 }
  0x49   : > { %1214 = vmatprep.mubr.bf16.mxu1 %v12715_v2 }
  0x4a   : > { %1072 = vmatpush2.bf16.msra.mxu0 %v8902_v13 }
  0x4b   : > { %8397 = vmatprep.subr.bf16.mxu0 %v12707_v36 }
  0x4d   : > { %1074 = vmatmul.mubr.bf16.vlgmr.msra.gmra.mxu0 %v9630_v14 }
  0x4e   : > { %1083 = vmatprep.mubr.bf16.mxu0 %v9634_v15  ;;  %8398 = vmatpush3.bf16.msra.mxu0 %v8933_v37 }
  0x4f   : > { %8399 = vmatprep.subr.bf16.mxu0 %v12707_v36 }
  0x50   : > { %1215 = vmatmul.mubr.bf16.gmra.mxu1 %v9651_v19 }
  0x51   : > { %1224 = vmatprep.mubr.bf16.mxu1 %v12715_v2 }
  0x52   : > { %8400 = vmatpush3.bf16.msra.mxu0 %v8936_v40 }
  0x53   : > { %8401 = vmatprep.subr.bf16.mxu0 %v12707_v36 }
  0x55   : > { %1084 = vmatmul.mubr.bf16.gmra.mxu0 %v9643_v17 }
  0x56   : > { %1093 = vmatprep.mubr.bf16.mxu0 %v9647_v18  ;;  %8402 = vmatpush3.bf16.msra.mxu0 %v8939_v44 }
  0x57   : > { %8403 = vmatprep.subr.bf16.mxu0 %v12707_v36 }
  0x58   : > { %1225 = vmatmul.mubr.bf16.gmra.mxu1 %v9666_v23 }
  0x59   : > { %1234 = vmatprep.mubr.bf16.mxu1 %v12715_v2 }
  0x5a   : > { %8404 = vmatpush3.bf16.msra.mxu0 %v8942_v48 }
  0x5b   : > { %8405 = vmatprep.subr.bf16.mxu0 %v12707_v36 }
  0x5d   : > { %1094 = vmatmul.mubr.bf16.gmra.mxu0 %v9658_v21 }
  0x5e   : > { %1103 = vmatprep.mubr.bf16.mxu0 %v9662_v22  ;;  %8406 = vmatpush3.bf16.msra.mxu0 %v8945_v51 }
  0x5f   : > { %8407 = vmatprep.subr.bf16.mxu0 %v12707_v36 }
  0x60   : > { %1235 = vmatmul.mubr.bf16.gmra.mxu1 %v9679_v26 }
  0x61   : > { %1275 = vmatprep.mubr.bf16.mxu1 %v9519_v35  ;;  %v8931_v35 = vld [vmem:[%s12696_s1 + $0x158] ss:$12 sps:$4 sm:$0xff]  }
  0x62   : > { %8209 = vmatprep.subr.bf16.mxu1 %v8931_v35  ;;  %8408 = vmatpush3.bf16.msra.mxu0 %v8948_v54 }
  0x63   : > { %8210 = vmatpush3.bf16.msra.mxu1 %v8932_v38  ;;  %8409 = vmatprep.subr.bf16.mxu0 %v12707_v36  ;;  %v8974_v38 = vld [vmem:[%s12699_s4 + $0xb0] ss:$8 sps:$4 sm:$0xff]  }
  0x64   : > { %8211 = vmatprep.subr.bf16.mxu1 %v8934_v39  ;;  %v8977_v39 = vld [vmem:[%s12699_s4 + $0x40] ss:$8 sps:$4 sm:$0xff]  }
  0x65   : > { %1104 = vmatmul.mubr.bf16.gmra.mxu0 %v9671_v24 }
  0x66   : > { %1113 = vmatprep.mubr.bf16.mxu0 %v9675_v25  ;;  %8410 = vmatpush3.bf16.msra.mxu0 %v8951_v57 }
  0x67   : > { %8212 = vmatpush3.bf16.msra.mxu1 %v8935_v42  ;;  %8411 = vmatprep.subr.bf16.mxu0 %v12707_v36 }
  0x68   : > { %8213 = vmatprep.subr.bf16.mxu1 %v8937_v43 }
  0x6a   : > { %8412 = vmatpush3.bf16.msra.mxu0 %v8952_v59 }
  0x6b   : > { %8214 = vmatpush3.bf16.msra.mxu1 %v8938_v45  ;;  %2313 = vmatprep.subr.bf16.mxu0 %v8961_v61 }
  0x6c   : > { %8215 = vmatprep.subr.bf16.mxu1 %v8940_v47 }
  0x6d   : > { %1114 = vmatmul.mubr.bf16.gmra.mxu0 %v9684_v27 }
  0x6e   : > { %1123 = vmatprep.mubr.bf16.mxu0 %v9688_v28 }
  0x6f   : > { %8216 = vmatpush3.bf16.msra.mxu1 %v8941_v49  ;;  %v8982_v49 = vld [vmem:[%s12699_s4 + $0xa4] ss:$8 sps:$4 sm:$0xff]  }
  0x70   : > { %8217 = vmatprep.subr.bf16.mxu1 %v8943_v50  ;;  %v8985_v50 = vld [vmem:[%s12699_s4 + $0x34] ss:$8 sps:$4 sm:$0xff]  }
  0x73   : > { %8218 = vmatpush3.bf16.msra.mxu1 %v8944_v52 }
  0x74   : > { %8219 = vmatprep.subr.bf16.mxu1 %v8946_v53 }
  0x75   : > { %1124 = vmatmul.mubr.bf16.gmra.mxu0 %v9695_v30 }
  0x76   : > { %1133 = vmatprep.mubr.bf16.mxu0 %v9697_v31 }
  0x77   : > { %8220 = vmatpush3.bf16.msra.mxu1 %v8947_v55  ;;  %v8983_v55 = vld [vmem:[%s12699_s4 + $0x30] ss:$8 sps:$4 sm:$0xff]  }
  0x78   : > { %8221 = vmatprep.subr.bf16.mxu1 %v8949_v56 }
  0x7b   : > { %8222 = vmatpush3.bf16.msra.mxu1 %v8950_v58 }
  0x7c   : > { %2059 = vmatprep.subr.bf16.mxu1 %v8955_v60 }
  0x7d   : > { %1134 = vmatmul.mubr.bf16.gmra.mxu0 %v9701_v32 }
  0x7e   : > { %8413 = vmatprep.mubr.msk.bf16.mxu0 %vm9324_vm12, %v12707_v36  ;;  %1276 = vmatmul.mubr.bf16.vlgmr.msra.gmra.mxu1 %v9630_v14 }
  0x7f   : > { %1283 = vmatprep.mubr.bf16.mxu1 %v9634_v15  ;;  %2060 = vmatpush1.bf16.msra.mxu1 %v8953_v62 }
  0x80   : > { %2061 = vmatprep.subr.bf16.mxu1 %v8958_v63 }
  0x83   : > { %2062 = vmatpush1.bf16.msra.mxu1 %v8956_v3  ;;  %v8988_v3 = vld [vmem:[%s12699_s4 + $0x94] ss:$8 sps:$4 sm:$0xff]  }
  0x84   : > { %2063 = vmatprep.subr.bf16.mxu1 %v8964_v4  ;;  %v8991_v4 = vld [vmem:[%s12699_s4 + $0x24] ss:$8 sps:$4 sm:$0xff]  }
  0x85   : > { %8414 = vmatmul.mubr.bf16.vlgmr.msra.gmra.mxu0 %v9538_v41  ;;  %v8965_v41 = vld [vmem:[%s12699_s4 + $0x60] ss:$8 sps:$4 sm:$0xff]  }
  0x86   : > { %8417 = vmatprep.mubr.msk.bf16.mxu0 %vm9324_vm12, %v12707_v36  ;;  %2314 = vmatpush1.bf16.msra.mxu0 %v8959_v0 }
  0x87   : > { %2315 = vmatprep.subr.bf16.mxu0 %v8967_v1  ;;  %1284 = vmatmul.mubr.bf16.gmra.mxu1 %v9643_v17  ;;  %v8973_v17 = vld [vmem:[%s12699_s4 + $0x54] ss:$8 sps:$4 sm:$0xff]  }
  0x88   : > { %1291 = vmatprep.mubr.bf16.mxu1 %v9647_v18  ;;  %2064 = vmatpush1.bf16.msra.mxu1 %v8962_v5 }
  0x8a   : > { %2316 = vmatpush1.bf16.msra.mxu0 %v8965_v41 }
  0x8b   : > { %2317 = vmatprep.subr.bf16.mxu0 %v8973_v17 }
  0x8d   : > { %8418 = vmatmul.mubr.bf16.gmra.mxu0 %v9555_v46 }
  0x8e   : > { %8421 = vmatprep.mubr.msk.bf16.mxu0 %vm9324_vm12, %v12707_v36  ;;  %2318 = vmatpush1.bf16.msra.mxu0 %v8971_v20 }
  0x8f   : > { %1292 = vmatmul.mubr.bf16.gmra.mxu1 %v9658_v21  ;;  %2319 = vmatprep.subr.bf16.mxu0 %v8979_v33 }
  0x90   : > { %1299 = vmatprep.mubr.bf16.mxu1 %v9662_v22 }
  0x91   : > { %v9861_v18 = vpop.permute.xlu1 %1465 }
  0x92   : > { %2320 = vmatpush1.bf16.msra.mxu0 %v8977_v39 }
  0x93   : > { %2321 = vmatprep.subr.bf16.mxu0 %v8985_v50 }
  0x95   : > { %8422 = vmatmul.mubr.bf16.gmra.mxu0 %v9619_v9 }
  0x96   : > { %8425 = vmatprep.mubr.msk.bf16.mxu0 %vm9324_vm12, %v12707_v36  ;;  %2322 = vmatpush1.bf16.msra.mxu0 %v8983_v55 }
  0x97   : > { %1300 = vmatmul.mubr.bf16.gmra.mxu1 %v9671_v24  ;;  %2323 = vmatprep.subr.bf16.mxu0 %v8991_v4 }
  0x98   : > { %1307 = vmatprep.mubr.bf16.mxu1 %v9675_v25  ;;  %v9874_v25 = vld [vmem:[%s12697_s2] ss:$0 sm:$0xff] }
  0x9b   : > { %v9886_v35 = vpop.permute.xlu0 %1534 }
  0x9c   : > { %12779 = vst [vmem:[#allocation6_spill] sm:$0xff] %v9886_v35  ;;  %vm1572_vm13 = vcmp.eq.s32.totalorder %v9886_v35, 1 }
  0x9d   : > { %8426 = vmatmul.mubr.bf16.gmra.mxu0 %v9638_v16  ;;  %v8970_v16 = vld [vmem:[%s12699_s4 + $0xc4] ss:$8 sps:$4 sm:$0xff]  }
  0x9e   : > { %8429 = vmatprep.mubr.msk.bf16.mxu0 %vm9324_vm12, %v12707_v36  ;;  %2065 = vmatprep.subr.bf16.mxu1 %v8970_v16 }
  0x9f   : > { %1308 = vmatmul.mubr.bf16.gmra.mxu1 %v9684_v27  ;;  %v9928_v61 = vpop.permute.xlu0 %1537 }
  0xa0   : > { %1315 = vmatprep.mubr.bf16.mxu1 %v9688_v28  ;;  %12781 = vst [vmem:[#allocation8_spill] sm:$0xff] %v9928_v61  ;;  %vm1573_vm14 = vcmp.eq.s32.totalorder %v9928_v61, 1 }
  0xa3   : > { %v9996_v50 = vpop.permute.xlu0 %1543 }
  0xa4   : > { %12786 = vst [vmem:[#allocation13_spill] sm:$0xff] %v9996_v50  ;;  %vm1575_vm0 = vcmp.eq.s32.totalorder %v9996_v50, 1 }
  0xa5   : > { %8430 = vmatmul.mubr.bf16.gmra.mxu0 %v9651_v19  ;;  %v8968_v19 = vld [vmem:[%s12699_s4 + $0xc0] ss:$8 sps:$4 sm:$0xff]  }
  0xa6   : > { %8433 = vmatprep.mubr.msk.bf16.mxu0 %vm9324_vm12, %v12707_v36  ;;  %2066 = vmatpush1.bf16.msra.mxu1 %v8968_v19 }
  0xa7   : > { %1316 = vmatmul.mubr.bf16.gmra.mxu1 %v9695_v30  ;;  %2067 = vmatprep.subr.bf16.mxu1 %v8976_v29 }
  0xa8   : > { %1323 = vmatprep.mubr.bf16.mxu1 %v9697_v31 }
  0xaa   : > { %2068 = vmatpush1.bf16.msra.mxu1 %v8974_v38  ;;  %v8997_v38 = vld [vmem:[%s12699_s4 + $0x14] ss:$8 sps:$4 sm:$0xff]  }
  0xab   : > { %2069 = vmatprep.subr.bf16.mxu1 %v8982_v49 }
  0xad   : > { %8434 = vmatmul.mubr.bf16.gmra.mxu0 %v9666_v23  ;;  %v8980_v23 = vld [vmem:[%s12699_s4 + $0xa0] ss:$8 sps:$4 sm:$0xff]  }
  0xae   : > { %8437 = vmatprep.mubr.msk.bf16.mxu0 %vm9324_vm12, %v12707_v36  ;;  %2070 = vmatpush1.bf16.msra.mxu1 %v8980_v23 }
  0xaf   : > { %1324 = vmatmul.mubr.bf16.gmra.mxu1 %v9701_v32  ;;  %2071 = vmatprep.subr.bf16.mxu1 %v8988_v3 }
  0xb0   : > { %2091 = vmatprep.mubr.bf16.mxu1 %v12715_v2 }
  0xb5   : > { %8438 = vmatmul.mubr.bf16.gmra.mxu0 %v9679_v26  ;;  %v8992_v26 = vld [vmem:[%s12699_s4 + $0x80] ss:$8 sps:$4 sm:$0xff]  }
  0xb6   : > { %2345 = vmatprep.mubr.bf16.mxu0 %v12715_v2 }
  0xf0   : > { %v1176_v6 = vpop.f32.mrf.mxu1 }
  0xf2   : > { %v1178_v7 = vpop.f32.mrf.mxu1 }
  0xf4   : > { %v1180_v8 = vpop.f32.mrf.mxu1 }
  0xf6   : > { %v1182_v10 = vpop.f32.mrf.mxu1 }
  0xf8   : > { %v9831_v46 = vpop.f32.mrf.mxu1 }
  0xfa   : > { %v9834_v11 = vpop.f32.mrf.mxu1 }
  0xfc   : > { %v9840_v9 = vpop.f32.mrf.mxu1 }
  0xfe   : > { %v9842_v12 = vpop.f32.mrf.mxu1 }
 0x100   : > { %v9844_v13 = vpop.f32.mrf.mxu1 }
 0x102   : > { %v9847_v14 = vpop.f32.mrf.mxu1 }
 0x104   : > { %v9853_v15 = vpop.f32.mrf.mxu1 }
 0x106   : > { %v9869_v22 = vpop.f32.mrf.mxu1 }
 0x108   : > { %v9876_v28 = vpop.f32.mrf.mxu1 }
 0x10a   : > { %v9897_v43 = vpop.f32.mrf.mxu1 }
 0x10c   : > { %v9901_v48 = vpop.f32.mrf.mxu1 }
 0x10d   : > { %v1075_v21 = vpop.f32.mrf.mxu0 }
 0x10e   : > { %v1177_v24 = vadd.f32 %v1176_v6, %v1075_v21  ;;  %v9924_v57 = vpop.f32.mrf.mxu1  ;;  %v9961_v21 = vpop.permute.xlu1 %1540 }
 0x10f   : > { %v1077_v27 = vpop.f32.mrf.mxu0  ;;  %12784 = vst [vmem:[#allocation11_spill] sm:$0xff] %v9961_v21  ;;  %vm1574_vm15 = vcmp.eq.s32.totalorder %v9961_v21, 1 }
 0x110   : > { %v9884_v34 = vadd.f32 %v1178_v7, %v1077_v27  ;;  %v1468_v37 = vadd.f32 %v9861_v18, %v1177_v24  ;;  %v1426_v40 = vadd.f32 %v9874_v25, %v1177_v24  ;;  %v9934_v1 = vpop.f32.mrf.mxu1 }
 0x111   : > { %v1079_v42 = vpop.f32.mrf.mxu0 }
 0x112   : > { %12778 = vst [vmem:[#allocation5_spill] sm:$0xff] %v9884_v34  ;;  %v1469_v44 = vadd.f32 %v9861_v18, %v9884_v34  ;;  %v1181_v45 = vadd.f32 %v1180_v8, %v1079_v42  ;;  %v1494_v47 = vmax.f32 %v1468_v37, 0.0  ;;  %v1439_v56 = vmax.f32 %v1426_v40, 0.0  ;;  %v8986_v8 = vld [vmem:[%s12699_s4 + $0x90] ss:$8 sps:$4 sm:$0xff]   ;;  %v9958_v20 = vpop.f32.mrf.mxu1 }
 0x113   : > { %v1081_v30 = vpop.f32.mrf.mxu0  ;;  %2072 = vmatpush1.bf16.msra.mxu1 %v8986_v8 }
 0x114   : > { %v1495_v51 = vmax.f32 %v1469_v44, 0.0  ;;  %v1427_v52 = vadd.f32 %v9874_v25, %v1181_v45  ;;  %v1470_v53 = vadd.f32 %v9861_v18, %v1181_v45  ;;  %v9913_v54 = vadd.f32 %v1182_v10, %v1081_v30  ;;  %v8989_v10 = vld [vmem:[%s12699_s4 + $0x20] ss:$8 sps:$4 sm:$0xff]   ;;  %v9970_v37 = vpop.f32.mrf.mxu1  ;;  %v8995_v45 = vld [vmem:[%s12699_s4 + $0x10] ss:$8 sps:$4 sm:$0xff]  }
 0x115   : > { %v1085_v31 = vpop.f32.mrf.mxu0  ;;  %v1585_v7 = vsel %vm1572_vm13, %v1494_v47, 0.0  ;;  %2324 = vmatpush1.bf16.msra.mxu0 %v8989_v10 }
 0x116   : > { %12780 = vst [vmem:[#allocation7_spill] sm:$0xff] %v9913_v54  ;;  %v1440_v58 = vmax.f32 %v1427_v52, 0.0  ;;  %v1496_v59 = vmax.f32 %v1470_v53, 0.0  ;;  %v1471_v60 = vadd.f32 %v9861_v18, %v9913_v54  ;;  %v1187_v62 = vadd.f32 %v9831_v46, %v1085_v31  ;;  %v9994_v49 = vpop.f32.mrf.mxu1  ;;  %2325 = vmatprep.subr.bf16.mxu0 %v8997_v38 }
 0x117   : > { %v1087_v63 = vpop.f32.mrf.mxu0  ;;  %v1586_v0 = vsel %vm1572_vm13, %v1495_v51, 0.0 }
 0x118   : > { %v9942_v41 = vpack.c.bf16 %v1440_v58, %v1439_v56  ;;  %v1497_v5 = vmax.f32 %v1471_v60, 0.0  ;;  %v1472_v6 = vadd.f32 %v9861_v18, %v1187_v62  ;;  %v1428_v46 = vadd.f32 %v9874_v25, %v1187_v62  ;;  %v10004_v31 = vpop.f32.mrf.mxu1  ;;  %v9002_v58 = vld [vmem:[%s12699_s4 + $0x4] ss:$8 sps:$4 sm:$0xff]  }
 0x119   : > { %v9956_v16 = vadd.f32 %v9834_v11, %v1087_v63  ;;  %v8181_v17 = vpack.c.bf16 %v1586_v0, %v1585_v7  ;;  %v1089_v19 = vpop.f32.mrf.mxu0  ;;  %v1587_v24 = vsel %vm1573_vm14, %v1496_v59, 0.0  ;;  %2326 = vmatpush1.bf16.msra.mxu0 %v8995_v45  ;;  %v9000_v63 = vld [vmem:[%s12699_s4] ss:$8 sps:$4 sm:$0xff]  }
 0x11a   : > { %12782 = vst [vmem:[#allocation9_spill] sm:$0xff] %v9942_v41  ;;  %v1191_v32 = vadd.f32 %v9840_v9, %v1089_v19  ;;  %v1588_v27 = vsel %vm1573_vm14, %v1497_v5, 0.0  ;;  %v8994_v9 = vld [vmem:[%s12699_s4 + $0x84] ss:$8 sps:$4 sm:$0xff]   ;;  %v1498_v39 = vmax.f32 %v1472_v6, 0.0  ;;  %v1441_v30 = vmax.f32 %v1428_v46, 0.0  ;;  %v10021_v6 = vpop.f32.mrf.mxu1  ;;  %2327 = vmatprep.subr.bf16.mxu0 %v9002_v58 }
 0x11b   : > { %12783 = vst [vmem:[#allocation10_spill] sm:$0xff] %v9956_v16  ;;  %v1473_v11 = vadd.f32 %v9861_v18, %v9956_v16  ;;  %1678 = vrot.lane.b32.xlu1 %v8181_v17, %s9325_s14  ;;  %v1091_v29 = vpop.f32.mrf.mxu0  ;;  %v8182_v33 = vpack.c.bf16 %v1588_v27, %v1587_v24  ;;  %2073 = vmatprep.subr.bf16.mxu1 %v8994_v9  ;;  %v10033_v24 = vpop.permute.xlu1 %1546 }
 0x11c   : > { %v1429_v40 = vadd.f32 %v9874_v25, %v1191_v32  ;;  %v1474_v42 = vadd.f32 %v9861_v18, %v1191_v32  ;;  %v9982_v44 = vadd.f32 %v9842_v12, %v1091_v29  ;;  %2074 = vmatpush1.bf16.msra.mxu1 %v8992_v26  ;;  %v10031_v19 = vpop.f32.mrf.mxu1  ;;  %12789 = vst [vmem:[#allocation16_spill] sm:$0xff] %v10033_v24  ;;  %vm1576_vm1 = vcmp.eq.s32.totalorder %v10033_v24, 1 }
 0x11d   : > { %v1499_v47 = vmax.f32 %v1473_v11, 0.0  ;;  %1680 = vrot.lane.b32.xlu0 %v8182_v33, %s9325_s14  ;;  %v1095_v12 = vpop.f32.mrf.mxu0  ;;  %2328 = vmatpush1.bf16.msra.mxu0 %v9000_v63 }
 0x11e   : > { %12785 = vst [vmem:[#allocation12_spill] sm:$0xff] %v9982_v44  ;;  %v1442_v51 = vmax.f32 %v1429_v40, 0.0  ;;  %v1500_v52 = vmax.f32 %v1474_v42, 0.0  ;;  %v1475_v53 = vadd.f32 %v9861_v18, %v9982_v44  ;;  %v1197_v23 = vadd.f32 %v9844_v13, %v1095_v12  ;;  %v10042_v38 = vpop.f32.mrf.mxu1 }
 0x11f   : > { %v1590_v55 = vsel %vm1574_vm15, %v1499_v47, 0.0  ;;  %v1097_v56 = vpop.f32.mrf.mxu0  ;;  %v1589_v13 = vsel %vm1574_vm15, %v1498_v39, 0.0  ;;  %v10044_v39 = vpop.permute.xlu0 %1549 }
 0x120   : > { %v10009_v59 = vpack.c.bf16 %v1442_v51, %v1441_v30  ;;  %v1501_v60 = vmax.f32 %v1475_v53, 0.0  ;;  %v1476_v62 = vadd.f32 %v9861_v18, %v1197_v23  ;;  %v1430_v0 = vadd.f32 %v9874_v25, %v1197_v23  ;;  %12791 = vst [vmem:[#allocation18_spill] sm:$0xff] %v10044_v39  ;;  %v10052_v47 = vpop.f32.mrf.mxu1 }
 0x121   : > { %v10019_v3 = vadd.f32 %v9847_v14, %v1097_v56  ;;  %v8183_v4 = vpack.c.bf16 %v1590_v55, %v1589_v13  ;;  %v1099_v5 = vpop.f32.mrf.mxu0  ;;  %v1591_v8 = vsel %vm1575_vm0, %v1500_v52, 0.0  ;;  %vm1577_vm2 = vcmp.eq.s32.totalorder %v10044_v39, 1 }
 0x122   : > { %12787 = vst [vmem:[#allocation14_spill] sm:$0xff] %v10009_v59  ;;  %v1201_v7 = vadd.f32 %v9853_v15, %v1099_v5  ;;  %v1592_v10 = vsel %vm1575_vm0, %v1501_v60, 0.0  ;;  %v1502_v32 = vmax.f32 %v1476_v62, 0.0  ;;  %v1443_v29 = vmax.f32 %v1430_v0, 0.0  ;;  %v10063_v58 = vpop.f32.mrf.mxu1  ;;  %v10073_v5 = vpop.permute.xlu1 %1552 }
 0x123   : > { %12788 = vst [vmem:[#allocation15_spill] sm:$0xff] %v10019_v3  ;;  %v1477_v46 = vadd.f32 %v9861_v18, %v10019_v3  ;;  %1682 = vrot.lane.b32.xlu1 %v8183_v4, %s9325_s14  ;;  %v1101_v14 = vpop.f32.mrf.mxu0  ;;  %v8184_v17 = vpack.c.bf16 %v1592_v10, %v1591_v8  ;;  %12794 = vst [vmem:[#allocation21_spill] sm:$0xff] %v10073_v5  ;;  %vm1578_vm3 = vcmp.eq.s32.totalorder %v10073_v5, 1 }
 0x124   : > { %v1431_v15 = vadd.f32 %v9874_v25, %v1201_v7  ;;  %v1478_v27 = vadd.f32 %v9861_v18, %v1201_v7  ;;  %v10038_v11 = vadd.f32 %v9869_v22, %v1101_v14  ;;  %v1593_v12 = vsel %vm1576_vm1, %v1502_v32, 0.0  ;;  %v1240_v4 = vpop.f32.mrf.mxu1 }
 0x125   : > { %v1503_v33 = vmax.f32 %v1477_v46, 0.0  ;;  %1684 = vrot.lane.b32.xlu0 %v8184_v17, %s9325_s14  ;;  %v1105_v9 = vpop.f32.mrf.mxu0 }
 0x126   : > { %12790 = vst [vmem:[#allocation17_spill] sm:$0xff] %v10038_v11  ;;  %v1444_v40 = vmax.f32 %v1431_v15, 0.0  ;;  %v1504_v42 = vmax.f32 %v1478_v27, 0.0  ;;  %v1479_v26 = vadd.f32 %v9861_v18, %v10038_v11  ;;  %v1207_v45 = vadd.f32 %v9876_v28, %v1105_v9  ;;  %v1241_v32 = vpop.f32.mrf.mxu1 }
 0x127   : > { %v1594_v22 = vsel %vm1576_vm1, %v1503_v33, 0.0  ;;  %v1107_v30 = vpop.f32.mrf.mxu0 }
 0x128   : > { %v10056_v51 = vpack.c.bf16 %v1444_v40, %v1443_v29  ;;  %v1505_v52 = vmax.f32 %v1479_v26, 0.0  ;;  %v1480_v53 = vadd.f32 %v9861_v18, %v1207_v45  ;;  %v1432_v23 = vadd.f32 %v9874_v25, %v1207_v45  ;;  %v10087_v40 = vpop.permute.xlu0 %1555 }
 0x129   : > { %v10061_v28 = vadd.f32 %v9897_v43, %v1107_v30  ;;  %v8185_v55 = vpack.c.bf16 %v1594_v22, %v1593_v12  ;;  %v1109_v56 = vpop.f32.mrf.mxu0  ;;  %v1595_v60 = vsel %vm1577_vm2, %v1504_v42, 0.0  ;;  %12796 = vst [vmem:[#allocation23_spill] sm:$0xff] %v10087_v40  ;;  %vm1579_vm4 = vcmp.eq.s32.totalorder %v10087_v40, 1 }
 0x12a   : > { %12792 = vst [vmem:[#allocation19_spill] sm:$0xff] %v10056_v51  ;;  %v1211_v13 = vadd.f32 %v9901_v48, %v1109_v56  ;;  %v1596_v62 = vsel %vm1577_vm2, %v1505_v52, 0.0  ;;  %v1506_v7 = vmax.f32 %v1480_v53, 0.0  ;;  %v1445_v46 = vmax.f32 %v1432_v23, 0.0 }
 0x12b   : > { %12793 = vst [vmem:[#allocation20_spill] sm:$0xff] %v10061_v28  ;;  %v1481_v63 = vadd.f32 %v9861_v18, %v10061_v28  ;;  %1686 = vrot.lane.b32.xlu1 %v8185_v55, %s9325_s14  ;;  %v1111_v0 = vpop.f32.mrf.mxu0  ;;  %v8186_v43 = vpack.c.bf16 %v1596_v62, %v1595_v60  ;;  %v10107_v62 = vpop.permute.xlu1 %1558  ;;  %v9069_v28 = vld [vmem:[%s12699_s4 + $0x250] ss:$8 sps:$4 sm:$0xff]  }
 0x12c   : > { %v1433_v8 = vadd.f32 %v9874_v25, %v1211_v13  ;;  %v1482_v48 = vadd.f32 %v9861_v18, %v1211_v13  ;;  %v10078_v10 = vadd.f32 %v9924_v57, %v1111_v0  ;;  %v1597_v22 = vsel %vm1578_vm3, %v1506_v7, 0.0  ;;  %12799 = vst [vmem:[#allocation26_spill] sm:$0xff] %v10107_v62 }
 0x12d   : > { %v1507_v14 = vmax.f32 %v1481_v63, 0.0  ;;  %1688 = vrot.lane.b32.xlu0 %v8186_v43, %s9325_s14  ;;  %v1115_v17 = vpop.f32.mrf.mxu0  ;;  %vm1580_vm5 = vcmp.eq.s32.totalorder %v10107_v62, 1 }
 0x12e   : > { %12795 = vst [vmem:[#allocation22_spill] sm:$0xff] %v10078_v10  ;;  %v1446_v15 = vmax.f32 %v1433_v8, 0.0  ;;  %v1508_v27 = vmax.f32 %v1482_v48, 0.0  ;;  %v1483_v29 = vadd.f32 %v9861_v18, %v10078_v10  ;;  %v1217_v33 = vadd.f32 %v9934_v1, %v1115_v17 }
 0x12f   : > { %v1117_v9 = vpop.f32.mrf.mxu0  ;;  %v1598_v57 = vsel %vm1578_vm3, %v1507_v14, 0.0 }
 0x130   : > { %v10089_v42 = vpack.c.bf16 %v1446_v15, %v1445_v46  ;;  %v1509_v26 = vmax.f32 %v1483_v29, 0.0  ;;  %v1484_v45 = vadd.f32 %v9861_v18, %v1217_v33  ;;  %v1434_v30 = vadd.f32 %v9874_v25, %v1217_v33 }
 0x131   : > { %v10097_v1 = vadd.f32 %v9958_v20, %v1117_v9  ;;  %v8187_v12 = vpack.c.bf16 %v1598_v57, %v1597_v22  ;;  %v1119_v52 = vpop.f32.mrf.mxu0  ;;  %v1599_v23 = vsel %vm1579_vm4, %v1508_v27, 0.0  ;;  %v9008_v9 = vld [vmem:[%s12699_s4 + $0x174] ss:$8 sps:$4 sm:$0xff]   ;;  %v10136_v22 = vpop.permute.xlu1 %1564 }
 0x132   : > { %12797 = vst [vmem:[#allocation24_spill] sm:$0xff] %v10089_v42  ;;  %v1221_v53 = vadd.f32 %v9970_v37, %v1119_v52  ;;  %v1600_v55 = vsel %vm1579_vm4, %v1509_v26, 0.0  ;;  %v1510_v20 = vmax.f32 %v1484_v45, 0.0  ;;  %v1447_v43 = vmax.f32 %v1434_v30, 0.0  ;;  %12804 = vst [vmem:[#allocation31_spill] sm:$0xff] %v10136_v22  ;;  %2560 = vmatprep.subr.bf16.mxu1 %v9008_v9 }
 0x133   : > { %12798 = vst [vmem:[#allocation25_spill] sm:$0xff] %v10097_v1  ;;  %v1485_v56 = vadd.f32 %v9861_v18, %v10097_v1  ;;  %1690 = vrot.lane.b32.xlu1 %v8187_v12, %s9325_s14  ;;  %v1121_v13 = vpop.f32.mrf.mxu0  ;;  %v8188_v60 = vpack.c.bf16 %v1600_v55, %v1599_v23  ;;  %vm1582_vm7 = vcmp.eq.s32.totalorder %v10136_v22, 1 }
 0x134   : > { %v1435_v63 = vadd.f32 %v9874_v25, %v1221_v53  ;;  %v1486_v37 = vadd.f32 %v9861_v18, %v1221_v53  ;;  %v10112_v0 = vadd.f32 %v9994_v49, %v1121_v13  ;;  %v10121_v49 = vpop.permute.xlu0 %1561  ;;  %v1601_v33 = vsel %vm1580_vm5, %v1510_v20, 0.0 }
 0x135   : > { %v1511_v4 = vmax.f32 %v1485_v56, 0.0  ;;  %1692 = vrot.lane.b32.xlu0 %v8188_v60, %s9325_s14  ;;  %v1125_v7 = vpop.f32.mrf.mxu0  ;;  %12801 = vst [vmem:[#allocation28_spill] sm:$0xff] %v10121_v49  ;;  %vm1581_vm6 = vcmp.eq.s32.totalorder %v10121_v49, 1  ;;  %v9015_v60 = vld [vmem:[%s12699_s4 + $0x1f4] ss:$8 sps:$4 sm:$0xff]  }
 0x136   : > { %12800 = vst [vmem:[#allocation27_spill] sm:$0xff] %v10112_v0  ;;  %v1448_v8 = vmax.f32 %v1435_v63, 0.0  ;;  %v1512_v48 = vmax.f32 %v1486_v37, 0.0  ;;  %v1487_v46 = vadd.f32 %v9861_v18, %v10112_v0  ;;  %v1227_v14 = vadd.f32 %v10004_v31, %v1125_v7  ;;  %2902 = vmatprep.subr.bf16.mxu0 %v9015_v60 }
 0x137   : > { %v1127_v17 = vpop.f32.mrf.mxu0  ;;  %v1602_v32 = vsel %vm1580_vm5, %v1511_v4, 0.0 }
 0x138   : > { %v10123_v15 = vpack.c.bf16 %v1448_v8, %v1447_v43  ;;  %v1513_v27 = vmax.f32 %v1487_v46, 0.0  ;;  %v1488_v29 = vadd.f32 %v9861_v18, %v1227_v14  ;;  %v1436_v31 = vadd.f32 %v9874_v25, %v1227_v14  ;;  %v10156_v43 = vpop.permute.xlu0 %1567  ;;  %v426_v8 = vld [vmem:[%s12705_s10 + $0x60] sm:$0xff] }
 0x139   : > { %v10134_v57 = vadd.f32 %v10021_v6, %v1127_v17  ;;  %v8189_v26 = vpack.c.bf16 %v1602_v32, %v1601_v33  ;;  %v1129_v45 = vpop.f32.mrf.mxu0  ;;  %v1603_v12 = vsel %vm1581_vm6, %v1512_v48, 0.0  ;;  %12806 = vst [vmem:[#allocation33_spill] sm:$0xff] %v10156_v43  ;;  %vm12721_vm8 = vcmp.eq.s32.totalorder %v10156_v43, 1 }
 0x13a   : > { %12802 = vst [vmem:[#allocation29_spill] sm:$0xff] %v10123_v15  ;;  %v1231_v30 = vadd.f32 %v10031_v19, %v1129_v45  ;;  %v1604_v52 = vsel %vm1581_vm6, %v1513_v27, 0.0  ;;  %v1514_v55 = vmax.f32 %v1488_v29, 0.0  ;;  %v1449_v20 = vmax.f32 %v1436_v31, 0.0 }
 0x13b   : > { %12803 = vst [vmem:[#allocation30_spill] sm:$0xff] %v10134_v57  ;;  %v1489_v53 = vadd.f32 %v9861_v18, %v10134_v57  ;;  %1694 = vrot.lane.b32.xlu1 %v8189_v26, %s9325_s14  ;;  %v1131_v6 = vpop.f32.mrf.mxu0  ;;  %v8190_v23 = vpack.c.bf16 %v1604_v52, %v1603_v12  ;;  %vm439_vm9 = vcmp.gt.f32.partialorder %v426_v8, 0.0  ;;  %v1876_v12 = vld [vmem:[#allocation2 + $0x4] sm:$0xf]  ;;  %v1875_v52 = vld [vmem:[#allocation2] sm:$0xc] }
 0x13c   : > { %v1437_v56 = vadd.f32 %v9874_v25, %v1231_v30  ;;  %v1490_v13 = vadd.f32 %v9861_v18, %v1231_v30  ;;  %v10149_v19 = vadd.f32 %v10042_v38, %v1131_v6  ;;  %v1605_v32 = vsel %vm1582_vm7, %v1514_v55, 0.0 }
 0x13d   : > { %v1515_v63 = vmax.f32 %v1489_v53, 0.0  ;;  %1696 = vrot.lane.b32.xlu0 %v8190_v23, %s9325_s14  ;;  %v1135_v37 = vpop.f32.mrf.mxu0  ;;  %v1532_v45 = vsel %vm439_vm9, 1, %v12715_v2  ;;  %v7612_v55 = vcombine.low %v1875_v52, %v1876_v12  ;;  %vm12727_vm9 = vsmask.f32 5376 }
 0x13e   : > { %12805 = vst [vmem:[#allocation32_spill] sm:$0xff] %v10149_v19  ;;  %v1450_v4 = vmax.f32 %v1437_v56, 0.0  ;;  %v1516_v25 = vmax.f32 %v1490_v13, 0.0  ;;  %v1491_v7 = vadd.f32 %v9861_v18, %v10149_v19  ;;  %v10161_v38 = vadd.f32 %v10052_v47, %v1135_v37  ;;  %v1905_v13 = vld [vmem:[#allocation2] sm:$0x8] }
 0x13f   : > { %v1137_v48 = vpop.f32.mrf.mxu0  ;;  %v1606_v46 = vsel %vm1582_vm7, %v1515_v63, 0.0  ;;  %v2168_v63 = vshll.u32 %v7612_v55, 16  ;;  %v12813_v15 = vmov 0  }
 0x140   : > { %12807 = vst [vmem:[#allocation34_spill] sm:$0xff] %v10161_v38  ;;  %v10168_v14 = vpack.c.bf16 %v1450_v4, %v1449_v20  ;;  %v1517_v17 = vmax.f32 %v1491_v7, 0.0  ;;  %v10174_v47 = vadd.f32 %v10063_v58, %v1137_v48  ;;  %v8191_v27 = vpack.c.bf16 %v1606_v46, %v1605_v32 }
 0x141   : > { %v1139_v29 = vpop.f32.mrf.mxu0  ;;  %v1607_v33 = vsel %vm12721_vm8, %v1516_v25, 0.0  ;;  %v2165_v20 = vshrl.u32 %v7612_v55, 16  ;;  %v10185_v4 = vcombine.low %v1905_v13, %v1876_v12  ;;  %v2170_v46 = vrot.slane %v2168_v63, 3  ;;  %v9010_v13 = vld [vmem:[%s12699_s4 + $0x160] ss:$8 sps:$4 sm:$0xff]  }
 0x142   : > { %12808 = vst [vmem:[#allocation35_spill] sm:$0xff] %v10168_v14  ;;  %12809 = vst [vmem:[#allocation36_spill] sm:$0xff] %v10174_v47  ;;  %v1608_v9 = vsel %vm12721_vm8, %v1517_v17, 0.0  ;;  %1698 = vrot.lane.b32.xlu1 %v8191_v27, %s9325_s14  ;;  %v9006_v29 = vld [vmem:[%s12699_s4 + $0x170] ss:$8 sps:$4 sm:$0xff]  }
 0x143   : > { %v8192_v31 = vpack.c.bf16 %v1608_v9, %v1607_v33  ;;  %v1140_v26 = vpop.f32.mrf.mxu0  ;;  %v2167_v48 = vrot.slane %v2165_v20, 2  ;;  %v1959_v27 = vrot.slane %v10185_v4, 3  ;;  %v9019_v20 = vld [vmem:[%s12699_s4 + $0x154] ss:$8 sps:$4 sm:$0xff]  }
 0x145   : > { %1700 = vrot.lane.b32.xlu0 %v8192_v31, %s9325_s14 }
 0x146   : > { %1570 = vperm.xlu1 %8829, %v1532_v45   ;;  %v2171_v45 = vor.u32 %v2170_v46, %v2167_v48  ;;  %v9020_v48 = vld [vmem:[%s12699_s4 + $0x1e0] ss:$8 sps:$4 sm:$0xff]  }
 0x18d   : > { %v1679_v58 = vpop.permute.xlu1 %1678 }
 0x18e   : > { %v1704_v30 = vrot.slane %v1679_v58, 4 }
 0x18f   : > { %v1681_v53 = vpop.permute.xlu0 %1680 }
 0x190   : > { %v1718_v6 = vsel %vm12733_vm10, %v1679_v58, %v1704_v30  ;;  %v1705_v23 = vrot.slane %v1681_v53, 4  ;;  %v9012_v58 = vld [vmem:[%s12699_s4 + $0x164] ss:$8 sps:$4 sm:$0xff]  }
 0x191   : > { %1744 = vst [vmem:[#allocation2 + $0x8] sm:$0xf] %v1718_v6 }
 0x192   : > { %v1719_v56 = vsel %vm12733_vm10, %v1681_v53, %v1705_v23 }
 0x193   : > { %1745 = vst [vmem:[#allocation2 + $0xc] sm:$0xf] %v1719_v56 }
 0x195   : > { %v1683_v60 = vpop.permute.xlu1 %1682 }
 0x196   : > { %v1706_v37 = vrot.slane %v1683_v60, 4 }
 0x197   : > { %v1685_v25 = vpop.permute.xlu0 %1684 }
 0x198   : > { %v1720_v7 = vsel %vm12733_vm10, %v1683_v60, %v1706_v37  ;;  %v1707_v8 = vrot.slane %v1685_v25, 4  ;;  %v9013_v60 = vld [vmem:[%s12699_s4 + $0x1f0] ss:$8 sps:$4 sm:$0xff]  }
 0x199   : > { %1746 = vst [vmem:[#allocation2 + $0x10] sm:$0xf] %v1720_v7  ;;  %v9022_v7 = vld [vmem:[%s12699_s4 + $0x1e4] ss:$8 sps:$4 sm:$0xff]  }
 0x19a   : > { %v1721_v17 = vsel %vm12733_vm10, %v1685_v25, %v1707_v8  ;;  %v10189_v32 = vld [vmem:[#allocation2 + $0x8] sm:$0xff]   ;;  %v9017_v8 = vld [vmem:[%s12699_s4 + $0x150] ss:$8 sps:$4 sm:$0xff]  }
 0x19b   : > { %1747 = vst [vmem:[#allocation2 + $0x14] sm:$0xf] %v1721_v17  ;;  %v1960_v33 = vrot.slane %v10189_v32, 3  ;;  %v12712_v9 = vshrl.u32 %v10189_v32, 16  ;;  %v12711_v31 = vshll.u32 %v10189_v32, 16 }
 0x19d   : > { %v1687_v26 = vpop.permute.xlu1 %1686  ;;  %v1961_v12 = vsel %vm12729_vm11, %v1959_v27, %v1960_v33  ;;  %v2175_v52 = vrot.slane %v12712_v9, 2  ;;  %v2178_v53 = vrot.slane %v12711_v31, 3 }
 0x19e   : > { %v1708_v30 = vrot.slane %v1687_v26, 4  ;;  %2092 = vmatmul.mubr.bf16.vlgmr.msra.gmra.mxu1 %v1961_v12 }
 0x19f   : > { %v1689_v6 = vpop.permute.xlu0 %1688  ;;  %v2179_v56 = vor.u32 %v2178_v53, %v2175_v52  ;;  %2101 = vmatprep.mubr.bf16.mxu1 %v12715_v2  ;;  %2561 = vmatpush1.bf16.msra.mxu1 %v9006_v29  ;;  %v9028_v52 = vld [vmem:[%s12699_s4 + $0x1d4] ss:$8 sps:$4 sm:$0xff]  }
 0x1a0   : > { %v1722_v23 = vsel %vm12733_vm10, %v1687_v26, %v1708_v30  ;;  %v1709_v55 = vrot.slane %v1689_v6, 4  ;;  %2562 = vmatprep.subr.bf16.mxu1 %v9012_v58  ;;  %v9025_v26 = vld [vmem:[%s12699_s4 + $0x144] ss:$8 sps:$4 sm:$0xff]  }
 0x1a1   : > { %1748 = vst [vmem:[#allocation2 + $0x18] sm:$0xf] %v1722_v23  ;;  %v2180_v37 = vsel %vm12727_vm9, %v2171_v45, %v2179_v56 }
 0x1a2   : > { %v1723_v63 = vsel %vm12733_vm10, %v1689_v6, %v1709_v55  ;;  %v10219_v25 = vld [vmem:[#allocation2 + $0x10] sm:$0xff]   ;;  %2346 = vmatmul.mubr.bf16.vlgmr.msra.gmra.mxu0 %v2180_v37 }
 0x1a3   : > { %1749 = vst [vmem:[#allocation2 + $0x1c] sm:$0xf] %v1723_v63  ;;  %v1962_v46 = vrot.slane %v10219_v25, 3  ;;  %2355 = vmatprep.mubr.bf16.mxu0 %v12715_v2  ;;  %v12710_v17 = vshrl.u32 %v10219_v25, 16  ;;  %v12709_v27 = vshll.u32 %v10219_v25, 16  ;;  %2563 = vmatpush1.bf16.msra.mxu1 %v9010_v13  ;;  %v8223_v13 = vpop.f32.mrf.mxu1  ;;  %v1365_v63 = vpop.f32.mrf.mxu0 }
 0x1a4   : > { %2903 = vmatpush1.bf16.msra.mxu0 %v9013_v60  ;;  %2564 = vmatprep.subr.bf16.mxu1 %v9019_v20  ;;  %v9026_v60 = vld [vmem:[%s12699_s4 + $0x1d0] ss:$8 sps:$4 sm:$0xff]   ;;  %v9032_v20 = vld [vmem:[%s12699_s4 + $0x134] ss:$8 sps:$4 sm:$0xff]  }
 0x1a5   : > { %v1691_v29 = vpop.permute.xlu1 %1690  ;;  %v1963_v58 = vsel %vm12729_vm11, %v1960_v33, %v1962_v46  ;;  %v2184_v30 = vrot.slane %v12710_v17, 2  ;;  %v2187_v12 = vrot.slane %v12709_v27, 3  ;;  %2904 = vmatprep.subr.bf16.mxu0 %v9022_v7  ;;  %v9023_v33 = vld [vmem:[%s12699_s4 + $0x140] ss:$8 sps:$4 sm:$0xff]  }
 0x1a6   : > { %v1710_v45 = vrot.slane %v1691_v29, 4  ;;  %2102 = vmatmul.mubr.bf16.gmra.mxu1 %v1963_v58  ;;  %v8415_v58 = vpop.f32.mrf.mxu0 }
 0x1a7   : > { %v1693_v53 = vpop.permute.xlu0 %1692  ;;  %v2188_v55 = vor.u32 %v2187_v12, %v2184_v30  ;;  %2111 = vmatprep.mubr.bf16.mxu1 %v12715_v2  ;;  %2565 = vmatpush1.bf16.msra.mxu1 %v9017_v8 }
 0x1a8   : > { %v1724_v6 = vsel %vm12733_vm10, %v1691_v29, %v1710_v45  ;;  %v1711_v23 = vrot.slane %v1693_v53, 4  ;;  %2905 = vmatpush1.bf16.msra.mxu0 %v9020_v48  ;;  %2566 = vmatprep.subr.bf16.mxu1 %v9025_v26  ;;  %v9035_v48 = vld [vmem:[%s12699_s4 + $0x1c4] ss:$8 sps:$4 sm:$0xff]   ;;  %v8224_v29 = vpop.f32.mrf.mxu1  ;;  %v9030_v26 = vld [vmem:[%s12699_s4 + $0x130] ss:$8 sps:$4 sm:$0xff]  }
 0x1a9   : > { %1750 = vst [vmem:[#allocation2 + $0x20] sm:$0xf] %v1724_v6  ;;  %v2189_v7 = vsel %vm12727_vm9, %v2179_v56, %v2188_v55  ;;  %2906 = vmatprep.subr.bf16.mxu0 %v9028_v52  ;;  %v9033_v45 = vld [vmem:[%s12699_s4 + $0x1c0] ss:$8 sps:$4 sm:$0xff]   ;;  %v8225_v52 = vadd.f32 %v8224_v29, %v8223_v13 }
 0x1aa   : > { %v1725_v37 = vsel %vm12733_vm10, %v1693_v53, %v1711_v23  ;;  %v10258_v8 = vld [vmem:[#allocation2 + $0x18] sm:$0xff]   ;;  %2356 = vmatmul.mubr.bf16.gmra.mxu0 %v2189_v7  ;;  %v8226_v53 = vpop.f32.mrf.mxu1  ;;  %v9038_v23 = vld [vmem:[%s12699_s4 + $0x124] ss:$8 sps:$4 sm:$0xff]   ;;  %v1368_v7 = vpop.f32.mrf.mxu0 }
 0x1ab   : > { %1751 = vst [vmem:[#allocation2 + $0x24] sm:$0xf] %v1725_v37  ;;  %v1964_v56 = vrot.slane %v10258_v8, 3  ;;  %2365 = vmatprep.mubr.bf16.mxu0 %v12715_v2  ;;  %v12713_v30 = vshrl.u32 %v10258_v8, 16  ;;  %v12714_v12 = vshll.u32 %v10258_v8, 16  ;;  %2567 = vmatpush1.bf16.msra.mxu1 %v9023_v33  ;;  %v10286_v29 = vadd.f32 %v8225_v52, %v1365_v63 }
 0x1ac   : > { %2907 = vmatpush1.bf16.msra.mxu0 %v9026_v60  ;;  %2568 = vmatprep.subr.bf16.mxu1 %v9032_v20  ;;  %v9041_v37 = vld [vmem:[%s12699_s4 + $0x1b4] ss:$8 sps:$4 sm:$0xff]   ;;  %v8227_v60 = vpop.f32.mrf.mxu1  ;;  %v8416_v27 = vpop.f32.mrf.mxu0 }
 0x1ad   : > { %v1695_v6 = vpop.permute.xlu1 %1694  ;;  %v1965_v36 = vsel %vm12729_vm11, %v1962_v46, %v1964_v56  ;;  %v2193_v33 = vrot.slane %v12713_v30, 2  ;;  %v2196_v13 = vrot.slane %v12714_v12, 3  ;;  %2908 = vmatprep.subr.bf16.mxu0 %v9035_v48  ;;  %12810 = vst [vmem:[#allocation37_spill] sm:$0xff] %v10286_v29  ;;  %v9036_v46 = vld [vmem:[%s12699_s4 + $0x120] ss:$8 sps:$4 sm:$0xff]   ;;  %v8228_v30 = vadd.f32 %v8227_v60, %v8226_v53 }
 0x1ae   : > { %v1712_v58 = vrot.slane %v1695_v6, 4  ;;  %2112 = vmatmul.mubr.bf16.gmra.mxu1 %v1965_v36  ;;  %v8229_v12 = vpop.f32.mrf.mxu1  ;;  %v9039_v36 = vld [vmem:[%s12699_s4 + $0x1b0] ss:$8 sps:$4 sm:$0xff]   ;;  %v9044_v27 = vld [vmem:[%s12699_s4 + $0x114] ss:$8 sps:$4 sm:$0xff]   ;;  %v1373_v63 = vpop.f32.mrf.mxu0 }
 0x1af   : > { %v1697_v20 = vpop.permute.xlu0 %1696  ;;  %v2197_v9 = vor.u32 %v2196_v13, %v2193_v33  ;;  %2121 = vmatprep.mubr.bf16.mxu1 %v12715_v2  ;;  %2569 = vmatpush1.bf16.msra.mxu1 %v9030_v26  ;;  %v9050_v13 = vld [vmem:[%s12699_s4 + $0x104] ss:$8 sps:$4 sm:$0xff]   ;;  %v9053_v60 = vld [vmem:[%s12699_s4 + $0x194] ss:$8 sps:$4 sm:$0xff]  }
 0x1b0   : > { %v1726_v17 = vsel %vm12733_vm10, %v1695_v6, %v1712_v58  ;;  %v1713_v31 = vrot.slane %v1697_v20, 4  ;;  %2909 = vmatpush1.bf16.msra.mxu0 %v9033_v45  ;;  %2570 = vmatprep.subr.bf16.mxu1 %v9038_v23  ;;  %v10306_v45 = vadd.f32 %v8228_v30, %v1368_v7  ;;  %v8230_v53 = vpop.f32.mrf.mxu1  ;;  %v9042_v6 = vld [vmem:[%s12699_s4 + $0x110] ss:$8 sps:$4 sm:$0xff]  }
 0x1b1   : > { %1752 = vst [vmem:[#allocation2 + $0x28] sm:$0xf] %v1726_v17  ;;  %v2198_v26 = vsel %vm12727_vm9, %v2188_v55, %v2197_v9  ;;  %2910 = vmatprep.subr.bf16.mxu0 %v9041_v37  ;;  %v9047_v17 = vld [vmem:[%s12699_s4 + $0x1a4] ss:$8 sps:$4 sm:$0xff]   ;;  %v8419_v55 = vpop.f32.mrf.mxu0  ;;  %v8231_v7 = vadd.f32 %v8230_v53, %v8229_v12 }
 0x1b2   : > { %v1727_v48 = vsel %vm12733_vm10, %v1697_v20, %v1713_v31  ;;  %v10301_v52 = vld [vmem:[#allocation2 + $0x20] sm:$0xff]   ;;  %12811 = vst [vmem:[#allocation38_spill] sm:$0xff] %v10306_v45  ;;  %2366 = vmatmul.mubr.bf16.gmra.mxu0 %v2198_v26  ;;  %v8232_v58 = vpop.f32.mrf.mxu1 }
 0x1b3   : > { %1753 = vst [vmem:[#allocation2 + $0x2c] sm:$0xf] %v1727_v48  ;;  %v9045_v31 = vld [vmem:[%s12699_s4 + $0x1a0] ss:$8 sps:$4 sm:$0xff]   ;;  %v1966_v23 = vrot.slane %v10301_v52, 3  ;;  %2375 = vmatprep.mubr.bf16.mxu0 %v12715_v2  ;;  %v12719_v37 = vshrl.u32 %v10301_v52, 16  ;;  %2571 = vmatpush1.bf16.msra.mxu1 %v9036_v46  ;;  %v10334_v53 = vadd.f32 %v8231_v7, %v1373_v63 }
 0x1b4   : > { %v12718_v30 = vshll.u32 %v10301_v52, 16  ;;  %v1699_v33 = vpop.permute.xlu1 %1698  ;;  %2911 = vmatpush1.bf16.msra.mxu0 %v9039_v36  ;;  %2572 = vmatprep.subr.bf16.mxu1 %v9044_v27  ;;  %v8233_v36 = vpop.f32.mrf.mxu1  ;;  %v9048_v26 = vld [vmem:[%s12699_s4 + $0x100] ss:$8 sps:$4 sm:$0xff]  }
 0x1b5   : > { %v1714_v20 = vrot.slane %v1699_v33, 4  ;;  %v1967_v48 = vsel %vm12729_vm11, %v1964_v56, %v1966_v23  ;;  %v2202_v12 = vrot.slane %v12719_v37, 2  ;;  %2912 = vmatprep.subr.bf16.mxu0 %v9047_v17  ;;  %12812 = vst [vmem:[#allocation39_spill] sm:$0xff] %v10334_v53  ;;  %v9051_v17 = vld [vmem:[%s12699_s4 + $0x190] ss:$8 sps:$4 sm:$0xff]   ;;  %v8234_v63 = vadd.f32 %v8233_v36, %v8232_v58 }
 0x1b6   : > { %v2205_v46 = vrot.slane %v12718_v30, 3  ;;  %2122 = vmatmul.mubr.bf16.gmra.mxu1 %v1967_v48  ;;  %v9064_v48 = vld [vmem:[%s12699_s4 + $0x274] ss:$8 sps:$4 sm:$0xff]  }
 0x1b7   : > { %v1701_v27 = vpop.permute.xlu0 %1700  ;;  %v1728_v55 = vsel %vm12733_vm10, %v1699_v33, %v1714_v20  ;;  %2131 = vmatprep.mubr.bf16.mxu1 %v12813_v15  ;;  %2573 = vmatpush1.bf16.msra.mxu1 %v9042_v6  ;;  %v9056_v6 = vld [vmem:[%s12699_s4 + $0x184] ss:$8 sps:$4 sm:$0xff]  }
 0x1b8   : > { %v1715_v2 = vrot.slane %v1701_v27, 4  ;;  %v2206_v56 = vor.u32 %v2205_v46, %v2202_v12  ;;  %1754 = vst [vmem:[#allocation2 + $0x30] sm:$0xf] %v1728_v55  ;;  %2913 = vmatpush1.bf16.msra.mxu0 %v9045_v31  ;;  %2574 = vmatprep.subr.bf16.mxu1 %v9050_v13  ;;  %v8235_v12 = vpop.f32.mrf.mxu1  ;;  %v1376_v46 = vpop.f32.mrf.mxu0  ;;  %v1492_v13 = vadd.f32 %v9861_v18, %v10161_v38  ;;  %v10510_v11 = vld [vmem:[#allocation2 + $0x28] sm:$0xf] }
 0x1b9   : > { %2914 = vmatprep.subr.bf16.mxu0 %v9053_v60  ;;  %v9054_v60 = vld [vmem:[%s12699_s4 + $0x180] ss:$8 sps:$4 sm:$0xff]   ;;  %v10360_v36 = vadd.f32 %v8234_v63, %v1376_v46  ;;  %v1493_v55 = vadd.f32 %v9861_v18, %v10174_v47 }
 0x1ba   : > { %v1729_v7 = vsel %vm12733_vm10, %v1701_v27, %v1715_v2  ;;  %v2207_v33 = vsel %vm12727_vm9, %v2197_v9, %v2206_v56  ;;  %v10346_v20 = vld [vmem:[#allocation2 + $0x28] sm:$0xff]   ;;  %v8420_v9 = vpop.f32.mrf.mxu0  ;;  %v8236_v27 = vpop.f32.mrf.mxu1  ;;  %v1518_v30 = vmax.f32 %v1492_v13, 0.0 }
 0x1bb   : > { %1755 = vst [vmem:[#allocation2 + $0x34] sm:$0xf] %v1729_v7  ;;  %2376 = vmatmul.mubr.bf16.gmra.mxu0 %v2207_v33  ;;  %v1968_v31 = vrot.slane %v10346_v20, 3  ;;  %v12717_v58 = vshrl.u32 %v10346_v20, 16  ;;  %v12720_v2 = vshll.u32 %v10346_v20, 16  ;;  %2575 = vmatpush1.bf16.msra.mxu1 %v9048_v26  ;;  %12814 = vst [vmem:[#allocation40_spill] sm:$0xff] %v10360_v36  ;;  %v8237_v63 = vadd.f32 %v8236_v27, %v8235_v12 }
 0x1bc   : > { %2385 = vmatprep.mubr.bf16.mxu0 %v12813_v15  ;;  %2915 = vmatpush1.bf16.msra.mxu0 %v9051_v17  ;;  %v9093_v17 = vld [vmem:[%s12699_s4 + $0x2f4] ss:$8 sps:$4 sm:$0xff]   ;;  %v8238_v46 = vpop.f32.mrf.mxu1  ;;  %v1519_v37 = vmax.f32 %v1493_v55, 0.0 }
 0x1bd   : > { %3140 = vmatprep.subr.bf16.mxu1 %v9064_v48  ;;  %v1969_v7 = vsel %vm12729_vm11, %v1966_v23, %v1968_v31  ;;  %v2211_v26 = vrot.slane %v12717_v58, 2  ;;  %v2214_v33 = vrot.slane %v12720_v2, 3  ;;  %2916 = vmatprep.subr.bf16.mxu0 %v9056_v6  ;;  %v1381_v48 = vpop.f32.mrf.mxu0 }
 0x1be   : > { %2132 = vmatmul.mubr.bf16.gmra.mxu1 %v1969_v7  ;;  %v10373_v23 = vadd.f32 %v8237_v63, %v1381_v48  ;;  %v8239_v58 = vpop.f32.mrf.mxu1 }
 0x1bf   : > { %v2215_v9 = vor.u32 %v2214_v33, %v2211_v26  ;;  %2141 = vmatprep.mubr.bf16.mxu1 %v12813_v15  ;;  %v8423_v18 = vpop.f32.mrf.mxu0  ;;  %v10378_v42 = vld [vmem:[#allocation2 + $0x30] sm:$0xf] }
 0x1c0   : > { %2917 = vmatpush1.bf16.msra.mxu0 %v9054_v60  ;;  %12815 = vst [vmem:[#allocation41_spill] sm:$0xff] %v10373_v23  ;;  %v8241_v60 = vpop.f32.mrf.mxu1  ;;  %v10451_v1 = vld [vmem:[#allocation2 + $0x2c] sm:$0xff]  }
 0x1c1   : > { %v10375_v2 = vpop.permute.xlu1 %1570  ;;  %v2216_v6 = vsel %vm12727_vm9, %v2206_v56, %v2215_v9  ;;  %3476 = vmatprep.subr.bf16.mxu0 %v9093_v17  ;;  %v1384_v12 = vpop.f32.mrf.mxu0  ;;  %v8240_v56 = vadd.f32 %v8239_v58, %v8238_v46 }
 0x1c2   : > { %12816 = vst [vmem:[#allocation42_spill] sm:$0xff] %v10375_v2  ;;  %v1888_v51 = vld [vmem:[#allocation2 + $0x34] sm:$0x7]  ;;  %vm1584_vm8 = vcmp.eq.s32.totalorder %v10375_v2, 1  ;;  %v8242_v63 = vpop.f32.mrf.mxu1 }
 0x1c3   : > { %2386 = vmatmul.mubr.bf16.gmra.mxu0 %v2216_v6  ;;  %v7595_v27 = vcombine.low %v10378_v42, %v1888_v51  ;;  %v1609_v7 = vsel %vm1584_vm8, %v1518_v30, 0.0  ;;  %v1610_v13 = vsel %vm1584_vm8, %v1519_v37, 0.0  ;;  %v8424_v55 = vpop.f32.mrf.mxu0  ;;  %v10389_v30 = vld [vmem:[#allocation2 + $0x10] sm:$0xf]  ;;  %v10391_v37 = vadd.f32 %v8240_v56, %v1384_v12 }
 0x1c4   : > { %2395 = vmatprep.mubr.bf16.mxu0 %v12813_v15  ;;  %v8193_v26 = vpack.c.bf16 %v1610_v13, %v1609_v7  ;;  %v8244_v14 = vpop.f32.mrf.mxu1  ;;  %v2687_v7 = vld [vmem:[#allocation2 + $0x4] sm:$0x8]  ;;  %v10396_v13 = vld [vmem:[#allocation2 + $0xc] sm:$0xf]  ;;  %v8243_v55 = vadd.f32 %v8242_v63, %v8241_v60  ;;  %v2437_v12 = vshrl.u32 %v10185_v4, 16 }
 0x1c5   : > { %v1970_v33 = vrot.slane %v7595_v27, 3  ;;  %v2218_v17 = vshrl.u32 %v7595_v27, 16  ;;  %v2221_v48 = vshll.u32 %v7595_v27, 16  ;;  %v1389_v18 = vpop.f32.mrf.mxu0  ;;  %12817 = vst [vmem:[#allocation43_spill] sm:$0xff] %v10391_v37  ;;  %v10394_v27 = vld [vmem:[#allocation2 + $0x8] sm:$0xf] }
 0x1c6   : > { %1702 = vrot.lane.b32.xlu0 %v8193_v26, %s9325_s14  ;;  %v8245_v26 = vpop.f32.mrf.mxu1  ;;  %v10403_v56 = vadd.f32 %v8243_v55, %v1389_v18  ;;  %v2439_v47 = vrot.slane %v2437_v12, 3  ;;  %v12821_v55 = vshll.u32 %v10189_v32, 16 }
 0x1c7   : > { %v1971_v51 = vsel %vm12729_vm11, %v1968_v31, %v1970_v33  ;;  %v2220_v6 = vrot.slane %v2218_v17, 2  ;;  %v2223_v59 = vrot.slane %v2221_v48, 3  ;;  %v8427_v58 = vpop.f32.mrf.mxu0  ;;  %v7679_v31 = vcombine.low %v10396_v13, %v10389_v30 }
 0x1c8   : > { %2142 = vmatmul.mubr.bf16.gmra.mxu1 %v1971_v51  ;;  %v8246_v17 = vadd.f32 %v8245_v26, %v8244_v14  ;;  %12818 = vst [vmem:[#allocation44_spill] sm:$0xff] %v10403_v56  ;;  %v7678_v58 = vcombine.low %v2687_v7, %v10394_v27  ;;  %vm3959_vm11 = vcmask 1046528  }
 0x1c9   : > { %v2224_v46 = vor.u32 %v2223_v59, %v2220_v6  ;;  %2151 = vmatprep.mubr.bf16.mxu1 %v12813_v15  ;;  %v1392_v48 = vpop.f32.mrf.mxu0  ;;  %v2440_v59 = vshll.u32 %v10185_v4, 16  ;;  %v8247_v6 = vpop.f32.mrf.mxu1  ;;  %v2762_v14 = vshrl.u32 %v7679_v31, 16  ;;  %v2765_v26 = vshll.u32 %v7679_v31, 16 }
 0x1ca   : > { %v10406_v41 = vadd.f32 %v8246_v17, %v1392_v48  ;;  %v12820_v4 = vshrl.u32 %v10189_v32, 16  ;;  %v2754_v7 = vshrl.u32 %v7678_v58, 16  ;;  %v2757_v17 = vshll.u32 %v7678_v58, 16  ;;  %v10413_v48 = vld [vmem:[#allocation2 + $0x18] sm:$0xf] }
 0x1cb   : > { %v2225_v51 = vsel %vm12727_vm9, %v2215_v9, %v2224_v46  ;;  %v8428_v60 = vpop.f32.mrf.mxu0  ;;  %v8248_v63 = vpop.f32.mrf.mxu1  ;;  %v2442_v19 = vrot.slane %v2440_v59, 4  ;;  %v2764_v12 = vrot.slane %v2762_v14, 3  ;;  %v2767_v59 = vrot.slane %v2765_v26, 4  ;;  %v10432_v14 = vld [vmem:[#allocation2 + $0x1c] sm:$0xff]  }
 0x1cc   : > { %2396 = vmatmul.mubr.bf16.gmra.mxu0 %v2225_v51  ;;  %12819 = vst [vmem:[#allocation45_spill] sm:$0xff] %v10406_v41  ;;  %v8249_v38 = vadd.f32 %v8248_v63, %v8247_v6  ;;  %v2444_v18 = vrot.slane %v12820_v4, 3  ;;  %v2445_v51 = vrot.slane %v12821_v55, 4  ;;  %v10418_v6 = vld [vmem:[#allocation2 + $0x14] sm:$0xf] }
 0x1cd   : > { %2405 = vmatprep.mubr.bf16.mxu0 %v12813_v15  ;;  %v1397_v9 = vpop.f32.mrf.mxu0  ;;  %v8250_v57 = vpop.f32.mrf.mxu1  ;;  %v2443_v32 = vor.u32 %v2442_v19, %v2439_v47  ;;  %vm12758_vm9 = vsmask.f32 4352  ;;  %v10430_v19 = vld [vmem:[#allocation2 + $0x14] sm:$0xff]   ;;  %v10434_v26 = vor.u32 %v2767_v59, %v2764_v12  ;;  %v10445_v59 = vld [vmem:[#allocation2 + $0x20] sm:$0xf] }
 0x1ce   : > { %v10415_v60 = vadd.f32 %v8249_v38, %v1397_v9  ;;  %v10420_v55 = vor.u32 %v2445_v51, %v2444_v18  ;;  %v2756_v38 = vrot.slane %v2754_v7, 3  ;;  %v12825_v51 = vshll.u32 %v10219_v25, 16 }
 0x1cf   : > { %v8431_v0 = vpop.f32.mrf.mxu0  ;;  %v8251_v31 = vpop.f32.mrf.mxu1 }
 0x1d0   : > { %2152 = vmatmul.mubr.bf16.gmra.mxu1 %v1970_v33  ;;  %12822 = vst [vmem:[#allocation46_spill] sm:$0xff] %v10415_v60  ;;  %v8252_v63 = vadd.f32 %v8251_v31, %v8250_v57  ;;  %v7680_v33 = vcombine.low %v10418_v6, %v10413_v48  ;;  %v2759_v0 = vrot.slane %v2757_v17, 4  ;;  %v9062_v57 = vld [vmem:[%s12699_s4 + $0x270] ss:$8 sps:$4 sm:$0xff]   ;;  %v2449_v7 = vrot.slane %v12825_v51, 4  ;;  %v10449_v51 = vld [vmem:[#allocation2 + $0x24] sm:$0xff]  }
 0x1d1   : > { %2592 = vmatprep.mubr.bf16.mxu1 %v12813_v15  ;;  %v1400_v4 = vpop.f32.mrf.mxu0  ;;  %v8253_v58 = vpop.f32.mrf.mxu1  ;;  %v9068_v17 = vld [vmem:[%s12699_s4 + $0x264] ss:$8 sps:$4 sm:$0xff]  }
 0x1d2   : > { %v10424_v9 = vadd.f32 %v8252_v63, %v1400_v4  ;;  %v2447_v63 = vsel %vm12758_vm9, %v2443_v32, %v10420_v55  ;;  %v2771_v4 = vshrl.u32 %v7680_v33, 16  ;;  %v2760_v12 = vor.u32 %v2759_v0, %v2756_v38  ;;  %v9066_v32 = vld [vmem:[%s12699_s4 + $0x260] ss:$8 sps:$4 sm:$0xff]  }
 0x1d3   : > { %v8432_v60 = vpop.f32.mrf.mxu0  ;;  %v8254_v47 = vpop.f32.mrf.mxu1  ;;  %v3963_v38 = vrot.slane %v10432_v14, 1 }
 0x1d4   : > { %2406 = vmatmul.mubr.bf16.gmra.mxu0 %v2224_v46  ;;  %12823 = vst [vmem:[#allocation47_spill] sm:$0xff] %v10424_v9  ;;  %v12824_v46 = vshrl.u32 %v10219_v25, 16  ;;  %v8255_v60 = vadd.f32 %v8254_v47, %v8253_v58  ;;  %v2774_v9 = vshll.u32 %v7680_v33, 16  ;;  %v2769_v0 = vsel %vm12758_vm9, %v2760_v12, %v10434_v26 }
 0x1d5   : > { %2934 = vmatprep.mubr.bf16.mxu0 %v12813_v15  ;;  %v1405_v31 = vpop.f32.mrf.mxu0  ;;  %v8256_v41 = vpop.f32.mrf.mxu1  ;;  %v2773_v58 = vrot.slane %v2771_v4, 3  ;;  %v3965_v4 = vrot.slane %v10449_v51, 1 }
 0x1d6   : > { %v2448_v18 = vrot.slane %v12824_v46, 3  ;;  %v10447_v46 = vadd.f32 %v8255_v60, %v1405_v31  ;;  %v10463_v60 = vld [vmem:[#allocation2 + $0x1c] sm:$0xf]  ;;  %v9091_v31 = vld [vmem:[%s12699_s4 + $0x2f0] ss:$8 sps:$4 sm:$0xff]  }
 0x1d7   : > { %v8435_v25 = vpop.f32.mrf.mxu0  ;;  %v8257_v33 = vpop.f32.mrf.mxu1  ;;  %v7681_v12 = vcombine.low %v10463_v60, %v10445_v59 }
 0x1d8   : > { %2593 = vmatmul.mubr.bf16.vlgmr.msra.gmra.mxu1 %v2447_v63  ;;  %12826 = vst [vmem:[#allocation48_spill] sm:$0xff] %v10447_v46  ;;  %v10461_v47 = vor.u32 %v2449_v7, %v2448_v18  ;;  %v8258_v63 = vadd.f32 %v8257_v33, %v8256_v41  ;;  %v2776_v46 = vrot.slane %v2774_v9, 4  ;;  %v9100_v18 = vld [vmem:[%s12699_s4 + $0x2e4] ss:$8 sps:$4 sm:$0xff]   ;;  %v12829_v33 = vshrl.u32 %v10258_v8, 16 }
 0x1d9   : > { %2602 = vmatprep.mubr.bf16.mxu1 %v12813_v15  ;;  %3141 = vmatpush1.bf16.msra.mxu1 %v9062_v57  ;;  %v9071_v57 = vld [vmem:[%s12699_s4 + $0x254] ss:$8 sps:$4 sm:$0xff]   ;;  %v1408_v25 = vpop.f32.mrf.mxu0  ;;  %v8259_v7 = vpop.f32.mrf.mxu1  ;;  %v10500_v9 = vsel %vm3959_vm11, %v3963_v38, %v3965_v4  ;;  %v2783_v23 = vshll.u32 %v7681_v12, 16 }
 0x1da   : > { %3142 = vmatprep.subr.bf16.mxu1 %v9068_v17  ;;  %v12827_v17 = vrot.slane %v10430_v19, 1  ;;  %v10481_v10 = vadd.f32 %v8258_v63, %v1408_v25  ;;  %v2452_v37 = vrot.slane %v12829_v33, 3  ;;  %v9075_v25 = vld [vmem:[%s12699_s4 + $0x244] ss:$8 sps:$4 sm:$0xff]  }
 0x1db   : > { %v8436_v41 = vpop.f32.mrf.mxu0 }
 0x1dc   : > { %v10479_v56 = vsel %vm3959_vm11, %v12827_v17, %v3963_v38  ;;  %2935 = vmatmul.mubr.bf16.vlgmr.msra.gmra.mxu0 %v2769_v0  ;;  %12828 = vst [vmem:[#allocation49_spill] sm:$0xff] %v10481_v10  ;;  %v8260_v17 = vpop.f32.mrf.mxu1  ;;  %v12830_v0 = vshll.u32 %v10258_v8, 16  ;;  %v9098_v41 = vld [vmem:[%s12699_s4 + $0x2e0] ss:$8 sps:$4 sm:$0xff]   ;;  %v12831_v10 = vrot.slane %v10451_v1, 1 }
 0x1dd   : > { %2944 = vmatprep.mubr.bf16.mxu0 %v12813_v15  ;;  %3143 = vmatpush1.bf16.msra.mxu1 %v9066_v32  ;;  %v8261_v33 = vadd.f32 %v8260_v17, %v8259_v7  ;;  %v1413_v32 = vpop.f32.mrf.mxu0  ;;  %v9107_v38 = vld [vmem:[%s12699_s4 + $0x2d4] ss:$8 sps:$4 sm:$0xff]  }
 0x1de   : > { %v2453_v63 = vrot.slane %v12830_v0, 4  ;;  %3144 = vmatprep.subr.bf16.mxu1 %v9071_v57  ;;  %3477 = vmatpush1.bf16.msra.mxu0 %v9091_v31  ;;  %v10505_v8 = vsel %vm3959_vm11, %v3965_v4, %v12831_v10  ;;  %v2451_v57 = vsel %vm12758_vm9, %v10420_v55, %v10461_v47  ;;  %v2777_v0 = vor.u32 %v2776_v46, %v2773_v58  ;;  %v8262_v7 = vpop.f32.mrf.mxu1  ;;  %v10518_v4 = vld [vmem:[#allocation2 + $0x24] sm:$0xf]  ;;  %v9073_v55 = vld [vmem:[%s12699_s4 + $0x240] ss:$8 sps:$4 sm:$0xff]  }
 0x1df   : > { %v2780_v31 = vshrl.u32 %v7681_v12, 16  ;;  %3478 = vmatprep.subr.bf16.mxu0 %v9100_v18  ;;  %v10515_v17 = vadd.f32 %v8261_v33, %v1413_v32  ;;  %v8439_v10 = vpop.f32.mrf.mxu0  ;;  %v7682_v58 = vcombine.low %v10518_v4, %v10510_v11  ;;  %v9079_v12 = vld [vmem:[%s12699_s4 + $0x234] ss:$8 sps:$4 sm:$0xff]   ;;  %v9105_v18 = vld [vmem:[%s12699_s4 + $0x2d0] ss:$8 sps:$4 sm:$0xff]   ;;  %v2785_v7 = vrot.slane %v2783_v23, 4 }
 0x1e0   : > { %2603 = vmatmul.mubr.bf16.gmra.mxu1 %v2451_v57  ;;  %v8263_v46 = vpop.f32.mrf.mxu1  ;;  %v2454_v32 = vor.u32 %v2453_v63, %v2452_v37  ;;  %v9082_v23 = vld [vmem:[%s12699_s4 + $0x224] ss:$8 sps:$4 sm:$0xff]   ;;  %v9112_v37 = vld [vmem:[%s12699_s4 + $0x2c0] ss:$8 sps:$4 sm:$0xff]  }
 0x1e1   : > { %12832 = vst [vmem:[#allocation50_spill] sm:$0xff] %v10515_v17  ;;  %2612 = vmatprep.mubr.bf16.mxu1 %v12813_v15  ;;  %3145 = vmatpush1.bf16.msra.mxu1 %v9069_v28  ;;  %v1416_v33 = vpop.f32.mrf.mxu0  ;;  %v2778_v28 = vsel %vm12758_vm9, %v10434_v26, %v2777_v0  ;;  %v2782_v57 = vrot.slane %v2780_v31, 3  ;;  %v2789_v46 = vshrl.u32 %v7682_v58, 16  ;;  %v12833_v31 = vshrl.u32 %v10301_v52, 16 }
 0x1e2   : > { %3146 = vmatprep.subr.bf16.mxu1 %v9075_v25  ;;  %3479 = vmatpush1.bf16.msra.mxu0 %v9098_v41  ;;  %v9114_v25 = vld [vmem:[%s12699_s4 + $0x2c4] ss:$8 sps:$4 sm:$0xff]   ;;  %v9077_v41 = vld [vmem:[%s12699_s4 + $0x230] ss:$8 sps:$4 sm:$0xff]   ;;  %v2792_v33 = vshll.u32 %v7682_v58, 16  ;;  %v2455_v26 = vsel %vm12758_vm9, %v10461_v47, %v2454_v32 }
 0x1e3   : > { %3480 = vmatprep.subr.bf16.mxu0 %v9107_v38  ;;  %v8440_v10 = vpop.f32.mrf.mxu0  ;;  %v2786_v63 = vor.u32 %v2785_v7, %v2782_v57  ;;  %v2456_v38 = vrot.slane %v12833_v31, 3  ;;  %v9080_v47 = vld [vmem:[%s12699_s4 + $0x220] ss:$8 sps:$4 sm:$0xff]   ;;  %v10564_v7 = vld [vmem:[#allocation2 + $0x2c] sm:$0xf] }
 0x1e4   : > { %2945 = vmatmul.mubr.bf16.gmra.mxu0 %v2778_v28  ;;  %v2791_v28 = vrot.slane %v2789_v46, 3  ;;  %v2794_v57 = vrot.slane %v2792_v33, 4  ;;  %v9134_v46 = vld [vmem:[%s12699_s4 + $0x2a4] ss:$8 sps:$4 sm:$0xff]   ;;  %v2414_v33 = vld [vmem:[#allocation2 + $0x34] sm:$0xf] }
 0x1e5   : > { %2954 = vmatprep.mubr.bf16.mxu0 %v12813_v15  ;;  %3147 = vmatpush1.bf16.msra.mxu1 %v9073_v55  ;;  %v12834_v55 = vshll.u32 %v10301_v52, 16  ;;  %v9085_v52 = vld [vmem:[%s12699_s4 + $0x214] ss:$8 sps:$4 sm:$0xff]   ;;  %v2787_v10 = vsel %vm12758_vm9, %v2777_v0, %v2786_v63  ;;  %v12835_v0 = vshrl.u32 %v10346_v20, 16 }
 0x1e6   : > { %3148 = vmatprep.subr.bf16.mxu1 %v9079_v12  ;;  %3481 = vmatpush1.bf16.msra.mxu0 %v9105_v18  ;;  %v9123_v12 = vld [vmem:[%s12699_s4 + $0x2b4] ss:$8 sps:$4 sm:$0xff]   ;;  %v10555_v18 = vld [vmem:[#allocation2 + $0x30] sm:$0xf] }
 0x1e7   : > { %v2457_v58 = vrot.slane %v12834_v55, 4  ;;  %3482 = vmatprep.subr.bf16.mxu0 %v9114_v25  ;;  %v9121_v25 = vld [vmem:[%s12699_s4 + $0x2b0] ss:$8 sps:$4 sm:$0xff]   ;;  %v2460_v31 = vrot.slane %v12835_v0, 3 }
 0x1e8   : > { %2613 = vmatmul.mubr.bf16.gmra.mxu1 %v2455_v26  ;;  %v7683_v26 = vcombine.low %v10564_v7, %v10555_v18 }
 0x1e9   : > { %2622 = vmatprep.mubr.bf16.mxu1 %v12813_v15  ;;  %3149 = vmatpush1.bf16.msra.mxu1 %v9077_v41  ;;  %v2458_v41 = vor.u32 %v2457_v58, %v2456_v38  ;;  %v12836_v38 = vshll.u32 %v10346_v20, 16  ;;  %v9088_v58 = vld [vmem:[%s12699_s4 + $0x204] ss:$8 sps:$4 sm:$0xff]   ;;  %v9140_v20 = vld [vmem:[%s12699_s4 + $0x294] ss:$8 sps:$4 sm:$0xff]  }
 0x1ea   : > { %3150 = vmatprep.subr.bf16.mxu1 %v9082_v23  ;;  %3483 = vmatpush1.bf16.msra.mxu0 %v9112_v37  ;;  %v9083_v23 = vld [vmem:[%s12699_s4 + $0x210] ss:$8 sps:$4 sm:$0xff]   ;;  %v2795_v37 = vor.u32 %v2794_v57, %v2791_v28  ;;  %v2801_v28 = vshll.u32 %v7683_v26, 16  ;;  %v7645_v57 = vcombine.low %v10378_v42, %v2414_v33  ;;  %v9096_v42 = vld [vmem:[%s12699_s4 + $0x374] ss:$8 sps:$4 sm:$0xff]  }
 0x1eb   : > { %3484 = vmatprep.subr.bf16.mxu0 %v9123_v12  ;;  %v2461_v55 = vrot.slane %v12836_v38, 4  ;;  %v9132_v12 = vld [vmem:[%s12699_s4 + $0x2a0] ss:$8 sps:$4 sm:$0xff]  }
 0x1ec   : > { %2955 = vmatmul.mubr.bf16.gmra.mxu0 %v2787_v10  ;;  %v2798_v10 = vshrl.u32 %v7683_v26, 16  ;;  %v9138_v26 = vld [vmem:[%s12699_s4 + $0x290] ss:$8 sps:$4 sm:$0xff]   ;;  %v2803_v33 = vrot.slane %v2801_v28, 4  ;;  %v2468_v0 = vshll.u32 %v7645_v57, 16 }
 0x1ed   : > { %2964 = vmatprep.mubr.bf16.mxu0 %v12813_v15  ;;  %3151 = vmatpush1.bf16.msra.mxu1 %v9080_v47  ;;  %v2459_v47 = vsel %vm12758_vm9, %v2454_v32, %v2458_v41  ;;  %v2462_v32 = vor.u32 %v2461_v55, %v2460_v31  ;;  %v9144_v31 = vld [vmem:[%s12699_s4 + $0x280] ss:$8 sps:$4 sm:$0xff]  }
 0x1ee   : > { %3152 = vmatprep.subr.bf16.mxu1 %v9085_v52  ;;  %3485 = vmatpush1.bf16.msra.mxu0 %v9121_v25  ;;  %v9086_v52 = vld [vmem:[%s12699_s4 + $0x200] ss:$8 sps:$4 sm:$0xff]   ;;  %v2796_v25 = vsel %vm12758_vm9, %v2786_v63, %v2795_v37  ;;  %v9146_v63 = vld [vmem:[%s12699_s4 + $0x284] ss:$8 sps:$4 sm:$0xff]  }
 0x1ef   : > { %3486 = vmatprep.subr.bf16.mxu0 %v9134_v46  ;;  %v2800_v46 = vrot.slane %v2798_v10, 3  ;;  %v2463_v38 = vsel %vm12758_vm9, %v2458_v41, %v2462_v32 }
 0x1f0   : > { %2623 = vmatmul.mubr.bf16.gmra.mxu1 %v2459_v47  ;;  %v9150_v47 = vld [vmem:[%s12699_s4 + $0x3f4] ss:$8 sps:$4 sm:$0xff]  }
 0x1f1   : > { %2632 = vmatprep.mubr.bf16.mxu1 %v12813_v15  ;;  %3153 = vmatpush1.bf16.msra.mxu1 %v9083_v23  ;;  %v2465_v23 = vshrl.u32 %v7645_v57, 16  ;;  %v10613_v55 = vor.u32 %v2803_v33, %v2800_v46  ;;  %v9094_v57 = vld [vmem:[%s12699_s4 + $0x370] ss:$8 sps:$4 sm:$0xff]   ;;  %v9126_v46 = vld [vmem:[%s12699_s4 + $0x324] ss:$8 sps:$4 sm:$0xff]  }
 0x1f2   : > { %3154 = vmatprep.subr.bf16.mxu1 %v9088_v58  ;;  %3487 = vmatpush1.bf16.msra.mxu0 %v9132_v12  ;;  %v2470_v12 = vrot.slane %v2468_v0, 4  ;;  %v9124_v33 = vld [vmem:[%s12699_s4 + $0x320] ss:$8 sps:$4 sm:$0xff]   ;;  %v9137_v0 = vld [vmem:[%s12699_s4 + $0x304] ss:$8 sps:$4 sm:$0xff]  }
 0x1f3   : > { %3488 = vmatprep.subr.bf16.mxu0 %v9140_v20  ;;  %v2467_v58 = vrot.slane %v2465_v23, 3  ;;  %v2805_v10 = vsel %vm12758_vm9, %v2795_v37, %v10613_v55  ;;  %v7717_v37 = vcombine.low %v10394_v27, %v10396_v13  ;;  %v9103_v20 = vld [vmem:[%s12699_s4 + $0x364] ss:$8 sps:$4 sm:$0xff]   ;;  %v9108_v27 = vld [vmem:[%s12699_s4 + $0x350] ss:$8 sps:$4 sm:$0xff]   ;;  %v7718_v13 = vcombine.low %v10389_v30, %v10418_v6 }
 0x1f4   : > { %2965 = vmatmul.mubr.bf16.gmra.mxu0 %v2796_v25  ;;  %v9110_v25 = vld [vmem:[%s12699_s4 + $0x354] ss:$8 sps:$4 sm:$0xff]   ;;  %v9118_v30 = vld [vmem:[%s12699_s4 + $0x330] ss:$8 sps:$4 sm:$0xff]   ;;  %v7719_v6 = vcombine.low %v10413_v48, %v10463_v60  ;;  %v7720_v60 = vcombine.low %v10445_v59, %v10518_v4  ;;  %v7721_v59 = vcombine.low %v10510_v11, %v10564_v7  ;;  %v3616_v11 = vld [vmem:[#allocation2 + $0x40] sm:$0x1] }
 0x1f5   : > { %2974 = vmatprep.mubr.bf16.mxu0 %v12813_v15  ;;  %3155 = vmatpush1.bf16.msra.mxu1 %v9086_v52  ;;  %v2471_v28 = vor.u32 %v2470_v12, %v2467_v58  ;;  %v9101_v52 = vld [vmem:[%s12699_s4 + $0x360] ss:$8 sps:$4 sm:$0xff]   ;;  %v9131_v23 = vld [vmem:[%s12699_s4 + $0x314] ss:$8 sps:$4 sm:$0xff]   ;;  %v9129_v48 = vld [vmem:[%s12699_s4 + $0x310] ss:$8 sps:$4 sm:$0xff]  }
 0x1f6   : > { %3811 = vmatprep.subr.bf16.mxu1 %v9096_v42  ;;  %3489 = vmatpush1.bf16.msra.mxu0 %v9138_v26  ;;  %v9115_v42 = vld [vmem:[%s12699_s4 + $0x340] ss:$8 sps:$4 sm:$0xff]   ;;  %v9120_v26 = vld [vmem:[%s12699_s4 + $0x334] ss:$8 sps:$4 sm:$0xff]   ;;  %v3603_v7 = vld [vmem:[#allocation2 + $0xc] sm:$0xf] }
 0x1f7   : > { %3490 = vmatprep.subr.bf16.mxu0 %v9146_v63  ;;  %v2472_v41 = vsel %vm12758_vm9, %v2462_v32, %v2471_v28  ;;  %v9117_v32 = vld [vmem:[%s12699_s4 + $0x344] ss:$8 sps:$4 sm:$0xff]   ;;  %v9135_v63 = vld [vmem:[%s12699_s4 + $0x300] ss:$8 sps:$4 sm:$0xff]   ;;  %v2699_v4 = vld [vmem:[#allocation2 + $0x34] sm:$0xf] }
 0x1f8   : > { %2633 = vmatmul.mubr.bf16.gmra.mxu1 %v2463_v38  ;;  %v7722_v38 = vcombine.low %v10555_v18, %v2699_v4 }
 0x1f9   : > { %2642 = vmatprep.mubr.bf16.mxu1 %v12813_v15 }
 0x1fa   : > { %3491 = vmatpush1.bf16.msra.mxu0 %v9144_v31  ;;  %v9156_v31 = vld [vmem:[%s12699_s4 + $0x474] ss:$8 sps:$4 sm:$0xff]  }
 0x1fb   : > { %4060 = vmatprep.subr.bf16.mxu0 %v9150_v47 }
 0x1fc   : > { %2975 = vmatmul.mubr.bf16.gmra.mxu0 %v2805_v10  ;;  %v10691_v10 = vld [vmem:[#allocation2 + $0x10] sm:$0xf] }
 0x1fd   : > { %2984 = vmatprep.mubr.bf16.mxu0 %v12813_v15 }
 0x200   : > { %2643 = vmatmul.mubr.bf16.gmra.mxu1 %v2472_v41  ;;  %v7795_v41 = vcombine.low %v3603_v7, %v10691_v10  ;;  %v9170_v7 = vld [vmem:[%s12699_s4 + $0x454] ss:$8 sps:$4 sm:$0xff]  }
 0x201   : > { %2652 = vmatprep.mubr.bf16.mxu1 %v12813_v15 }
 0x208   : > { %2653 = vmatmul.mubr.bf16.gmra.mxu1 %v2471_v28  ;;  %v10693_v28 = vld [vmem:[#allocation2 + $0x3c] sm:$0xf] }
 0x209   : > { %3172 = vmatprep.mubr.bf16.mxu1 %v12813_v15 }
 0x210   : > { %3173 = vmatmul.mubr.bf16.vlgmr.msra.gmra.mxu1 %v7717_v37  ;;  %v3672_v37 = vshll.u32 %v7795_v41, 16 }
 0x211   : > { %3182 = vmatprep.mubr.bf16.mxu1 %v12813_v15  ;;  %3812 = vmatpush1.bf16.msra.mxu1 %v9094_v57  ;;  %v10697_v57 = vcombine.low %v10693_v28, %v3616_v11  ;;  %v10732_v11 = vld [vmem:[#allocation2 + $0x10] sm:$0xff]  }
 0x212   : > { %3813 = vmatprep.subr.bf16.mxu1 %v9103_v20 }
 0x215   : > { %3814 = vmatpush1.bf16.msra.mxu1 %v9101_v52 }
 0x216   : > { %3815 = vmatprep.subr.bf16.mxu1 %v9110_v25 }
 0x218   : > { %3183 = vmatmul.mubr.bf16.gmra.mxu1 %v7718_v13  ;;  %v12740_v13 = vshll.u32 %v10430_v19, 16 }
 0x219   : > { %3192 = vmatprep.mubr.bf16.mxu1 %v12813_v15  ;;  %3816 = vmatpush1.bf16.msra.mxu1 %v9108_v27  ;;  %v12734_v27 = vrot.slane %v10697_v57, 1 }
 0x21a   : > { %3817 = vmatprep.subr.bf16.mxu1 %v9117_v32 }
 0x21d   : > { %3818 = vmatpush1.bf16.msra.mxu1 %v9115_v42 }
 0x21e   : > { %3819 = vmatprep.subr.bf16.mxu1 %v9120_v26 }
 0x220   : > { %3193 = vmatmul.mubr.bf16.gmra.mxu1 %v7719_v6  ;;  %v12837_v6 = vrot.slane %v10451_v1, 1 }
 0x221   : > { %3202 = vmatprep.mubr.bf16.mxu1 %v12813_v15  ;;  %3820 = vmatpush1.bf16.msra.mxu1 %v9118_v30  ;;  %v3674_v30 = vrot.slane %v3672_v37, 1 }
 0x222   : > { %3821 = vmatprep.subr.bf16.mxu1 %v9126_v46 }
 0x225   : > { %3822 = vmatpush1.bf16.msra.mxu1 %v9124_v33 }
 0x226   : > { %3823 = vmatprep.subr.bf16.mxu1 %v9131_v23 }
 0x228   : > { %3203 = vmatmul.mubr.bf16.gmra.mxu1 %v7720_v60  ;;  %v3670_v60 = vshrl.u32 %v7795_v41, 16  ;;  %v12741_v41 = vshrl.u32 %v10430_v19, 16 }
 0x229   : > { %3212 = vmatprep.mubr.bf16.mxu1 %v12813_v15  ;;  %3824 = vmatpush1.bf16.msra.mxu1 %v9129_v48 }
 0x22a   : > { %3825 = vmatprep.subr.bf16.mxu1 %v9137_v0  ;;  %v3679_v0 = vrot.slane %v12740_v13, 1 }
 0x22d   : > { %3826 = vmatpush1.bf16.msra.mxu1 %v9135_v63 }
 0x22e   : > { %4333 = vmatprep.subr.bf16.mxu1 %v9156_v31  ;;  %v3675_v31 = vor.u32 %v3674_v30, %v3670_v60  ;;  %v12736_v30 = vshll.u32 %v10449_v51, 16 }
 0x230   : > { %3213 = vmatmul.mubr.bf16.gmra.mxu1 %v7721_v59  ;;  %v9154_v59 = vld [vmem:[%s12699_s4 + $0x470] ss:$8 sps:$4 sm:$0xff]  }
 0x231   : > { %3222 = vmatprep.mubr.bf16.mxu1 %v12813_v15 }
 0x238   : > { %3223 = vmatmul.mubr.bf16.gmra.mxu1 %v7722_v38  ;;  %v1703_v58 = vpop.permute.xlu0 %1702  ;;  %v9163_v38 = vld [vmem:[%s12699_s4 + $0x464] ss:$8 sps:$4 sm:$0xff]  }
 0x239   : > { %3232 = vmatprep.mubr.bf16.mxu1 %v12813_v15  ;;  %v1716_v12 = vrot.slane %v1703_v58, 4 }
 0x23b   : > { %v1730_v47 = vsel %vm12733_vm10, %v1703_v58, %v1716_v12  ;;  %vm3333_vm10 = vsmask.f32 7424  ;;  %v12738_v12 = vshll.u32 %v10432_v14, 16 }
 0x23c   : > { %1756 = vst [vmem:[#allocation2 + $0x38] sm:$0xf] %v1730_v47  ;;  %v3680_v58 = vsel %vm3333_vm10, %v3675_v31, %v3679_v0  ;;  %v9151_v47 = vld [vmem:[#allocation2 + $0x8] sm:$0xff]   ;;  %v12739_v31 = vshrl.u32 %v10432_v14, 16 }
 0x23d   : > { %v3337_v37 = vshll.u32 %v9151_v47, 16 }
 0x243   : > { %v2700_v18 = vld [vmem:[#allocation2 + $0x38] sm:$0xf] }
 0x244   : > { %v10699_v20 = vld [vmem:[#allocation2 + $0x34] sm:$0xff]   ;;  %v7684_v52 = vcombine.low %v2699_v4, %v2700_v18  ;;  %v7723_v25 = vcombine.low %v2700_v18, %v2700_v18  ;;  %v3687_v18 = vrot.slane %v12738_v12, 1  ;;  %v10842_v12 = vld [vmem:[#allocation2 + $0x28] sm:$0xff]  }
 0x245   : > { %v3969_v32 = vrot.slane %v10699_v20, 1 }
 0x246   : > { %3233 = vmatmul.mubr.bf16.gmra.mxu1 %v7723_v25  ;;  %v2807_v42 = vshrl.u32 %v7684_v52, 16  ;;  %v2810_v26 = vshll.u32 %v7684_v52, 16  ;;  %v3683_v52 = vor.u32 %v12741_v41, %v3679_v0  ;;  %v9168_v25 = vld [vmem:[%s12699_s4 + $0x450] ss:$8 sps:$4 sm:$0xff]  }
 0x247   : > { %3843 = vmatprep.mubr.bf16.mxu1 %v12813_v15  ;;  %v10708_v46 = vsel %vm3959_vm11, %v12837_v6, %v3969_v32  ;;  %v10713_v48 = vsel %vm3959_vm11, %v3969_v32, %v12734_v27  ;;  %v3342_v32 = vshll.u32 %v10732_v11, 16  ;;  %v3339_v6 = vrot.slane %v3337_v37, 1  ;;  %v10756_v0 = vld [vmem:[#allocation2 + $0x18] sm:$0xff]  }
 0x248   : > { %v2809_v33 = vrot.slane %v2807_v42, 3  ;;  %v2812_v23 = vrot.slane %v2810_v26, 4  ;;  %v9178_v42 = vld [vmem:[%s12699_s4 + $0x444] ss:$8 sps:$4 sm:$0xff]   ;;  %v3688_v26 = vsel %vm3333_vm10, %v3683_v52, %v3687_v18  ;;  %v9181_v37 = vld [vmem:[%s12699_s4 + $0x430] ss:$8 sps:$4 sm:$0xff]  }
 0x249   : > { %v3344_v60 = vrot.slane %v3342_v32, 1 }
 0x24a   : > { %v2813_v63 = vor.u32 %v2812_v23, %v2809_v33  ;;  %v9176_v33 = vld [vmem:[%s12699_s4 + $0x440] ss:$8 sps:$4 sm:$0xff]   ;;  %v3335_v23 = vshrl.u32 %v9151_v47, 16  ;;  %v9159_v47 = vld [vmem:[%s12699_s4 + $0x3e4] ss:$8 sps:$4 sm:$0xff]  }
 0x24c   : > { %v2814_v4 = vsel %vm12758_vm9, %v10613_v55, %v2813_v63  ;;  %v9161_v55 = vld [vmem:[%s12699_s4 + $0x460] ss:$8 sps:$4 sm:$0xff]   ;;  %vm12777_vm9 = vsmask.f32 6400 }
 0x24d   : > { %2985 = vmatmul.mubr.bf16.gmra.mxu0 %v2814_v4  ;;  %v9148_v4 = vld [vmem:[%s12699_s4 + $0x3f0] ss:$8 sps:$4 sm:$0xff]  }
 0x24e   : > { %3844 = vmatmul.mubr.bf16.vlgmr.msra.gmra.mxu1 %v3680_v58  ;;  %2994 = vmatprep.mubr.bf16.mxu0 %v12813_v15  ;;  %v3691_v58 = vor.u32 %v12739_v31, %v3687_v18  ;;  %v9189_v18 = vld [vmem:[%s12699_s4 + $0x424] ss:$8 sps:$4 sm:$0xff]  }
 0x24f   : > { %3853 = vmatprep.mubr.bf16.mxu1 %v12813_v15  ;;  %4334 = vmatpush1.bf16.msra.mxu1 %v9154_v59  ;;  %v3695_v59 = vrot.slane %v12736_v30, 1 }
 0x250   : > { %4335 = vmatprep.subr.bf16.mxu1 %v9163_v38  ;;  %v3340_v38 = vor.u32 %v3339_v6, %v3335_v23 }
 0x251   : > { %v3696_v52 = vsel %vm3333_vm10, %v3691_v58, %v3695_v59 }
 0x253   : > { %4336 = vmatpush1.bf16.msra.mxu1 %v9161_v55  ;;  %v3345_v55 = vsel %vm3333_vm10, %v3340_v38, %v3344_v60  ;;  %v12737_v38 = vshrl.u32 %v10449_v51, 16 }
 0x254   : > { %4337 = vmatprep.subr.bf16.mxu1 %v9170_v7  ;;  %v3350_v7 = vshll.u32 %v10756_v0, 16 }
 0x255   : > { %2995 = vmatmul.mubr.bf16.gmra.mxu0 %v2813_v63  ;;  %v9183_v63 = vld [vmem:[%s12699_s4 + $0x434] ss:$8 sps:$4 sm:$0xff]   ;;  %v3699_v27 = vor.u32 %v12737_v38, %v3695_v59 }
 0x256   : > { %3854 = vmatmul.mubr.bf16.gmra.mxu1 %v3688_v26  ;;  %3508 = vmatprep.mubr.bf16.mxu0 %v12813_v15  ;;  %v9167_v26 = vld [vmem:[%s12699_s4 + $0x3d4] ss:$8 sps:$4 sm:$0xff]   ;;  %v3352_v23 = vrot.slane %v3350_v7, 1 }
 0x257   : > { %3863 = vmatprep.mubr.bf16.mxu1 %v12813_v15  ;;  %4338 = vmatpush1.bf16.msra.mxu1 %v9168_v25  ;;  %v12735_v25 = vshll.u32 %v10451_v1, 16 }
 0x258   : > { %4339 = vmatprep.subr.bf16.mxu1 %v9178_v42  ;;  %v9157_v42 = vld [vmem:[%s12699_s4 + $0x3e0] ss:$8 sps:$4 sm:$0xff]  }
 0x259   : > { %v3703_v58 = vrot.slane %v12735_v25, 1 }
 0x25b   : > { %4340 = vmatpush1.bf16.msra.mxu1 %v9176_v33  ;;  %v3346_v33 = vshrl.u32 %v10732_v11, 16  ;;  %v9193_v11 = vld [vmem:[%s12699_s4 + $0x414] ss:$8 sps:$4 sm:$0xff]   ;;  %v3704_v59 = vsel %vm3333_vm10, %v3699_v27, %v3703_v58  ;;  %v7885_v27 = vld [vmem:[%s12701_s6] ss:$0 sm:$0xff] }
 0x25c   : > { %4341 = vmatprep.subr.bf16.mxu1 %v9183_v63  ;;  %v10791_v63 = vld [vmem:[#allocation2 + $0x20] sm:$0xff]   ;;  %4506 = vrot.lane.b32.xlu1 %v7885_v27, %s9322_s15  ;;  %v3366_v27 = vshll.u32 %v10842_v12, 16 }
 0x25d   : > { %3509 = vmatmul.mubr.bf16.vlgmr.msra.gmra.mxu0 %v3345_v55  ;;  %v3348_v7 = vor.u32 %v3346_v33, %v3344_v60  ;;  %v9175_v60 = vld [vmem:[%s12699_s4 + $0x3c4] ss:$8 sps:$4 sm:$0xff]   ;;  %v12742_v33 = vshll.u32 %v10699_v20, 16 }
 0x25e   : > { %4061 = vmatpush1.bf16.msra.mxu0 %v9148_v4  ;;  %3864 = vmatmul.mubr.bf16.gmra.mxu1 %v3696_v52  ;;  %v2093_v32 = vpop.f32.mrf.mxu1  ;;  %v9187_v4 = vld [vmem:[%s12699_s4 + $0x420] ss:$8 sps:$4 sm:$0xff]  }
 0x25f   : > { %4062 = vmatprep.subr.bf16.mxu0 %v9159_v47  ;;  %3518 = vmatprep.mubr.bf16.mxu0 %v12813_v15  ;;  %v3711_v31 = vrot.slane %v12742_v33, 1 }
 0x260   : > { %v2095_v6 = vpop.f32.mrf.mxu1  ;;  %3873 = vmatprep.mubr.bf16.mxu1 %v12813_v15  ;;  %4342 = vmatpush1.bf16.msra.mxu1 %v9181_v37  ;;  %v9165_v37 = vld [vmem:[%s12699_s4 + $0x3d0] ss:$8 sps:$4 sm:$0xff]  }
 0x261   : > { %4343 = vmatprep.subr.bf16.mxu1 %v9189_v18  ;;  %v3353_v18 = vsel %vm3333_vm10, %v3348_v7, %v3352_v23 }
 0x262   : > { %4063 = vmatpush1.bf16.msra.mxu0 %v9157_v42  ;;  %v2097_v47 = vpop.f32.mrf.mxu1  ;;  %v2347_v55 = vpop.f32.mrf.mxu0  ;;  %v3358_v42 = vshll.u32 %v10791_v63, 16 }
 0x263   : > { %v10805_v52 = vadd.f32 %v2347_v55, %v2093_v32  ;;  %4064 = vmatprep.subr.bf16.mxu0 %v9167_v26  ;;  %v9191_v32 = vld [vmem:[%s12699_s4 + $0x410] ss:$8 sps:$4 sm:$0xff]   ;;  %v9199_v55 = vld [vmem:[%s12699_s4 + $0x404] ss:$8 sps:$4 sm:$0xff]  }
 0x264   : > { %v10810_v25 = vpop.f32.mrf.mxu1  ;;  %v2349_v30 = vpop.f32.mrf.mxu0  ;;  %4344 = vmatpush1.bf16.msra.mxu1 %v9187_v4  ;;  %v9173_v4 = vld [vmem:[%s12699_s4 + $0x3c0] ss:$8 sps:$4 sm:$0xff]  }
 0x265   : > { %3519 = vmatmul.mubr.bf16.gmra.mxu0 %v3353_v18  ;;  %v10820_v26 = vadd.f32 %v2349_v30, %v2095_v6  ;;  %4345 = vmatprep.subr.bf16.mxu1 %v9193_v11  ;;  %v9186_v6 = vld [vmem:[%s12699_s4 + $0x3b4] ss:$8 sps:$4 sm:$0xff]   ;;  %v3354_v18 = vshrl.u32 %v10756_v0, 16 }
 0x266   : > { %3874 = vmatmul.mubr.bf16.gmra.mxu1 %v3704_v59  ;;  %v2103_v7 = vpop.f32.mrf.mxu1  ;;  %v2351_v38 = vpop.f32.mrf.mxu0  ;;  %4065 = vmatpush1.bf16.msra.mxu0 %v9165_v37  ;;  %v3360_v59 = vrot.slane %v3358_v42, 1 }
 0x267   : > { %v10832_v30 = vadd.f32 %v2351_v38, %v2097_v47  ;;  %3528 = vmatprep.mubr.bf16.mxu0 %v12813_v15  ;;  %3883 = vmatprep.mubr.bf16.mxu1 %v12813_v15  ;;  %v9197_v38 = vld [vmem:[%s12699_s4 + $0x400] ss:$8 sps:$4 sm:$0xff]   ;;  %v12743_v47 = vshrl.u32 %v10451_v1, 16  ;;  %v3356_v0 = vor.u32 %v3354_v18, %v3352_v23 }
 0x268   : > { %v2105_v11 = vpop.f32.mrf.mxu1  ;;  %v10839_v37 = vpop.f32.mrf.mxu0  ;;  %4066 = vmatprep.subr.bf16.mxu0 %v9175_v60  ;;  %4346 = vmatpush1.bf16.msra.mxu1 %v9191_v32  ;;  %v9184_v32 = vld [vmem:[%s12699_s4 + $0x3b0] ss:$8 sps:$4 sm:$0xff]  }
 0x269   : > { %4347 = vmatprep.subr.bf16.mxu1 %v9199_v55  ;;  %v3707_v60 = vor.u32 %v12743_v47, %v3703_v58  ;;  %v3361_v17 = vsel %vm3333_vm10, %v3356_v0, %v3360_v59  ;;  %v10881_v47 = vld [vmem:[#allocation2 + $0x30] sm:$0xff]  }
 0x26a   : > { %v2107_v13 = vpop.f32.mrf.mxu1  ;;  %v2357_v41 = vpop.f32.mrf.mxu0  ;;  %4067 = vmatpush1.bf16.msra.mxu0 %v9173_v4  ;;  %v12838_v4 = vmov 0.0   ;;  %v3374_v16 = vshll.u32 %v10881_v47, 16 }
 0x26b   : > { %v10851_v42 = vadd.f32 %v2357_v41, %v2103_v7  ;;  %4068 = vmatprep.subr.bf16.mxu0 %v9186_v6  ;;  %v9196_v41 = vld [vmem:[%s12699_s4 + $0x3a4] ss:$8 sps:$4 sm:$0xff]   ;;  %v3712_v23 = vsel %vm3333_vm10, %v3707_v60, %v3711_v31  ;;  %v3717_v7 = vshll.u32 %v10697_v57, 16 }
 0x26c   : > { %v10859_v33 = vpop.f32.mrf.mxu1  ;;  %v2359_v55 = vpop.f32.mrf.mxu0  ;;  %4348 = vmatpush1.bf16.msra.mxu1 %v9197_v38  ;;  %v12747_v38 = vshrl.u32 %v10699_v20, 16 }
 0x26d   : > { %3529 = vmatmul.mubr.bf16.gmra.mxu0 %v3361_v17  ;;  %v10866_v58 = vadd.f32 %v2359_v55, %v2105_v11  ;;  %8481 = vmatprep.subr.bf16.mxu1 %v12838_v4  ;;  %v9194_v17 = vld [vmem:[%s12699_s4 + $0x3a0] ss:$8 sps:$4 sm:$0xff]   ;;  %v3362_v55 = vshrl.u32 %v10791_v63, 16  ;;  %v9201_v63 = vld [vmem:[%s12699_s4 + $0x390] ss:$8 sps:$4 sm:$0xff]  }
 0x26e   : > { %3884 = vmatmul.mubr.bf16.gmra.mxu1 %v3712_v23  ;;  %v2113_v6 = vpop.f32.mrf.mxu1  ;;  %v2361_v18 = vpop.f32.mrf.mxu0  ;;  %3538 = vmatprep.mubr.bf16.mxu0 %v12813_v15  ;;  %v3368_v23 = vrot.slane %v3366_v27, 1 }
 0x26f   : > { %v10871_v0 = vadd.f32 %v2361_v18, %v2107_v13  ;;  %3893 = vmatprep.mubr.bf16.mxu1 %v12813_v15  ;;  %4069 = vmatpush1.bf16.msra.mxu0 %v9184_v32  ;;  %v9203_v13 = vld [vmem:[%s12699_s4 + $0x394] ss:$8 sps:$4 sm:$0xff]   ;;  %v3715_v32 = vor.u32 %v12747_v38, %v3711_v31  ;;  %v3719_v18 = vrot.slane %v3717_v7, 1  ;;  %v3364_v53 = vor.u32 %v3362_v55, %v3360_v59  ;;  %v9206_v31 = vld [vmem:[%s12699_s4 + $0x384] ss:$8 sps:$4 sm:$0xff]  }
 0x270   : > { %v2115_v11 = vpop.f32.mrf.mxu1  ;;  %v10878_v60 = vpop.f32.mrf.mxu0  ;;  %4070 = vmatprep.subr.bf16.mxu0 %v9196_v41  ;;  %v3938_v7 = vld [vmem:[#allocation2 + $0xc] sm:$0xe]  ;;  %v9200_v38 = vld [vmem:[#allocation2 + $0x38] sm:$0x1f]  }
 0x271   : > { %v3369_v27 = vsel %vm3333_vm10, %v3364_v53, %v3368_v23  ;;  %v3721_v53 = vshrl.u32 %v10697_v57, 16  ;;  %v10906_v55 = vcombine.low %v3938_v7, %v10691_v10 }
 0x272   : > { %v2117_v36 = vpop.f32.mrf.mxu1  ;;  %v2367_v3 = vpop.f32.mrf.mxu0 }
 0x273   : > { %v10888_v44 = vadd.f32 %v2367_v3, %v2113_v6  ;;  %4071 = vmatpush1.bf16.msra.mxu0 %v9194_v17  ;;  %v3720_v3 = vsel %vm3333_vm10, %v3715_v32, %v3719_v18  ;;  %v4213_v54 = vshll.u32 %v10906_v55, 16 }
 0x274   : > { %v10894_v41 = vpop.f32.mrf.mxu1  ;;  %v2369_v45 = vpop.f32.mrf.mxu0  ;;  %4072 = vmatprep.subr.bf16.mxu0 %v9203_v13 }
 0x275   : > { %3539 = vmatmul.mubr.bf16.gmra.mxu0 %v3369_v27  ;;  %v10901_v59 = vadd.f32 %v2369_v45, %v2115_v11  ;;  %v9204_v45 = vld [vmem:[%s12699_s4 + $0x380] ss:$8 sps:$4 sm:$0xff]   ;;  %v3370_v27 = vshrl.u32 %v10842_v12, 16  ;;  %v3382_v12 = vshll.u32 %v9200_v38, 16 }
 0x276   : > { %3894 = vmatmul.mubr.bf16.gmra.mxu1 %v3720_v3  ;;  %v2123_v6 = vpop.f32.mrf.mxu1  ;;  %v2371_v17 = vpop.f32.mrf.mxu0  ;;  %3548 = vmatprep.mubr.bf16.mxu0 %v12813_v15  ;;  %v3376_v3 = vrot.slane %v3374_v16, 1  ;;  %v12839_v16 = vshrl.u32 %v10430_v19, 16 }
 0x277   : > { %v10908_v13 = vadd.f32 %v2371_v17, %v2117_v36  ;;  %3903 = vmatprep.mubr.bf16.mxu1 %v12813_v15  ;;  %4073 = vmatpush1.bf16.msra.mxu0 %v9201_v63  ;;  %v3372_v7 = vor.u32 %v3370_v27, %v3368_v23  ;;  %v3723_v36 = vor.u32 %v3721_v53, %v3719_v18  ;;  %v4210_v63 = vshrl.u32 %v10906_v55, 16 }
 0x278   : > { %v2125_v11 = vpop.f32.mrf.mxu1  ;;  %v10914_v32 = vpop.f32.mrf.mxu0  ;;  %4074 = vmatprep.subr.bf16.mxu0 %v9206_v31  ;;  %v4217_v31 = vrot.slane %v12839_v16, 1  ;;  %v12840_v18 = vshll.u32 %v10430_v19, 16 }
 0x279   : > { %v3377_v34 = vsel %vm3333_vm10, %v3372_v7, %v3376_v3  ;;  %v4215_v7 = vrot.slane %v4213_v54, 2 }
 0x27a   : > { %v2127_v29 = vpop.f32.mrf.mxu1 }
 0x27b   : > { %v2377_v10 = vpop.f32.mrf.mxu0  ;;  %4075 = vmatpush1.bf16.msra.mxu0 %v9204_v45 }
 0x27c   : > { %v10917_v17 = vadd.f32 %v2377_v10, %v2123_v6  ;;  %v10922_v2 = vpop.f32.mrf.mxu1  ;;  %8441 = vmatprep.subr.bf16.mxu0 %v12838_v4  ;;  %v4218_v6 = vrot.slane %v12840_v18, 2  ;;  %v4212_v10 = vrot.slane %v4210_v63, 1 }
 0x27d   : > { %v2379_v43 = vpop.f32.mrf.mxu0  ;;  %3549 = vmatmul.mubr.bf16.gmra.mxu0 %v3377_v34  ;;  %v3378_v34 = vshrl.u32 %v10881_v47, 16  ;;  %v12841_v47 = vshrl.u32 %v10432_v14, 16 }
 0x27e   : > { %v10927_v23 = vadd.f32 %v2379_v43, %v2125_v11  ;;  %3904 = vmatmul.mubr.bf16.gmra.mxu1 %v3723_v36  ;;  %v2133_v53 = vpop.f32.mrf.mxu1  ;;  %3558 = vmatprep.mubr.bf16.mxu0 %v12813_v15  ;;  %v3384_v43 = vrot.slane %v3382_v12, 1  ;;  %v4219_v11 = vor.u32 %v4218_v6, %v4217_v31  ;;  %v4216_v40 = vor.u32 %v4215_v7, %v4212_v10 }
 0x27f   : > { %v2381_v45 = vpop.f32.mrf.mxu0  ;;  %4365 = vmatprep.mubr.bf16.mxu1 %v12813_v15  ;;  %v3380_v36 = vor.u32 %v3378_v34, %v3376_v3  ;;  %v4221_v12 = vrot.slane %v12841_v47, 1  ;;  %v12842_v31 = vshll.u32 %v10432_v14, 16 }
 0x280   : > { %v10932_v27 = vadd.f32 %v2381_v45, %v2127_v29  ;;  %v2135_v22 = vpop.f32.mrf.mxu1  ;;  %v4220_v54 = vsel %vm12777_vm9, %v4216_v40, %v4219_v11 }
 0x281   : > { %v10935_v49 = vpop.f32.mrf.mxu0  ;;  %v3385_v29 = vsel %vm3333_vm10, %v3380_v36, %v3384_v43  ;;  %v4222_v3 = vrot.slane %v12842_v31, 2 }
 0x282   : > { %v2137_v16 = vpop.f32.mrf.mxu1 }
 0x283   : > { %v2387_v18 = vpop.f32.mrf.mxu0  ;;  %v4223_v34 = vor.u32 %v4222_v3, %v4221_v12 }
 0x284   : > { %v10938_v62 = vadd.f32 %v2387_v18, %v2133_v53  ;;  %v10941_v45 = vpop.f32.mrf.mxu1 }
 0x285   : > { %v2389_v63 = vpop.f32.mrf.mxu0  ;;  %3559 = vmatmul.mubr.bf16.gmra.mxu0 %v3385_v29  ;;  %v4224_v14 = vsel %vm12777_vm9, %v4219_v11, %v4223_v34 }
 0x286   : > { %v10944_v5 = vadd.f32 %v2389_v63, %v2135_v22  ;;  %4366 = vmatmul.mubr.bf16.vlgmr.msra.gmra.mxu1 %v4220_v54  ;;  %3568 = vmatprep.mubr.bf16.mxu0 %v12813_v15  ;;  %v3386_v22 = vshrl.u32 %v9200_v38, 16 }
 0x287   : > { %v2391_v6 = vpop.f32.mrf.mxu0  ;;  %4375 = vmatprep.mubr.bf16.mxu1 %v12813_v15 }
 0x288   : > { %v2143_v53 = vpop.f32.mrf.mxu1  ;;  %v10951_v10 = vadd.f32 %v2391_v6, %v2137_v16  ;;  %v3388_v29 = vor.u32 %v3386_v22, %v3384_v43  ;;  %v12844_v16 = vshrl.u32 %v10449_v51, 16  ;;  %v12845_v6 = vshll.u32 %v10449_v51, 16 }
 0x289   : > { %v10954_v7 = vpop.f32.mrf.mxu0 }
 0x28a   : > { %v2145_v40 = vpop.f32.mrf.mxu1  ;;  %v4225_v31 = vrot.slane %v12844_v16, 1  ;;  %v4226_v39 = vrot.slane %v12845_v6, 2 }
 0x28c   : > { %v2147_v18 = vpop.f32.mrf.mxu1  ;;  %v2397_v36 = vpop.f32.mrf.mxu0  ;;  %v4227_v22 = vor.u32 %v4226_v39, %v4225_v31  ;;  %v12849_v39 = vshll.u32 %v10451_v1, 16 }
 0x28d   : > { %v10956_v63 = vadd.f32 %v2397_v36, %v2143_v53  ;;  %3569 = vmatmul.mubr.bf16.gmra.mxu0 %v3388_v29  ;;  %v3960_v36 = vrot.slane %v10906_v55, 1 }
 0x28e   : > { %v10959_v54 = vpop.f32.mrf.mxu1  ;;  %v2399_v47 = vpop.f32.mrf.mxu0  ;;  %4376 = vmatmul.mubr.bf16.gmra.mxu1 %v4224_v14  ;;  %4092 = vmatprep.mubr.bf16.mxu0 %v12813_v15  ;;  %v4230_v31 = vrot.slane %v12849_v39, 2 }
 0x28f   : > { %12843 = vst [vmem:[#allocation51_spill] sm:$0xff] %v10959_v54  ;;  %v10965_v38 = vadd.f32 %v2399_v47, %v2145_v40  ;;  %4385 = vmatprep.mubr.bf16.mxu1 %v12813_v15  ;;  %v12847_v40 = vrot.slane %v10430_v19, 1  ;;  %v4228_v47 = vsel %vm12777_vm9, %v4223_v34, %v4227_v22 }
 0x290   : > { %v2153_v43 = vpop.f32.mrf.mxu1  ;;  %v2401_v12 = vpop.f32.mrf.mxu0 }
 0x291   : > { %v10969_v3 = vadd.f32 %v2401_v12, %v2147_v18  ;;  %v3962_v14 = vsel %vm3959_vm11, %v3960_v36, %v12847_v40  ;;  %v12848_v12 = vshrl.u32 %v10451_v1, 16 }
 0x292   : > { %v2155_v11 = vpop.f32.mrf.mxu1  ;;  %v10971_v53 = vpop.f32.mrf.mxu0 }
 0x293   : > { %12846 = vst [vmem:[#allocation52_spill] sm:$0xff] %v10971_v53  ;;  %v4229_v24 = vrot.slane %v12848_v12, 1 }
 0x294   : > { %v2157_v29 = vpop.f32.mrf.mxu1  ;;  %v2407_v51 = vpop.f32.mrf.mxu0 }
 0x295   : > { %v10974_v16 = vadd.f32 %v2407_v51, %v2153_v43  ;;  %4093 = vmatmul.mubr.bf16.vlgmr.msra.gmra.mxu0 %v3962_v14  ;;  %v4231_v51 = vor.u32 %v4230_v31, %v4229_v24  ;;  %v4187_v14 = vld [vmem:[#allocation2 + $0x40] sm:$0x3]  ;;  %v12851_v24 = vshll.u32 %v10699_v20, 16 }
 0x296   : > { %v2158_v6 = vpop.f32.mrf.mxu1  ;;  %v2409_v18 = vpop.f32.mrf.mxu0  ;;  %4386 = vmatmul.mubr.bf16.gmra.mxu1 %v4228_v47  ;;  %4102 = vmatprep.mubr.bf16.mxu0 %v12813_v15  ;;  %v7867_v31 = vcombine.low %v10693_v28, %v4187_v14 }
 0x297   : > { %v10984_v55 = vadd.f32 %v2409_v18, %v2155_v11  ;;  %4395 = vmatprep.mubr.bf16.mxu1 %v12813_v15  ;;  %v4232_v18 = vsel %vm12777_vm9, %v4227_v22, %v4231_v51 }
 0x298   : > { %v2411_v43 = vpop.f32.mrf.mxu0  ;;  %v2594_v19 = vpop.f32.mrf.mxu1 }
 0x299   : > { %v2661_v36 = vadd.f32 %v2594_v19, %v10805_v52  ;;  %v12850_v52 = vshrl.u32 %v10699_v20, 16 }
 0x29a   : > { %v2412_v34 = vpop.f32.mrf.mxu0  ;;  %v2596_v29 = vpop.f32.mrf.mxu1 }
 0x29b   : > { %v2662_v40 = vadd.f32 %v2596_v29, %v10820_v26  ;;  %v4233_v43 = vrot.slane %v12850_v52, 1  ;;  %v4234_v26 = vrot.slane %v12851_v24, 2 }
 0x29c   : > { %v2598_v6 = vpop.f32.mrf.mxu1  ;;  %v2936_v1 = vpop.f32.mrf.mxu0 }
 0x29d   : > { %v2663_v47 = vadd.f32 %v2598_v6, %v10832_v30  ;;  %v10991_v11 = vadd.f32 %v2936_v1, %v2661_v36  ;;  %4103 = vmatmul.mubr.bf16.gmra.mxu0 %v10479_v56  ;;  %v4235_v20 = vor.u32 %v4234_v26, %v4233_v43  ;;  %v4238_v6 = vshrl.u32 %v7867_v31, 16 }
 0x29e   : > { %v10995_v12 = vpop.f32.mrf.mxu1  ;;  %v2938_v39 = vpop.f32.mrf.mxu0  ;;  %4396 = vmatmul.mubr.bf16.gmra.mxu1 %v4232_v18  ;;  %4112 = vmatprep.mubr.bf16.mxu0 %v12813_v15  ;;  %v4241_v1 = vshll.u32 %v7867_v31, 16 }
 0x29f   : > { %v11002_v19 = vadd.f32 %v2938_v39, %v2662_v40  ;;  %4405 = vmatprep.mubr.bf16.mxu1 %v12813_v15  ;;  %v4240_v24 = vrot.slane %v4238_v6, 1 }
 0x2a0   : > { %v2604_v30 = vpop.f32.mrf.mxu1  ;;  %v2940_v56 = vpop.f32.mrf.mxu0 }
 0x2a1   : > { %v2665_v22 = vadd.f32 %v2604_v30, %v10851_v42  ;;  %v11007_v36 = vadd.f32 %v2940_v56, %v2663_v47  ;;  %v4236_v42 = vsel %vm12777_vm9, %v4231_v51, %v4235_v20  ;;  %v4243_v30 = vrot.slane %v4241_v1, 2 }
 0x2a2   : > { %v2606_v34 = vpop.f32.mrf.mxu1  ;;  %v11009_v29 = vpop.f32.mrf.mxu0 }
 0x2a3   : > { %v2666_v28 = vadd.f32 %v2606_v34, %v10866_v58  ;;  %v4244_v56 = vor.u32 %v4243_v30, %v4240_v24 }
 0x2a4   : > { %v2608_v40 = vpop.f32.mrf.mxu1  ;;  %v2946_v14 = vpop.f32.mrf.mxu0 }
 0x2a5   : > { %v2667_v18 = vadd.f32 %v2608_v40, %v10871_v0  ;;  %v11013_v39 = vadd.f32 %v2946_v14, %v2665_v22  ;;  %4113 = vmatmul.mubr.bf16.gmra.mxu0 %v10500_v9  ;;  %v4245_v40 = vsel %vm12777_vm9, %v4235_v20, %v4244_v56  ;;  %vm444_vm9 = vcmask 781312  }
 0x2a6   : > { %v11017_v47 = vpop.f32.mrf.mxu1  ;;  %v2948_v52 = vpop.f32.mrf.mxu0  ;;  %4406 = vmatmul.mubr.bf16.gmra.mxu1 %v4236_v42  ;;  %4122 = vmatprep.mubr.bf16.mxu0 %v12813_v15  ;;  %445 = vst.msk [vmem:[#allocation3] sm:$0xf] %vm444_vm9, %v12813_v15  ;;  %446 = vst.msk [vmem:[#allocation3 + $0x4] sm:$0xf] %vm444_vm9, %v12813_v15 }
 0x2a7   : > { %v11019_v43 = vadd.f32 %v2948_v52, %v2666_v28  ;;  %4415 = vmatprep.mubr.bf16.mxu1 %v12813_v15  ;;  %447 = vst.msk [vmem:[#allocation3 + $0x3c] sm:$0xf] %vm444_vm9, %v12813_v15  ;;  %448 = vst.msk [vmem:[#allocation3 + $0x40] sm:$0xf] %vm444_vm9, %v12813_v15 }
 0x2a8   : > { %v2614_v58 = vpop.f32.mrf.mxu1  ;;  %v2950_v26 = vpop.f32.mrf.mxu0 }
 0x2a9   : > { %v2669_v0 = vadd.f32 %v2614_v58, %v10888_v44  ;;  %v11024_v31 = vadd.f32 %v2950_v26, %v2667_v18 }
 0x2aa   : > { %v2616_v9 = vpop.f32.mrf.mxu1  ;;  %v11026_v51 = vpop.f32.mrf.mxu0 }
 0x2ab   : > { %v2670_v22 = vadd.f32 %v2616_v9, %v10901_v59 }
 0x2ac   : > { %v2618_v34 = vpop.f32.mrf.mxu1  ;;  %v2956_v6 = vpop.f32.mrf.mxu0 }
 0x2ad   : > { %v2671_v1 = vadd.f32 %v2618_v34, %v10908_v13  ;;  %v11030_v28 = vadd.f32 %v2956_v6, %v2669_v0  ;;  %4123 = vmatmul.mubr.bf16.gmra.mxu0 %v10505_v8 }
 0x2ae   : > { %v11034_v14 = vpop.f32.mrf.mxu1  ;;  %v2958_v44 = vpop.f32.mrf.mxu0  ;;  %4416 = vmatmul.mubr.bf16.gmra.mxu1 %v4245_v40  ;;  %4132 = vmatprep.mubr.bf16.mxu0 %v12813_v15 }
 0x2af   : > { %v11036_v18 = vadd.f32 %v2958_v44, %v2670_v22  ;;  %4425 = vmatprep.mubr.bf16.mxu1 %v12813_v15 }
 0x2b0   : > { %v2624_v42 = vpop.f32.mrf.mxu1  ;;  %v2960_v59 = vpop.f32.mrf.mxu0 }
 0x2b1   : > { %v2673_v13 = vadd.f32 %v2624_v42, %v10917_v17  ;;  %v11041_v52 = vadd.f32 %v2960_v59, %v2671_v1 }
 0x2b2   : > { %v2626_v24 = vpop.f32.mrf.mxu1  ;;  %v11043_v8 = vpop.f32.mrf.mxu0 }
 0x2b3   : > { %v2674_v20 = vadd.f32 %v2626_v24, %v10927_v23 }
 0x2b4   : > { %v2628_v30 = vpop.f32.mrf.mxu1  ;;  %v2966_v58 = vpop.f32.mrf.mxu0 }
 0x2b5   : > { %v2675_v26 = vadd.f32 %v2628_v30, %v10932_v27  ;;  %v11047_v0 = vadd.f32 %v2966_v58, %v2673_v13  ;;  %4133 = vmatmul.mubr.bf16.gmra.mxu0 %v10708_v46 }
 0x2b6   : > { %v11050_v9 = vpop.f32.mrf.mxu1  ;;  %v2968_v22 = vpop.f32.mrf.mxu0  ;;  %4142 = vmatprep.mubr.bf16.mxu0 %v12813_v15  ;;  %4426 = vmatmul.mubr.bf16.gmra.mxu1 %v4244_v56 }
 0x2b7   : > { %v3016_v34 = vadd.f32 %v2968_v22, %v2674_v20  ;;  %8493 = vmatprep.mubr.msk.bf16.mxu1 %vm9324_vm12, %v12838_v4 }
 0x2b8   : > { %v2634_v17 = vpop.f32.mrf.mxu1  ;;  %v2970_v6 = vpop.f32.mrf.mxu0 }
 0x2b9   : > { %v2677_v23 = vadd.f32 %v2634_v17, %v10938_v62  ;;  %v3017_v1 = vadd.f32 %v2970_v6, %v2675_v26  ;;  %v12854_v6 = vrot.slane %v10697_v57, 1 }
 0x2ba   : > { %v2636_v27 = vpop.f32.mrf.mxu1  ;;  %v11056_v40 = vpop.f32.mrf.mxu0 }
 0x2bb   : > { %12852 = vst [vmem:[#allocation53_spill] sm:$0xff] %v11056_v40  ;;  %v2678_v46 = vadd.f32 %v2636_v27, %v10944_v5 }
 0x2bc   : > { %v2638_v44 = vpop.f32.mrf.mxu1  ;;  %v2976_v42 = vpop.f32.mrf.mxu0 }
 0x2bd   : > { %v2679_v59 = vadd.f32 %v2638_v44, %v10951_v10  ;;  %v3019_v13 = vadd.f32 %v2976_v42, %v2677_v23  ;;  %4143 = vmatmul.mubr.bf16.gmra.mxu0 %v10713_v48 }
 0x2be   : > { %v11061_v56 = vpop.f32.mrf.mxu1  ;;  %v2978_v24 = vpop.f32.mrf.mxu0  ;;  %4152 = vmatprep.mubr.bf16.mxu0 %v12813_v15  ;;  %v2374_v15 = vadd.f32 %v10914_v32, %v10894_v41  ;;  %v2384_v41 = vadd.f32 %v10935_v49, %v10922_v2  ;;  %v2394_v32 = vadd.f32 %v10954_v7, %v10941_v45 }
 0x2bf   : > { %12853 = vst [vmem:[#allocation54_spill] sm:$0xff] %v11061_v56  ;;  %v3020_v20 = vadd.f32 %v2978_v24, %v2678_v46 }
 0x2c0   : > { %v2644_v62 = vpop.f32.mrf.mxu1  ;;  %v2980_v30 = vpop.f32.mrf.mxu0  ;;  %v2676_v45 = vadd.f32 %v11050_v9, %v2384_v41  ;;  %v12870_v9 = vld [vmem:[#allocation52_spill] sm:$0xff] }
 0x2c1   : > { %v2681_v58 = vadd.f32 %v2644_v62, %v10956_v63  ;;  %v3021_v26 = vadd.f32 %v2980_v30, %v2679_v59 }
 0x2c2   : > { %v2646_v22 = vpop.f32.mrf.mxu1  ;;  %v11131_v21 = vpop.f32.mrf.mxu0 }
 0x2c3   : > { %v2682_v5 = vadd.f32 %v2646_v22, %v10965_v38  ;;  %12860 = vst [vmem:[#allocation60_spill] sm:$0xff] %v11131_v21 }
 0x2c4   : > { %v2648_v17 = vpop.f32.mrf.mxu1 }
 0x2c5   : > { %v2683_v10 = vadd.f32 %v2648_v17, %v10969_v3  ;;  %4153 = vmatmul.mubr.bf16.gmra.mxu0 %v12854_v6 }
 0x2c6   : > { %v11069_v48 = vpop.f32.mrf.mxu1  ;;  %8453 = vmatprep.mubr.msk.bf16.mxu0 %vm9324_vm12, %v12838_v4 }
 0x2c7   : > { %12855 = vst [vmem:[#allocation55_spill] sm:$0xff] %v11069_v48 }
 0x2c8   : > { %v2654_v23 = vpop.f32.mrf.mxu1 }
 0x2c9   : > { %v11074_v27 = vadd.f32 %v2654_v23, %v10974_v16 }
 0x2ca   : > { %v2656_v63 = vpop.f32.mrf.mxu1 }
 0x2cb   : > { %v11077_v46 = vadd.f32 %v2656_v63, %v10984_v55 }
 0x2cc   : > { %v2658_v38 = vpop.f32.mrf.mxu1 }
 0x2ce   : > { %v2659_v44 = vpop.f32.mrf.mxu1 }
 0x2d0   : > { %v3174_v42 = vpop.f32.mrf.mxu1 }
 0x2d1   : > { %v11080_v3 = vadd.f32 %v3174_v42, %v10991_v11 }
 0x2d2   : > { %v3176_v57 = vpop.f32.mrf.mxu1 }
 0x2d3   : > { %v11083_v59 = vadd.f32 %v3176_v57, %v11002_v19 }
 0x2d4   : > { %v3178_v24 = vpop.f32.mrf.mxu1 }
 0x2d5   : > { %v11086_v62 = vadd.f32 %v3178_v24, %v11007_v36 }
 0x2d6   : > { %v11088_v16 = vpop.f32.mrf.mxu1 }
 0x2d8   : > { %v3184_v30 = vpop.f32.mrf.mxu1 }
 0x2d9   : > { %v11091_v55 = vadd.f32 %v3184_v30, %v11013_v39 }
 0x2da   : > { %v3186_v22 = vpop.f32.mrf.mxu1 }
 0x2db   : > { %v11094_v17 = vadd.f32 %v3186_v22, %v11019_v43 }
 0x2dc   : > { %v3188_v11 = vpop.f32.mrf.mxu1 }
 0x2dd   : > { %v11097_v6 = vadd.f32 %v3188_v11, %v11024_v31 }
 0x2de   : > { %v11099_v19 = vpop.f32.mrf.mxu1 }
 0x2e0   : > { %v3194_v23 = vpop.f32.mrf.mxu1 }
 0x2e1   : > { %v11102_v36 = vadd.f32 %v3194_v23, %v11030_v28 }
 0x2e2   : > { %v3196_v63 = vpop.f32.mrf.mxu1 }
 0x2e3   : > { %v11105_v38 = vadd.f32 %v3196_v63, %v11036_v18 }
 0x2e4   : > { %v3198_v39 = vpop.f32.mrf.mxu1 }
 0x2e5   : > { %v11108_v44 = vadd.f32 %v3198_v39, %v11041_v52 }
 0x2e6   : > { %v11110_v43 = vpop.f32.mrf.mxu1 }
 0x2e7   : > { %12856 = vst [vmem:[#allocation56_spill] sm:$0xff] %v11110_v43 }
 0x2e8   : > { %v3204_v42 = vpop.f32.mrf.mxu1 }
 0x2e9   : > { %v11113_v31 = vadd.f32 %v3204_v42, %v11047_v0 }
 0x2ea   : > { %v3206_v57 = vpop.f32.mrf.mxu1 }
 0x2eb   : > { %v11115_v24 = vadd.f32 %v3206_v57, %v3016_v34 }
 0x2ec   : > { %v3208_v30 = vpop.f32.mrf.mxu1 }
 0x2ed   : > { %v11117_v28 = vadd.f32 %v3208_v30, %v3017_v1 }
 0x2ee   : > { %v11119_v22 = vpop.f32.mrf.mxu1 }
 0x2ef   : > { %12857 = vst [vmem:[#allocation57_spill] sm:$0xff] %v11119_v22 }
 0x2f0   : > { %v3214_v18 = vpop.f32.mrf.mxu1 }
 0x2f1   : > { %v11121_v11 = vadd.f32 %v3214_v18, %v3019_v13 }
 0x2f2   : > { %v3216_v23 = vpop.f32.mrf.mxu1 }
 0x2f3   : > { %v11123_v52 = vadd.f32 %v3216_v23, %v3020_v20 }
 0x2f4   : > { %v3218_v63 = vpop.f32.mrf.mxu1 }
 0x2f5   : > { %v11125_v39 = vadd.f32 %v3218_v63, %v3021_v26 }
 0x2f6   : > { %v11127_v50 = vpop.f32.mrf.mxu1 }
 0x2f7   : > { %12858 = vst [vmem:[#allocation58_spill] sm:$0xff] %v11127_v50 }
 0x2f8   : > { %v3224_v0 = vpop.f32.mrf.mxu1 }
 0x2fa   : > { %v3226_v42 = vpop.f32.mrf.mxu1 }
 0x2fc   : > { %v3228_v34 = vpop.f32.mrf.mxu1 }
 0x2fe   : > { %v11129_v57 = vpop.f32.mrf.mxu1 }
 0x2ff   : > { %12859 = vst [vmem:[#allocation59_spill] sm:$0xff] %v11129_v57 }
 0x306   : > { %v3234_v1 = vpop.f32.mrf.mxu1 }
 0x308   : > { %v3236_v30 = vpop.f32.mrf.mxu1 }
 0x30a   : > { %v3238_v48 = vpop.f32.mrf.mxu1 }
 0x30c   : > { %v3239_v13 = vpop.f32.mrf.mxu1 }
 0x30d   : > { %v2986_v18 = vpop.f32.mrf.mxu0 }
 0x30e   : > { %v3023_v22 = vadd.f32 %v2986_v18, %v2681_v58  ;;  %v3845_v20 = vpop.f32.mrf.mxu1 }
 0x30f   : > { %v2988_v23 = vpop.f32.mrf.mxu0 }
 0x310   : > { %v3024_v61 = vadd.f32 %v2988_v23, %v2682_v5  ;;  %v3847_v26 = vpop.f32.mrf.mxu1  ;;  %v11133_v63 = vadd.f32 %v3224_v0, %v3023_v22 }
 0x311   : > { %v2990_v50 = vpop.f32.mrf.mxu0 }
 0x312   : > { %v3025_v56 = vadd.f32 %v2990_v50, %v2683_v10  ;;  %v3849_v35 = vpop.f32.mrf.mxu1  ;;  %v11135_v43 = vadd.f32 %v3226_v42, %v3024_v61 }
 0x313   : > { %v11137_v57 = vpop.f32.mrf.mxu0 }
 0x314   : > { %12861 = vst [vmem:[#allocation61_spill] sm:$0xff] %v11137_v57  ;;  %v11139_v40 = vpop.f32.mrf.mxu1  ;;  %v11141_v48 = vadd.f32 %v3228_v34, %v3025_v56 }
 0x315   : > { %v2996_v13 = vpop.f32.mrf.mxu0 }
 0x316   : > { %v3027_v58 = vadd.f32 %v2996_v13, %v11074_v27  ;;  %v3855_v18 = vpop.f32.mrf.mxu1 }
 0x317   : > { %v2998_v21 = vpop.f32.mrf.mxu0 }
 0x318   : > { %v3028_v5 = vadd.f32 %v2998_v21, %v11077_v46  ;;  %v3857_v22 = vpop.f32.mrf.mxu1  ;;  %v11145_v0 = vadd.f32 %v3234_v1, %v3027_v58 }
 0x319   : > { %v3000_v50 = vpop.f32.mrf.mxu0 }
 0x31a   : > { %v3859_v10 = vpop.f32.mrf.mxu1  ;;  %v11147_v61 = vadd.f32 %v3236_v30, %v3028_v5 }
 0x31b   : > { %v3001_v42 = vpop.f32.mrf.mxu0 }
 0x31c   : > { %v11149_v23 = vpop.f32.mrf.mxu1 }
 0x31d   : > { %12862 = vst [vmem:[#allocation62_spill] sm:$0xff] %v11149_v23  ;;  %v3510_v57 = vpop.f32.mrf.mxu0 }
 0x31e   : > { %v3577_v56 = vadd.f32 %v3510_v57, %v11080_v3  ;;  %v3865_v34 = vpop.f32.mrf.mxu1 }
 0x31f   : > { %v3512_v53 = vpop.f32.mrf.mxu0 }
 0x320   : > { %v3578_v27 = vadd.f32 %v3512_v53, %v11083_v59  ;;  %v3867_v13 = vpop.f32.mrf.mxu1  ;;  %v11153_v54 = vadd.f32 %v3845_v20, %v3577_v56 }
 0x321   : > { %v3514_v21 = vpop.f32.mrf.mxu0 }
 0x322   : > { %v3579_v46 = vadd.f32 %v3514_v21, %v11086_v62  ;;  %v3869_v1 = vpop.f32.mrf.mxu1  ;;  %v11156_v58 = vadd.f32 %v3847_v26, %v3578_v27 }
 0x323   : > { %v11158_v30 = vpop.f32.mrf.mxu0 }
 0x324   : > { %v11160_v5 = vpop.f32.mrf.mxu1  ;;  %v11162_v50 = vadd.f32 %v3849_v35, %v3579_v46 }
 0x325   : > { %12863 = vst [vmem:[#allocation63_spill] sm:$0xff] %v11160_v5  ;;  %v3520_v3 = vpop.f32.mrf.mxu0 }
 0x326   : > { %v3581_v57 = vadd.f32 %v3520_v3, %v11091_v55  ;;  %v3875_v42 = vpop.f32.mrf.mxu1 }
 0x327   : > { %v3522_v53 = vpop.f32.mrf.mxu0 }
 0x328   : > { %v3582_v59 = vadd.f32 %v3522_v53, %v11094_v17  ;;  %v3877_v20 = vpop.f32.mrf.mxu1  ;;  %v11166_v56 = vadd.f32 %v3855_v18, %v3581_v57  ;;  %v9208_v18 = vld [vmem:[%s12702_s7 + $0x58] sm:$0xff]  }
 0x329   : > { %v3524_v62 = vpop.f32.mrf.mxu0  ;;  %8442 = vmatpush3.bf16.msra.mxu0 %v9208_v18 }
 0x32a   : > { %v3583_v26 = vadd.f32 %v3524_v62, %v11097_v6  ;;  %v3879_v27 = vpop.f32.mrf.mxu1  ;;  %v11169_v21 = vadd.f32 %v3857_v22, %v3582_v59  ;;  %8443 = vmatprep.subr.bf16.mxu0 %v12838_v4 }
 0x32b   : > { %v11171_v23 = vpop.f32.mrf.mxu0 }
 0x32c   : > { %v11173_v35 = vpop.f32.mrf.mxu1  ;;  %v11175_v46 = vadd.f32 %v3859_v10, %v3583_v26 }
 0x32d   : > { %12864 = vst [vmem:[#allocation64_spill] sm:$0xff] %v11173_v35  ;;  %v3530_v55 = vpop.f32.mrf.mxu0 }
 0x32e   : > { %v3585_v3 = vadd.f32 %v3530_v55, %v11102_v36  ;;  %v3885_v5 = vpop.f32.mrf.mxu1 }
 0x32f   : > { %v3532_v17 = vpop.f32.mrf.mxu0 }
 0x330   : > { %v3586_v6 = vadd.f32 %v3532_v17, %v11105_v38  ;;  %v3887_v57 = vpop.f32.mrf.mxu1  ;;  %v11182_v22 = vadd.f32 %v3865_v34, %v3585_v3 }
 0x331   : > { %v3534_v53 = vpop.f32.mrf.mxu0 }
 0x332   : > { %12865 = vst [vmem:[#allocation65_spill] sm:$0xff] %v11182_v22  ;;  %v3587_v59 = vadd.f32 %v3534_v53, %v11108_v44  ;;  %v3889_v10 = vpop.f32.mrf.mxu1  ;;  %v11185_v62 = vadd.f32 %v3867_v13, %v3586_v6 }
 0x333   : > { %v11188_v36 = vpop.f32.mrf.mxu0 }
 0x334   : > { %12866 = vst [vmem:[#allocation66_spill] sm:$0xff] %v11185_v62  ;;  %v11190_v26 = vpop.f32.mrf.mxu1  ;;  %v11192_v55 = vadd.f32 %v3869_v1, %v3587_v59  ;;  %v9209_v1 = vld [vmem:[%s12702_s7 + $0x50] sm:$0xff]  }
 0x335   : > { %12867 = vst [vmem:[#allocation67_spill] sm:$0xff] %v11190_v26  ;;  %v3540_v35 = vpop.f32.mrf.mxu0  ;;  %8444 = vmatpush3.bf16.msra.mxu0 %v9209_v1 }
 0x336   : > { %v3589_v38 = vadd.f32 %v3540_v35, %v11113_v31  ;;  %v3895_v34 = vpop.f32.mrf.mxu1  ;;  %8445 = vmatprep.subr.bf16.mxu0 %v12838_v4 }
 0x337   : > { %v3542_v3 = vpop.f32.mrf.mxu0 }
 0x338   : > { %v3590_v17 = vadd.f32 %v3542_v3, %v11115_v24  ;;  %v3897_v18 = vpop.f32.mrf.mxu1  ;;  %v11196_v44 = vadd.f32 %v3875_v42, %v3589_v38 }
 0x339   : > { %v3544_v13 = vpop.f32.mrf.mxu0 }
 0x33a   : > { %v3591_v6 = vadd.f32 %v3544_v13, %v11117_v28  ;;  %v3899_v53 = vpop.f32.mrf.mxu1  ;;  %v11199_v62 = vadd.f32 %v3877_v20, %v3590_v17 }
 0x33b   : > { %v11201_v22 = vpop.f32.mrf.mxu0 }
 0x33c   : > { %v11206_v31 = vpop.f32.mrf.mxu1  ;;  %v11208_v35 = vadd.f32 %v3879_v27, %v3591_v6  ;;  %v9211_v6 = vld [vmem:[%s12702_s7 + $0x28] sm:$0xff]  }
 0x33d   : > { %12868 = vst [vmem:[#allocation68_spill] sm:$0xff] %v11206_v31  ;;  %v3550_v24 = vpop.f32.mrf.mxu0  ;;  %8482 = vmatpush3.bf16.msra.mxu1 %v9211_v6 }
 0x33e   : > { %v3593_v42 = vadd.f32 %v3550_v24, %v11121_v11  ;;  %v3905_v59 = vpop.f32.mrf.mxu1  ;;  %v9210_v11 = vld [vmem:[%s12702_s7 + $0x48] sm:$0xff]   ;;  %8483 = vmatprep.subr.bf16.mxu1 %v12838_v4 }
 0x33f   : > { %v3552_v28 = vpop.f32.mrf.mxu0  ;;  %8446 = vmatpush3.bf16.msra.mxu0 %v9210_v11 }
 0x340   : > { %v3594_v20 = vadd.f32 %v3552_v28, %v11123_v52  ;;  %v3907_v38 = vpop.f32.mrf.mxu1  ;;  %v11213_v3 = vadd.f32 %v3885_v5, %v3593_v42  ;;  %8447 = vmatprep.subr.bf16.mxu0 %v12838_v4 }
 0x341   : > { %v3554_v17 = vpop.f32.mrf.mxu0 }
 0x342   : > { %v3595_v13 = vadd.f32 %v3554_v17, %v11125_v39  ;;  %v3909_v26 = vpop.f32.mrf.mxu1  ;;  %v11216_v31 = vadd.f32 %v3887_v57, %v3594_v20 }
 0x343   : > { %v11218_v27 = vpop.f32.mrf.mxu0 }
 0x344   : > { %v3910_v52 = vpop.f32.mrf.mxu1  ;;  %v11226_v1 = vadd.f32 %v3889_v10, %v3595_v13 }
 0x345   : > { %v3560_v5 = vpop.f32.mrf.mxu0 }
 0x346   : > { %v3597_v39 = vadd.f32 %v3560_v5, %v11133_v63  ;;  %v4367_v57 = vpop.f32.mrf.mxu1  ;;  %v9212_v63 = vld [vmem:[%s12702_s7 + $0x40] sm:$0xff]  }
 0x347   : > { %v3562_v26 = vpop.f32.mrf.mxu0  ;;  %8448 = vmatpush3.bf16.msra.mxu0 %v9212_v63  ;;  %v2364_v63 = vadd.f32 %v10878_v60, %v10859_v33 }
 0x348   : > { %v3598_v24 = vadd.f32 %v3562_v26, %v11135_v43  ;;  %v4369_v42 = vpop.f32.mrf.mxu1  ;;  %v11232_v28 = vadd.f32 %v3895_v34, %v3597_v39  ;;  %v2354_v34 = vadd.f32 %v10839_v37, %v10810_v25  ;;  %8449 = vmatprep.subr.bf16.mxu0 %v12838_v4  ;;  %v9213_v39 = vld [vmem:[%s12702_s7 + $0x20] sm:$0xff]  }
 0x349   : > { %v3564_v20 = vpop.f32.mrf.mxu0  ;;  %8484 = vmatpush3.bf16.msra.mxu1 %v9213_v39  ;;  %v2668_v33 = vadd.f32 %v11017_v47, %v2364_v63 }
 0x34a   : > { %v3599_v10 = vadd.f32 %v3564_v20, %v11141_v48  ;;  %v4371_v17 = vpop.f32.mrf.mxu1  ;;  %v11235_v13 = vadd.f32 %v3897_v18, %v3598_v24  ;;  %v2664_v26 = vadd.f32 %v10995_v12, %v2354_v34  ;;  %8485 = vmatprep.subr.bf16.mxu1 %v12838_v4 }
 0x34b   : > { %v11237_v11 = vpop.f32.mrf.mxu0 }
 0x34c   : > { %v11242_v6 = vpop.f32.mrf.mxu1  ;;  %v11244_v52 = vadd.f32 %v3899_v53, %v3599_v10  ;;  %v3006_v37 = vadd.f32 %v11009_v29, %v2664_v26 }
 0x34d   : > { %v3570_v43 = vpop.f32.mrf.mxu0 }
 0x34e   : > { %v3601_v48 = vadd.f32 %v3570_v43, %v11145_v0  ;;  %v11249_v5 = vpop.f32.mrf.mxu1 }
 0x34f   : > { %v3572_v18 = vpop.f32.mrf.mxu0 }
 0x350   : > { %v3602_v53 = vadd.f32 %v3572_v18, %v11147_v61  ;;  %v11257_v24 = vpop.f32.mrf.mxu1  ;;  %v11259_v20 = vadd.f32 %v3905_v59, %v3601_v48  ;;  %v3244_v61 = vadd.f32 %v11088_v16, %v3006_v37  ;;  %v11286_v48 = vpop.permute.xlu1 %4506 }
 0x351   : > { %v3574_v25 = vpop.f32.mrf.mxu0 }
 0x352   : > { %v11262_v0 = vpop.f32.mrf.mxu1  ;;  %v11264_v10 = vadd.f32 %v3907_v38, %v3602_v53  ;;  %v3580_v29 = vadd.f32 %v11158_v30, %v3244_v61  ;;  %v3010_v38 = vadd.f32 %v11026_v51, %v2668_v33 }
 0x353   : > { %v3575_v12 = vpop.f32.mrf.mxu0 }
 0x354   : > { %v11270_v43 = vpop.f32.mrf.mxu1  ;;  %v3248_v47 = vadd.f32 %v11099_v19, %v3010_v38  ;;  %v2672_v19 = vadd.f32 %v11034_v14, %v2374_v15 }
 0x355   : > { %v4094_v60 = vpop.f32.mrf.mxu0 }
 0x356   : > { %v4161_v16 = vadd.f32 %v4094_v60, %v11153_v54  ;;  %v11283_v59 = vpop.f32.mrf.mxu1  ;;  %v11297_v54 = vld [vmem:[%s12700_s5] ss:$0 sm:$0xff]  ;;  %v3014_v2 = vadd.f32 %v11043_v8, %v2672_v19 }
 0x357   : > { %v4096_v34 = vpop.f32.mrf.mxu0  ;;  %v12869_v8 = vld [vmem:[#allocation51_spill] sm:$0xff] }
 0x358   : > { %v4434_v18 = vadd.f32 %v4367_v57, %v4161_v16  ;;  %v4162_v39 = vadd.f32 %v4096_v34, %v11156_v58  ;;  %v11289_v26 = vpop.f32.mrf.mxu1  ;;  %v3915_v58 = vadd.f32 %v11139_v40, %v3580_v29  ;;  %v3584_v40 = vadd.f32 %v11171_v23, %v3248_v47  ;;  %v12871_v34 = vld [vmem:[#allocation53_spill] sm:$0xff] }
 0x359   : > { %v4098_v30 = vpop.f32.mrf.mxu0  ;;  %v11331_v38 = vadd.f32 %v12870_v9, %v12869_v8 }
 0x35a   : > { %v4435_v51 = vadd.f32 %v4369_v42, %v4162_v39  ;;  %v4163_v53 = vadd.f32 %v4098_v30, %v11162_v50  ;;  %v11300_v25 = vpop.f32.mrf.mxu1  ;;  %v4509_v57 = vadd.f32 %v11286_v48, %v4434_v18  ;;  %v9214_v42 = vld [vmem:[%s12702_s7 + $0x38] sm:$0xff]   ;;  %v4467_v7 = vadd.f32 %v11297_v54, %v4434_v18  ;;  %v12872_v39 = vld [vmem:[#allocation56_spill] sm:$0xff] }
 0x35b   : > { %v4100_v37 = vpop.f32.mrf.mxu0  ;;  %v9215_v50 = vld [vmem:[%s12702_s7 + $0x18] sm:$0xff]   ;;  %8450 = vmatpush3.bf16.msra.mxu0 %v9214_v42  ;;  %v3018_v18 = vadd.f32 %v12871_v34, %v2676_v45  ;;  %v3252_v15 = vadd.f32 %v12872_v39, %v3014_v2 }
 0x35c   : > { %v4436_v63 = vadd.f32 %v4371_v17, %v4163_v53  ;;  %v4164_v12 = vadd.f32 %v4100_v37, %v3915_v58  ;;  %v11316_v61 = vpop.f32.mrf.mxu1  ;;  %v4510_v49 = vadd.f32 %v11286_v48, %v4435_v51  ;;  %v4535_v33 = vmax.f32 %v4509_v57, 0.0  ;;  %8486 = vmatpush3.bf16.msra.mxu1 %v9215_v50  ;;  %8451 = vmatprep.subr.bf16.mxu0 %v12838_v4  ;;  %v12873_v58 = vld [vmem:[#allocation62_spill] sm:$0xff] }
 0x35d   : > { %v4104_v14 = vpop.f32.mrf.mxu0  ;;  %8487 = vmatprep.subr.bf16.mxu1 %v12838_v4  ;;  %v3919_v57 = vadd.f32 %v12873_v58, %v3584_v40  ;;  %v4480_v41 = vmax.f32 %v4467_v7, 0.0  ;;  %v12878_v58 = vld [vmem:[#allocation60_spill] sm:$0xff] }
 0x35e   : > { %v4468_v60 = vadd.f32 %v11297_v54, %v4436_v63  ;;  %v4511_v23 = vadd.f32 %v11286_v48, %v4436_v63  ;;  %v4437_v17 = vadd.f32 %v11242_v6, %v4164_v12  ;;  %v4165_v29 = vadd.f32 %v4104_v14, %v11166_v56  ;;  %v11326_v16 = vpop.f32.mrf.mxu1  ;;  %v12875_v14 = vld [vmem:[#allocation54_spill] sm:$0xff] }
 0x35f   : > { %v4106_v47 = vpop.f32.mrf.mxu0  ;;  %v4536_v30 = vmax.f32 %v4510_v49, 0.0  ;;  %v2680_v40 = vadd.f32 %v12875_v14, %v2394_v32 }
 0x360   : > { %v4481_v51 = vmax.f32 %v4468_v60, 0.0  ;;  %v4512_v6 = vadd.f32 %v11286_v48, %v4437_v17  ;;  %v4438_v56 = vadd.f32 %v11249_v5, %v4165_v29  ;;  %v11338_v53 = vpop.f32.mrf.mxu1  ;;  %v4537_v19 = vmax.f32 %v4511_v23, 0.0  ;;  %v9216_v23 = vld [vmem:[%s12702_s7 + $0x30] sm:$0xff]  }
 0x361   : > { %v4166_v37 = vadd.f32 %v4106_v47, %v11169_v21  ;;  %v4108_v42 = vpop.f32.mrf.mxu0  ;;  %v4562_v63 = vsel %vm1572_vm13, %v4536_v30, 0.0  ;;  %v4561_v5 = vsel %vm1572_vm13, %v4535_v33, 0.0  ;;  %v3588_v29 = vadd.f32 %v11188_v36, %v3252_v15  ;;  %8452 = vmatpush3.bf16.msra.mxu0 %v9216_v23 }
 0x362   : > { %v4538_v12 = vmax.f32 %v4512_v6, 0.0  ;;  %v4513_v49 = vadd.f32 %v11286_v48, %v4438_v56  ;;  %v4167_v2 = vadd.f32 %v4108_v42, %v11175_v46  ;;  %v11346_v45 = vpop.f32.mrf.mxu1  ;;  %v8194_v21 = vpack.c.bf16 %v4562_v63, %v4561_v5  ;;  %8521 = vmatprep.subr.bf16.mxu0 %v12838_v4  ;;  %v9217_v63 = vld [vmem:[%s12702_s7 + $0x10] sm:$0xff]   ;;  %v12880_v5 = vld [vmem:[#allocation63_spill] sm:$0xff] }
 0x363   : > { %v4439_v7 = vadd.f32 %v11257_v24, %v4166_v37  ;;  %v4110_v60 = vpop.f32.mrf.mxu0  ;;  %v11355_v17 = vpack.c.bf16 %v4481_v51, %v4480_v41  ;;  %v4469_v46 = vadd.f32 %v11297_v54, %v4438_v56  ;;  %v4563_v47 = vsel %vm1573_vm14, %v4537_v19, 0.0  ;;  %v12877_v51 = vld [vmem:[#allocation65_spill] sm:$0xff]  ;;  %8488 = vmatpush3.bf16.msra.mxu1 %v9217_v63 }
 0x364   : > { %v4440_v8 = vadd.f32 %v11262_v0, %v4167_v2  ;;  %v4168_v9 = vadd.f32 %v4110_v60, %v3919_v57  ;;  %v11360_v33 = vpop.f32.mrf.mxu1  ;;  %v4539_v32 = vmax.f32 %v4513_v49, 0.0  ;;  %4654 = vrot.lane.b32.xlu0 %v8194_v21, %s9325_s14  ;;  %v4564_v30 = vsel %vm1573_vm14, %v4538_v12, 0.0  ;;  %v12879_v41 = vld [vmem:[#allocation57_spill] sm:$0xff]  ;;  %v12881_v60 = vld [vmem:[#allocation66_spill] sm:$0xff]  ;;  %8489 = vmatprep.subr.bf16.mxu1 %v12838_v4 }
 0x365   : > { %v4514_v24 = vadd.f32 %v11286_v48, %v4439_v7  ;;  %v4114_v34 = vpop.f32.mrf.mxu0  ;;  %v3022_v57 = vadd.f32 %v12878_v58, %v2680_v40  ;;  %v3256_v19 = vadd.f32 %v12879_v41, %v3018_v18  ;;  %v8195_v50 = vpack.c.bf16 %v4564_v30, %v4563_v47 }
 0x366   : > { %v4470_v36 = vadd.f32 %v11297_v54, %v4440_v8  ;;  %v4515_v0 = vadd.f32 %v11286_v48, %v4440_v8  ;;  %v4441_v15 = vadd.f32 %v11270_v43, %v4168_v9  ;;  %v4169_v6 = vadd.f32 %v4114_v34, %v12877_v51  ;;  %v11372_v56 = vpop.f32.mrf.mxu1 }
 0x367   : > { %v4540_v37 = vmax.f32 %v4514_v24, 0.0  ;;  %v4116_v42 = vpop.f32.mrf.mxu0  ;;  %v3923_v14 = vadd.f32 %v12880_v5, %v3588_v29  ;;  %v4482_v7 = vmax.f32 %v4469_v46, 0.0  ;;  %4656 = vrot.lane.b32.xlu1 %v8195_v50, %s9325_s14  ;;  %v4565_v29 = vsel %vm1574_vm15, %v4539_v32, 0.0  ;;  %v12883_v46 = vld [vmem:[#allocation55_spill] sm:$0xff] }
 0x368   : > { %v4483_v12 = vmax.f32 %v4470_v36, 0.0  ;;  %v4516_v43 = vadd.f32 %v11286_v48, %v4441_v15  ;;  %v4442_v49 = vadd.f32 %v11283_v59, %v4169_v6  ;;  %v11382_v2 = vpop.f32.mrf.mxu1  ;;  %v4541_v40 = vmax.f32 %v4515_v0, 0.0 }
 0x369   : > { %v4170_v18 = vadd.f32 %v4116_v42, %v12881_v60  ;;  %v4118_v21 = vpop.f32.mrf.mxu0  ;;  %v4566_v8 = vsel %vm1574_vm15, %v4540_v37, 0.0  ;;  %v2684_v39 = vadd.f32 %v12883_v46, %v11331_v38  ;;  %v3592_v15 = vadd.f32 %v11201_v22, %v3256_v19 }
 0x36a   : > { %v4542_v9 = vmax.f32 %v4516_v43, 0.0  ;;  %v4517_v24 = vadd.f32 %v11286_v48, %v4442_v49  ;;  %v4171_v59 = vadd.f32 %v4118_v21, %v11192_v55  ;;  %v11391_v34 = vpop.f32.mrf.mxu1  ;;  %v8196_v36 = vpack.c.bf16 %v4566_v8, %v4565_v29  ;;  %v9218_v55 = vld [vmem:[%s12702_s7 + $0x8] sm:$0xff]   ;;  %v12885_v43 = vld [vmem:[#allocation58_spill] sm:$0xff] }
 0x36b   : > { %v4443_v47 = vadd.f32 %v11289_v26, %v4170_v18  ;;  %v4120_v30 = vpop.f32.mrf.mxu0  ;;  %v11399_v0 = vpack.c.bf16 %v4483_v12, %v4482_v7  ;;  %v4471_v51 = vadd.f32 %v11297_v54, %v4442_v49  ;;  %v4567_v42 = vsel %vm1575_vm0, %v4541_v40, 0.0  ;;  %8490 = vmatpush3.bf16.msra.mxu1 %v9218_v55  ;;  %v12888_v55 = vld [vmem:[#allocation61_spill] sm:$0xff] }
 0x36c   : > { %v4444_v32 = vadd.f32 %v11300_v25, %v4171_v59  ;;  %v4172_v6 = vadd.f32 %v4120_v30, %v3923_v14  ;;  %v11407_v58 = vpop.f32.mrf.mxu1  ;;  %v4543_v38 = vmax.f32 %v4517_v24, 0.0  ;;  %4658 = vrot.lane.b32.xlu0 %v8196_v36, %s9325_s14  ;;  %v4568_v50 = vsel %vm1575_vm0, %v4542_v9, 0.0  ;;  %8491 = vmatprep.subr.bf16.mxu1 %v12838_v4 }
 0x36d   : > { %v4518_v26 = vadd.f32 %v11286_v48, %v4443_v47  ;;  %v4124_v41 = vpop.f32.mrf.mxu0  ;;  %v3260_v49 = vadd.f32 %v12885_v43, %v3022_v57  ;;  %v8197_v7 = vpack.c.bf16 %v4568_v50, %v4567_v42  ;;  %vm449_vm13 = vcmask 785408  }
 0x36e   : > { %v4472_v22 = vadd.f32 %v11297_v54, %v4444_v32  ;;  %v4519_v25 = vadd.f32 %v11286_v48, %v4444_v32  ;;  %v4445_v19 = vadd.f32 %v11316_v61, %v4172_v6  ;;  %v4173_v63 = vadd.f32 %v4124_v41, %v11196_v44  ;;  %v11419_v12 = vpop.f32.mrf.mxu1  ;;  %v12886_v61 = vld [vmem:[#allocation64_spill] sm:$0xff]  ;;  %450 = vst.msk [vmem:[#allocation4] sm:$0xff] %vm449_vm13, %v12838_v4  ;;  %v9222_v44 = vld [vmem:[%s12702_s7] sm:$0xff]  }
 0x36f   : > { %v4544_v5 = vmax.f32 %v4518_v26, 0.0  ;;  %v4126_v14 = vpop.f32.mrf.mxu0  ;;  %v3927_v23 = vadd.f32 %v12886_v61, %v3592_v15  ;;  %451 = vst.msk [vmem:[#allocation4 + $0x8] sm:$0xff] %vm449_vm13, %v12838_v4  ;;  %452 = vst.msk [vmem:[#allocation4 + $0x78] sm:$0xff] %vm449_vm13, %v12838_v4  ;;  %4660 = vrot.lane.b32.xlu1 %v8197_v7, %s9325_s14  ;;  %v4569_v36 = vsel %vm1576_vm1, %v4543_v38, 0.0  ;;  %8492 = vmatpush3.bf16.msra.mxu1 %v9222_v44  ;;  %vm12928_vm0 = vcmask 261120  }
 0x370   : > { %v4485_v40 = vmax.f32 %v4472_v22, 0.0  ;;  %v4520_v60 = vadd.f32 %v11286_v48, %v4445_v19  ;;  %v4446_v18 = vadd.f32 %v11326_v16, %v4173_v63  ;;  %v11425_v21 = vpop.f32.mrf.mxu1  ;;  %453 = vst.msk [vmem:[#allocation4 + $0x80] sm:$0xff] %vm449_vm13, %v12838_v4  ;;  %v4484_v16 = vmax.f32 %v4471_v51, 0.0  ;;  %8561 = vmatprep.subr.bf16.mxu1 %v12838_v4 }
 0x371   : > { %v4545_v57 = vmax.f32 %v4519_v25, 0.0  ;;  %v4174_v8 = vadd.f32 %v4126_v14, %v11199_v62  ;;  %v4128_v9 = vpop.f32.mrf.mxu0  ;;  %v4570_v59 = vsel %vm1576_vm1, %v4544_v5, 0.0  ;;  %v3026_v15 = vadd.f32 %v12888_v55, %v2684_v39  ;;  %vm12929_vm1 = vmmov %vm12928_vm0 }
 0x372   : > { %v4546_v29 = vmax.f32 %v4520_v60, 0.0  ;;  %v4521_v46 = vadd.f32 %v11286_v48, %v4446_v18  ;;  %v4175_v47 = vadd.f32 %v4128_v9, %v11208_v35  ;;  %v11445_v30 = vpop.f32.mrf.mxu1  ;;  %v8198_v32 = vpack.c.bf16 %v4570_v59, %v4569_v36 }
 0x373   : > { %v4447_v62 = vadd.f32 %v11338_v53, %v4174_v8  ;;  %v4130_v51 = vpop.f32.mrf.mxu0  ;;  %v11451_v6 = vpack.c.bf16 %v4485_v40, %v4484_v16  ;;  %v3596_v26 = vadd.f32 %v11218_v27, %v3260_v49  ;;  %v4473_v35 = vadd.f32 %v11297_v54, %v4446_v18  ;;  %v12890_v49 = vld [vmem:[#allocation59_spill] sm:$0xff] }
 0x374   : > { %v4448_v41 = vadd.f32 %v11346_v45, %v4175_v47  ;;  %v4176_v37 = vadd.f32 %v4130_v51, %v3927_v23  ;;  %v11457_v42 = vpop.f32.mrf.mxu1  ;;  %v4547_v38 = vmax.f32 %v4521_v46, 0.0  ;;  %4662 = vrot.lane.b32.xlu0 %v8198_v32, %s9325_s14  ;;  %v4571_v22 = vsel %vm1577_vm2, %v4545_v57, 0.0  ;;  %v12891_v23 = vld [vmem:[#allocation67_spill] sm:$0xff] }
 0x375   : > { %v4522_v39 = vadd.f32 %v11286_v48, %v4447_v62  ;;  %v4134_v53 = vpop.f32.mrf.mxu0  ;;  %v4572_v25 = vsel %vm1577_vm2, %v4546_v29, 0.0  ;;  %v3264_v5 = vadd.f32 %v12890_v49, %v3026_v15  ;;  %v3931_v44 = vadd.f32 %v12891_v23, %v3596_v26  ;;  %v12894_v49 = vld [vmem:[#allocation68_spill] sm:$0xff]  ;;  %vm12930_vm2 = vmmov %vm12928_vm0 }
 0x376   : > { %v4474_v27 = vadd.f32 %v11297_v54, %v4448_v41  ;;  %v4523_v19 = vadd.f32 %v11286_v48, %v4448_v41  ;;  %v4449_v45 = vadd.f32 %v11360_v33, %v4176_v37  ;;  %v4177_v63 = vadd.f32 %v4134_v53, %v11213_v3  ;;  %v11469_v43 = vpop.f32.mrf.mxu1 }
 0x377   : > { %v4548_v14 = vmax.f32 %v4522_v39, 0.0  ;;  %v4136_v7 = vpop.f32.mrf.mxu0  ;;  %v8199_v40 = vpack.c.bf16 %v4572_v25, %v4571_v22  ;;  %v4486_v57 = vmax.f32 %v4473_v35, 0.0  ;;  %v3600_v62 = vadd.f32 %v11237_v11, %v3264_v5 }
 0x378   : > { %v4487_v60 = vmax.f32 %v4474_v27, 0.0  ;;  %v4524_v18 = vadd.f32 %v11286_v48, %v4449_v45  ;;  %v4450_v61 = vadd.f32 %v11372_v56, %v4177_v63  ;;  %v11475_v16 = vpop.f32.mrf.mxu1  ;;  %v4549_v33 = vmax.f32 %v4523_v19, 0.0 }
 0x379   : > { %v4178_v3 = vadd.f32 %v4136_v7, %v11216_v31  ;;  %4664 = vrot.lane.b32.xlu1 %v8199_v40, %s9325_s14  ;;  %v4138_v8 = vpop.f32.mrf.mxu0  ;;  %v4574_v24 = vsel %vm1578_vm3, %v4548_v14, 0.0  ;;  %v4573_v56 = vsel %vm1578_vm3, %v4547_v38, 0.0  ;;  %v3935_v5 = vadd.f32 %v12894_v49, %v3600_v62  ;;  %vm12931_vm3 = vmmov %vm12928_vm0 }
 0x37a   : > { %v4550_v59 = vmax.f32 %v4524_v18, 0.0  ;;  %v4525_v29 = vadd.f32 %v11286_v48, %v4450_v61  ;;  %v4179_v46 = vadd.f32 %v4138_v8, %v11226_v1  ;;  %v4431_v47 = vpop.f32.mrf.mxu1  ;;  %v8200_v15 = vpack.c.bf16 %v4574_v24, %v4573_v56 }
 0x37b   : > { %v4451_v36 = vadd.f32 %v11382_v2, %v4178_v3  ;;  %v4140_v55 = vpop.f32.mrf.mxu0  ;;  %v11486_v31 = vpack.c.bf16 %v4487_v60, %v4486_v57  ;;  %v4475_v51 = vadd.f32 %v11297_v54, %v4450_v61  ;;  %v4575_v2 = vsel %vm1579_vm4, %v4549_v33, 0.0 }
 0x37c   : > { %v4452_v32 = vadd.f32 %v11391_v34, %v4179_v46  ;;  %v4180_v26 = vadd.f32 %v4140_v55, %v3931_v44  ;;  %v4432_v35 = vpop.f32.mrf.mxu1  ;;  %v4551_v41 = vmax.f32 %v4525_v29, 0.0  ;;  %4666 = vrot.lane.b32.xlu0 %v8200_v15, %s9325_s14  ;;  %v4576_v39 = vsel %vm1579_vm4, %v4550_v59, 0.0  ;;  %v12922_v29 = vld [vmem:[#allocation47_spill] sm:$0xff]  ;;  %vm12932_vm4 = vmmov %vm12928_vm0 }
 0x37d   : > { %v4526_v1 = vadd.f32 %v11286_v48, %v4451_v36  ;;  %v4144_v37 = vpop.f32.mrf.mxu0  ;;  %v8201_v27 = vpack.c.bf16 %v4576_v39, %v4575_v2  ;;  %v4488_v14 = vmax.f32 %v4475_v51, 0.0 }
 0x37e   : > { %v4476_v11 = vadd.f32 %v11297_v54, %v4452_v32  ;;  %v4527_v53 = vadd.f32 %v11286_v48, %v4452_v32  ;;  %v4453_v34 = vadd.f32 %v11407_v58, %v4180_v26  ;;  %v4181_v50 = vadd.f32 %v4144_v37, %v11232_v28  ;;  %v12907_v58 = vld [vmem:[#allocation12_spill] sm:$0xff]  ;;  %v9304_v37 = vld [vmem:[%s12705_s10 + $0x38] sm:$0xff] }
 0x37f   : > { %v4552_v22 = vmax.f32 %v4526_v1, 0.0  ;;  %v4146_v25 = vpop.f32.mrf.mxu0  ;;  %4668 = vrot.lane.b32.xlu1 %v8201_v27, %s9325_s14 }
 0x380   : > { %v4489_v19 = vmax.f32 %v4476_v11, 0.0  ;;  %v4528_v45 = vadd.f32 %v11286_v48, %v4453_v34  ;;  %v4454_v63 = vadd.f32 %v11419_v12, %v4181_v50  ;;  %v4553_v7 = vmax.f32 %v4527_v53, 0.0  ;;  %v12898_v50 = vld [vmem:[#allocation33_spill] sm:$0xff] }
 0x381   : > { %v4182_v40 = vadd.f32 %v4146_v25, %v11235_v13  ;;  %v4148_v60 = vpop.f32.mrf.mxu0  ;;  %v4578_v28 = vsel %vm1580_vm5, %v4552_v22, 0.0  ;;  %v4577_v12 = vsel %vm1580_vm5, %v4551_v41, 0.0  ;;  %vm12899_vm14 = vcmp.eq.s32.totalorder %v12898_v50, 1 }
 0x382   : > { %v4554_v18 = vmax.f32 %v4528_v45, 0.0  ;;  %v4529_v61 = vadd.f32 %v11286_v48, %v4454_v63  ;;  %v4183_v23 = vadd.f32 %v4148_v60, %v11244_v52  ;;  %v8202_v33 = vpack.c.bf16 %v4578_v28, %v4577_v12  ;;  %vm12900_vm15 = vmmov %vm12899_vm14  ;;  %v12906_v60 = vld [vmem:[#allocation38_spill] sm:$0xff]  ;;  %v12908_v28 = vld [vmem:[#allocation39_spill] sm:$0xff] }
 0x383   : > { %v4455_v44 = vadd.f32 %v11425_v21, %v4182_v40  ;;  %v4150_v57 = vpop.f32.mrf.mxu0  ;;  %v11513_v3 = vpack.c.bf16 %v4489_v19, %v4488_v14  ;;  %v4477_v13 = vadd.f32 %v11297_v54, %v4454_v63  ;;  %v4579_v46 = vsel %vm1581_vm6, %v4553_v7, 0.0  ;;  %v12903_v14 = vld [vmem:[#allocation7_spill] sm:$0xff]  ;;  %v12904_v7 = vld [vmem:[#allocation37_spill] sm:$0xff]  ;;  %v12905_v40 = vld [vmem:[#allocation10_spill] sm:$0xff] }
 0x384   : > { %v4456_v8 = vadd.f32 %v11445_v30, %v4183_v23  ;;  %v4184_v9 = vadd.f32 %v4150_v57, %v3935_v5  ;;  %v4555_v24 = vmax.f32 %v4529_v61, 0.0  ;;  %4670 = vrot.lane.b32.xlu0 %v8202_v33, %s9325_s14  ;;  %v4580_v21 = vsel %vm1581_vm6, %v4554_v18, 0.0  ;;  %v12902_v5 = vld [vmem:[#allocation5_spill] sm:$0xff]  ;;  %v12909_v18 = vld [vmem:[#allocation15_spill] sm:$0xff]  ;;  %v12910_v61 = vld [vmem:[#allocation40_spill] sm:$0xff] }
 0x385   : > { %v4530_v59 = vadd.f32 %v11286_v48, %v4455_v44  ;;  %v4154_v52 = vpop.f32.mrf.mxu0  ;;  %v8203_v62 = vpack.c.bf16 %v4580_v21, %v4579_v46  ;;  %v4490_v41 = vmax.f32 %v4477_v13, 0.0  ;;  %v12911_v23 = vld [vmem:[#allocation17_spill] sm:$0xff]  ;;  %v12913_v44 = vld [vmem:[#allocation20_spill] sm:$0xff]  ;;  %v12914_v57 = vld [vmem:[#allocation43_spill] sm:$0xff]  ;;  %vm12933_vm5 = vcmask 1044480  }
 0x386   : > { %v4478_v56 = vadd.f32 %v11297_v54, %v4456_v8  ;;  %v4531_v47 = vadd.f32 %v11286_v48, %v4456_v8  ;;  %v4457_v36 = vadd.f32 %v11457_v42, %v4184_v9  ;;  %v4185_v30 = vadd.f32 %v4154_v52, %v11259_v20  ;;  %v12912_v12 = vld [vmem:[#allocation41_spill] sm:$0xff]  ;;  %v12915_v33 = vld [vmem:[#allocation22_spill] sm:$0xff]  ;;  %v12916_v13 = vld [vmem:[#allocation44_spill] sm:$0xff] }
 0x387   : > { %v4556_v55 = vmax.f32 %v4530_v59, 0.0  ;;  %v4156_v15 = vpop.f32.mrf.mxu0  ;;  %4672 = vrot.lane.b32.xlu1 %v8203_v62, %s9325_s14  ;;  %v4581_v42 = vsel %vm1582_vm7, %v4555_v24, 0.0  ;;  %v12917_v8 = vld [vmem:[#allocation25_spill] sm:$0xff]  ;;  %v12919_v24 = vld [vmem:[#allocation27_spill] sm:$0xff]  ;;  %v12920_v59 = vld [vmem:[#allocation46_spill] sm:$0xff] }
 0x388   : > { %v4491_v51 = vmax.f32 %v4478_v56, 0.0  ;;  %v4557_v32 = vmax.f32 %v4531_v47, 0.0  ;;  %v4532_v26 = vadd.f32 %v11286_v48, %v4457_v36  ;;  %v4186_v35 = vadd.f32 %v4156_v15, %v11264_v10  ;;  %v12918_v9 = vld [vmem:[#allocation45_spill] sm:$0xff]  ;;  %v12921_v52 = vld [vmem:[#allocation30_spill] sm:$0xff]  ;;  %v12923_v46 = vld [vmem:[#allocation32_spill] sm:$0xff] }
 0x389   : > { %v11530_v1 = vadd.f32 %v11469_v43, %v4185_v30  ;;  %v4582_v20 = vsel %vm1582_vm7, %v4556_v55, 0.0  ;;  %v4158_v38 = vpop.f32.mrf.mxu0  ;;  %v12924_v21 = vld [vmem:[#allocation48_spill] sm:$0xff]  ;;  %v12926_v47 = vld [vmem:[#allocation49_spill] sm:$0xff]  ;;  %v9296_v36 = vld [vmem:[%s12705_s10] sm:$0xff]  ;;  %vm12935_vm7 = vsmask.f32 5376 }
 0x38a   : > { %v4558_v2 = vmax.f32 %v4532_v26, 0.0  ;;  %v4459_v39 = vadd.f32 %v11475_v16, %v4186_v35  ;;  %v8204_v11 = vpack.c.bf16 %v4582_v20, %v4581_v42  ;;  %v11540_v34 = vpack.c.bf16 %v4491_v51, %v4490_v41  ;;  %v12925_v56 = vld [vmem:[#allocation36_spill] sm:$0xff]  ;;  %v12927_v30 = vld [vmem:[#allocation50_spill] sm:$0xff]  ;;  %v9297_v55 = vld [vmem:[%s12705_s10 + $0x10] sm:$0xff] }
 0x38b   : > { %v4533_v10 = vadd.f32 %v11286_v48, %v11530_v1  ;;  %v4159_v53 = vpop.f32.mrf.mxu0  ;;  %v4583_v22 = vsel %vm12899_vm14, %v4557_v32, 0.0  ;;  %v9298_v15 = vld [vmem:[%s12705_s10 + $0x8] sm:$0xff]  ;;  %v9299_v62 = vld [vmem:[%s12705_s10 + $0x20] sm:$0xff]  ;;  %v9300_v51 = vld [vmem:[%s12705_s10 + $0x18] sm:$0xff] }
 0x38c   : > { %v4534_v43 = vadd.f32 %v11286_v48, %v4459_v39  ;;  %4674 = vrot.lane.b32.xlu0 %v8204_v11, %s9325_s14  ;;  %v4584_v25 = vsel %vm12900_vm15, %v4558_v2, 0.0  ;;  %v9301_v32 = vld [vmem:[%s12705_s10 + $0x30] sm:$0xff]  ;;  %v9302_v26 = vld [vmem:[%s12705_s10 + $0x28] sm:$0xff]  ;;  %v9303_v41 = vld [vmem:[%s12705_s10 + $0x40] sm:$0xff] }
 0x38d   : > { %v4559_v27 = vmax.f32 %v4533_v10, 0.0  ;;  %v8205_v19 = vpack.c.bf16 %v4584_v25, %v4583_v22  ;;  %v4733_v38 = vld [vmem:[#allocation3 + $0x4] sm:$0xf]  ;;  %v4732_v2 = vld [vmem:[#allocation3] sm:$0xc]  ;;  %v9305_v11 = vld [vmem:[%s12705_s10 + $0x50] sm:$0xff] }
 0x38e   : > { %v4560_v16 = vmax.f32 %v4534_v43, 0.0  ;;  %v9306_v10 = vld [vmem:[%s12705_s10 + $0x48] sm:$0xff]  ;;  %v7931_v43 = vcombine.low %v4732_v2, %v4733_v38  ;;  %v9307_v25 = vld [vmem:[%s12705_s10 + $0x60] sm:$0xff]  ;;  %vm12934_vm6 = vmmov %vm12928_vm0 }
 0x38f   : > { %4676 = vrot.lane.b32.xlu1 %v8205_v19, %s9325_s14  ;;  %v4585_v63 = vsel %vm1584_vm8, %v4559_v27, 0.0  ;;  %v9308_v27 = vld [vmem:[%s12705_s10 + $0x58] sm:$0xff]  ;;  %v4758_v19 = vld [vmem:[#allocation3] sm:$0x8]  ;;  %vm12937_vm14 = vmmov %vm12933_vm5 }
 0x390   : > { %v4586_v49 = vsel %vm1584_vm8, %v4560_v16, 0.0  ;;  %v4969_v45 = vshrl.u32 %v7931_v43, 16  ;;  %vm12936_vm8 = vmmov %vm12928_vm0  ;;  %v9233_v2 = vld [vmem:[%s12702_s7 + $0xa8] sm:$0xff]  }
 0x391   : > { %v8206_v48 = vpack.c.bf16 %v4586_v49, %v4585_v63  ;;  %v4972_v63 = vshll.u32 %v7931_v43, 16  ;;  %vm12938_vm15 = vmmov %vm12928_vm0 }
 0x393   : > { %1783 = vrot.lane.b32.xlu1 %v12902_v5, %s9325_s14  ;;  %4678 = vrot.lane.b32.xlu0 %v8206_v48, %s9325_s14  ;;  %v11650_v48 = vcombine.low %v4758_v19, %v4733_v38 }
 0x397   : > { %1787 = vrot.lane.b32.xlu1 %v12903_v14, %s9325_s14  ;;  %1785 = vrot.lane.b32.xlu0 %v12904_v7, %s9325_s14  ;;  %v4479_v7 = vadd.f32 %v11297_v54, %v11530_v1 }
 0x39b   : > { %1791 = vrot.lane.b32.xlu1 %v12905_v40, %s9325_s14  ;;  %1789 = vrot.lane.b32.xlu0 %v12906_v60, %s9325_s14  ;;  %v4971_v40 = vrot.slane %v4969_v45, 2  ;;  %v4974_v60 = vrot.slane %v4972_v63, 3 }
 0x39f   : > { %1795 = vrot.lane.b32.xlu1 %v12907_v58, %s9325_s14  ;;  %1793 = vrot.lane.b32.xlu0 %v12908_v28, %s9325_s14 }
 0x3a3   : > { %1799 = vrot.lane.b32.xlu1 %v12909_v18, %s9325_s14  ;;  %1797 = vrot.lane.b32.xlu0 %v12910_v61, %s9325_s14  ;;  %v4807_v18 = vrot.slane %v11650_v48, 3 }
 0x3a7   : > { %1803 = vrot.lane.b32.xlu1 %v12911_v23, %s9325_s14  ;;  %1801 = vrot.lane.b32.xlu0 %v12912_v12, %s9325_s14  ;;  %v4492_v12 = vmax.f32 %v4479_v7, 0.0 }
 0x3ab   : > { %1807 = vrot.lane.b32.xlu1 %v12913_v44, %s9325_s14  ;;  %1805 = vrot.lane.b32.xlu0 %v12914_v57, %s9325_s14  ;;  %v4975_v44 = vor.u32 %v4974_v60, %v4971_v40 }
 0x3af   : > { %1811 = vrot.lane.b32.xlu1 %v12915_v33, %s9325_s14  ;;  %1809 = vrot.lane.b32.xlu0 %v12916_v13, %s9325_s14 }
 0x3b3   : > { %1815 = vrot.lane.b32.xlu1 %v12917_v8, %s9325_s14  ;;  %1813 = vrot.lane.b32.xlu0 %v12918_v9, %s9325_s14 }
 0x3b7   : > { %1819 = vrot.lane.b32.xlu1 %v12919_v24, %s9325_s14  ;;  %1817 = vrot.lane.b32.xlu0 %v12920_v59, %s9325_s14  ;;  %v9224_v24 = vld [vmem:[%s12702_s7 + $0x80] sm:$0xff]   ;;  %v4499_v59 = vpack.c.bf16 %v4492_v12, %v4492_v12 }
 0x3bb   : > { %1823 = vrot.lane.b32.xlu1 %v12921_v52, %s9325_s14  ;;  %1821 = vrot.lane.b32.xlu0 %v12922_v29, %s9325_s14 }
 0x3bf   : > { %1827 = vrot.lane.b32.xlu1 %v12923_v46, %s9325_s14  ;;  %1825 = vrot.lane.b32.xlu0 %v12924_v21, %s9325_s14  ;;  %v9226_v21 = vld [vmem:[%s12702_s7 + $0x78] sm:$0xff]  }
 0x3c3   : > { %1831 = vrot.lane.b32.xlu1 %v12925_v56, %s9325_s14  ;;  %1829 = vrot.lane.b32.xlu0 %v12926_v47, %s9325_s14 }
 0x3c7   : > { %7036 = vperm.xlu1 %8829, %v9296_v36   ;;  %1833 = vrot.lane.b32.xlu0 %v12927_v30, %s9325_s14 }
 0x3cb   : > { %7046 = vperm.xlu1 %8829, %v9297_v55   ;;  %7041 = vperm.xlu0 %8828, %v9298_v15  }
 0x3cf   : > { %7056 = vperm.xlu1 %8829, %v9299_v62   ;;  %7051 = vperm.xlu0 %8828, %v9300_v51  }
 0x3d3   : > { %7066 = vperm.xlu1 %8829, %v9301_v32   ;;  %7061 = vperm.xlu0 %8828, %v9302_v26   ;;  %v9230_v32 = vld [vmem:[%s12702_s7 + $0xb0] sm:$0xff]  }
 0x3d6   : > { %v4655_v35 = vpop.permute.xlu0 %4654 }
 0x3d7   : > { %7076 = vperm.xlu1 %8829, %v9303_v41   ;;  %7071 = vperm.xlu0 %8828, %v9304_v37   ;;  %v4680_v42 = vrot.slane %v4655_v35, 4  ;;  %v9229_v37 = vld [vmem:[%s12702_s7 + $0x70] sm:$0xff]  }
 0x3d9   : > { %v4693_v20 = vsel %vm12928_vm0, %v4655_v35, %v4680_v42  ;;  %v4657_v39 = vpop.permute.xlu1 %4656  ;;  %vm12939_vm0 = vmmov %vm12935_vm7 }
 0x3da   : > { %4719 = vst.msk [vmem:[#allocation3 + $0x8] sm:$0xf] %vm444_vm9, %v4693_v20  ;;  %v4681_v53 = vrot.slane %v4657_v39, 4 }
 0x3db   : > { %7086 = vperm.xlu1 %8829, %v9305_v11   ;;  %7081 = vperm.xlu0 %8828, %v9306_v10  }
 0x3dc   : > { %v4694_v50 = vsel %vm12929_vm1, %v4657_v39, %v4681_v53 }
 0x3dd   : > { %4720 = vst.msk [vmem:[#allocation3 + $0xc] sm:$0xf] %vm444_vm9, %v4694_v50  ;;  %v9232_v50 = vld [vmem:[%s12702_s7 + $0x68] sm:$0xff]  }
 0x3de   : > { %v4659_v22 = vpop.permute.xlu0 %4658 }
 0x3df   : > { %7096 = vperm.xlu1 %8829, %v9307_v25   ;;  %7091 = vperm.xlu0 %8828, %v9308_v27   ;;  %v4682_v16 = vrot.slane %v4659_v22, 4 }
 0x3e1   : > { %v4695_v49 = vsel %vm12930_vm2, %v4659_v22, %v4682_v16  ;;  %v4661_v5 = vpop.permute.xlu1 %4660  ;;  %vm12940_vm2 = vmmov %vm12933_vm5  ;;  %v9236_v16 = vld [vmem:[%s12702_s7 + $0xa0] sm:$0xff]  }
 0x3e2   : > { %4721 = vst.msk [vmem:[#allocation3 + $0x10] sm:$0xf] %vm444_vm9, %v4695_v49  ;;  %v4683_v14 = vrot.slane %v4661_v5, 4 }
 0x3e3   : > { %7161 = vrot.lane.b32.xlu1 %v11399_v0, %s9322_s15  ;;  %7159 = vrot.lane.b32.xlu0 %v11355_v17, %s9322_s15  ;;  %v9221_v0 = vld [vmem:[%s12702_s7 + $0x88] sm:$0xff]  }
 0x3e4   : > { %v4696_v58 = vsel %vm12931_vm3, %v4661_v5, %v4683_v14  ;;  %v11660_v28 = vld [vmem:[#allocation3 + $0x8] sm:$0xff]   ;;  %v9235_v5 = vld [vmem:[%s12702_s7 + $0x60] sm:$0xff]   ;;  %vm12941_vm3 = vmmov %vm12929_vm1 }
 0x3e5   : > { %4722 = vst.msk [vmem:[#allocation3 + $0x14] sm:$0xf] %vm444_vm9, %v4696_v58  ;;  %v4808_v54 = vrot.slane %v11660_v28, 3  ;;  %v4977_v1 = vshrl.u32 %v11660_v28, 16  ;;  %v4980_v23 = vshll.u32 %v11660_v28, 16  ;;  %v9237_v58 = vld [vmem:[%s12702_s7 + $0x98] sm:$0xff]  }
 0x3e6   : > { %v4663_v61 = vpop.permute.xlu0 %4662 }
 0x3e7   : > { %7165 = vrot.lane.b32.xlu1 %v11486_v31, %s9322_s15  ;;  %7163 = vrot.lane.b32.xlu0 %v11451_v6, %s9322_s15  ;;  %v4684_v17 = vrot.slane %v4663_v61, 4  ;;  %v4809_v31 = vsel %vm12933_vm5, %v4807_v18, %v4808_v54  ;;  %v4979_v6 = vrot.slane %v4977_v1, 2  ;;  %v4982_v33 = vrot.slane %v4980_v23, 3  ;;  %vm12943_vm5 = vmmov %vm12929_vm1 }
 0x3e8   : > { %8454 = vmatmul.mubr.msk.bf16.vlgmr.msra.gmra.mxu0 %vm449_vm13, %v4809_v31 }
 0x3e9   : > { %v4697_v57 = vsel %vm12932_vm4, %v4663_v61, %v4684_v17  ;;  %8522 = vmatpush3.bf16.msra.mxu0 %v9221_v0  ;;  %v4983_v9 = vor.u32 %v4982_v33, %v4979_v6  ;;  %8457 = vmatprep.mubr.msk.bf16.mxu0 %vm9324_vm12, %v12838_v4  ;;  %vm12942_vm4 = vmmov %vm12939_vm0  ;;  %v9239_v33 = vld [vmem:[%s12702_s7 + $0x90] sm:$0xff]  }
 0x3ea   : > { %4723 = vst.msk [vmem:[#allocation3 + $0x18] sm:$0xf] %vm444_vm9, %v4697_v57  ;;  %8523 = vmatprep.subr.bf16.mxu0 %v12838_v4 }
 0x3eb   : > { %v4665_v13 = vpop.permute.xlu1 %4664  ;;  %7169 = vrot.lane.b32.xlu1 %v11540_v34, %s9322_s15  ;;  %7167 = vrot.lane.b32.xlu0 %v11513_v3, %s9322_s15  ;;  %v4984_v34 = vsel %vm12935_vm7, %v4975_v44, %v4983_v9  ;;  %v9227_v3 = vld [vmem:[%s12702_s7 + $0xb8] sm:$0xff]   ;;  %vm12945_vm7 = vmmov %vm12929_vm1 }
 0x3ec   : > { %v4685_v8 = vrot.slane %v4665_v13, 4  ;;  %v11694_v29 = vld [vmem:[#allocation3 + $0x10] sm:$0xff]   ;;  %8494 = vmatmul.mubr.msk.bf16.vlgmr.msra.gmra.mxu1 %vm449_vm13, %v4984_v34 }
 0x3ed   : > { %v4810_v47 = vrot.slane %v11694_v29, 3  ;;  %8524 = vmatpush3.bf16.msra.mxu0 %v9224_v24  ;;  %v4986_v36 = vshrl.u32 %v11694_v29, 16  ;;  %v4989_v30 = vshll.u32 %v11694_v29, 16  ;;  %8497 = vmatprep.mubr.msk.bf16.mxu1 %vm9324_vm12, %v12838_v4 }
 0x3ee   : > { %v4698_v52 = vsel %vm12934_vm6, %v4665_v13, %v4685_v8  ;;  %v4667_v46 = vpop.permute.xlu0 %4666  ;;  %8525 = vmatprep.subr.bf16.mxu0 %v12838_v4  ;;  %8562 = vmatpush3.bf16.msra.mxu1 %v9227_v3  ;;  %vm12944_vm6 = vmmov %vm12940_vm2 }
 0x3ef   : > { %4724 = vst.msk [vmem:[#allocation3 + $0x1c] sm:$0xf] %vm444_vm9, %v4698_v52  ;;  %v4686_v56 = vrot.slane %v4667_v46, 4  ;;  %7171 = vrot.lane.b32.xlu0 %v4499_v59, %s9322_s15  ;;  %v4811_v15 = vsel %vm12937_vm14, %v4808_v54, %v4810_v47  ;;  %v4988_v62 = vrot.slane %v4986_v36, 2  ;;  %v4991_v51 = vrot.slane %v4989_v30, 3  ;;  %8563 = vmatprep.subr.bf16.mxu1 %v12838_v4  ;;  %vm12947_vm14 = vmmov %vm12929_vm1 }
 0x3f0   : > { %8458 = vmatmul.mubr.msk.bf16.gmra.mxu0 %vm449_vm13, %v4811_v15 }
 0x3f1   : > { %v4699_v55 = vsel %vm12936_vm8, %v4667_v46, %v4686_v56  ;;  %v4669_v26 = vpop.permute.xlu1 %4668  ;;  %v4992_v41 = vor.u32 %v4991_v51, %v4988_v62  ;;  %8461 = vmatprep.mubr.msk.bf16.mxu0 %vm9324_vm12, %v12838_v4  ;;  %8526 = vmatpush3.bf16.msra.mxu0 %v9226_v21  ;;  %vm12946_vm8 = vmmov %vm12939_vm0 }
 0x3f2   : > { %4725 = vst.msk [vmem:[#allocation3 + $0x20] sm:$0xf] %vm444_vm9, %v4699_v55  ;;  %v4687_v35 = vrot.slane %v4669_v26, 4  ;;  %8527 = vmatprep.subr.bf16.mxu0 %v12838_v4  ;;  %8564 = vmatpush3.bf16.msra.mxu1 %v9230_v32 }
 0x3f3   : > { %v4993_v20 = vsel %vm12939_vm0, %v4983_v9, %v4992_v41  ;;  %8565 = vmatprep.subr.bf16.mxu1 %v12838_v4  ;;  %vm12949_vm0 = vmmov %vm12940_vm2 }
 0x3f4   : > { %v4700_v42 = vsel %vm12938_vm15, %v4669_v26, %v4687_v35  ;;  %8498 = vmatmul.mubr.msk.bf16.gmra.mxu1 %vm449_vm13, %v4993_v20  ;;  %vm12948_vm15 = vmmov %vm12929_vm1 }
 0x3f5   : > { %4726 = vst.msk [vmem:[#allocation3 + $0x24] sm:$0xf] %vm444_vm9, %v4700_v42  ;;  %8501 = vmatprep.mubr.msk.bf16.mxu1 %vm9324_vm12, %v12838_v4  ;;  %8528 = vmatpush3.bf16.msra.mxu0 %v9229_v37 }
 0x3f6   : > { %v11731_v38 = vld [vmem:[#allocation3 + $0x18] sm:$0xff]   ;;  %v4671_v39 = vpop.permute.xlu0 %4670  ;;  %8529 = vmatprep.subr.bf16.mxu0 %v12838_v4  ;;  %8566 = vmatpush3.bf16.msra.mxu1 %v9233_v2 }
 0x3f7   : > { %v4688_v11 = vrot.slane %v4671_v39, 4  ;;  %v4812_v10 = vrot.slane %v11731_v38, 3  ;;  %v4995_v53 = vshrl.u32 %v11731_v38, 16  ;;  %v4998_v43 = vshll.u32 %v11731_v38, 16  ;;  %8567 = vmatprep.subr.bf16.mxu1 %v12838_v4 }
 0x3f9   : > { %v4701_v22 = vsel %vm12929_vm1, %v4671_v39, %v4688_v11  ;;  %v4813_v25 = vsel %vm12940_vm2, %v4810_v47, %v4812_v10  ;;  %v4997_v27 = vrot.slane %v4995_v53, 2  ;;  %v5000_v19 = vrot.slane %v4998_v43, 3  ;;  %v4673_v45 = vpop.permute.xlu1 %4672  ;;  %8530 = vmatpush3.bf16.msra.mxu0 %v9232_v50  ;;  %vm12952_vm2 = vmmov %vm12949_vm0 }
 0x3fa   : > { %4727 = vst.msk [vmem:[#allocation3 + $0x28] sm:$0xf] %vm444_vm9, %v4701_v22  ;;  %8462 = vmatmul.mubr.msk.bf16.gmra.mxu0 %vm449_vm13, %v4813_v25  ;;  %v4689_v63 = vrot.slane %v4673_v45, 4  ;;  %8531 = vmatprep.subr.bf16.mxu0 %v12838_v4 }
 0x3fb   : > { %v5001_v49 = vor.u32 %v5000_v19, %v4997_v27  ;;  %8465 = vmatprep.mubr.msk.bf16.mxu0 %vm9324_vm12, %v12838_v4  ;;  %8568 = vmatpush3.bf16.msra.mxu1 %v9236_v16 }
 0x3fc   : > { %v4702_v14 = vsel %vm12941_vm3, %v4673_v45, %v4689_v63  ;;  %v11768_v60 = vld [vmem:[#allocation3 + $0x20] sm:$0xff]   ;;  %8569 = vmatprep.subr.bf16.mxu1 %v12838_v4 }
 0x3fd   : > { %v5002_v40 = vsel %vm12942_vm4, %v4992_v41, %v5001_v49  ;;  %4728 = vst.msk [vmem:[#allocation3 + $0x2c] sm:$0xf] %vm444_vm9, %v4702_v14  ;;  %v4814_v61 = vrot.slane %v11768_v60, 3  ;;  %v5004_v17 = vshrl.u32 %v11768_v60, 16  ;;  %v5007_v54 = vshll.u32 %v11768_v60, 16  ;;  %8532 = vmatpush3.bf16.msra.mxu0 %v9235_v5 }
 0x3fe   : > { %v4675_v7 = vpop.permute.xlu0 %4674  ;;  %8502 = vmatmul.mubr.msk.bf16.gmra.mxu1 %vm449_vm13, %v5002_v40  ;;  %8601 = vmatprep.subr.bf16.mxu0 %v12838_v4  ;;  %v5387_v5 = vld [vmem:[#allocation3 + $0x4] sm:$0x8] }
 0x3ff   : > { %v4690_v18 = vrot.slane %v4675_v7, 4  ;;  %8505 = vmatprep.mubr.msk.bf16.mxu1 %vm9324_vm12, %v12838_v4  ;;  %v4815_v57 = vsel %vm12944_vm6, %v4812_v10, %v4814_v61  ;;  %v5006_v31 = vrot.slane %v5004_v17, 2  ;;  %v5009_v6 = vrot.slane %v5007_v54, 3  ;;  %8570 = vmatpush3.bf16.msra.mxu1 %v9237_v58  ;;  %vm12955_vm6 = vmmov %vm12941_vm3 }
 0x400   : > { %8571 = vmatprep.subr.bf16.mxu1 %v12838_v4  ;;  %v5193_v58 = vshrl.u32 %v11650_v48, 16 }
 0x401   : > { %v4703_v0 = vsel %vm12943_vm5, %v4675_v7, %v4690_v18  ;;  %v4677_v12 = vpop.permute.xlu1 %4676  ;;  %v5010_v8 = vor.u32 %v5009_v6, %v5006_v31  ;;  %v5196_v18 = vshll.u32 %v11650_v48, 16  ;;  %vm12954_vm5 = vmmov %vm12941_vm3  ;;  %v11852_v31 = vld [vmem:[#allocation3 + $0x18] sm:$0xf] }
 0x402   : > { %4729 = vst.msk [vmem:[#allocation3 + $0x30] sm:$0xf] %vm444_vm9, %v4703_v0  ;;  %v4691_v44 = vrot.slane %v4677_v12, 4  ;;  %8466 = vmatmul.mubr.msk.bf16.gmra.mxu0 %vm449_vm13, %v4815_v57  ;;  %v11842_v0 = vld [vmem:[#allocation3 + $0xc] sm:$0xf] }
 0x403   : > { %8469 = vmatprep.mubr.msk.bf16.mxu0 %vm9324_vm12, %v12838_v4  ;;  %v5011_v52 = vsel %vm12946_vm8, %v5001_v49, %v5010_v8  ;;  %8572 = vmatpush3.bf16.msra.mxu1 %v9239_v33  ;;  %v11833_v49 = vld [vmem:[#allocation3 + $0x10] sm:$0xf]  ;;  %v5195_v33 = vrot.slane %v5193_v58, 3  ;;  %vm12957_vm8 = vmmov %vm12941_vm3 }
 0x404   : > { %v4704_v13 = vsel %vm12945_vm7, %v4677_v12, %v4691_v44  ;;  %v11799_v34 = vld [vmem:[#allocation3 + $0x28] sm:$0xff]   ;;  %8641 = vmatprep.subr.bf16.mxu1 %v12838_v4  ;;  %v7984_v44 = vcombine.low %v11842_v0, %v11833_v49  ;;  %vm12956_vm7 = vmmov %vm12941_vm3 }
 0x405   : > { %4730 = vst.msk [vmem:[#allocation3 + $0x34] sm:$0xf] %vm444_vm9, %v4704_v13  ;;  %v1784_v9 = vpop.permute.xlu1 %1783  ;;  %v4679_v24 = vpop.permute.xlu0 %4678  ;;  %v4816_v46 = vrot.slane %v11799_v34, 3  ;;  %v5013_v21 = vshrl.u32 %v11799_v34, 16  ;;  %v5016_v56 = vshll.u32 %v11799_v34, 16  ;;  %v5198_v13 = vrot.slane %v5196_v18, 4 }
 0x406   : > { %v4692_v59 = vrot.slane %v4679_v24, 4  ;;  %8506 = vmatmul.mubr.msk.bf16.gmra.mxu1 %vm449_vm13, %v5011_v52  ;;  %v5461_v52 = vshll.u32 %v7984_v44, 16  ;;  %v9253_v34 = vld [vmem:[%s12702_s7 + $0x108] sm:$0xff]  }
 0x407   : > { %8509 = vmatprep.mubr.msk.bf16.mxu1 %vm9324_vm12, %v12838_v4  ;;  %v4817_v62 = vsel %vm12949_vm0, %v4814_v61, %v4816_v46  ;;  %v5015_v51 = vrot.slane %v5013_v21, 2  ;;  %v5018_v32 = vrot.slane %v5016_v56, 3  ;;  %v11840_v61 = vld [vmem:[#allocation3 + $0x8] sm:$0xf] }
 0x408   : > { %v4705_v3 = vsel %vm12947_vm14, %v4679_v24, %v4692_v59  ;;  %v7983_v57 = vcombine.low %v5387_v5, %v11840_v61  ;;  %v5458_v59 = vshrl.u32 %v7984_v44, 16  ;;  %vm12958_vm14 = vsmask.f32 4352  ;;  %v9247_v44 = vld [vmem:[%s12702_s7 + $0x118] sm:$0xff]  }
 0x409   : > { %4731 = vst.msk [vmem:[#allocation3 + $0x38] sm:$0xf] %vm444_vm9, %v4705_v3  ;;  %v1788_v47 = vpop.permute.xlu1 %1787  ;;  %v1786_v55 = vpop.permute.xlu0 %1785  ;;  %v5019_v26 = vor.u32 %v5018_v32, %v5015_v51  ;;  %v11820_v35 = vld [vmem:[#allocation3 + $0x30] sm:$0xf]  ;;  %vm12950_vm9 = vmmov %vm12929_vm1  ;;  %v11859_v3 = vld [vmem:[#allocation3 + $0x14] sm:$0xf] }
 0x40a   : > { %v1836_v15 = vsel %vm12948_vm15, %v1784_v9, %v1786_v55  ;;  %8470 = vmatmul.mubr.msk.bf16.gmra.mxu0 %vm449_vm13, %v4817_v62  ;;  %vm12951_vm1 = vmmov %vm12942_vm4  ;;  %v5201_v9 = vrot.slane %v4980_v23, 4  ;;  %v5450_v28 = vshrl.u32 %v7983_v57, 16  ;;  %v11869_v23 = vld [vmem:[#allocation3 + $0x1c] sm:$0xf]  ;;  %v5199_v62 = vor.u32 %v5198_v13, %v5195_v33 }
 0x40b   : > { %1862 = vst.msk [vmem:[#allocation4 + $0x10] sm:$0xff] %vm449_vm13, %v1836_v15  ;;  %8473 = vmatprep.mubr.msk.bf16.mxu0 %vm9324_vm12, %v12838_v4  ;;  %v5020_v39 = vsel %vm12951_vm1, %v5010_v8, %v5019_v26  ;;  %vm12953_vm4 = vmmov %vm12951_vm1  ;;  %v5200_v8 = vrot.slane %v4977_v1, 3  ;;  %v5453_v1 = vshll.u32 %v7983_v57, 16  ;;  %v5208_v13 = vrot.slane %v4995_v53, 3  ;;  %v11914_v53 = vld [vmem:[#allocation3 + $0x30] sm:$0xf] }
 0x40c   : > { %v4745_v41 = vld [vmem:[#allocation3 + $0x34] sm:$0x7]  ;;  %vm12959_vm15 = vmmov %vm12941_vm3 }
 0x40d   : > { %v1792_v37 = vpop.permute.xlu1 %1791  ;;  %v1790_v42 = vpop.permute.xlu0 %1789  ;;  %v7917_v20 = vcombine.low %v11820_v35, %v4745_v41  ;;  %v5460_v41 = vrot.slane %v5458_v59, 3  ;;  %vm12960_vm0 = vmmov %vm12958_vm14 }
 0x40e   : > { %v1837_v2 = vsel %vm12950_vm9, %v1788_v47, %v1790_v42  ;;  %8510 = vmatmul.mubr.msk.bf16.gmra.mxu1 %vm449_vm13, %v5020_v39  ;;  %v7985_v47 = vcombine.low %v11859_v3, %v11852_v31  ;;  %v9238_v42 = vld [vmem:[%s12702_s7 + $0xe8] sm:$0xff]   ;;  %v5452_v39 = vrot.slane %v5450_v28, 3  ;;  %vm12961_vm9 = vmmov %vm12960_vm0 }
 0x40f   : > { %1863 = vst.msk [vmem:[#allocation4 + $0x18] sm:$0xff] %vm449_vm13, %v1837_v2  ;;  %v4818_v11 = vrot.slane %v7917_v20, 3  ;;  %v5022_v10 = vshrl.u32 %v7917_v20, 16  ;;  %v5025_v50 = vshll.u32 %v7917_v20, 16  ;;  %8513 = vmatprep.mubr.msk.bf16.mxu1 %vm9324_vm12, %v12838_v4  ;;  %vm12962_vm1 = vmmov %vm12941_vm3 }
 0x410   : > { %v5467_v20 = vshrl.u32 %v7985_v47, 16  ;;  %v5470_v2 = vshll.u32 %v7985_v47, 16 }
 0x411   : > { %v1796_v22 = vpop.permute.xlu1 %1795  ;;  %v1794_v25 = vpop.permute.xlu0 %1793  ;;  %v4819_v27 = vsel %vm12952_vm2, %v4816_v46, %v4818_v11  ;;  %v5024_v19 = vrot.slane %v5022_v10, 2  ;;  %v5027_v16 = vrot.slane %v5025_v50, 3  ;;  %v11861_v46 = vld [vmem:[#allocation3 + $0x20] sm:$0xf]  ;;  %v5204_v10 = vrot.slane %v4986_v36, 3  ;;  %vm12963_vm2 = vmmov %vm12960_vm0 }
 0x412   : > { %v1838_v45 = vsel %vm12941_vm3, %v1792_v37, %v1794_v25  ;;  %8474 = vmatmul.mubr.msk.bf16.gmra.mxu0 %vm449_vm13, %v4819_v27  ;;  %v7986_v51 = vcombine.low %v11869_v23, %v11861_v46  ;;  %v5463_v37 = vrot.slane %v5461_v52, 4  ;;  %v5205_v50 = vrot.slane %v4989_v30, 4  ;;  %v6838_v59 = vld [vmem:[#allocation4 + $0xd] sm:$0xff]  ;;  %vm12964_vm3 = vmmov %vm12960_vm0 }
 0x413   : > { %1864 = vst.msk [vmem:[#allocation4 + $0x20] sm:$0xff] %vm449_vm13, %v1838_v45  ;;  %v5028_v63 = vor.u32 %v5027_v16, %v5024_v19  ;;  %8477 = vmatprep.mubr.msk.bf16.mxu0 %vm9324_vm12, %v12838_v4  ;;  %v6837_v45 = vld [vmem:[#allocation4 + $0x5] sm:$0xff]  ;;  %v5469_v29 = vrot.slane %v5467_v20, 3  ;;  %v5472_v36 = vrot.slane %v5470_v2, 4  ;;  %v6851_v52 = vld [vmem:[#allocation4 + $0xe] sm:$0xff] }
 0x414   : > { %v5476_v19 = vshrl.u32 %v7986_v51, 16  ;;  %v5479_v16 = vshll.u32 %v7986_v51, 16  ;;  %v11897_v18 = vor.u32 %v5205_v50, %v5204_v10  ;;  %v5212_v50 = vrot.slane %v5004_v17, 3 }
 0x415   : > { %v1800_v14 = vpop.permute.xlu1 %1799  ;;  %v1798_v7 = vpop.permute.xlu0 %1797  ;;  %v5029_v40 = vsel %vm12953_vm4, %v5019_v26, %v5028_v63  ;;  %v5202_v26 = vor.u32 %v5201_v9, %v5200_v8  ;;  %v5209_v8 = vrot.slane %v4998_v43, 4  ;;  %v9245_v43 = vld [vmem:[%s12702_s7 + $0xd8] sm:$0xff]   ;;  %vm12965_vm4 = vmmov %vm12960_vm0 }
 0x416   : > { %v1839_v12 = vsel %vm12954_vm5, %v1796_v22, %v1798_v7  ;;  %8514 = vmatmul.mubr.msk.bf16.gmra.mxu1 %vm449_vm13, %v5029_v40  ;;  %v11885_v22 = vld [vmem:[#allocation3 + $0x28] sm:$0xf]  ;;  %v5464_v7 = vor.u32 %v5463_v37, %v5460_v41  ;;  %v11889_v40 = vld [vmem:[#allocation3 + $0x24] sm:$0xf]  ;;  %v5478_v9 = vrot.slane %v5476_v19, 3  ;;  %v6864_v41 = vadd.f32 %v6851_v52, %v6838_v59  ;;  %v6877_v19 = vld [vmem:[#allocation4 + $0xf] sm:$0xff] }
 0x417   : > { %1865 = vst.msk [vmem:[#allocation4 + $0x28] sm:$0xff] %vm449_vm13, %v1839_v12  ;;  %8517 = vmatprep.mubr.msk.bf16.mxu1 %vm9324_vm12, %v12838_v4  ;;  %v7987_v30 = vcombine.low %v11889_v40, %v11885_v22  ;;  %v9243_v12 = vld [vmem:[%s12702_s7 + $0xe0] sm:$0xff]   ;;  %v5207_v38 = vsel %vm12961_vm9, %v5202_v26, %v11897_v18  ;;  %v11923_v20 = vor.u32 %v5209_v8, %v5208_v13  ;;  %vm12966_vm5 = vmmov %vm12962_vm1 }
 0x418   : > { %vm12973_vm9 = vmmov %vm12963_vm2 }
 0x419   : > { %v1804_v48 = vpop.permute.xlu1 %1803  ;;  %v1802_v6 = vpop.permute.xlu0 %1801  ;;  %v5488_v51 = vshll.u32 %v7987_v30, 16 }
 0x41a   : > { %v1840_v24 = vsel %vm12955_vm6, %v1800_v14, %v1802_v6  ;;  %8478 = vmatmul.mubr.msk.bf16.gmra.mxu0 %vm449_vm13, %v4818_v11  ;;  %v5455_v11 = vrot.slane %v5453_v1, 4  ;;  %v5203_v14 = vsel %vm12958_vm14, %v5199_v62, %v5202_v26  ;;  %v6839_v1 = vld [vmem:[#allocation4 + $0x15] sm:$0xff]  ;;  %v5485_v62 = vshrl.u32 %v7987_v30, 16  ;;  %v9250_v26 = vld [vmem:[%s12702_s7 + $0x110] sm:$0xff]   ;;  %vm12967_vm6 = vmmov %vm12962_vm1 }
 0x41b   : > { %1866 = vst.msk [vmem:[#allocation4 + $0x30] sm:$0xff] %vm449_vm13, %v1840_v24  ;;  %8533 = vmatprep.mubr.msk.bf16.mxu0 %vm9324_vm12, %v12838_v4  ;;  %v5481_v24 = vrot.slane %v5479_v16, 4  ;;  %v6878_v16 = vld [vmem:[#allocation4 + $0x17] sm:$0xff]  ;;  %v6890_v30 = vadd.f32 %v6877_v19, %v6864_v41  ;;  %vm12970_vm14 = vmmov %vm12960_vm0 }
 0x41c   : > { %v5456_v58 = vor.u32 %v5455_v11, %v5452_v39  ;;  %v11931_v11 = vld [vmem:[#allocation3 + $0x2c] sm:$0xf]  ;;  %v5487_v60 = vrot.slane %v5485_v62, 3  ;;  %v6942_v41 = vld [vmem:[#allocation4 + $0x11] sm:$0xff] }
 0x41d   : > { %v1808_v55 = vpop.permute.xlu1 %1807  ;;  %v1806_v15 = vpop.permute.xlu0 %1805  ;;  %v11926_v2 = vor.u32 %v5481_v24, %v5478_v9  ;;  %v6879_v9 = vld [vmem:[#allocation4 + $0x1f] sm:$0xff]  ;;  %v6904_v62 = vadd.f32 %v6890_v30, %v6878_v16 }
 0x41e   : > { %v1841_v32 = vsel %vm12956_vm7, %v1804_v48, %v1806_v15  ;;  %8518 = vmatmul.mubr.msk.bf16.gmra.mxu1 %vm449_vm13, %v5028_v63  ;;  %v6850_v63 = vld [vmem:[#allocation4 + $0x6] sm:$0xff]  ;;  %v5465_v28 = vsel %vm12960_vm0, %v5456_v58, %v5464_v7  ;;  %v5473_v15 = vor.u32 %v5472_v36, %v5469_v29  ;;  %v5216_v29 = vrot.slane %v5013_v21, 3  ;;  %vm12968_vm7 = vmmov %vm12960_vm0 }
 0x41f   : > { %1867 = vst.msk [vmem:[#allocation4 + $0x38] sm:$0xff] %vm449_vm13, %v1841_v32  ;;  %8573 = vmatprep.mubr.msk.bf16.mxu1 %vm9324_vm12, %v12838_v4  ;;  %v6863_v57 = vadd.f32 %v6850_v63, %v6837_v45  ;;  %v6876_v48 = vld [vmem:[#allocation4 + $0x7] sm:$0xff]  ;;  %v11944_v45 = vcombine.low %v11931_v11, %v11914_v53  ;;  %v6840_v63 = vld [vmem:[#allocation4 + $0x1d] sm:$0xff]  ;;  %v5217_v36 = vrot.slane %v5016_v56, 4  ;;  %v5175_v56 = vld [vmem:[#allocation3 + $0x34] sm:$0xf] }
 0x420   : > { %v5474_v17 = vsel %vm12963_vm2, %v5464_v7, %v5473_v15  ;;  %v6854_v58 = vld [vmem:[#allocation4 + $0x26] sm:$0xff] }
 0x421   : > { %v1812_v25 = vpop.permute.xlu1 %1811  ;;  %v1810_v27 = vpop.permute.xlu0 %1809  ;;  %v6889_v32 = vadd.f32 %v6876_v48, %v6863_v57  ;;  %v5211_v48 = vsel %vm12964_vm3, %v11897_v18, %v11923_v20  ;;  %v5494_v18 = vshrl.u32 %v11944_v45, 16  ;;  %v5497_v52 = vshll.u32 %v11944_v45, 16 }
 0x422   : > { %v1842_v5 = vsel %vm12957_vm8, %v1808_v55, %v1810_v27  ;;  %8534 = vmatmul.mubr.msk.bf16.vlgmr.msra.gmra.mxu0 %vm449_vm13, %v5203_v14  ;;  %v6852_v55 = vld [vmem:[#allocation4 + $0x16] sm:$0xff]  ;;  %v9249_v27 = vld [vmem:[%s12702_s7 + $0xd0] sm:$0xff]   ;;  %v5490_v14 = vrot.slane %v5488_v51, 4  ;;  %vm12969_vm8 = vmmov %vm12960_vm0 }
 0x423   : > { %1868 = vst.msk [vmem:[#allocation4 + $0x40] sm:$0xff] %vm449_vm13, %v1842_v5  ;;  %8602 = vmatpush3.bf16.msra.mxu0 %v9238_v42  ;;  %8537 = vmatprep.mubr.msk.bf16.mxu0 %vm9324_vm12, %v12838_v4  ;;  %v6865_v39 = vadd.f32 %v6852_v55, %v6839_v1  ;;  %v6853_v5 = vld [vmem:[#allocation4 + $0x1e] sm:$0xff]  ;;  %v6903_v8 = vadd.f32 %v6889_v32, %v6877_v19  ;;  %v6916_v32 = vld [vmem:[#allocation4 + $0x10] sm:$0xff]  ;;  %v5496_v19 = vrot.slane %v5494_v18, 3  ;;  %vm12972_vm0 = vmmov %vm12962_vm1 }
 0x424   : > { %8603 = vmatprep.subr.bf16.mxu0 %v12838_v4  ;;  %v11974_v55 = vor.u32 %v5490_v14, %v5487_v60  ;;  %v6944_v18 = vld [vmem:[#allocation4 + $0x21] sm:$0xff] }
 0x425   : > { %v1816_v6 = vpop.permute.xlu1 %1815  ;;  %v1814_v33 = vpop.permute.xlu0 %1813  ;;  %v6891_v21 = vadd.f32 %v6878_v16, %v6865_v39  ;;  %v6881_v16 = vld [vmem:[#allocation4 + $0x2f] sm:$0xff] }
 0x426   : > { %v1843_v47 = vsel %vm12959_vm15, %v1812_v25, %v1814_v33  ;;  %8574 = vmatmul.mubr.msk.bf16.vlgmr.msra.gmra.mxu1 %vm449_vm13, %v5465_v28  ;;  %v5213_v25 = vrot.slane %v5007_v54, 4  ;;  %v6841_v54 = vld [vmem:[#allocation4 + $0x25] sm:$0xff]  ;;  %v6843_v24 = vld [vmem:[#allocation4 + $0x35] sm:$0xff]  ;;  %v6866_v28 = vadd.f32 %v6853_v5, %v6840_v63  ;;  %vm12971_vm15 = vmmov %vm12962_vm1 }
 0x427   : > { %1869 = vst.msk [vmem:[#allocation4 + $0x48] sm:$0xff] %vm449_vm13, %v1843_v47  ;;  %8604 = vmatpush3.bf16.msra.mxu0 %v9243_v12  ;;  %8577 = vmatprep.mubr.msk.bf16.mxu1 %vm9324_vm12, %v12838_v4  ;;  %v6842_v12 = vld [vmem:[#allocation4 + $0x2d] sm:$0xff]  ;;  %v6856_v59 = vld [vmem:[#allocation4 + $0x36] sm:$0xff]  ;;  %v6867_v47 = vadd.f32 %v6854_v58, %v6841_v54  ;;  %v6918_v58 = vld [vmem:[#allocation4 + $0x20] sm:$0xff] }
 0x428   : > { %8605 = vmatprep.subr.bf16.mxu0 %v12838_v4  ;;  %8642 = vmatpush3.bf16.msra.mxu1 %v9247_v44  ;;  %v6855_v44 = vld [vmem:[#allocation4 + $0x2e] sm:$0xff]  ;;  %v5214_v13 = vor.u32 %v5213_v25, %v5212_v50  ;;  %v6869_v39 = vadd.f32 %v6856_v59, %v6843_v24  ;;  %v6917_v54 = vld [vmem:[#allocation4 + $0x18] sm:$0xff]  ;;  %v6892_v5 = vadd.f32 %v6879_v9, %v6866_v28 }
 0x429   : > { %v1820_v37 = vpop.permute.xlu1 %1819  ;;  %v1818_v42 = vpop.permute.xlu0 %1817  ;;  %8643 = vmatprep.subr.bf16.mxu1 %v12838_v4  ;;  %v6868_v1 = vadd.f32 %v6855_v44, %v6842_v12  ;;  %v6930_v12 = vadd.f32 %v6917_v54, %v6904_v62  ;;  %v6882_v44 = vld [vmem:[#allocation4 + $0x37] sm:$0xff] }
 0x42a   : > { %v1844_v10 = vsel %vm12962_vm1, %v1816_v6, %v1818_v42  ;;  %8538 = vmatmul.mubr.msk.bf16.gmra.mxu0 %vm449_vm13, %v5207_v38  ;;  %v11960_v6 = vsel %vm12965_vm4, %v5473_v15, %v11926_v2  ;;  %v11976_v15 = vor.u32 %v5217_v36, %v5216_v29  ;;  %v9252_v38 = vld [vmem:[%s12702_s7 + $0xc8] sm:$0xff]   ;;  %v11993_v25 = vsel %vm12968_vm7, %v11923_v20, %v5214_v13  ;;  %vm12974_vm1 = vmmov %vm12963_vm2 }
 0x42b   : > { %1870 = vst.msk [vmem:[#allocation4 + $0x50] sm:$0xff] %vm449_vm13, %v1844_v10  ;;  %8541 = vmatprep.mubr.msk.bf16.mxu0 %vm9324_vm12, %v12838_v4  ;;  %8606 = vmatpush3.bf16.msra.mxu0 %v9245_v43  ;;  %v9256_v43 = vld [vmem:[%s12702_s7 + $0x100] sm:$0xff]   ;;  %v6880_v42 = vld [vmem:[#allocation4 + $0x27] sm:$0xff]  ;;  %v11988_v10 = vld [vmem:[#allocation3 + $0x38] sm:$0xf]  ;;  %v6894_v14 = vadd.f32 %v6881_v16, %v6868_v1  ;;  %v12003_v36 = vsel %vm12969_vm8, %v11926_v2, %v11974_v55 }
 0x42c   : > { %8607 = vmatprep.subr.bf16.mxu0 %v12838_v4  ;;  %8644 = vmatpush3.bf16.msra.mxu1 %v9250_v26  ;;  %v11986_v26 = vcombine.low %v11820_v35, %v5175_v56  ;;  %v6844_v45 = vld [vmem:[#allocation4 + $0x3d] sm:$0xff]  ;;  %v5499_v35 = vrot.slane %v5497_v52, 4  ;;  %v6893_v63 = vadd.f32 %v6880_v42, %v6867_v47  ;;  %v12007_v30 = vsel %vm12970_vm14, %v5214_v13, %v11976_v15  ;;  %v12013_v2 = vld [vmem:[#allocation3 + $0x34] sm:$0xf]  ;;  %vm12975_vm2 = vmmov %vm12974_vm1 }
 0x42d   : > { %v1824_v7 = vpop.permute.xlu1 %1823  ;;  %v1822_v57 = vpop.permute.xlu0 %1821  ;;  %8645 = vmatprep.subr.bf16.mxu1 %v12838_v4  ;;  %v6895_v56 = vadd.f32 %v6882_v44, %v6869_v39  ;;  %v9257_v13 = vld [vmem:[%s12702_s7 + $0xf8] sm:$0xff]   ;;  %v6883_v24 = vld [vmem:[#allocation4 + $0x3f] sm:$0xff]  ;;  %v12022_v59 = vcombine.low %v12013_v2, %v11988_v10  ;;  %v6906_v62 = vadd.f32 %v6892_v5, %v6880_v42  ;;  %v6919_v39 = vld [vmem:[#allocation4 + $0x28] sm:$0xff] }
 0x42e   : > { %v1845_v33 = vsel %vm12966_vm5, %v1820_v37, %v1822_v57  ;;  %8578 = vmatmul.mubr.msk.bf16.gmra.mxu1 %vm449_vm13, %v5474_v17  ;;  %v6905_v37 = vadd.f32 %v6891_v21, %v6879_v9  ;;  %v6857_v17 = vld [vmem:[#allocation4 + $0x3e] sm:$0xff]  ;;  %v6858_v20 = vld [vmem:[#allocation4 + $0x46] sm:$0xff]  ;;  %v12028_v28 = vor.u32 %v5499_v35, %v5496_v19  ;;  %v6907_v1 = vadd.f32 %v6893_v63, %v6881_v16  ;;  %vm12984_vm7 = vmmov %vm12972_vm0 }
 0x42f   : > { %1871 = vst.msk [vmem:[#allocation4 + $0x58] sm:$0xff] %vm449_vm13, %v1845_v33  ;;  %8581 = vmatprep.mubr.msk.bf16.mxu1 %vm9324_vm12, %v12838_v4  ;;  %8608 = vmatpush3.bf16.msra.mxu0 %v9249_v27  ;;  %v6929_v27 = vadd.f32 %v6916_v32, %v6903_v8  ;;  %v6845_v29 = vld [vmem:[#allocation4 + $0x45] sm:$0xff]  ;;  %v6870_v33 = vadd.f32 %v6857_v17, %v6844_v45  ;;  %v6982_v16 = vld [vmem:[#allocation4 + $0x1a] sm:$0xff]  ;;  %v5224_v17 = vshll.u32 %v11986_v26, 16  ;;  %vm12987_vm8 = vmmov %vm12972_vm0 }
 0x430   : > { %8609 = vmatprep.subr.bf16.mxu0 %v12838_v4  ;;  %8646 = vmatpush3.bf16.msra.mxu1 %v9253_v34  ;;  %v6931_v21 = vadd.f32 %v6918_v58, %v6905_v37  ;;  %v5221_v34 = vshrl.u32 %v11986_v26, 16  ;;  %v6871_v52 = vadd.f32 %v6858_v20, %v6845_v29  ;;  %v6945_v42 = vld [vmem:[#allocation4 + $0x29] sm:$0xff]  ;;  %v6946_v29 = vld [vmem:[#allocation4 + $0x31] sm:$0xff]  ;;  %vm12989_vm14 = vmmov %vm12972_vm0 }
 0x431   : > { %v1826_v51 = vpop.permute.xlu0 %1825  ;;  %8647 = vmatprep.subr.bf16.mxu1 %v12838_v4  ;;  %v1828_v60 = vpop.permute.xlu1 %1827  ;;  %v6955_v9 = vadd.f32 %v6942_v41, %v6929_v27  ;;  %v6884_v35 = vld [vmem:[#allocation4 + $0x47] sm:$0xff]  ;;  %v6896_v54 = vadd.f32 %v6883_v24, %v6870_v33  ;;  %v6921_v20 = vld [vmem:[#allocation4 + $0x38] sm:$0xff] }
 0x432   : > { %v1846_v50 = vsel %vm12967_vm6, %v1824_v7, %v1826_v51  ;;  %8542 = vmatmul.mubr.msk.bf16.gmra.mxu0 %vm449_vm13, %v5211_v48  ;;  %v9255_v7 = vld [vmem:[%s12702_s7 + $0xc0] sm:$0xff]   ;;  %v6846_v47 = vld [vmem:[#allocation4 + $0x4d] sm:$0xff]  ;;  %v6957_v45 = vadd.f32 %v6944_v18, %v6931_v21  ;;  %v6897_v58 = vadd.f32 %v6884_v35, %v6871_v52  ;;  %v6922_v52 = vld [vmem:[#allocation4 + $0x40] sm:$0xff] }
 0x433   : > { %1872 = vst.msk [vmem:[#allocation4 + $0x60] sm:$0xff] %vm449_vm13, %v1846_v50  ;;  %8545 = vmatprep.mubr.msk.bf16.mxu0 %vm9324_vm12, %v12838_v4  ;;  %8610 = vmatpush3.bf16.msra.mxu0 %v9252_v38  ;;  %v6943_v48 = vld [vmem:[#allocation4 + $0x19] sm:$0xff]  ;;  %v6908_v38 = vadd.f32 %v6894_v14, %v6882_v44  ;;  %v6859_v32 = vld [vmem:[#allocation4 + $0x4e] sm:$0xff] }
 0x434   : > { %8611 = vmatprep.subr.bf16.mxu0 %v12838_v4  ;;  %8648 = vmatpush3.bf16.msra.mxu1 %v9256_v43  ;;  %v6969_v41 = vadd.f32 %v6955_v9, %v6943_v48  ;;  %v6956_v37 = vadd.f32 %v6943_v48, %v6930_v12  ;;  %v6920_v14 = vld [vmem:[#allocation4 + $0x30] sm:$0xff]  ;;  %v6872_v44 = vadd.f32 %v6859_v32, %v6846_v47 }
 0x435   : > { %v1830_v57 = vpop.permute.xlu0 %1829  ;;  %8649 = vmatprep.subr.bf16.mxu1 %v12838_v4  ;;  %v1832_v27 = vpop.permute.xlu1 %1831  ;;  %v6933_v26 = vadd.f32 %v6920_v14, %v6907_v1  ;;  %v6934_v48 = vadd.f32 %v6921_v20, %v6908_v38  ;;  %v6885_v21 = vld [vmem:[#allocation4 + $0x4f] sm:$0xff] }
 0x436   : > { %v1847_v8 = vsel %vm12971_vm15, %v1828_v60, %v1830_v57  ;;  %8582 = vmatmul.mubr.msk.bf16.gmra.mxu1 %vm449_vm13, %v11960_v6  ;;  %v6847_v43 = vld [vmem:[#allocation4 + $0x55] sm:$0xff]  ;;  %v9259_v6 = vld [vmem:[%s12702_s7 + $0xf0] sm:$0xff]   ;;  %v6909_v60 = vadd.f32 %v6895_v56, %v6883_v24  ;;  %v6932_v57 = vadd.f32 %v6919_v39, %v6906_v62  ;;  %v6970_v9 = vadd.f32 %v6956_v37, %v6944_v18  ;;  %vm12991_vm15 = vmmov %vm12972_vm0 }
 0x437   : > { %1873 = vst.msk [vmem:[#allocation4 + $0x68] sm:$0xff] %vm449_vm13, %v1847_v8  ;;  %v6860_v51 = vld [vmem:[#allocation4 + $0x56] sm:$0xff]  ;;  %8585 = vmatprep.mubr.msk.bf16.mxu1 %vm9324_vm12, %v12838_v4  ;;  %8612 = vmatpush3.bf16.msra.mxu0 %v9255_v7  ;;  %v5223_v7 = vrot.slane %v5221_v34, 3  ;;  %v6971_v8 = vadd.f32 %v6957_v45, %v6945_v42  ;;  %v6948_v62 = vld [vmem:[#allocation4 + $0x41] sm:$0xff]  ;;  %v6911_v38 = vadd.f32 %v6897_v58, %v6885_v21  ;;  %v6984_v37 = vld [vmem:[#allocation4 + $0x2a] sm:$0xff] }
 0x438   : > { %v6873_v50 = vadd.f32 %v6860_v51, %v6847_v43  ;;  %v12036_v63 = vld [vmem:[#allocation4 + $0x57] sm:$0xff]  ;;  %8650 = vmatpush3.bf16.msra.mxu1 %v9257_v13  ;;  %8681 = vmatprep.subr.bf16.mxu0 %v12838_v4  ;;  %v6995_v13 = vadd.f32 %v6982_v16, %v6969_v41  ;;  %v5226_v51 = vrot.slane %v5224_v17, 4  ;;  %v6935_v32 = vadd.f32 %v6922_v52, %v6909_v60  ;;  %v7010_v52 = vld [vmem:[#allocation4 + $0x2b] sm:$0xff] }
 0x439   : > { %v1834_v19 = vpop.permute.xlu0 %1833  ;;  %8651 = vmatprep.subr.bf16.mxu1 %v12838_v4  ;;  %v6947_v24 = vld [vmem:[#allocation4 + $0x39] sm:$0xff]  ;;  %v6910_v39 = vadd.f32 %v6896_v54, %v6884_v35  ;;  %v6898_v41 = vadd.f32 %v6885_v21, %v6872_v44  ;;  %v6959_v16 = vadd.f32 %v6946_v29, %v6933_v26  ;;  %v6958_v45 = vadd.f32 %v6945_v42, %v6932_v57  ;;  %v6923_v44 = vld [vmem:[#allocation4 + $0x48] sm:$0xff] }
 0x43a   : > { %v1848_v5 = vsel %vm12972_vm0, %v1832_v27, %v1834_v19  ;;  %v6899_v12 = vadd.f32 %v12036_v63, %v6873_v50  ;;  %8546 = vmatmul.mubr.msk.bf16.gmra.mxu0 %vm449_vm13, %v11993_v25  ;;  %v6887_v56 = vld [vmem:[#allocation4 + $0x5f] sm:$0xff]  ;;  %v5503_v25 = vshrl.u32 %v12022_v59, 16  ;;  %v5506_v17 = vshll.u32 %v12022_v59, 16 }
 0x43b   : > { %1874 = vst.msk [vmem:[#allocation4 + $0x70] sm:$0xff] %vm449_vm13, %v1848_v5  ;;  %v6848_v33 = vld [vmem:[#allocation4 + $0x5d] sm:$0xff]  ;;  %8549 = vmatprep.mubr.msk.bf16.mxu0 %vm9324_vm12, %v12838_v4  ;;  %v6997_v35 = vadd.f32 %v6984_v37, %v6971_v8  ;;  %v6973_v14 = vadd.f32 %v6959_v16, %v6947_v24  ;;  %v6972_v20 = vadd.f32 %v6958_v45, %v6946_v29 }
 0x43c   : > { %v6913_v47 = vadd.f32 %v6899_v12, %v6887_v56  ;;  %v6861_v43 = vld [vmem:[#allocation4 + $0x5e] sm:$0xff]  ;;  %8652 = vmatpush3.bf16.msra.mxu1 %v9259_v6  ;;  %v6960_v6 = vadd.f32 %v6947_v24, %v6934_v48  ;;  %v6924_v12 = vld [vmem:[#allocation4 + $0x50] sm:$0xff]  ;;  %v6961_v57 = vadd.f32 %v6948_v62, %v6935_v32  ;;  %v6936_v48 = vadd.f32 %v6923_v44, %v6910_v39 }
 0x43d   : > { %v6926_v34 = vld [vmem:[#allocation4 + $0x60] sm:$0xff]  ;;  %v6874_v1 = vadd.f32 %v6861_v43, %v6848_v33  ;;  %8721 = vmatprep.subr.bf16.mxu1 %v12838_v4  ;;  %v6937_v59 = vadd.f32 %v6924_v12, %v6911_v38  ;;  %v6912_v21 = vadd.f32 %v6898_v41, %v12036_v63  ;;  %v5501_v29 = vsel %vm12973_vm9, %v11974_v55, %v12028_v28  ;;  %v6950_v24 = vld [vmem:[#allocation4 + $0x51] sm:$0xff]  ;;  %vm12993_vm9 = vmmov %vm12972_vm0 }
 0x43e   : > { %v6939_v50 = vadd.f32 %v6926_v34, %v6913_v47  ;;  %v12048_v27 = vld [vmem:[#allocation4 + $0x61] sm:$0xff]  ;;  %8586 = vmatmul.mubr.msk.bf16.gmra.mxu1 %vm449_vm13, %v12003_v36  ;;  %v6949_v36 = vld [vmem:[#allocation4 + $0x49] sm:$0xff]  ;;  %v6974_v58 = vadd.f32 %v6960_v6, %v6948_v62  ;;  %v6985_v43 = vld [vmem:[#allocation4 + $0x32] sm:$0xff]  ;;  %v5505_v34 = vrot.slane %v5503_v25, 3  ;;  %v7023_v62 = vadd.f32 %v7010_v52, %v6997_v35 }
 0x43f   : > { %v7008_v18 = vld [vmem:[#allocation4 + $0x1b] sm:$0xff]  ;;  %8589 = vmatprep.mubr.msk.bf16.mxu1 %vm9324_vm12, %v12838_v4  ;;  %v6900_v26 = vadd.f32 %v6887_v56, %v6874_v1  ;;  %v6888_v33 = vld [vmem:[#allocation4 + $0x67] sm:$0xff]  ;;  %v6975_v32 = vadd.f32 %v6961_v57, %v6949_v36  ;;  %v5508_v1 = vrot.slane %v5506_v17, 4  ;;  %v6998_v38 = vadd.f32 %v6985_v43, %v6972_v20 }
 0x440   : > { %v6983_v19 = vld [vmem:[#allocation4 + $0x22] sm:$0xff]  ;;  %v7021_v60 = vadd.f32 %v7008_v18, %v6995_v13  ;;  %v12057_v5 = vadd.f32 %v12048_v27, %v6939_v50  ;;  %v12063_v13 = vld [vmem:[%s12704_s9] ss:$0 sm:$0xff]  ;;  %v6986_v47 = vld [vmem:[#allocation4 + $0x3a] sm:$0xff]  ;;  %v6963_v37 = vadd.f32 %v6950_v24, %v6937_v59 }
 0x441   : > { %v6996_v54 = vadd.f32 %v6983_v19, %v6970_v9  ;;  %v7009_v56 = vld [vmem:[#allocation4 + $0x23] sm:$0xff]  ;;  %v12070_v9 = vor.u32 %v5226_v51, %v5223_v7  ;;  %v6951_v50 = vld [vmem:[#allocation4 + $0x59] sm:$0xff]  ;;  %v6914_v41 = vadd.f32 %v6900_v26, %v6888_v33  ;;  %v6962_v19 = vadd.f32 %v6949_v36, %v6936_v48 }
 0x442   : > { %v7037_v42 = vpop.permute.xlu1 %7036  ;;  %8550 = vmatmul.mubr.msk.bf16.gmra.mxu0 %vm449_vm13, %v12007_v30  ;;  %v6999_v30 = vadd.f32 %v6986_v47, %v6973_v14  ;;  %v6987_v39 = vld [vmem:[#allocation4 + $0x42] sm:$0xff]  ;;  %v6925_v55 = vld [vmem:[#allocation4 + $0x58] sm:$0xff]  ;;  %v6988_v17 = vld [vmem:[#allocation4 + $0x4a] sm:$0xff]  ;;  %v6977_v20 = vadd.f32 %v6963_v37, %v6951_v50  ;;  %v12083_v33 = vor.u32 %v5508_v1, %v5505_v34 }
 0x443   : > { %v7099_v8 = vmul.f32 %v7037_v42, %v7021_v60  ;;  %v7022_v63 = vadd.f32 %v7009_v56, %v6996_v54  ;;  %8553 = vmatprep.mubr.msk.bf16.mxu0 %vm9324_vm12, %v12838_v4  ;;  %v7000_v18 = vadd.f32 %v6987_v39, %v6974_v58  ;;  %v6938_v16 = vadd.f32 %v6925_v55, %v6912_v21  ;;  %v7012_v60 = vld [vmem:[#allocation4 + $0x3b] sm:$0xff]  ;;  %v7011_v54 = vld [vmem:[#allocation4 + $0x33] sm:$0xff]  ;;  %v6927_v58 = vld [vmem:[#allocation4 + $0x68] sm:$0xff] }
 0x444   : > { %v5228_v35 = vsel %vm12974_vm1, %v11976_v15, %v12070_v9  ;;  %v7001_v14 = vadd.f32 %v6988_v17, %v6975_v32  ;;  %v6976_v36 = vadd.f32 %v6962_v19, %v6950_v24  ;;  %v7025_v44 = vadd.f32 %v7012_v60, %v6999_v30  ;;  %v7013_v42 = vld [vmem:[#allocation4 + $0x43] sm:$0xff]  ;;  %v7014_v47 = vld [vmem:[#allocation4 + $0x4b] sm:$0xff]  ;;  %v6990_v43 = vld [vmem:[#allocation4 + $0x5a] sm:$0xff] }
 0x445   : > { %v7119_v45 = vadd.f32 %v12063_v13, %v7099_v8  ;;  %v7024_v26 = vadd.f32 %v7011_v54, %v6998_v38  ;;  %v6940_v57 = vadd.f32 %v6927_v58, %v6914_v41  ;;  %v7026_v15 = vadd.f32 %v7013_v42, %v7000_v18  ;;  %v6953_v8 = vld [vmem:[#allocation4 + $0x69] sm:$0xff]  ;;  %v6989_v32 = vld [vmem:[#allocation4 + $0x52] sm:$0xff]  ;;  %vm12994_vm1 = vmmov %vm12972_vm0 }
 0x446   : > { %v7047_v7 = vpop.permute.xlu1 %7046  ;;  %v7042_v51 = vpop.permute.xlu0 %7041  ;;  %8590 = vmatmul.mubr.msk.bf16.gmra.mxu1 %vm449_vm13, %v5501_v29  ;;  %v6964_v29 = vadd.f32 %v6951_v50, %v6938_v16  ;;  %v7003_v30 = vadd.f32 %v6990_v43, %v6977_v20  ;;  %v7002_v38 = vadd.f32 %v6989_v32, %v6976_v36  ;;  %v6979_v50 = vadd.f32 %v12057_v5, %v6953_v8  ;;  %v6991_v5 = vld [vmem:[#allocation4 + $0x62] sm:$0xff]  ;;  %v6992_v60 = vld [vmem:[#allocation4 + $0x6a] sm:$0xff] }
 0x447   : > { %v7101_v6 = vmul.f32 %v7047_v7, %v7023_v62  ;;  %v7100_v25 = vmul.f32 %v7042_v51, %v7022_v63  ;;  %8593 = vmatprep.mubr.msk.bf16.mxu1 %vm9324_vm12, %v12838_v4  ;;  %v7132_v56 = vmax.f32 %v7119_v45, 0.0  ;;  %v7027_v62 = vadd.f32 %v7014_v47, %v7001_v14  ;;  %v7016_v45 = vld [vmem:[#allocation4 + $0x5b] sm:$0xff]  ;;  %v9260_v54 = vld [vmem:[#allocation3 + $0x8] sm:$0xff]   ;;  %v12101_v42 = vld [vmem:[#allocation3 + $0x10] sm:$0xff]  }
 0x448   : > { %v6978_v34 = vadd.f32 %v6964_v29, %v12048_v27  ;;  %v6966_v55 = vadd.f32 %v6953_v8, %v6940_v57  ;;  %v5510_v51 = vsel %vm12975_vm2, %v12028_v28, %v12083_v33  ;;  %v7005_v36 = vadd.f32 %v6992_v60, %v6979_v50  ;;  %v7018_v8 = vld [vmem:[#allocation4 + $0x6b] sm:$0xff] }
 0x449   : > { %v7120_v12 = vadd.f32 %v12063_v13, %v7100_v25  ;;  %v7121_v59 = vadd.f32 %v12063_v13, %v7101_v6  ;;  %v7015_v6 = vld [vmem:[#allocation4 + $0x53] sm:$0xff]  ;;  %v7029_v25 = vadd.f32 %v7016_v45, %v7003_v30  ;;  %v8015_v50 = vcombine.low %v11840_v61, %v11842_v0 }
 0x44a   : > { %v7057_v48 = vpop.permute.xlu1 %7056  ;;  %v7052_v21 = vpop.permute.xlu0 %7051  ;;  %8554 = vmatmul.mubr.msk.bf16.gmra.mxu0 %vm449_vm13, %v5228_v35  ;;  %v7028_v17 = vadd.f32 %v7015_v6, %v7002_v38  ;;  %v7004_v28 = vadd.f32 %v6991_v5, %v6978_v34  ;;  %v6954_v35 = vld [vmem:[#allocation4 + $0x71] sm:$0xff] }
 0x44b   : > { %v7133_v52 = vmax.f32 %v7120_v12, 0.0  ;;  %v7103_v63 = vmul.f32 %v7057_v48, %v7025_v44  ;;  %v7102_v24 = vmul.f32 %v7052_v21, %v7024_v26  ;;  %8557 = vmatprep.mubr.msk.bf16.mxu0 %vm9324_vm12, %v12838_v4  ;;  %v7134_v41 = vmax.f32 %v7121_v59, 0.0  ;;  %v9263_v45 = vld [vmem:[#allocation3 + $0x18] sm:$0xff]  }
 0x44c   : > { %v6980_v58 = vadd.f32 %v6966_v55, %v6954_v35  ;;  %v9258_v55 = vld [vmem:[%s12702_s7 + $0x148] sm:$0xff]  }
 0x44d   : > { %v7122_v1 = vadd.f32 %v12063_v13, %v7102_v24  ;;  %v7145_v39 = vpack.c.bf16 %v7133_v52, %v7132_v56  ;;  %v7123_v37 = vadd.f32 %v12063_v13, %v7103_v63  ;;  %v6993_v56 = vld [vmem:[#allocation4 + $0x72] sm:$0xff]  ;;  %v5912_v52 = vshll.u32 %v9260_v54, 16 }
 0x44e   : > { %v7067_v7 = vpop.permute.xlu1 %7066  ;;  %v7062_v18 = vpop.permute.xlu0 %7061  ;;  %8594 = vmatmul.mubr.msk.bf16.gmra.mxu1 %vm449_vm13, %v5510_v51  ;;  %v7031_v24 = vadd.f32 %v7018_v8, %v7005_v36  ;;  %v7006_v43 = vadd.f32 %v6993_v56, %v6980_v58  ;;  %v8016_v58 = vcombine.low %v11833_v49, %v11859_v3  ;;  %v9268_v49 = vld [vmem:[%s12702_s7 + $0x130] sm:$0xff]   ;;  %v9273_v3 = vld [vmem:[%s12702_s7 + $0x168] sm:$0xff]   ;;  %v9278_v8 = vld [vmem:[%s12702_s7 + $0x160] sm:$0xff]  }
 0x44f   : > { %v7135_v19 = vmax.f32 %v7122_v1, 0.0  ;;  %v7105_v16 = vmul.f32 %v7067_v7, %v7027_v62  ;;  %v7104_v27 = vmul.f32 %v7062_v18, %v7026_v15  ;;  %7201 = vrot.lane.b32.xlu0 %v7145_v39, %s9325_s14  ;;  %8597 = vmatprep.mubr.msk.bf16.mxu1 %vm9324_vm12, %v12838_v4  ;;  %v7136_v57 = vmax.f32 %v7123_v37, 0.0  ;;  %v7017_v15 = vld [vmem:[#allocation4 + $0x63] sm:$0xff] }
 0x450   : > { %v7030_v29 = vadd.f32 %v7017_v15, %v7004_v28  ;;  %v5914_v7 = vrot.slane %v5912_v52, 1  ;;  %v9266_v28 = vld [vmem:[%s12702_s7 + $0x178] sm:$0xff]   ;;  %v8017_v15 = vcombine.low %v11852_v31, %v11869_v23  ;;  %v9267_v52 = vld [vmem:[#allocation3 + $0x28] sm:$0xff]   ;;  %v9276_v31 = vld [vmem:[%s12702_s7 + $0x120] sm:$0xff]  }
 0x451   : > { %v7124_v14 = vadd.f32 %v12063_v13, %v7104_v27  ;;  %v7146_v20 = vpack.c.bf16 %v7135_v19, %v7134_v41  ;;  %v7125_v12 = vadd.f32 %v12063_v13, %v7105_v16  ;;  %v7019_v41 = vld [vmem:[#allocation4 + $0x73] sm:$0xff]  ;;  %v5910_v16 = vshrl.u32 %v9260_v54, 16 }
 0x452   : > { %v7077_v44 = vpop.permute.xlu1 %7076  ;;  %v7072_v26 = vpop.permute.xlu0 %7071  ;;  %8558 = vmatmul.mubr.msk.bf16.gmra.mxu0 %vm449_vm13, %v12070_v9  ;;  %v5917_v9 = vshll.u32 %v12101_v42, 16  ;;  %v5925_v54 = vshll.u32 %v9263_v45, 16  ;;  %v9279_v23 = vld [vmem:[%s12702_s7 + $0x158] sm:$0xff]  }
 0x453   : > { %v7137_v59 = vmax.f32 %v7124_v14, 0.0  ;;  %v7107_v48 = vmul.f32 %v7077_v44, %v7029_v25  ;;  %v7106_v21 = vmul.f32 %v7072_v26, %v7028_v17  ;;  %7203 = vrot.lane.b32.xlu1 %v7146_v20, %s9325_s14  ;;  %8613 = vmatprep.mubr.msk.bf16.mxu0 %vm9324_vm12, %v12838_v4  ;;  %v7138_v32 = vmax.f32 %v7125_v12, 0.0  ;;  %v9262_v25 = vld [vmem:[%s12702_s7 + $0x140] sm:$0xff]   ;;  %v9269_v12 = vld [vmem:[%s12702_s7 + $0x170] sm:$0xff]  }
 0x454   : > { %v5919_v27 = vrot.slane %v5917_v9, 1  ;;  %v5915_v5 = vor.u32 %v5914_v7, %v5910_v16  ;;  %v5921_v44 = vshrl.u32 %v12101_v42, 16  ;;  %v5927_v26 = vrot.slane %v5925_v54, 1  ;;  %v9271_v9 = vld [vmem:[#allocation3 + $0x30] sm:$0xff]  }
 0x455   : > { %v7126_v63 = vadd.f32 %v12063_v13, %v7106_v21  ;;  %v7147_v47 = vpack.c.bf16 %v7137_v59, %v7136_v57  ;;  %v7127_v38 = vadd.f32 %v12063_v13, %v7107_v48  ;;  %v9265_v57 = vld [vmem:[#allocation3 + $0x20] sm:$0xff]  }
 0x456   : > { %v7087_v62 = vpop.permute.xlu1 %7086  ;;  %v7082_v30 = vpop.permute.xlu0 %7081  ;;  %8598 = vmatmul.mubr.msk.bf16.gmra.mxu1 %vm449_vm13, %v12083_v33  ;;  %v7032_v33 = vadd.f32 %v7019_v41, %v7006_v43  ;;  %v5920_v35 = vsel %vm3333_vm10, %v5915_v5, %v5919_v27  ;;  %v5923_v59 = vor.u32 %v5921_v44, %v5919_v27  ;;  %v5933_v48 = vshll.u32 %v9265_v57, 16  ;;  %v9272_v21 = vld [vmem:[%s12702_s7 + $0x128] sm:$0xff]   ;;  %v12223_v27 = vld [vmem:[#allocation3 + $0x14] sm:$0xff]  }
 0x457   : > { %v7139_v34 = vmax.f32 %v7126_v63, 0.0  ;;  %v7109_v1 = vmul.f32 %v7087_v62, %v7031_v24  ;;  %v7108_v39 = vmul.f32 %v7082_v30, %v7030_v29  ;;  %7205 = vrot.lane.b32.xlu0 %v7147_v47, %s9325_s14  ;;  %8653 = vmatprep.mubr.msk.bf16.mxu1 %vm9324_vm12, %v12838_v4  ;;  %v7140_v61 = vmax.f32 %v7127_v38, 0.0 }
 0x458   : > { %v5928_v42 = vsel %vm3333_vm10, %v5923_v59, %v5927_v26  ;;  %v5929_v29 = vshrl.u32 %v9263_v45, 16  ;;  %v5935_v56 = vrot.slane %v5933_v48, 1  ;;  %v5941_v47 = vshll.u32 %v9267_v52, 16 }
 0x459   : > { %v7129_v51 = vadd.f32 %v12063_v13, %v7109_v1  ;;  %v7128_v18 = vadd.f32 %v12063_v13, %v7108_v39  ;;  %v7148_v37 = vpack.c.bf16 %v7139_v34, %v7138_v32  ;;  %v8018_v43 = vcombine.low %v11861_v46, %v11889_v40  ;;  %v9283_v32 = vld [vmem:[%s12702_s7 + $0x150] sm:$0xff]  }
 0x45a   : > { %v7092_v19 = vpop.permute.xlu0 %7091  ;;  %8614 = vmatmul.mubr.msk.bf16.vlgmr.msra.gmra.mxu0 %vm449_vm13, %v8015_v50  ;;  %v5931_v63 = vor.u32 %v5929_v29, %v5927_v26  ;;  %v5937_v62 = vshrl.u32 %v9265_v57, 16  ;;  %v5943_v30 = vrot.slane %v5941_v47, 1  ;;  %v5949_v40 = vshll.u32 %v9271_v9, 16  ;;  %v9275_v50 = vld [vmem:[#allocation3 + $0x38] sm:$0x1f]   ;;  %v12261_v57 = vld [vmem:[#allocation3 + $0x24] sm:$0xff]  }
 0x45b   : > { %v7141_v0 = vmax.f32 %v7128_v18, 0.0  ;;  %v7110_v6 = vmul.f32 %v7092_v19, %v7032_v33  ;;  %7207 = vrot.lane.b32.xlu1 %v7148_v37, %s9325_s14  ;;  %8682 = vmatpush3.bf16.msra.mxu0 %v9258_v55  ;;  %v7142_v14 = vmax.f32 %v7129_v51, 0.0  ;;  %v8019_v34 = vcombine.low %v11885_v22, %v11931_v11  ;;  %v6123_v11 = vld [vmem:[#allocation3 + $0x10] sm:$0xf]  ;;  %v6122_v33 = vld [vmem:[#allocation3 + $0xc] sm:$0xf] }
 0x45c   : > { %8617 = vmatprep.mubr.msk.bf16.mxu0 %vm9324_vm12, %v12838_v4  ;;  %8683 = vmatprep.subr.bf16.mxu0 %v12838_v4  ;;  %v5936_v24 = vsel %vm3333_vm10, %v5931_v63, %v5935_v56  ;;  %v5939_v38 = vor.u32 %v5937_v62, %v5935_v56  ;;  %v5945_v1 = vshrl.u32 %v9267_v52, 16  ;;  %v5951_v39 = vrot.slane %v5949_v40, 1  ;;  %v12287_v56 = vld [vmem:[#allocation3 + $0x2c] sm:$0xff]   ;;  %v9292_v63 = vld [vmem:[%s12702_s7 + $0x188] sm:$0xff]   ;;  %v9295_v47 = vld [vmem:[%s12702_s7 + $0x180] sm:$0xff]  }
 0x45d   : > { %v7130_v17 = vadd.f32 %v12063_v13, %v7110_v6  ;;  %v7149_v60 = vpack.c.bf16 %v7141_v0, %v7140_v61  ;;  %v9264_v13 = vld [vmem:[%s12702_s7 + $0x138] sm:$0xff]   ;;  %v5957_v7 = vshll.u32 %v9275_v50, 16  ;;  %v8020_v22 = vcombine.low %v11914_v53, %v12013_v2 }
 0x45e   : > { %8654 = vmatmul.mubr.msk.bf16.vlgmr.msra.gmra.mxu1 %vm449_vm13, %v5920_v35  ;;  %v5944_v46 = vsel %vm3333_vm10, %v5939_v38, %v5943_v30  ;;  %v5947_v55 = vor.u32 %v5945_v1, %v5943_v30  ;;  %v5953_v51 = vshrl.u32 %v9271_v9, 16  ;;  %v8079_v19 = vcombine.low %v6122_v33, %v6123_v11  ;;  %v12314_v30 = vld [vmem:[#allocation3 + $0x34] sm:$0xff]  }
 0x45f   : > { %v7143_v20 = vmax.f32 %v7130_v17, 0.0  ;;  %7209 = vrot.lane.b32.xlu0 %v7149_v60, %s9325_s14  ;;  %8684 = vmatpush3.bf16.msra.mxu0 %v9262_v25  ;;  %v5959_v18 = vrot.slane %v5957_v7, 1  ;;  %v8021_v2 = vcombine.low %v11988_v10, %v11988_v10  ;;  %v6192_v45 = vshll.u32 %v12223_v27, 16  ;;  %v12236_v17 = vld [vmem:[#allocation3 + $0x1c] sm:$0xff]   ;;  %v6397_v60 = vld [vmem:[#allocation3 + $0xc] sm:$0xe] }
 0x460   : > { %8657 = vmatprep.mubr.msk.bf16.mxu1 %vm9324_vm12, %v12838_v4  ;;  %8685 = vmatprep.subr.bf16.mxu0 %v12838_v4  ;;  %v5952_v41 = vsel %vm3333_vm10, %v5947_v55, %v5951_v39  ;;  %v5955_v37 = vor.u32 %v5953_v51, %v5951_v39  ;;  %v6187_v53 = vshll.u32 %v8079_v19, 16  ;;  %v5961_v61 = vshrl.u32 %v9275_v50, 16  ;;  %v6134_v39 = vld [vmem:[#allocation3 + $0x3c] sm:$0xf]  ;;  %v6135_v50 = vld [vmem:[#allocation3 + $0x40] sm:$0x1] }
 0x461   : > { %v12143_v36 = vpack.c.bf16 %v7143_v20, %v7142_v14  ;;  %8722 = vmatpush3.bf16.msra.mxu1 %v9266_v28  ;;  %v6185_v5 = vshrl.u32 %v8079_v19, 16  ;;  %v6194_v25 = vrot.slane %v6192_v45, 1  ;;  %v9282_v28 = vld [vmem:[%s12702_s7 + $0x1a8] sm:$0xff]   ;;  %v12244_v35 = vcombine.low %v6397_v60, %v6123_v11 }
 0x462   : > { %8723 = vmatprep.subr.bf16.mxu1 %v12838_v4  ;;  %8618 = vmatmul.mubr.msk.bf16.gmra.mxu0 %vm449_vm13, %v8016_v58  ;;  %v5960_v16 = vsel %vm3333_vm10, %v5955_v37, %v5959_v18  ;;  %v6189_v0 = vrot.slane %v6187_v53, 1  ;;  %v5963_v6 = vor.u32 %v5961_v61, %v5959_v18  ;;  %v6415_v14 = vrot.slane %v12223_v27, 1  ;;  %v9286_v58 = vld [vmem:[%s12702_s7 + $0x1a0] sm:$0xff]  }
 0x463   : > { %8621 = vmatprep.mubr.msk.bf16.mxu0 %vm9324_vm12, %v12838_v4  ;;  %8686 = vmatpush3.bf16.msra.mxu0 %v9264_v13  ;;  %v6200_v20 = vshll.u32 %v12236_v17, 16  ;;  %v6414_v13 = vrot.slane %v12244_v35, 1  ;;  %v6196_v44 = vshrl.u32 %v12223_v27, 16  ;;  %v6208_v48 = vshll.u32 %v12261_v57, 16 }
 0x464   : > { %8687 = vmatprep.subr.bf16.mxu0 %v12838_v4  ;;  %v6190_v10 = vor.u32 %v6189_v0, %v6185_v5  ;;  %v6224_v40 = vshll.u32 %v12314_v30, 16  ;;  %v12340_v33 = vcombine.low %v6134_v39, %v6135_v50  ;;  %v6423_v53 = vrot.slane %v12314_v30, 1 }
 0x465   : > { %8724 = vmatpush3.bf16.msra.mxu1 %v9269_v12  ;;  %v6416_v12 = vsel %vm3959_vm11, %v6414_v13, %v6415_v14  ;;  %v6202_v26 = vrot.slane %v6200_v20, 1  ;;  %v6198_v59 = vor.u32 %v6196_v44, %v6194_v25  ;;  %v6210_v29 = vrot.slane %v6208_v48, 1 }
 0x466   : > { %8725 = vmatprep.subr.bf16.mxu1 %v12838_v4  ;;  %8658 = vmatmul.mubr.msk.bf16.gmra.mxu1 %vm449_vm13, %v5928_v42  ;;  %v6195_v54 = vsel %vm3333_vm10, %v6190_v10, %v6194_v25  ;;  %v6417_v42 = vrot.slane %v12236_v17, 1  ;;  %v6226_v7 = vrot.slane %v6224_v40, 1  ;;  %v6228_v5 = vshrl.u32 %v12314_v30, 16 }
 0x467   : > { %8661 = vmatprep.mubr.msk.bf16.mxu1 %vm9324_vm12, %v12838_v4  ;;  %8688 = vmatpush3.bf16.msra.mxu0 %v9268_v49  ;;  %v9288_v49 = vld [vmem:[%s12702_s7 + $0x198] sm:$0xff]  }
 0x468   : > { %8689 = vmatprep.subr.bf16.mxu0 %v12838_v4  ;;  %v6626_v27 = vrot.slane %v6228_v5, 1 }
 0x469   : > { %8726 = vmatpush3.bf16.msra.mxu1 %v9273_v3  ;;  %v6203_v3 = vsel %vm3333_vm10, %v6198_v59, %v6202_v26 }
 0x46a   : > { %8727 = vmatprep.subr.bf16.mxu1 %v12838_v4  ;;  %8622 = vmatmul.mubr.msk.bf16.gmra.mxu0 %vm449_vm13, %v8017_v15  ;;  %v6418_v15 = vsel %vm3959_vm11, %v6415_v14, %v6417_v42 }
 0x46b   : > { %8625 = vmatprep.mubr.msk.bf16.mxu0 %vm9324_vm12, %v12838_v4  ;;  %8690 = vmatpush3.bf16.msra.mxu0 %v9272_v21  ;;  %v9290_v21 = vld [vmem:[%s12702_s7 + $0x190] sm:$0xff]  }
 0x46c   : > { %8691 = vmatprep.subr.bf16.mxu0 %v12838_v4 }
 0x46d   : > { %8728 = vmatpush3.bf16.msra.mxu1 %v9278_v8  ;;  %v6204_v8 = vshrl.u32 %v12236_v17, 16 }
 0x46e   : > { %8729 = vmatprep.subr.bf16.mxu1 %v12838_v4  ;;  %8662 = vmatmul.mubr.msk.bf16.gmra.mxu1 %vm449_vm13, %v5936_v24  ;;  %v6216_v24 = vshll.u32 %v12287_v56, 16 }
 0x46f   : > { %8665 = vmatprep.mubr.msk.bf16.mxu1 %vm9324_vm12, %v12838_v4  ;;  %8692 = vmatpush3.bf16.msra.mxu0 %v9276_v31  ;;  %v6206_v52 = vor.u32 %v6204_v8, %v6202_v26  ;;  %v6614_v30 = vrot.slane %v6204_v8, 1 }
 0x470   : > { %8761 = vmatprep.subr.bf16.mxu0 %v12838_v4  ;;  %v6218_v62 = vrot.slane %v6216_v24, 1 }
 0x471   : > { %8730 = vmatpush3.bf16.msra.mxu1 %v9279_v23  ;;  %v6211_v31 = vsel %vm3333_vm10, %v6206_v52, %v6210_v29  ;;  %v6419_v23 = vrot.slane %v12261_v57, 1 }
 0x472   : > { %8731 = vmatprep.subr.bf16.mxu1 %v12838_v4  ;;  %8626 = vmatmul.mubr.msk.bf16.gmra.mxu0 %vm449_vm13, %v8018_v43 }
 0x473   : > { %8629 = vmatprep.mubr.msk.bf16.mxu0 %vm9324_vm12, %v12838_v4  ;;  %v6420_v43 = vsel %vm3959_vm11, %v6417_v42, %v6419_v23 }
 0x475   : > { %8732 = vmatpush3.bf16.msra.mxu1 %v9283_v32  ;;  %v6212_v32 = vshrl.u32 %v12261_v57, 16 }
 0x476   : > { %8801 = vmatprep.subr.bf16.mxu1 %v12838_v4  ;;  %8666 = vmatmul.mubr.msk.bf16.gmra.mxu1 %vm449_vm13, %v5944_v46  ;;  %v6421_v46 = vrot.slane %v12287_v56, 1 }
 0x477   : > { %8669 = vmatprep.mubr.msk.bf16.mxu1 %vm9324_vm12, %v12838_v4  ;;  %v6214_v9 = vor.u32 %v6212_v32, %v6210_v29 }
 0x478   : > { %v6422_v55 = vsel %vm3959_vm11, %v6419_v23, %v6421_v46  ;;  %v6424_v10 = vsel %vm3959_vm11, %v6421_v46, %v6423_v53  ;;  %v6606_v46 = vshll.u32 %v12244_v35, 16 }
 0x479   : > { %v6219_v38 = vsel %vm3333_vm10, %v6214_v9, %v6218_v62 }
 0x47a   : > { %8630 = vmatmul.mubr.msk.bf16.gmra.mxu0 %vm449_vm13, %v8019_v34 }
 0x47b   : > { %8633 = vmatprep.mubr.msk.bf16.mxu0 %vm9324_vm12, %v12838_v4 }
 0x47e   : > { %8670 = vmatmul.mubr.msk.bf16.gmra.mxu1 %vm449_vm13, %v5952_v41  ;;  %v6220_v41 = vshrl.u32 %v12287_v56, 16 }
 0x47f   : > { %8673 = vmatprep.mubr.msk.bf16.mxu1 %vm9324_vm12, %v12838_v4 }
 0x480   : > { %v6222_v18 = vor.u32 %v6220_v41, %v6218_v62 }
 0x482   : > { %8634 = vmatmul.mubr.msk.bf16.gmra.mxu0 %vm449_vm13, %v8020_v22 }
 0x483   : > { %8637 = vmatprep.mubr.msk.bf16.mxu0 %vm9324_vm12, %v12838_v4 }
 0x486   : > { %8674 = vmatmul.mubr.msk.bf16.gmra.mxu1 %vm449_vm13, %v5960_v16  ;;  %v6227_v16 = vsel %vm3333_vm10, %v6222_v18, %v6226_v7 }
 0x487   : > { %8677 = vmatprep.mubr.msk.bf16.mxu1 %vm9324_vm12, %v12838_v4 }
 0x48a   : > { %8638 = vmatmul.mubr.msk.bf16.gmra.mxu0 %vm449_vm13, %v8021_v2  ;;  %v6232_v2 = vshll.u32 %v12340_v33, 16 }
 0x48b   : > { %8693 = vmatprep.mubr.msk.bf16.mxu0 %vm9324_vm12, %v12838_v4 }
 0x48e   : > { %8678 = vmatmul.mubr.msk.bf16.gmra.mxu1 %vm449_vm13, %v5963_v6 }
 0x48f   : > { %8733 = vmatprep.mubr.msk.bf16.mxu1 %vm9324_vm12, %v12838_v4 }
 0x492   : > { %8694 = vmatmul.mubr.msk.bf16.vlgmr.msra.gmra.mxu0 %vm449_vm13, %v6195_v54  ;;  %v6234_v54 = vrot.slane %v6232_v2, 1 }
 0x493   : > { %8762 = vmatpush3.bf16.msra.mxu0 %v9282_v28  ;;  %8697 = vmatprep.mubr.msk.bf16.mxu0 %vm9324_vm12, %v12838_v4 }
 0x494   : > { %8763 = vmatprep.subr.bf16.mxu0 %v12838_v4 }
 0x496   : > { %8734 = vmatmul.mubr.msk.bf16.vlgmr.msra.gmra.mxu1 %vm449_vm13, %v6416_v12 }
 0x497   : > { %8764 = vmatpush3.bf16.msra.mxu0 %v9286_v58  ;;  %8737 = vmatprep.mubr.msk.bf16.mxu1 %vm9324_vm12, %v12838_v4 }
 0x498   : > { %8765 = vmatprep.subr.bf16.mxu0 %v12838_v4  ;;  %8807 = vmatpush3.bf16.msra.mxu1 %v9282_v28  ;;  %v6230_v28 = vor.u32 %v6228_v5, %v6226_v7  ;;  %v6611_v7 = vrot.slane %v6192_v45, 2 }
 0x499   : > { %8802 = vmatprep.subr.bf16.mxu1 %v12838_v4 }
 0x49a   : > { %8698 = vmatmul.mubr.msk.bf16.gmra.mxu0 %vm449_vm13, %v6203_v3  ;;  %v6235_v59 = vsel %vm3333_vm10, %v6230_v28, %v6234_v54  ;;  %v6425_v3 = vrot.slane %v12340_v33, 1  ;;  %vm12976_vm10 = vsmask.f32 6400 }
 0x49b   : > { %8701 = vmatprep.mubr.msk.bf16.mxu0 %vm9324_vm12, %v12838_v4  ;;  %8766 = vmatpush3.bf16.msra.mxu0 %v9288_v49  ;;  %vm12978_vm3 = vmmov %vm12976_vm10 }
 0x49c   : > { %8767 = vmatprep.subr.bf16.mxu0 %v12838_v4  ;;  %8808 = vmatpush3.bf16.msra.mxu1 %v9286_v58  ;;  %v6426_v23 = vsel %vm3959_vm11, %v6423_v53, %v6425_v3  ;;  %vm12977_vm11 = vmmov %vm12976_vm10 }
 0x49d   : > { %8803 = vmatprep.subr.bf16.mxu1 %v12838_v4  ;;  %vm12979_vm4 = vmmov %vm12978_vm3 }
 0x49e   : > { %8738 = vmatmul.mubr.msk.bf16.gmra.mxu1 %vm449_vm13, %v6418_v15  ;;  %v6236_v15 = vshrl.u32 %v12340_v33, 16  ;;  %v6608_v33 = vrot.slane %v6606_v46, 2  ;;  %vm12980_vm5 = vmmov %vm12978_vm3 }
 0x49f   : > { %8741 = vmatprep.mubr.msk.bf16.mxu1 %vm9324_vm12, %v12838_v4  ;;  %8768 = vmatpush3.bf16.msra.mxu0 %v9290_v21  ;;  %vm12981_vm6 = vmmov %vm12978_vm3 }
 0x4a0   : > { %8769 = vmatprep.subr.bf16.mxu0 %v12838_v4  ;;  %8809 = vmatpush3.bf16.msra.mxu1 %v9288_v49  ;;  %v6585_v49 = vld [vmem:[#allocation3 + $0x40] sm:$0x3]  ;;  %v6238_v62 = vor.u32 %v6236_v15, %v6234_v54 }
 0x4a1   : > { %8804 = vmatprep.subr.bf16.mxu1 %v12838_v4  ;;  %v8137_v52 = vcombine.low %v6134_v39, %v6585_v49 }
 0x4a2   : > { %8702 = vmatmul.mubr.msk.bf16.gmra.mxu0 %vm449_vm13, %v6211_v31 }
 0x4a3   : > { %8705 = vmatprep.mubr.msk.bf16.mxu0 %vm9324_vm12, %v12838_v4  ;;  %8770 = vmatpush3.bf16.msra.mxu0 %v9292_v63  ;;  %v6631_v39 = vshrl.u32 %v8137_v52, 16  ;;  %v6634_v50 = vshll.u32 %v8137_v52, 16  ;;  %v6618_v52 = vrot.slane %v6212_v32, 1 }
 0x4a4   : > { %8771 = vmatprep.subr.bf16.mxu0 %v12838_v4  ;;  %8810 = vmatpush3.bf16.msra.mxu1 %v9290_v21 }
 0x4a5   : > { %8805 = vmatprep.subr.bf16.mxu1 %v12838_v4  ;;  %v6636_v53 = vrot.slane %v6634_v50, 2  ;;  %v6623_v50 = vrot.slane %v6216_v24, 2 }
 0x4a6   : > { %8742 = vmatmul.mubr.msk.bf16.gmra.mxu1 %vm449_vm13, %v6420_v43 }
 0x4a7   : > { %8745 = vmatprep.mubr.msk.bf16.mxu1 %vm9324_vm12, %v12838_v4  ;;  %8772 = vmatpush3.bf16.msra.mxu0 %v9295_v47 }
 0x4a8   : > { %8811 = vmatpush3.bf16.msra.mxu1 %v9292_v63  ;;  %v4911_v34 = vpop.f32.mrf.mxu0 }
 0x4a9   : > { %8806 = vmatprep.subr.bf16.mxu1 %v12838_v4 }
 0x4aa   : > { %8706 = vmatmul.mubr.msk.bf16.gmra.mxu0 %vm449_vm13, %v6219_v38  ;;  %v8455_v1 = vpop.f32.mrf.mxu0  ;;  %v6603_v38 = vshrl.u32 %v12244_v35, 16 }
 0x4ab   : > { %8709 = vmatprep.mubr.msk.bf16.mxu0 %vm9324_vm12, %v12838_v4 }
 0x4ac   : > { %8812 = vmatpush3.bf16.msra.mxu1 %v9295_v47  ;;  %v4914_v22 = vpop.f32.mrf.mxu0  ;;  %v5121_v11 = vpop.f32.mrf.mxu1  ;;  %v6605_v35 = vrot.slane %v6603_v38, 1 }
 0x4ad   : > { %v12334_v51 = vadd.f32 %v5121_v11, %v4911_v34 }
 0x4ae   : > { %8746 = vmatmul.mubr.msk.bf16.gmra.mxu1 %vm449_vm13, %v6422_v55  ;;  %v8456_v37 = vpop.f32.mrf.mxu0  ;;  %v8495_v19 = vpop.f32.mrf.mxu1  ;;  %v6610_v55 = vrot.slane %v6196_v44, 1  ;;  %v6627_v44 = vrot.slane %v6224_v40, 2  ;;  %v6615_v40 = vrot.slane %v6200_v20, 2 }
 0x4af   : > { %8749 = vmatprep.mubr.msk.bf16.mxu1 %vm9324_vm12, %v12838_v4 }
 0x4b0   : > { %v4919_v61 = vpop.f32.mrf.mxu0  ;;  %v5124_v0 = vpop.f32.mrf.mxu1  ;;  %v6612_v45 = vor.u32 %v6611_v7, %v6610_v55 }
 0x4b1   : > { %v12346_v6 = vadd.f32 %v5124_v0, %v4914_v22 }
 0x4b2   : > { %8710 = vmatmul.mubr.msk.bf16.gmra.mxu0 %vm449_vm13, %v6227_v16  ;;  %v8459_v25 = vpop.f32.mrf.mxu0  ;;  %v8496_v60 = vpop.f32.mrf.mxu1  ;;  %v6633_v16 = vrot.slane %v6631_v39, 1  ;;  %v6622_v39 = vrot.slane %v6220_v41, 1 }
 0x4b3   : > { %8713 = vmatprep.mubr.msk.bf16.mxu0 %vm9324_vm12, %v12838_v4  ;;  %v6609_v25 = vor.u32 %v6608_v33, %v6605_v35 }
 0x4b4   : > { %v4922_v14 = vpop.f32.mrf.mxu0  ;;  %v5129_v13 = vpop.f32.mrf.mxu1  ;;  %v6637_v28 = vor.u32 %v6636_v53, %v6633_v16  ;;  %v6624_v33 = vor.u32 %v6623_v50, %v6622_v39 }
 0x4b5   : > { %v12353_v58 = vadd.f32 %v5129_v13, %v4919_v61  ;;  %v6613_v54 = vsel %vm12976_vm10, %v6609_v25, %v6612_v45 }
 0x4b6   : > { %8750 = vmatmul.mubr.msk.bf16.gmra.mxu1 %vm449_vm13, %v6424_v10  ;;  %v8460_v12 = vpop.f32.mrf.mxu0  ;;  %v8499_v26 = vpop.f32.mrf.mxu1 }
 0x4b7   : > { %8753 = vmatprep.mubr.msk.bf16.mxu1 %vm9324_vm12, %v12838_v4 }
 0x4b8   : > { %v5132_v21 = vpop.f32.mrf.mxu1 }
 0x4b9   : > { %v12361_v29 = vadd.f32 %v5132_v21, %v4922_v14  ;;  %v12390_v14 = vor.u32 %v6627_v44, %v6626_v27 }
 0x4ba   : > { %v4927_v42 = vpop.f32.mrf.mxu0  ;;  %8714 = vmatmul.mubr.msk.bf16.gmra.mxu0 %vm449_vm13, %v6235_v59  ;;  %v8500_v31 = vpop.f32.mrf.mxu1 }
 0x4bb   : > { %8717 = vmatprep.mubr.msk.bf16.mxu0 %vm9324_vm12, %v12838_v4  ;;  %v6638_v49 = vsel %vm12977_vm11, %v12390_v14, %v6637_v28 }
 0x4bc   : > { %v8463_v63 = vpop.f32.mrf.mxu0 }
 0x4bd   : > { %v6619_v63 = vrot.slane %v6208_v48, 2 }
 0x4be   : > { %v4930_v47 = vpop.f32.mrf.mxu0  ;;  %v5137_v43 = vpop.f32.mrf.mxu1  ;;  %8754 = vmatmul.mubr.msk.bf16.gmra.mxu1 %vm449_vm13, %v6426_v23 }
 0x4bf   : > { %v12367_v9 = vadd.f32 %v5137_v43, %v4927_v42  ;;  %8757 = vmatprep.mubr.msk.bf16.mxu1 %vm9324_vm12, %v12838_v4  ;;  %v6620_v38 = vor.u32 %v6619_v63, %v6618_v52 }
 0x4c0   : > { %v8464_v34 = vpop.f32.mrf.mxu0  ;;  %v8503_v1 = vpop.f32.mrf.mxu1 }
 0x4c1   : > { %v6625_v56 = vsel %vm12980_vm5, %v6620_v38, %v6624_v33 }
 0x4c2   : > { %v4935_v22 = vpop.f32.mrf.mxu0  ;;  %v5140_v11 = vpop.f32.mrf.mxu1  ;;  %8718 = vmatmul.mubr.msk.bf16.gmra.mxu0 %vm449_vm13, %v6238_v62 }
 0x4c3   : > { %v12378_v18 = vadd.f32 %v5140_v11, %v4930_v47  ;;  %8773 = vmatprep.mubr.msk.bf16.mxu0 %vm9324_vm12, %v12838_v4 }
 0x4c4   : > { %v8467_v37 = vpop.f32.mrf.mxu0  ;;  %v8504_v19 = vpop.f32.mrf.mxu1 }
 0x4c6   : > { %v4938_v2 = vpop.f32.mrf.mxu0  ;;  %v5145_v61 = vpop.f32.mrf.mxu1  ;;  %8758 = vmatmul.mubr.msk.bf16.gmra.mxu1 %vm449_vm13, %v6425_v3  ;;  %v6616_v3 = vor.u32 %v6615_v40, %v6614_v30  ;;  %v6629_v30 = vsel %vm12981_vm6, %v6624_v33, %v12390_v14 }
 0x4c7   : > { %v12385_v0 = vadd.f32 %v5145_v61, %v4935_v22  ;;  %8793 = vmatprep.mubr.msk.bf16.mxu1 %vm9324_vm12, %v12838_v4 }
 0x4c8   : > { %v8468_v60 = vpop.f32.mrf.mxu0  ;;  %v8507_v10 = vpop.f32.mrf.mxu1  ;;  %v6617_v15 = vsel %vm12978_vm3, %v6612_v45, %v6616_v3  ;;  %v6621_v1 = vsel %vm12979_vm4, %v6616_v3, %v6620_v38 }
 0x4ca   : > { %v4943_v5 = vpop.f32.mrf.mxu0  ;;  %v5148_v13 = vpop.f32.mrf.mxu1  ;;  %8774 = vmatmul.mubr.msk.bf16.vlgmr.msra.gmra.mxu0 %vm449_vm13, %v6613_v54 }
 0x4cb   : > { %v12397_v12 = vadd.f32 %v5148_v13, %v4938_v2  ;;  %8777 = vmatprep.mubr.msk.bf16.mxu0 %vm9324_vm12, %v12838_v4 }
 0x4cc   : > { %v8471_v26 = vpop.f32.mrf.mxu0  ;;  %v8508_v59 = vpop.f32.mrf.mxu1 }
 0x4ce   : > { %v4946_v42 = vpop.f32.mrf.mxu0  ;;  %v5153_v8 = vpop.f32.mrf.mxu1  ;;  %8794 = vmatmul.mubr.msk.bf16.vlgmr.msra.gmra.mxu1 %vm449_vm13, %v6638_v49 }
 0x4cf   : > { %v12404_v17 = vadd.f32 %v5153_v8, %v4943_v5  ;;  %8797 = vmatprep.mubr.msk.bf16.mxu1 %vm9324_vm12, %v12838_v4 }
 0x4d0   : > { %v8472_v20 = vpop.f32.mrf.mxu0  ;;  %v8511_v21 = vpop.f32.mrf.mxu1 }
 0x4d2   : > { %v4951_v31 = vpop.f32.mrf.mxu0  ;;  %v5156_v23 = vpop.f32.mrf.mxu1  ;;  %8778 = vmatmul.mubr.msk.bf16.gmra.mxu0 %vm449_vm13, %v6617_v15 }
 0x4d3   : > { %v12414_v47 = vadd.f32 %v5156_v23, %v4946_v42  ;;  %8781 = vmatprep.mubr.msk.bf16.mxu0 %vm9324_vm12, %v12838_v4 }
 0x4d4   : > { %v8475_v43 = vpop.f32.mrf.mxu0  ;;  %v8512_v62 = vpop.f32.mrf.mxu1 }
 0x4d6   : > { %v4954_v46 = vpop.f32.mrf.mxu0  ;;  %v5161_v34 = vpop.f32.mrf.mxu1  ;;  %8798 = vmatmul.mubr.msk.bf16.gmra.mxu1 %vm449_vm13, %v6637_v28 }
 0x4d7   : > { %v12419_v32 = vadd.f32 %v5161_v34, %v4951_v31 }
 0x4d8   : > { %v8476_v57 = vpop.f32.mrf.mxu0  ;;  %v8515_v48 = vpop.f32.mrf.mxu1 }
 0x4da   : > { %v4959_v55 = vpop.f32.mrf.mxu0  ;;  %v5164_v7 = vpop.f32.mrf.mxu1  ;;  %8782 = vmatmul.mubr.msk.bf16.gmra.mxu0 %vm449_vm13, %v6621_v1 }
 0x4db   : > { %v12427_v22 = vadd.f32 %v5164_v7, %v4954_v46  ;;  %8785 = vmatprep.mubr.msk.bf16.mxu0 %vm9324_vm12, %v12838_v4 }
 0x4dc   : > { %v8479_v11 = vpop.f32.mrf.mxu0  ;;  %v8516_v35 = vpop.f32.mrf.mxu1 }
 0x4de   : > { %v4962_v37 = vpop.f32.mrf.mxu0  ;;  %v5169_v19 = vpop.f32.mrf.mxu1 }
 0x4df   : > { %v12431_v16 = vadd.f32 %v5169_v19, %v4959_v55 }
 0x4e0   : > { %v8480_v41 = vpop.f32.mrf.mxu0  ;;  %v8519_v53 = vpop.f32.mrf.mxu1 }
 0x4e2   : > { %v5172_v24 = vpop.f32.mrf.mxu1  ;;  %v5320_v44 = vpop.f32.mrf.mxu0  ;;  %8786 = vmatmul.mubr.msk.bf16.gmra.mxu0 %vm449_vm13, %v6625_v56 }
 0x4e3   : > { %v5374_v27 = vadd.f32 %v5320_v44, %v12334_v51  ;;  %8789 = vmatprep.mubr.msk.bf16.mxu0 %vm9324_vm12, %v12838_v4  ;;  %vm7236_vm12 = vcmask 523264  }
 0x4e4   : > { %v8520_v45 = vpop.f32.mrf.mxu1  ;;  %v8535_v2 = vpop.f32.mrf.mxu0 }
 0x4e6   : > { %v5323_v61 = vpop.f32.mrf.mxu0  ;;  %v5602_v25 = vpop.f32.mrf.mxu1 }
 0x4e7   : > { %v5375_v60 = vadd.f32 %v5323_v61, %v12346_v6  ;;  %v12439_v10 = vadd.f32 %v5602_v25, %v5374_v27 }
 0x4e8   : > { %v8536_v28 = vpop.f32.mrf.mxu0  ;;  %v8575_v54 = vpop.f32.mrf.mxu1 }
 0x4ea   : > { %v5328_v40 = vpop.f32.mrf.mxu0  ;;  %v5605_v5 = vpop.f32.mrf.mxu1  ;;  %8790 = vmatmul.mubr.msk.bf16.gmra.mxu0 %vm449_vm13, %v6629_v30 }
 0x4eb   : > { %v5376_v51 = vadd.f32 %v5328_v40, %v12353_v58  ;;  %v12445_v4 = vadd.f32 %v5605_v5, %v5375_v60 }
 0x4ec   : > { %v8539_v13 = vpop.f32.mrf.mxu0  ;;  %v8576_v26 = vpop.f32.mrf.mxu1 }
 0x4ee   : > { %v5331_v59 = vpop.f32.mrf.mxu0  ;;  %v5610_v49 = vpop.f32.mrf.mxu1 }
 0x4ef   : > { %v5377_v6 = vadd.f32 %v5331_v59, %v12361_v29  ;;  %v12448_v3 = vadd.f32 %v5610_v49, %v5376_v51 }
 0x4f0   : > { %v8540_v42 = vpop.f32.mrf.mxu0  ;;  %v8579_v8 = vpop.f32.mrf.mxu1 }
 0x4f2   : > { %v5336_v20 = vpop.f32.mrf.mxu0  ;;  %v5613_v14 = vpop.f32.mrf.mxu1 }
 0x4f3   : > { %v5378_v21 = vadd.f32 %v5336_v20, %v12367_v9  ;;  %v12451_v15 = vadd.f32 %v5613_v14, %v5377_v6 }
 0x4f4   : > { %v8543_v52 = vpop.f32.mrf.mxu0  ;;  %v8580_v58 = vpop.f32.mrf.mxu1 }
 0x4f6   : > { %v5339_v63 = vpop.f32.mrf.mxu0  ;;  %v5618_v31 = vpop.f32.mrf.mxu1 }
 0x4f7   : > { %v5379_v23 = vadd.f32 %v5339_v63, %v12378_v18  ;;  %v12454_v43 = vadd.f32 %v5618_v31, %v5378_v21 }
 0x4f8   : > { %v8544_v62 = vpop.f32.mrf.mxu0  ;;  %v8583_v29 = vpop.f32.mrf.mxu1 }
 0x4fa   : > { %v5344_v38 = vpop.f32.mrf.mxu0  ;;  %v5621_v46 = vpop.f32.mrf.mxu1 }
 0x4fb   : > { %v5380_v34 = vadd.f32 %v5344_v38, %v12385_v0  ;;  %v12457_v57 = vadd.f32 %v5621_v46, %v5379_v23 }
 0x4fc   : > { %v8547_v48 = vpop.f32.mrf.mxu0  ;;  %v8584_v9 = vpop.f32.mrf.mxu1 }
 0x4fe   : > { %v5347_v1 = vpop.f32.mrf.mxu0  ;;  %v5626_v39 = vpop.f32.mrf.mxu1 }
 0x4ff   : > { %v5381_v50 = vadd.f32 %v5347_v1, %v12397_v12  ;;  %v12460_v55 = vadd.f32 %v5626_v39, %v5380_v34 }
 0x500   : > { %v8548_v7 = vpop.f32.mrf.mxu0  ;;  %v8587_v18 = vpop.f32.mrf.mxu1 }
 0x502   : > { %v5352_v11 = vpop.f32.mrf.mxu0  ;;  %v5629_v35 = vpop.f32.mrf.mxu1 }
 0x503   : > { %v5382_v33 = vadd.f32 %v5352_v11, %v12404_v17  ;;  %v12463_v37 = vadd.f32 %v5629_v35, %v5381_v50 }
 0x504   : > { %v8551_v19 = vpop.f32.mrf.mxu0  ;;  %v8588_v0 = vpop.f32.mrf.mxu1 }
 0x506   : > { %v5355_v41 = vpop.f32.mrf.mxu0  ;;  %v5634_v53 = vpop.f32.mrf.mxu1 }
 0x507   : > { %v5383_v56 = vadd.f32 %v5355_v41, %v12414_v47  ;;  %v12466_v24 = vadd.f32 %v5634_v53, %v5382_v33 }
 0x508   : > { %v8552_v44 = vpop.f32.mrf.mxu0  ;;  %v8591_v12 = vpop.f32.mrf.mxu1 }
 0x50a   : > { %v5360_v27 = vpop.f32.mrf.mxu0  ;;  %v5637_v45 = vpop.f32.mrf.mxu1 }
 0x50b   : > { %v5384_v2 = vadd.f32 %v5360_v27, %v12419_v32  ;;  %v12469_v61 = vadd.f32 %v5637_v45, %v5383_v56 }
 0x50c   : > { %v8555_v25 = vpop.f32.mrf.mxu0  ;;  %v8592_v17 = vpop.f32.mrf.mxu1 }
 0x50e   : > { %v5363_v60 = vpop.f32.mrf.mxu0  ;;  %v5642_v28 = vpop.f32.mrf.mxu1 }
 0x50f   : > { %v5385_v54 = vadd.f32 %v5363_v60, %v12427_v22  ;;  %v12472_v30 = vadd.f32 %v5642_v28, %v5384_v2 }
 0x510   : > { %v8556_v40 = vpop.f32.mrf.mxu0  ;;  %v8595_v47 = vpop.f32.mrf.mxu1 }
 0x512   : > { %v5368_v5 = vpop.f32.mrf.mxu0  ;;  %v5645_v51 = vpop.f32.mrf.mxu1 }
 0x513   : > { %v5386_v13 = vadd.f32 %v5368_v5, %v12431_v16  ;;  %v12475_v26 = vadd.f32 %v5645_v51, %v5385_v54 }
 0x514   : > { %v8559_v59 = vpop.f32.mrf.mxu0  ;;  %v8596_v32 = vpop.f32.mrf.mxu1 }
 0x516   : > { %v5371_v49 = vpop.f32.mrf.mxu0  ;;  %v5650_v6 = vpop.f32.mrf.mxu1 }
 0x517   : > { %v12477_v42 = vadd.f32 %v5650_v6, %v5386_v13 }
 0x518   : > { %v8560_v8 = vpop.f32.mrf.mxu0  ;;  %v8599_v20 = vpop.f32.mrf.mxu1 }
 0x51a   : > { %v5653_v14 = vpop.f32.mrf.mxu1  ;;  %v5780_v22 = vpop.f32.mrf.mxu0 }
 0x51b   : > { %v5834_v21 = vadd.f32 %v5780_v22, %v12439_v10 }
 0x51c   : > { %v8600_v52 = vpop.f32.mrf.mxu1  ;;  %v8615_v58 = vpop.f32.mrf.mxu0 }
 0x51e   : > { %v5783_v63 = vpop.f32.mrf.mxu0  ;;  %v6055_v31 = vpop.f32.mrf.mxu1 }
 0x51f   : > { %v5835_v16 = vadd.f32 %v5783_v63, %v12445_v4  ;;  %v12481_v23 = vadd.f32 %v6055_v31, %v5834_v21 }
 0x520   : > { %v8616_v62 = vpop.f32.mrf.mxu0  ;;  %v8655_v29 = vpop.f32.mrf.mxu1 }
 0x522   : > { %v5788_v38 = vpop.f32.mrf.mxu0  ;;  %v6058_v46 = vpop.f32.mrf.mxu1 }
 0x523   : > { %v5836_v34 = vadd.f32 %v5788_v38, %v12448_v3  ;;  %v12484_v48 = vadd.f32 %v6058_v46, %v5835_v16 }
 0x524   : > { %v8619_v9 = vpop.f32.mrf.mxu0  ;;  %v8656_v1 = vpop.f32.mrf.mxu1 }
 0x526   : > { %v5791_v39 = vpop.f32.mrf.mxu0  ;;  %v6063_v10 = vpop.f32.mrf.mxu1 }
 0x527   : > { %v5837_v50 = vadd.f32 %v5791_v39, %v12451_v15  ;;  %v12487_v7 = vadd.f32 %v6063_v10, %v5836_v34 }
 0x528   : > { %v8620_v18 = vpop.f32.mrf.mxu0  ;;  %v8659_v4 = vpop.f32.mrf.mxu1 }
 0x52a   : > { %v5796_v11 = vpop.f32.mrf.mxu0  ;;  %v6066_v35 = vpop.f32.mrf.mxu1 }
 0x52b   : > { %v5838_v33 = vadd.f32 %v5796_v11, %v12454_v43  ;;  %v12490_v19 = vadd.f32 %v6066_v35, %v5837_v50 }
 0x52c   : > { %v8623_v0 = vpop.f32.mrf.mxu0  ;;  %v8660_v3 = vpop.f32.mrf.mxu1 }
 0x52e   : > { %v5799_v41 = vpop.f32.mrf.mxu0  ;;  %v6071_v53 = vpop.f32.mrf.mxu1 }
 0x52f   : > { %v5839_v56 = vadd.f32 %v5799_v41, %v12457_v57  ;;  %v12493_v44 = vadd.f32 %v6071_v53, %v5838_v33 }
 0x530   : > { %v8624_v12 = vpop.f32.mrf.mxu0  ;;  %v8663_v15 = vpop.f32.mrf.mxu1 }
 0x532   : > { %v5804_v27 = vpop.f32.mrf.mxu0  ;;  %v6074_v45 = vpop.f32.mrf.mxu1 }
 0x533   : > { %v5840_v2 = vadd.f32 %v5804_v27, %v12460_v55  ;;  %v12496_v25 = vadd.f32 %v6074_v45, %v5839_v56 }
 0x534   : > { %v8627_v17 = vpop.f32.mrf.mxu0  ;;  %v8664_v43 = vpop.f32.mrf.mxu1 }
 0x536   : > { %v5807_v60 = vpop.f32.mrf.mxu0  ;;  %v6079_v28 = vpop.f32.mrf.mxu1 }
 0x537   : > { %v5841_v54 = vadd.f32 %v5807_v60, %v12463_v37  ;;  %v12499_v40 = vadd.f32 %v6079_v28, %v5840_v2 }
 0x538   : > { %v8628_v47 = vpop.f32.mrf.mxu0  ;;  %v8667_v57 = vpop.f32.mrf.mxu1 }
 0x53a   : > { %v5812_v5 = vpop.f32.mrf.mxu0  ;;  %v6082_v51 = vpop.f32.mrf.mxu1 }
 0x53b   : > { %v5842_v13 = vadd.f32 %v5812_v5, %v12466_v24  ;;  %v12502_v59 = vadd.f32 %v6082_v51, %v5841_v54 }
 0x53c   : > { %v8631_v32 = vpop.f32.mrf.mxu0  ;;  %v8668_v55 = vpop.f32.mrf.mxu1 }
 0x53e   : > { %v5815_v49 = vpop.f32.mrf.mxu0  ;;  %v6087_v6 = vpop.f32.mrf.mxu1 }
 0x53f   : > { %v5843_v8 = vadd.f32 %v5815_v49, %v12469_v61  ;;  %v12505_v20 = vadd.f32 %v6087_v6, %v5842_v13 }
 0x540   : > { %v8632_v14 = vpop.f32.mrf.mxu0  ;;  %v8671_v37 = vpop.f32.mrf.mxu1 }
 0x542   : > { %v5820_v22 = vpop.f32.mrf.mxu0  ;;  %v6090_v21 = vpop.f32.mrf.mxu1 }
 0x543   : > { %v5844_v52 = vadd.f32 %v5820_v22, %v12472_v30  ;;  %v12508_v58 = vadd.f32 %v6090_v21, %v5843_v8 }
 0x544   : > { %v8635_v63 = vpop.f32.mrf.mxu0  ;;  %v8672_v24 = vpop.f32.mrf.mxu1 }
 0x546   : > { %v5823_v31 = vpop.f32.mrf.mxu0  ;;  %v6095_v16 = vpop.f32.mrf.mxu1 }
 0x547   : > { %v5845_v62 = vadd.f32 %v5823_v31, %v12475_v26  ;;  %v12511_v29 = vadd.f32 %v6095_v16, %v5844_v52 }
 0x548   : > { %v8636_v38 = vpop.f32.mrf.mxu0  ;;  %v8675_v61 = vpop.f32.mrf.mxu1 }
 0x54a   : > { %v5828_v46 = vpop.f32.mrf.mxu0  ;;  %v6098_v34 = vpop.f32.mrf.mxu1 }
 0x54b   : > { %v5846_v9 = vadd.f32 %v5828_v46, %v12477_v42  ;;  %v12514_v1 = vadd.f32 %v6098_v34, %v5845_v62 }
 0x54c   : > { %v8639_v39 = vpop.f32.mrf.mxu0  ;;  %v8676_v30 = vpop.f32.mrf.mxu1 }
 0x54e   : > { %v5831_v10 = vpop.f32.mrf.mxu0  ;;  %v6103_v50 = vpop.f32.mrf.mxu1 }
 0x54f   : > { %v12516_v18 = vadd.f32 %v6103_v50, %v5846_v9 }
 0x550   : > { %v8640_v4 = vpop.f32.mrf.mxu0  ;;  %v8679_v11 = vpop.f32.mrf.mxu1 }
 0x552   : > { %v6106_v35 = vpop.f32.mrf.mxu1  ;;  %v6330_v26 = vpop.f32.mrf.mxu0 }
 0x553   : > { %v6849_v35 = vld [vmem:[#allocation4 + $0x65] sm:$0xff] }
 0x554   : > { %v8680_v33 = vpop.f32.mrf.mxu1  ;;  %v8695_v0 = vpop.f32.mrf.mxu0 }
 0x555   : > { %v6862_v33 = vld [vmem:[#allocation4 + $0x66] sm:$0xff] }
 0x556   : > { %v6333_v3 = vpop.f32.mrf.mxu0  ;;  %v6518_v41 = vpop.f32.mrf.mxu1 }
 0x558   : > { %v8696_v53 = vpop.f32.mrf.mxu0  ;;  %v8735_v56 = vpop.f32.mrf.mxu1 }
 0x559   : > { %v6875_v56 = vadd.f32 %v6862_v33, %v6849_v35 }
 0x55a   : > { %v12518_v12 = vpop.f32.mrf.mxu0  ;;  %v12520_v42 = vpop.f32.mrf.mxu1 }
 0x55c   : > { %v8699_v15 = vpop.f32.mrf.mxu0  ;;  %v8736_v27 = vpop.f32.mrf.mxu1 }
 0x55e   : > { %v12522_v45 = vpop.f32.mrf.mxu0  ;;  %v12524_v2 = vpop.f32.mrf.mxu1 }
 0x560   : > { %v8700_v17 = vpop.f32.mrf.mxu0  ;;  %v8739_v43 = vpop.f32.mrf.mxu1 }
 0x561   : > { %v6384_v17 = vadd.f32 %v6330_v26, %v12481_v23 }
 0x562   : > { %v12526_v60 = vpop.f32.mrf.mxu0  ;;  %v12528_v28 = vpop.f32.mrf.mxu1 }
 0x564   : > { %v8703_v54 = vpop.f32.mrf.mxu0  ;;  %v8740_v47 = vpop.f32.mrf.mxu1 }
 0x565   : > { %v6572_v47 = vadd.f32 %v6518_v41, %v6384_v17 }
 0x566   : > { %v12530_v57 = vpop.f32.mrf.mxu0  ;;  %v12532_v5 = vpop.f32.mrf.mxu1 }
 0x568   : > { %v8704_v51 = vpop.f32.mrf.mxu0  ;;  %v8743_v13 = vpop.f32.mrf.mxu1 }
 0x569   : > { %v9309_v51 = vld [vmem:[#allocation4 + $0x67] sm:$0xff] }
 0x56a   : > { %v12534_v32 = vpop.f32.mrf.mxu0  ;;  %v12536_v55 = vpop.f32.mrf.mxu1  ;;  %v6901_v13 = vadd.f32 %v9309_v51, %v6875_v56 }
 0x56c   : > { %v8707_v49 = vpop.f32.mrf.mxu0  ;;  %v8744_v6 = vpop.f32.mrf.mxu1 }
 0x56e   : > { %v12538_v8 = vpop.f32.mrf.mxu0  ;;  %v12540_v14 = vpop.f32.mrf.mxu1 }
 0x570   : > { %v8708_v37 = vpop.f32.mrf.mxu0  ;;  %v8747_v22 = vpop.f32.mrf.mxu1 }
 0x571   : > { %v6902_v37 = vld [vmem:[#allocation4 + $0x6f] sm:$0xff]  ;;  %v6385_v22 = vadd.f32 %v6333_v3, %v12484_v48 }
 0x572   : > { %v12542_v21 = vpop.f32.mrf.mxu0  ;;  %v12544_v52 = vpop.f32.mrf.mxu1 }
 0x573   : > { %v6573_v26 = vadd.f32 %v12520_v42, %v6385_v22 }
 0x574   : > { %v8711_v63 = vpop.f32.mrf.mxu0  ;;  %v8748_v24 = vpop.f32.mrf.mxu1 }
 0x576   : > { %v12546_v31 = vpop.f32.mrf.mxu0  ;;  %v12548_v16 = vpop.f32.mrf.mxu1 }
 0x578   : > { %v8712_v62 = vpop.f32.mrf.mxu0  ;;  %v8751_v38 = vpop.f32.mrf.mxu1 }
 0x579   : > { %v12558_v62 = vld [vmem:[%s12703_s8] ss:$0 sm:$0xff] }
 0x57a   : > { %v6370_v61 = vpop.f32.mrf.mxu0  ;;  %v12550_v46 = vpop.f32.mrf.mxu1 }
 0x57b   : > { %v6394_v63 = vadd.f32 %v6370_v61, %v12511_v29 }
 0x57c   : > { %v8715_v34 = vpop.f32.mrf.mxu0  ;;  %v8752_v9 = vpop.f32.mrf.mxu1 }
 0x57d   : > { %v6915_v34 = vadd.f32 %v6902_v37, %v6901_v13  ;;  %v6386_v9 = vadd.f32 %v12518_v12, %v12487_v7  ;;  %v6387_v7 = vadd.f32 %v12522_v45, %v12490_v19  ;;  %v9310_v37 = vld [vmem:[#allocation4 + $0x71] sm:$0xff] }
 0x57e   : > { %v6373_v39 = vpop.f32.mrf.mxu0  ;;  %v6558_v30 = vpop.f32.mrf.mxu1 }
 0x57f   : > { %v6582_v41 = vadd.f32 %v6558_v30, %v6394_v63  ;;  %v6395_v48 = vadd.f32 %v6373_v39, %v12514_v1  ;;  %v6968_v63 = vld [vmem:[#allocation4 + $0x79] sm:$0xff] }
 0x580   : > { %v8716_v10 = vpop.f32.mrf.mxu0  ;;  %v8755_v50 = vpop.f32.mrf.mxu1 }
 0x582   : > { %v6378_v4 = vpop.f32.mrf.mxu0  ;;  %v6561_v11 = vpop.f32.mrf.mxu1 }
 0x583   : > { %v6583_v56 = vadd.f32 %v6561_v11, %v6395_v48  ;;  %v6396_v12 = vadd.f32 %v6378_v4, %v12516_v18  ;;  %v6388_v18 = vadd.f32 %v12526_v60, %v12493_v44 }
 0x584   : > { %v8719_v0 = vpop.f32.mrf.mxu0  ;;  %v8756_v53 = vpop.f32.mrf.mxu1 }
 0x585   : > { %v6928_v0 = vld [vmem:[#allocation4 + $0x70] sm:$0xff]  ;;  %v6574_v53 = vadd.f32 %v12524_v2, %v6386_v9  ;;  %v6575_v2 = vadd.f32 %v12528_v28, %v6387_v7 }
 0x586   : > { %v6381_v15 = vpop.f32.mrf.mxu0  ;;  %v6566_v27 = vpop.f32.mrf.mxu1  ;;  %v6941_v30 = vadd.f32 %v6928_v0, %v6915_v34 }
 0x587   : > { %v6584_v11 = vadd.f32 %v6566_v27, %v6396_v12  ;;  %v7020_v12 = vld [vmem:[#allocation4 + $0x7b] sm:$0xff] }
 0x588   : > { %v8720_v43 = vpop.f32.mrf.mxu0  ;;  %v8759_v54 = vpop.f32.mrf.mxu1  ;;  %v6967_v19 = vadd.f32 %v9310_v37, %v6941_v30 }
 0x58a   : > { %v6569_v49 = vpop.f32.mrf.mxu1  ;;  %v6730_v6 = vpop.f32.mrf.mxu0  ;;  %v6981_v9 = vadd.f32 %v6968_v63, %v6967_v19 }
 0x58b   : > { %v6784_v24 = vadd.f32 %v6730_v6, %v6572_v47 }
 0x58c   : > { %v8760_v38 = vpop.f32.mrf.mxu1  ;;  %v8775_v23 = vpop.f32.mrf.mxu0 }
 0x58d   : > { %v6804_v29 = vadd.f32 %v12558_v62, %v6784_v24 }
 0x58e   : > { %v6733_v10 = vpop.f32.mrf.mxu0  ;;  %v6770_v50 = vpop.f32.mrf.mxu1 }
 0x58f   : > { %v6785_v3 = vadd.f32 %v6733_v10, %v6573_v26  ;;  %v6794_v61 = vadd.f32 %v6770_v50, %v6582_v41  ;;  %v6817_v17 = vmax.f32 %v6804_v29, 0.0  ;;  %v6576_v41 = vadd.f32 %v12532_v5, %v6388_v18  ;;  %v6994_v29 = vld [vmem:[#allocation4 + $0x7a] sm:$0xff] }
 0x590   : > { %v8776_v35 = vpop.f32.mrf.mxu0  ;;  %v8795_v33 = vpop.f32.mrf.mxu1  ;;  %v6389_v10 = vadd.f32 %v12530_v57, %v12496_v25  ;;  %v7007_v30 = vadd.f32 %v6994_v29, %v6981_v9  ;;  %v6390_v25 = vadd.f32 %v12534_v32, %v12499_v40 }
 0x591   : > { %v6805_v42 = vadd.f32 %v12558_v62, %v6785_v3  ;;  %v6814_v1 = vadd.f32 %v12558_v62, %v6794_v61 }
 0x592   : > { %v6738_v39 = vpop.f32.mrf.mxu0  ;;  %v6773_v15 = vpop.f32.mrf.mxu1 }
 0x593   : > { %v6818_v43 = vmax.f32 %v6805_v42, 0.0  ;;  %v6786_v54 = vadd.f32 %v6738_v39, %v6574_v53  ;;  %v6795_v47 = vadd.f32 %v6773_v15, %v6583_v56  ;;  %v6827_v45 = vmax.f32 %v6814_v1, 0.0 }
 0x594   : > { %v8779_v51 = vpop.f32.mrf.mxu0  ;;  %v8796_v13 = vpop.f32.mrf.mxu1  ;;  %v6577_v53 = vadd.f32 %v12536_v55, %v6389_v10  ;;  %v6578_v15 = vadd.f32 %v12540_v14, %v6390_v25  ;;  %v6392_v14 = vadd.f32 %v12542_v21, %v12505_v20 }
 0x595   : > { %v6815_v49 = vadd.f32 %v12558_v62, %v6795_v47  ;;  %v6830_v6 = vpack.c.bf16 %v6818_v43, %v6817_v17  ;;  %v6806_v24 = vadd.f32 %v12558_v62, %v6786_v54  ;;  %v7097_v17 = vpop.permute.xlu1 %7096  ;;  %v7033_v43 = vadd.f32 %v7020_v12, %v7007_v30 }
 0x596   : > { %v6741_v4 = vpop.f32.mrf.mxu0  ;;  %v6778_v22 = vpop.f32.mrf.mxu1  ;;  %v6391_v47 = vadd.f32 %v12538_v8, %v12502_v59  ;;  %v9311_v59 = vld [vmem:[%s12704_s9] ss:$0 sm:$0xff] }
 0x597   : > { %v6828_v38 = vmax.f32 %v6815_v49, 0.0  ;;  %v6787_v23 = vadd.f32 %v6741_v4, %v6575_v2  ;;  %v6796_v26 = vadd.f32 %v6778_v22, %v6584_v11  ;;  %7180 = vrot.lane.b32.xlu1 %v6830_v6, %s9326_s28  ;;  %v6819_v3 = vmax.f32 %v6806_v24, 0.0 }
 0x598   : > { %v8780_v28 = vpop.f32.mrf.mxu0  ;;  %v8799_v27 = vpop.f32.mrf.mxu1  ;;  %v7111_v2 = vmul.f32 %v7097_v17, %v7033_v43  ;;  %v6579_v11 = vadd.f32 %v12544_v52, %v6391_v47  ;;  %v6393_v22 = vadd.f32 %v12546_v31, %v12508_v58  ;;  %v12985_v17 = vld [vmem:[#allocation35_spill] sm:$0xff] }
 0x599   : > { %v6807_v34 = vadd.f32 %v12558_v62, %v6787_v23  ;;  %v6816_v44 = vadd.f32 %v12558_v62, %v6796_v26  ;;  %v6835_v60 = vpack.c.bf16 %v6828_v38, %v6827_v45  ;;  %v6580_v45 = vadd.f32 %v12548_v16, %v6392_v14  ;;  %v7162_v9 = vpop.permute.xlu1 %7161 }
 0x59a   : > { %v6746_v50 = vpop.f32.mrf.mxu0  ;;  %v6781_v48 = vpop.f32.mrf.mxu1  ;;  %v7131_v8 = vadd.f32 %v9311_v59, %v7111_v2  ;;  %v6581_v23 = vadd.f32 %v12550_v46, %v6393_v22 }
 0x59b   : > { %v6820_v61 = vmax.f32 %v6807_v34, 0.0  ;;  %v6829_v35 = vmax.f32 %v6816_v44, 0.0  ;;  %v6788_v33 = vadd.f32 %v6746_v50, %v6576_v41  ;;  %7190 = vrot.lane.b32.xlu0 %v6835_v60, %s9326_s28  ;;  %v7160_v46 = vpop.permute.xlu0 %7159 }
 0x59c   : > { %v8783_v0 = vpop.f32.mrf.mxu0  ;;  %v8800_v5 = vpop.f32.mrf.mxu1  ;;  %v7144_v38 = vmax.f32 %v7131_v8, 0.0 }
 0x59d   : > { %v6836_v56 = vpack.c.bf16 %v6829_v35, %v6829_v35  ;;  %v6831_v42 = vpack.c.bf16 %v6820_v61, %v6819_v3  ;;  %v6808_v57 = vadd.f32 %v12558_v62, %v6788_v33  ;;  %v12613_v50 = vpop.permute.xlu1 %7165  ;;  %v9312_v0 = vld [vmem:[%s12697_s2] ss:$0 sm:$0xff] }
 0x59e   : > { %v6749_v7 = vpop.f32.mrf.mxu0  ;;  %v7151_v34 = vpack.c.bf16 %v7144_v38, %v7144_v38 }
 0x59f   : > { %v6789_v1 = vadd.f32 %v6749_v7, %v6577_v53  ;;  %7192 = vrot.lane.b32.xlu1 %v6836_v56, %s9326_s28  ;;  %7182 = vrot.lane.b32.xlu0 %v6831_v42, %s9326_s28  ;;  %v6821_v51 = vmax.f32 %v6808_v57, 0.0  ;;  %v7164_v10 = vpop.permute.xlu0 %7163  ;;  %v12983_v42 = vld [vmem:[#allocation9_spill] sm:$0xff] }
 0x5a0   : > { %v8784_v39 = vpop.f32.mrf.mxu0  ;;  %v7217_v30 = vsel %vm449_vm13, %v12983_v42, %v7160_v46 }
 0x5a1   : > { %v6809_v55 = vadd.f32 %v12558_v62, %v6789_v1  ;;  %v7170_v29 = vpop.permute.xlu1 %7169 }
 0x5a2   : > { %v6754_v54 = vpop.f32.mrf.mxu0  ;;  %v7232_v43 = vsel %vm449_vm13, %v12985_v17, %v7170_v29 }
 0x5a3   : > { %v6822_v40 = vmax.f32 %v6809_v55, 0.0  ;;  %v6790_v32 = vadd.f32 %v6754_v54, %v6578_v15  ;;  %v12615_v48 = vpop.permute.xlu0 %7167 }
 0x5a4   : > { %v8787_v13 = vpop.f32.mrf.mxu0 }
 0x5a5   : > { %v6832_v49 = vpack.c.bf16 %v6822_v40, %v6821_v51  ;;  %v6810_v37 = vadd.f32 %v12558_v62, %v6790_v32  ;;  %v7204_v61 = vpop.permute.xlu1 %7203  ;;  %v12986_v32 = vld [vmem:[#allocation14_spill] sm:$0xff] }
 0x5a6   : > { %v6757_v6 = vpop.f32.mrf.mxu0  ;;  %v7220_v13 = vsel %vm449_vm13, %v12986_v32, %v7162_v9 }
 0x5a7   : > { %v6791_v19 = vadd.f32 %v6757_v6, %v6579_v11  ;;  %7184 = vrot.lane.b32.xlu1 %v6832_v49, %s9326_s28  ;;  %v6823_v20 = vmax.f32 %v6810_v37, 0.0 }
 0x5a8   : > { %v8788_v18 = vpop.f32.mrf.mxu0 }
 0x5a9   : > { %v6811_v52 = vadd.f32 %v12558_v62, %v6791_v19  ;;  %v7208_v33 = vpop.permute.xlu1 %7207 }
 0x5aa   : > { %v6762_v4 = vpop.f32.mrf.mxu0 }
 0x5ab   : > { %v6824_v21 = vmax.f32 %v6811_v52, 0.0  ;;  %v6792_v63 = vadd.f32 %v6762_v4, %v6580_v45  ;;  %v12988_v4 = vld [vmem:[#allocation19_spill] sm:$0xff] }
 0x5ac   : > { %v8791_v24 = vpop.f32.mrf.mxu0  ;;  %v7223_v22 = vsel %vm449_vm13, %v12988_v4, %v7164_v10 }
 0x5ad   : > { %v6833_v26 = vpack.c.bf16 %v6824_v21, %v6823_v20  ;;  %v6812_v27 = vadd.f32 %v12558_v62, %v6792_v63 }
 0x5ae   : > { %v6765_v28 = vpop.f32.mrf.mxu0 }
 0x5af   : > { %v6793_v41 = vadd.f32 %v6765_v28, %v6581_v23  ;;  %7186 = vrot.lane.b32.xlu0 %v6833_v26, %s9326_s28  ;;  %v6825_v60 = vmax.f32 %v6812_v27, 0.0  ;;  %v12990_v28 = vld [vmem:[#allocation24_spill] sm:$0xff] }
 0x5b0   : > { %v8792_v16 = vpop.f32.mrf.mxu0  ;;  %v7226_v27 = vsel %vm449_vm13, %v12990_v28, %v12613_v50 }
 0x5b1   : > { %v6813_v44 = vadd.f32 %v12558_v62, %v6793_v41  ;;  %v7172_v62 = vpop.permute.xlu0 %7171 }
 0x5b3   : > { %v6826_v58 = vmax.f32 %v6813_v44, 0.0  ;;  %7213 = vrot.lane.b32.xlu0 %v7151_v34, %s9325_s14 }
 0x5b5   : > { %v6834_v31 = vpack.c.bf16 %v6826_v58, %v6825_v60  ;;  %v7202_v3 = vpop.permute.xlu0 %7201 }
 0x5b7   : > { %7188 = vrot.lane.b32.xlu1 %v6834_v31, %s9326_s28 }
 0x5b9   : > { %v7206_v35 = vpop.permute.xlu0 %7205 }
 0x5bb   : > { %7211 = vrot.lane.b32.xlu1 %v12143_v36, %s9325_s14  ;;  %v12982_v36 = vld [vmem:[#allocation34_spill] sm:$0xff] }
 0x5bc   : > { %v1438_v5 = vadd.f32 %v9312_v0, %v12982_v36 }
 0x5bd   : > { %v12621_v53 = vpop.permute.xlu0 %7209 }
 0x5be   : > { %v1451_v15 = vmax.f32 %v1438_v5, 0.0 }
 0x5c0   : > { %v1458_v40 = vpack.c.bf16 %v1451_v15, %v1451_v15 }
 0x5c2   : > { %v7235_v49 = vsel %vm449_vm13, %v1458_v40, %v7172_v62 }
 0x609   : > { %v7181_v56 = vpop.permute.xlu1 %7180 }
 0x60a   : > { %v7238_v7 = vsel %vm7236_vm12, %v7160_v46, %v7181_v56  ;;  %v7252_v12 = vsel %vm12984_vm7, %v7181_v56, %v7202_v3 }
 0x60b   : > { %v8153_v25 = vcombine.low %v7217_v30, %v7238_v7  ;;  %v8154_v57 = vcombine.low %v7252_v12, %v7252_v12  ;;  %v8155_v1 = vcombine.high %v7217_v30, %v7238_v7  ;;  %v8156_v39 = vcombine.high %v7252_v12, %v7252_v12 }
 0x60d   : > { %7377 = vst [vmem:[%s12630_s21] sm:$0xff] %v8153_v25  ;;  %7378 = vst [vmem:[%s12630_s21 + $0x8] sm:$0xf] %v8154_v57  ;;  %v12638_v55 = vpop.permute.xlu0 %7190 }
 0x60e   : > { %7379 = vst [vmem:[%s12630_s21 + $0xc] sm:$0xff] %v8155_v1  ;;  %7380 = vst [vmem:[%s12630_s21 + $0x14] sm:$0xf] %v8156_v39  ;;  %v7248_v54 = vsel %vm7236_vm12, %v7170_v29, %v12638_v55 }
 0x60f   : > { %v8173_v47 = vcombine.low %v7232_v43, %v7248_v54  ;;  %v8175_v51 = vcombine.high %v7232_v43, %v7248_v54 }
 0x611   : > { %7397 = vst [vmem:[%s12630_s21 + $0x78] sm:$0xff] %v8173_v47  ;;  %7399 = vst [vmem:[%s12630_s21 + $0x84] sm:$0xff] %v8175_v51  ;;  %v7193_v2 = vpop.permute.xlu1 %7192  ;;  %v7183_v11 = vpop.permute.xlu0 %7182 }
 0x612   : > { %v7250_v6 = vsel %vm7236_vm12, %v7172_v62, %v7193_v2  ;;  %v7240_v14 = vsel %vm7236_vm12, %v7162_v9, %v7183_v11  ;;  %v7254_v37 = vsel %vm12987_vm8, %v7183_v11, %v7204_v61 }
 0x613   : > { %v8177_v19 = vcombine.low %v7235_v49, %v7250_v6  ;;  %v8157_v18 = vcombine.low %v7220_v13, %v7240_v14  ;;  %v8158_v59 = vcombine.low %v7254_v37, %v7254_v37  ;;  %v8159_v8 = vcombine.high %v7220_v13, %v7240_v14 }
 0x614   : > { %v8160_v45 = vcombine.high %v7254_v37, %v7254_v37 }
 0x615   : > { %7401 = vst [vmem:[%s12630_s21 + $0x90] sm:$0xff] %v8177_v19  ;;  %7381 = vst [vmem:[%s12630_s21 + $0x18] sm:$0xff] %v8157_v18 }
 0x616   : > { %7382 = vst [vmem:[%s12630_s21 + $0x20] sm:$0xf] %v8158_v59  ;;  %7383 = vst [vmem:[%s12630_s21 + $0x24] sm:$0xff] %v8159_v8 }
 0x617   : > { %7384 = vst [vmem:[%s12630_s21 + $0x2c] sm:$0xf] %v8160_v45 }
 0x619   : > { %v7185_v52 = vpop.permute.xlu1 %7184 }
 0x61a   : > { %v7242_v20 = vsel %vm7236_vm12, %v7164_v10, %v7185_v52  ;;  %v7256_v21 = vsel %vm12989_vm14, %v7185_v52, %v7206_v35 }
 0x61b   : > { %v8161_v63 = vcombine.low %v7223_v22, %v7242_v20  ;;  %v8162_v24 = vcombine.low %v7256_v21, %v7256_v21  ;;  %v8163_v38 = vcombine.high %v7223_v22, %v7242_v20  ;;  %v8164_v23 = vcombine.high %v7256_v21, %v7256_v21 }
 0x61d   : > { %7385 = vst [vmem:[%s12630_s21 + $0x30] sm:$0xff] %v8161_v63  ;;  %7386 = vst [vmem:[%s12630_s21 + $0x38] sm:$0xf] %v8162_v24 }
 0x61e   : > { %7387 = vst [vmem:[%s12630_s21 + $0x3c] sm:$0xff] %v8163_v38  ;;  %7388 = vst [vmem:[%s12630_s21 + $0x44] sm:$0xf] %v8164_v23 }
 0x621   : > { %v7187_v26 = vpop.permute.xlu0 %7186 }
 0x622   : > { %v7244_v41 = vsel %vm7236_vm12, %v12613_v50, %v7187_v26  ;;  %v7258_v16 = vsel %vm12991_vm15, %v7187_v26, %v7208_v33  ;;  %v12992_v50 = vld [vmem:[#allocation29_spill] sm:$0xff] }
 0x623   : > { %v8165_v34 = vcombine.low %v7226_v27, %v7244_v41  ;;  %v8166_v44 = vcombine.low %v7258_v16, %v7258_v16  ;;  %v8167_v60 = vcombine.high %v7226_v27, %v7244_v41  ;;  %v8168_v58 = vcombine.high %v7258_v16, %v7258_v16 }
 0x624   : > { %v7229_v29 = vsel %vm449_vm13, %v12992_v50, %v12615_v48 }
 0x625   : > { %7389 = vst [vmem:[%s12630_s21 + $0x48] sm:$0xff] %v8165_v34  ;;  %7390 = vst [vmem:[%s12630_s21 + $0x50] sm:$0xf] %v8166_v44  ;;  %v7214_v31 = vpop.permute.xlu0 %7213 }
 0x626   : > { %7391 = vst [vmem:[%s12630_s21 + $0x54] sm:$0xff] %v8167_v60  ;;  %7392 = vst [vmem:[%s12630_s21 + $0x5c] sm:$0xf] %v8168_v58  ;;  %v7264_v46 = vsel %vm12972_vm0, %v7193_v2, %v7214_v31 }
 0x627   : > { %v8178_v9 = vcombine.low %v7264_v46, %v7264_v46 }
 0x629   : > { %7402 = vst [vmem:[%s12630_s21 + $0x98] sm:$0xf] %v8178_v9  ;;  %v7189_v10 = vpop.permute.xlu1 %7188 }
 0x62a   : > { %v7246_v62 = vsel %vm7236_vm12, %v12615_v48, %v7189_v10  ;;  %v7260_v3 = vsel %vm12993_vm9, %v7189_v10, %v12621_v53 }
 0x62b   : > { %v8169_v61 = vcombine.low %v7229_v29, %v7246_v62  ;;  %v8170_v35 = vcombine.low %v7260_v3, %v7260_v3  ;;  %v8171_v33 = vcombine.high %v7229_v29, %v7246_v62  ;;  %v8172_v0 = vcombine.high %v7260_v3, %v7260_v3 }
 0x62d   : > { %7393 = vst [vmem:[%s12630_s21 + $0x60] sm:$0xff] %v8169_v61  ;;  %7394 = vst [vmem:[%s12630_s21 + $0x68] sm:$0xf] %v8170_v35  ;;  %v7212_v36 = vpop.permute.xlu1 %7211 }
 0x62e   : > { %7395 = vst [vmem:[%s12630_s21 + $0x6c] sm:$0xff] %v8171_v33  ;;  %7396 = vst [vmem:[%s12630_s21 + $0x74] sm:$0xf] %v8172_v0  ;;  %v7262_v5 = vsel %vm12994_vm1, %v12638_v55, %v7212_v36 }
 0x62f   : > { %v8174_v56 = vcombine.low %v7262_v5, %v7262_v5  ;;  %v8176_v42 = vcombine.high %v7262_v5, %v7262_v5 }
 0x631   : > { %7398 = vst [vmem:[%s12630_s21 + $0x80] sm:$0xf] %v8174_v56  ;;  %7400 = vst [vmem:[%s12630_s21 + $0x8c] sm:$0xf] %v8176_v42 }
 0x632 PF: > { %s21_s17 = sadd.s32 1, %s9319_s17  }
 0x633   : > { %p18_p4 = scmp.ge.s32.totalorder %s21_s17, 4  }
 0x635   :  { %20 = sbr.rel (!%p18_p4) target bundleno = 1 (0x1), region = 110 }

</bundles_post_ra>
